<compile_context>
chip_gen: v7x
topology: tpu7x:2x2x1
jax: 0.10.0
libtpu: 0.0.40
codegen_flags: <defaults>
</compile_context>

<pallas_src>
from functools import partial

import jax
import jax.numpy as jnp
from jax.experimental import pallas as pl
from jax.experimental.pallas import tpu as pltpu

LANE = 128

# ----------------------------- model config ---------------------------------
IMG = 32           # input image spatial size
C_IN = 3
C_STEM = 16        # stride-2 stem
C4 = 16            # feature_c4 channels, total stride 4
C5 = 32            # feature_c5 channels, total stride 8
NUM_ANCHORS = 3
NUM_PROPOSALS = 8
POOL = 4
HIDDEN = 64
NUM_CLASSES = 5
TAPS = 9           # 3x3 deformable kernel


def _pad_to(n, m):
    return ((n + m - 1) // m) * m


# ----------------------------------------------------------------------------
# In-kernel bilinear one-hot builder: (S,1),(S,1) coords -> (S, H*W) weights.
# Clip-to-edge corner gathers + whole-sample validity masking (matches v1/v2).
# ----------------------------------------------------------------------------
def _bilinear_onehot_block(y, x, S, H, W):
    HW = H * W
    lin = jax.lax.broadcasted_iota(jnp.int32, (S, HW), 1).astype(jnp.float32)
    y0 = jnp.floor(y)
    x0 = jnp.floor(x)
    wy1 = y - y0
    wx1 = x - x0
    wy0 = 1.0 - wy1
    wx0 = 1.0 - wx1

    def corner(yy, xx, wgt):
        yyc = jnp.clip(yy, 0.0, H - 1.0)
        xxc = jnp.clip(xx, 0.0, W - 1.0)
        hit = (lin == (yyc * W + xxc)).astype(jnp.float32)
        return wgt * hit

    m = (corner(y0, x0, wy0 * wx0) + corner(y0, x0 + 1.0, wy0 * wx1)
         + corner(y0 + 1.0, x0, wy1 * wx0) + corner(y0 + 1.0, x0 + 1.0, wy1 * wx1))
    valid = ((y > -1.0) & (y < H) & (x > -1.0) & (x < W)).astype(jnp.float32)
    return m * valid


# ----------------------------------------------------------------------------
# Kernel 1: fused (matmul + bias + optional ReLU). bf16 operands, f32 acc,
# lane-dense (pre-padded) output N. Used by stem / c4 / dcn-offset convs.
# ----------------------------------------------------------------------------
def _linear_kernel(a_ref, w_ref, b_ref, o_ref, *, relu):
    acc = jnp.dot(a_ref[...], w_ref[...], preferred_element_type=jnp.float32)
    acc = acc + b_ref[...]
    if relu:
        acc = jnp.maximum(acc, 0.0)
    o_ref[...] = acc


def pallas_linear(a_bf16, w_p, b_p, true_n, relu=False):
    """a: (M, K) bf16; w_p: (K, Npad) bf16 pre-padded; b_p: (1, Npad) f32."""
    M, K = a_bf16.shape
    Kw, npad = w_p.shape
    assert K == Kw
    Mp = _pad_to(M, 8)
    a_p = a_bf16 if Mp == M else jnp.pad(a_bf16, ((0, Mp - M), (0, 0)))
    flops = int(2 * M * K * true_n)
    bytes_accessed = int(2 * (M * K + K * true_n) + 4 * (true_n + M * true_n))
    out = pl.pallas_call(
        partial(_linear_kernel, relu=relu),
        out_shape=jax.ShapeDtypeStruct((Mp, npad), jnp.float32),
        grid=(1,),
        in_specs=[
            pl.BlockSpec((Mp, K), lambda i: (0, 0)),
            pl.BlockSpec((K, npad), lambda i: (0, 0)),
            pl.BlockSpec((1, npad), lambda i: (0, 0)),
        ],
        out_specs=pl.BlockSpec((Mp, npad), lambda i: (0, 0)),
        compiler_params=pltpu.CompilerParams(dimension_semantics=("arbitrary",)),
        cost_estimate=pl.CostEstimate(flops=flops, transcendentals=0,
                                      bytes_accessed=bytes_accessed),
    )(a_p, w_p, b_p)
    return out[:M, :true_n]


# ----------------------------------------------------------------------------
# Kernel 2: fused RPN head — 3x3 conv (as im2col matmul) chained with the
# 1x1 objectness|bbox head inside one pallas_call. Intermediate never hits HBM.
# ----------------------------------------------------------------------------
def _rpn_fused_kernel(a_ref, wc_ref, bc_ref, wh_ref, bh_ref, o_ref):
    h = jnp.dot(a_ref[...], wc_ref[...], preferred_element_type=jnp.float32)
    h = jnp.maximum(h + bc_ref[...], 0.0)
    head = jnp.dot(h.astype(jnp.bfloat16), wh_ref[...],
                   preferred_element_type=jnp.float32)
    o_ref[...] = head + bh_ref[...]


def rpn_head_fused(patches_bf16, wc, bc, wh, bh, true_n):
    M, K = patches_bf16.shape
    Mp = _pad_to(M, 8)
    a = patches_bf16 if Mp == M else jnp.pad(patches_bf16, ((0, Mp - M), (0, 0)))
    cmid = wc.shape[-1]
    npad = wh.shape[-1]
    flops = int(2 * M * (K * cmid + cmid * true_n))
    bytes_accessed = int(2 * (M * K + K * cmid + cmid * true_n)
                         + 4 * (cmid + true_n + M * true_n))
    out = pl.pallas_call(
        _rpn_fused_kernel,
        out_shape=jax.ShapeDtypeStruct((Mp, npad), jnp.float32),
        grid=(1,),
        in_specs=[
            pl.BlockSpec((Mp, K), lambda i: (0, 0)),
            pl.BlockSpec((K, cmid), lambda i: (0, 0)),
            pl.BlockSpec((1, cmid), lambda i: (0, 0)),
            pl.BlockSpec((cmid, npad), lambda i: (0, 0)),
            pl.BlockSpec((1, npad), lambda i: (0, 0)),
        ],
        out_specs=pl.BlockSpec((Mp, npad), lambda i: (0, 0)),
        compiler_params=pltpu.CompilerParams(dimension_semantics=("arbitrary",)),
        cost_estimate=pl.CostEstimate(flops=flops, transcendentals=0,
                                      bytes_accessed=bytes_accessed),
    )(a, wc, bc, wh, bh)
    return out[:M, :true_n]


# ----------------------------------------------------------------------------
# Kernel 3: fused deformable conv — in-kernel one-hot bilinear sampling
# (onehot @ x on the MXU) followed by the 9-tap weighted sum, one image per
# grid step ("parallel" batch axis). Sampled values never leave VMEM.
# Coords are tap-major: s = t*HoWo + p.
# ----------------------------------------------------------------------------
def _deform_conv_kernel(coords_ref, x_ref, w_ref, b_ref, o_ref,
                        *, H, W, C, HoWo, taps, relu):
    S = taps * HoWo
    coords = coords_ref[...]                                   # (S, 2)
    onehot = _bilinear_onehot_block(coords[:, 0:1], coords[:, 1:2], S, H, W)
    sampled = jnp.dot(onehot.astype(jnp.bfloat16), x_ref[...],
                      preferred_element_type=jnp.float32)      # (S, C)
    w_all = w_ref[...]                                         # (taps*C, Npad) bf16
    npad = o_ref.shape[-1]
    acc = jnp.zeros((HoWo, npad), jnp.float32)
    for t in range(taps):                                      # unrolled 9-tap sum
        st = sampled[t * HoWo:(t + 1) * HoWo, :].astype(jnp.bfloat16)
        acc = acc + jnp.dot(st, w_all[t * C:(t + 1) * C, :],
                            preferred_element_type=jnp.float32)
    out = acc + b_ref[...]
    if relu:
        out = jnp.maximum(out, 0.0)
    o_ref[...] = out


def deform_conv_fused(coords, x_flat_bf16, w_p, b_p, true_n,
                      *, H, W, C, HoWo, taps, relu=True):
    B = coords.shape[0]
    S = taps * HoWo
    npad = w_p.shape[-1]
    flops = int(2 * B * (S * H * W * C + HoWo * taps * C * true_n))
    bytes_accessed = int(4 * B * S * 2 + 2 * B * H * W * C
                         + 2 * taps * C * true_n + 4 * true_n
                         + 4 * B * HoWo * true_n)
    out = pl.pallas_call(
        partial(_deform_conv_kernel, H=H, W=W, C=C, HoWo=HoWo, taps=taps, relu=relu),
        out_shape=jax.ShapeDtypeStruct((B, HoWo, npad), jnp.float32),
        grid=(B,),
        in_specs=[
            pl.BlockSpec((None, S, 2), lambda i: (i, 0, 0)),
            pl.BlockSpec((None, H * W, C), lambda i: (i, 0, 0)),
            pl.BlockSpec((taps * C, npad), lambda i: (0, 0)),   # resident across grid
            pl.BlockSpec((1, npad), lambda i: (0, 0)),
        ],
        out_specs=pl.BlockSpec((None, HoWo, npad), lambda i: (i, 0, 0)),
        compiler_params=pltpu.CompilerParams(dimension_semantics=("parallel",)),
        cost_estimate=pl.CostEstimate(flops=flops, transcendentals=0,
                                      bytes_accessed=bytes_accessed),
    )(coords, x_flat_bf16, w_p, b_p)
    return out[..., :true_n]


# ----------------------------------------------------------------------------
# Kernel 4: fused ROI head — ROI-Align (in-kernel one-hot pooling matmul)
# -> fc1 -> fc2 -> cls|bbox head, all weights VMEM-resident, one image per
# grid step. Coords are bin-major / proposal-minor: s = (py*P+px)*Np + n.
# ----------------------------------------------------------------------------
def _roi_box_head_kernel(coords_ref, f_ref, w1_ref, b1_ref, w2_ref, b2_ref,
                         w3_ref, b3_ref, feat_ref, head_ref, *, H, W, C, P, Np):
    S = P * P * Np
    coords = coords_ref[...]                                   # (S, 2)
    onehot = _bilinear_onehot_block(coords[:, 0:1], coords[:, 1:2], S, H, W)
    pooled = jnp.dot(onehot.astype(jnp.bfloat16), f_ref[...],
                     preferred_element_type=jnp.float32)       # (S, C)
    w1 = w1_ref[...]                                           # (P*P*C, Npad) bf16
    npad = w1_ref.shape[-1]
    acc = jnp.zeros((Np, npad), jnp.float32)
    for q in range(P * P):                                     # fc1 per-bin accumulation
        pq = pooled[q * Np:(q + 1) * Np, :].astype(jnp.bfloat16)
        acc = acc + jnp.dot(pq, w1[q * C:(q + 1) * C, :],
                            preferred_element_type=jnp.float32)
    h1 = jnp.maximum(acc + b1_ref[...], 0.0)
    h2 = jnp.dot(h1.astype(jnp.bfloat16), w2_ref[...],
                 preferred_element_type=jnp.float32)
    h2 = jnp.maximum(h2 + b2_ref[...], 0.0)
    feat_ref[...] = h2
    head = jnp.dot(h2.astype(jnp.bfloat16), w3_ref[...],
                   preferred_element_type=jnp.float32)
    head_ref[...] = head + b3_ref[...]


def roi_box_head_fused(coords, feat_flat_bf16, q, *, H, W, C, P, Np):
    B = coords.shape[0]
    S = P * P * Np
    npad = q["fc1_w"].shape[-1]
    true_head = 5 * NUM_CLASSES
    flops = int(2 * B * (S * H * W * C
                         + Np * (P * P * C * HIDDEN + HIDDEN * HIDDEN
                                 + HIDDEN * true_head)))
    bytes_accessed = int(4 * B * S * 2 + 2 * B * H * W * C
                         + 2 * (P * P * C * HIDDEN + HIDDEN * HIDDEN
                                + HIDDEN * true_head)
                         + 4 * B * Np * (HIDDEN + true_head))
    feat, head = pl.pallas_call(
        partial(_roi_box_head_kernel, H=H, W=W, C=C, P=P, Np=Np),
        out_shape=(jax.ShapeDtypeStruct((B, Np, npad), jnp.float32),
                   jax.ShapeDtypeStruct((B, Np, npad), jnp.float32)),
        grid=(B,),
        in_specs=[
            pl.BlockSpec((None, S, 2), lambda i: (i, 0, 0)),
            pl.BlockSpec((None, H * W, C), lambda i: (i, 0, 0)),
            pl.BlockSpec((P * P * C, npad), lambda i: (0, 0)),
            pl.BlockSpec((1, npad), lambda i: (0, 0)),
            pl.BlockSpec((npad, npad), lambda i: (0, 0)),
            pl.BlockSpec((1, npad), lambda i: (0, 0)),
            pl.BlockSpec((npad, npad), lambda i: (0, 0)),
            pl.BlockSpec((1, npad), lambda i: (0, 0)),
        ],
        out_specs=(pl.BlockSpec((None, Np, npad), lambda i: (i, 0, 0)),
                   pl.BlockSpec((None, Np, npad), lambda i: (i, 0, 0))),
        compiler_params=pltpu.CompilerParams(dimension_semantics=("parallel",)),
        cost_estimate=pl.CostEstimate(flops=flops, transcendentals=0,
                                      bytes_accessed=bytes_accessed),
    )(coords, feat_flat_bf16, q["fc1_w"], q["fc1_b"], q["fc2_w"], q["fc2_b"],
      q["head_w"], q["head_b"])
    return feat, head


# ----------------------------------------------------------------------------
# Conv helpers (im2col glue in XLA at bf16, matmul in Pallas)
# ----------------------------------------------------------------------------
def _im2col(x, kh, kw, stride, pad):
    B, H, W, C = x.shape
    xp = jnp.pad(x, ((0, 0), (pad, pad), (pad, pad), (0, 0)))
    Ho = (H + 2 * pad - kh) // stride + 1
    Wo = (W + 2 * pad - kw) // stride + 1
    cols = []
    for i in range(kh):
        for j in range(kw):
            cols.append(xp[:, i:i + stride * Ho:stride, j:j + stride * Wo:stride, :])
    return jnp.concatenate(cols, axis=-1)


def conv2d(x, w_p, b_p, true_n, *, kh=3, kw=3, stride=1, pad=1, relu=False):
    patches = _im2col(x.astype(jnp.bfloat16), kh, kw, stride, pad)
    B, Ho, Wo, K = patches.shape
    out = pallas_linear(patches.reshape(B * Ho * Wo, K), w_p, b_p, true_n, relu=relu)
    return out.reshape(B, Ho, Wo, true_n)


def decode_boxes(anchors_cxcywh, deltas, img_size):
    acx, acy, aw, ah = (anchors_cxcywh[..., 0], anchors_cxcywh[..., 1],
                        anchors_cxcywh[..., 2], anchors_cxcywh[..., 3])
    dx, dy, dw, dh = deltas[..., 0], deltas[..., 1], deltas[..., 2], deltas[..., 3]
    cx = acx + dx * aw
    cy = acy + dy * ah
    w = aw * jnp.exp(jnp.clip(dw, -4.0, 4.0))
    h = ah * jnp.exp(jnp.clip(dh, -4.0, 4.0))
    boxes = jnp.stack([cx - w / 2, cy - h / 2, cx + w / 2, cy + h / 2], axis=-1)
    return jnp.clip(boxes, 0.0, img_size - 1.0)


# ----------------------------------------------------------------------------
# Parameters: raw (PyTorch-layout) init + one-time padded/bf16 preparation
# ----------------------------------------------------------------------------
def init_params(key):
    ks = jax.random.split(key, 16)

    def w(k, shape, scale=0.05):
        return (scale * jax.random.normal(k, shape)).astype(jnp.float32)

    def z(n):
        return jnp.zeros((n,), jnp.float32)

    return {
        "stem_w": w(ks[0], (3, 3, C_IN, C_STEM)), "stem_b": z(C_STEM),
        "c4_w": w(ks[1], (3, 3, C_STEM, C4)), "c4_b": z(C4),
        "dcn_off_w": w(ks[2], (3, 3, C4, 2 * TAPS), scale=0.01), "dcn_off_b": z(2 * TAPS),
        "dcn_w": w(ks[3], (3, 3, C4, C5)), "dcn_b": z(C5),
        "rpn_conv_w": w(ks[4], (3, 3, C4, C4)), "rpn_conv_b": z(C4),
        "rpn_obj_w": w(ks[5], (1, 1, C4, NUM_ANCHORS)), "rpn_obj_b": z(NUM_ANCHORS),
        "rpn_box_w": w(ks[6], (1, 1, C4, 4 * NUM_ANCHORS)), "rpn_box_b": z(4 * NUM_ANCHORS),
        "fc1_w": w(ks[7], (POOL * POOL * C5, HIDDEN)), "fc1_b": z(HIDDEN),
        "fc2_w": w(ks[8], (HIDDEN, HIDDEN)), "fc2_b": z(HIDDEN),
        "cls_w": w(ks[9], (HIDDEN, NUM_CLASSES)), "cls_b": z(NUM_CLASSES),
        "bbox_w": w(ks[10], (HIDDEN, 4 * NUM_CLASSES)), "bbox_b": z(4 * NUM_CLASSES),
    }


def prepare_params(p):
    """One-time pad-to-lane + bf16 cast + sibling-head concat (done at model load)."""
    def padw(w2d):
        k, n = w2d.shape
        return jnp.pad(w2d, ((0, 0), (0, LANE - n))).astype(jnp.bfloat16)

    def padb(b1d):
        return jnp.pad(b1d, (0, LANE - b1d.shape[0])).reshape(1, LANE).astype(jnp.float32)

    q = {}
    q["stem_w"] = padw(p["stem_w"].reshape(-1, C_STEM)); q["stem_b"] = padb(p["stem_b"])
    q["c4_w"] = padw(p["c4_w"].reshape(-1, C4)); q["c4_b"] = padb(p["c4_b"])
    q["dcn_off_w"] = padw(p["dcn_off_w"].reshape(-1, 2 * TAPS))
    q["dcn_off_b"] = padb(p["dcn_off_b"])
    q["dcn_w"] = padw(p["dcn_w"].reshape(-1, C5)); q["dcn_b"] = padb(p["dcn_b"])
    # rpn: 3x3 conv weight stays unpadded (intermediate lives only in VMEM);
    # objectness + bbox heads fused into one lane-dense 1x1 weight.
    q["rpn_conv_w"] = p["rpn_conv_w"].reshape(-1, C4).astype(jnp.bfloat16)
    q["rpn_conv_b"] = p["rpn_conv_b"].reshape(1, C4).astype(jnp.float32)
    rpn_head_w = jnp.concatenate([p["rpn_obj_w"], p["rpn_box_w"]], axis=-1)
    q["rpn_head_w"] = padw(rpn_head_w.reshape(C4, 5 * NUM_ANCHORS))
    q["rpn_head_b"] = padb(jnp.concatenate([p["rpn_obj_b"], p["rpn_box_b"]]))
    # roi box head: fc1/fc2 padded to 128; cls+bbox fused into one wide head.
    q["fc1_w"] = padw(p["fc1_w"]); q["fc1_b"] = padb(p["fc1_b"])
    q["fc2_w"] = jnp.pad(p["fc2_w"], ((0, LANE - HIDDEN), (0, LANE - HIDDEN))).astype(jnp.bfloat16)
    q["fc2_b"] = padb(p["fc2_b"])
    w3 = jnp.concatenate([p["cls_w"], p["bbox_w"]], axis=1)       # (HIDDEN, 5*NC)
    q["head_w"] = jnp.pad(w3, ((0, LANE - HIDDEN), (0, LANE - w3.shape[1]))).astype(jnp.bfloat16)
    q["head_b"] = padb(jnp.concatenate([p["cls_b"], p["bbox_b"]]))
    return q


# ----------------------------------------------------------------------------
# Forward (inference)
# ----------------------------------------------------------------------------
def deform_conv_rcnn_forward(q, images_nchw):
    x = jnp.transpose(images_nchw, (0, 2, 3, 1)).astype(jnp.float32)   # NCHW -> NHWC
    B = x.shape[0]

    # -------- backbone --------
    stem = conv2d(x, q["stem_w"], q["stem_b"], C_STEM, stride=2, pad=1, relu=True)
    feat_c4 = conv2d(stem, q["c4_w"], q["c4_b"], C4, stride=2, pad=1, relu=True)

    # deformable conv: offsets via a regular conv, then one fused Pallas kernel
    # does in-kernel bilinear one-hot sampling + the 9-tap weighted sum.
    offsets = conv2d(feat_c4, q["dcn_off_w"], q["dcn_off_b"], 2 * TAPS,
                     stride=2, pad=1, relu=False)
    Hc4, Wc4 = feat_c4.shape[1], feat_c4.shape[2]
    Ho, Wo = offsets.shape[1], offsets.shape[2]
    # NOTE: offset layout assumed (dy, dx) interleaved per tap, taps row-major.
    offsets = offsets.reshape(B, Ho, Wo, TAPS, 2)
    stride_d, pad_d = 2, 1
    oy = jnp.arange(Ho, dtype=jnp.float32) * stride_d - pad_d
    ox = jnp.arange(Wo, dtype=jnp.float32) * stride_d - pad_d
    ky, kx = jnp.meshgrid(jnp.arange(3, dtype=jnp.float32),
                          jnp.arange(3, dtype=jnp.float32), indexing="ij")
    ky = ky.reshape(-1)
    kx = kx.reshape(-1)
    sample_y = oy[None, :, None, None] + ky[None, None, None, :] + offsets[..., 0]
    sample_x = ox[None, None, :, None] + kx[None, None, None, :] + offsets[..., 1]
    S = TAPS * Ho * Wo
    sy = jnp.transpose(sample_y, (0, 3, 1, 2)).reshape(B, S)     # tap-major ordering
    sx = jnp.transpose(sample_x, (0, 3, 1, 2)).reshape(B, S)
    dcn_coords = jnp.stack([sy, sx], axis=-1)                    # (B, S, 2)
    feat_c5 = deform_conv_fused(
        dcn_coords, feat_c4.reshape(B, Hc4 * Wc4, C4).astype(jnp.bfloat16),
        q["dcn_w"], q["dcn_b"], C5,
        H=Hc4, W=Wc4, C=C4, HoWo=Ho * Wo, taps=TAPS, relu=True)
    feat_c5 = feat_c5.reshape(B, Ho, Wo, C5)

    # -------- rpn (3x3 conv + fused objectness|bbox head, one pallas_call) --------
    rpn_patches = _im2col(feat_c4.astype(jnp.bfloat16), 3, 3, 1, 1)  # (B, 8, 8, 9*C4)
    Hc, Wc = rpn_patches.shape[1], rpn_patches.shape[2]
    rpn_head = rpn_head_fused(rpn_patches.reshape(B * Hc * Wc, -1),
                              q["rpn_conv_w"], q["rpn_conv_b"],
                              q["rpn_head_w"], q["rpn_head_b"],
                              true_n=5 * NUM_ANCHORS)
    rpn_head = rpn_head.reshape(B, Hc, Wc, 5 * NUM_ANCHORS)
    obj = rpn_head[..., :NUM_ANCHORS]
    rpn_deltas = rpn_head[..., NUM_ANCHORS:]

    stride_c4 = IMG // Hc
    ys = (jnp.arange(Hc, dtype=jnp.float32) + 0.5) * stride_c4
    xs = (jnp.arange(Wc, dtype=jnp.float32) + 0.5) * stride_c4
    cy, cx = jnp.meshgrid(ys, xs, indexing="ij")
    sizes = jnp.array([8.0, 16.0, 24.0], jnp.float32)
    acx = jnp.broadcast_to(cx[..., None], (Hc, Wc, NUM_ANCHORS))
    acy = jnp.broadcast_to(cy[..., None], (Hc, Wc, NUM_ANCHORS))
    asz = jnp.broadcast_to(sizes[None, None, :], (Hc, Wc, NUM_ANCHORS))
    anchors = jnp.stack([acx, acy, asz, asz], axis=-1).reshape(-1, 4)

    rpn_deltas = rpn_deltas.reshape(B, Hc * Wc * NUM_ANCHORS, 4)
    rpn_boxes = decode_boxes(anchors[None], rpn_deltas, IMG)
    scores = obj.reshape(B, -1)
    top_scores, top_idx = jax.lax.top_k(scores, NUM_PROPOSALS)
    proposals = jnp.take_along_axis(rpn_boxes, top_idx[..., None], axis=1)   # (B,Np,4)

    # -------- roi heads (ROI-Align pooling fused into the box head kernel) --------
    P = POOL
    Hc5, Wc5 = feat_c5.shape[1], feat_c5.shape[2]
    spatial_scale = 1.0 / (IMG // Hc5)
    sb = proposals * spatial_scale
    x1, y1, x2, y2 = sb[..., 0], sb[..., 1], sb[..., 2], sb[..., 3]
    steps = (jnp.arange(P, dtype=jnp.float32) + 0.5) / P
    ys_b = y1[..., None] + steps * (y2 - y1)[..., None]          # (B, Np, P)
    xs_b = x1[..., None] + steps * (x2 - x1)[..., None]
    gy = jnp.broadcast_to(ys_b[..., :, None], (B, NUM_PROPOSALS, P, P))
    gx = jnp.broadcast_to(xs_b[..., None, :], (B, NUM_PROPOSALS, P, P))
    # bin-major / proposal-minor ordering: s = (py*P+px)*Np + n
    gy = jnp.transpose(gy, (0, 2, 3, 1)).reshape(B, P * P * NUM_PROPOSALS)
    gx = jnp.transpose(gx, (0, 2, 3, 1)).reshape(B, P * P * NUM_PROPOSALS)
    roi_coords = jnp.stack([gy, gx], axis=-1)                    # (B, P*P*Np, 2)
    feat5_flat = feat_c5.reshape(B, Hc5 * Wc5, C5).astype(jnp.bfloat16)

    feat_mim, head = roi_box_head_fused(roi_coords, feat5_flat, q,
                                        H=Hc5, W=Wc5, C=C5, P=P, Np=NUM_PROPOSALS)
    box_mimicking_feature = feat_mim[..., :HIDDEN]               # (B, Np, HIDDEN)
    cls_logits = head[..., :NUM_CLASSES]                         # (B, Np, NC)
    box_deltas = head[..., NUM_CLASSES:NUM_CLASSES + 4 * NUM_CLASSES]

    probs = jax.nn.softmax(cls_logits, axis=-1)
    labels = jnp.argmax(probs, axis=-1)
    det_scores = jnp.max(probs, axis=-1)

    box_deltas = box_deltas.reshape(B, NUM_PROPOSALS, NUM_CLASSES, 4)
    cls_deltas = jnp.take_along_axis(
        box_deltas, labels[..., None, None].astype(jnp.int32), axis=2)[:, :, 0, :]
    pw = proposals[..., 2] - proposals[..., 0]
    ph = proposals[..., 3] - proposals[..., 1]
    pcx = proposals[..., 0] + 0.5 * pw
    pcy = proposals[..., 1] + 0.5 * ph
    prop_cxcywh = jnp.stack([pcx, pcy, jnp.maximum(pw, 1.0), jnp.maximum(ph, 1.0)], -1)
    det_boxes = decode_boxes(prop_cxcywh, cls_deltas, IMG)

    return {
        "boxes": det_boxes,
        "scores": det_scores,
        "labels": labels,
        "proposals": proposals,
        "rpn_scores": top_scores,
        "box_mimicking_feature": box_mimicking_feature,
    }


if __name__ == "__main__":
    key = jax.random.PRNGKey(0)
    k_img, k_par = jax.random.split(key)
    images = jax.random.normal(k_img, (2, C_IN, IMG, IMG), dtype=jnp.float32)  # NCHW input
    params = init_params(k_par)
    prepped = prepare_params(params)        # one-time pad/cast/concat (model load time)

    fwd = jax.jit(deform_conv_rcnn_forward)
    dets = fwd(prepped, images)
    dets = jax.tree_util.tree_map(jax.block_until_ready, dets)

    assert dets["boxes"].shape == (2, NUM_PROPOSALS, 4)
    assert dets["scores"].shape == (2, NUM_PROPOSALS)
    assert dets["labels"].shape == (2, NUM_PROPOSALS)
    assert dets["box_mimicking_feature"].shape == (2, NUM_PROPOSALS, HIDDEN)
    assert bool(jnp.all(jnp.isfinite(dets["boxes"])))
    print("KERNEL_OK")
</pallas_src>

<mosaic_0001>
module attributes {stable_mosaic.version = 11 : i64} {
  func.func @_linear_kernel(%arg0: i32, %arg1: memref<512x27xbf16, #tpu.memory_space<vmem>>, %arg2: memref<27x128xbf16, #tpu.memory_space<vmem>>, %arg3: memref<1x128xf32, #tpu.memory_space<vmem>>, %arg4: memref<512x128xf32, #tpu.memory_space<vmem>>) attributes {dimension_semantics = [#tpu.dimension_semantics<arbitrary>], iteration_bounds = array<i64: 1>, scalar_prefetch = 0 : i64, scratch_operands = 0 : i64, tpu.core_type = #tpu.core_type<tc>, window_params = [{pipeline_mode = #tpu.pipeline_mode<synchronous>, transform_indices = @transform_0, window_bounds = array<i64: 512, 27>}, {pipeline_mode = #tpu.pipeline_mode<synchronous>, transform_indices = @transform_1, window_bounds = array<i64: 27, 128>}, {pipeline_mode = #tpu.pipeline_mode<synchronous>, transform_indices = @transform_2, window_bounds = array<i64: 1, 128>}, {pipeline_mode = #tpu.pipeline_mode<synchronous>, transform_indices = @transform_3, window_bounds = array<i64: 512, 128>}]} {
    %c0 = arith.constant 0 : index
    %c0_0 = arith.constant 0 : index
    %0 = vector.load %arg1[%c0, %c0_0] : memref<512x27xbf16, #tpu.memory_space<vmem>>, vector<512x27xbf16>
    %c0_1 = arith.constant 0 : index
    %c0_2 = arith.constant 0 : index
    %1 = vector.load %arg2[%c0_1, %c0_2] : memref<27x128xbf16, #tpu.memory_space<vmem>>, vector<27x128xbf16>
    %cst = arith.constant dense<0.000000e+00> : vector<512x128xf32>
    %2 = tpu.matmul %0, %1, %cst {dimension_numbers = #tpu.dot_dimension_numbers<[1], [0], [0], [1], [0, 0, 1, 1], [], []>} : vector<512x27xbf16>, vector<27x128xbf16>, vector<512x128xf32> -> vector<512x128xf32>
    %c0_3 = arith.constant 0 : index
    %c0_4 = arith.constant 0 : index
    %3 = vector.load %arg3[%c0_3, %c0_4] : memref<1x128xf32, #tpu.memory_space<vmem>>, vector<1x128xf32>
    %4 = vector.broadcast %3 : vector<1x128xf32> to vector<512x128xf32>
    %5 = arith.addf %2, %4 : vector<512x128xf32>
    %cst_5 = arith.constant 0.000000e+00 : f32
    %6 = vector.broadcast %cst_5 : f32 to vector<512x128xf32>
    %7 = arith.maximumf %5, %6 : vector<512x128xf32>
    %c0_6 = arith.constant 0 : index
    %c0_7 = arith.constant 0 : index
    %8 = vector.load %arg4[%c0_6, %c0_7] : memref<512x128xf32, #tpu.memory_space<vmem>>, vector<512x128xf32>
    tpu.vector_store %arg4[%c0_6, %c0_7], %7 {strides = array<i32>} : memref<512x128xf32, #tpu.memory_space<vmem>>, vector<512x128xf32>,
    return
  }
  func.func @transform_0(%arg0: i32) -> (i32, i32) {
    %c0_i32 = arith.constant 0 : i32
    %c0_i32_0 = arith.constant 0 : i32
    %c0_i32_1 = arith.constant 0 : i32
    return %c0_i32, %c0_i32_0 : i32, i32
  }
  func.func @transform_1(%arg0: i32) -> (i32, i32) {
    %c0_i32 = arith.constant 0 : i32
    %c0_i32_0 = arith.constant 0 : i32
    %c0_i32_1 = arith.constant 0 : i32
    return %c0_i32, %c0_i32_0 : i32, i32
  }
  func.func @transform_2(%arg0: i32) -> (i32, i32) {
    %c0_i32 = arith.constant 0 : i32
    %c0_i32_0 = arith.constant 0 : i32
    %c0_i32_1 = arith.constant 0 : i32
    return %c0_i32, %c0_i32_0 : i32, i32
  }
  func.func @transform_3(%arg0: i32) -> (i32, i32) {
    %c0_i32 = arith.constant 0 : i32
    %c0_i32_0 = arith.constant 0 : i32
    %c0_i32_1 = arith.constant 0 : i32
    return %c0_i32, %c0_i32_0 : i32, i32
  }
}

module attributes {stable_mosaic.version = 11 : i64} {
  func.func @_linear_kernel(%arg0: i32, %arg1: memref<128x144xbf16, #tpu.memory_space<vmem>>, %arg2: memref<144x128xbf16, #tpu.memory_space<vmem>>, %arg3: memref<1x128xf32, #tpu.memory_space<vmem>>, %arg4: memref<128x128xf32, #tpu.memory_space<vmem>>) attributes {dimension_semantics = [#tpu.dimension_semantics<arbitrary>], iteration_bounds = array<i64: 1>, scalar_prefetch = 0 : i64, scratch_operands = 0 : i64, tpu.core_type = #tpu.core_type<tc>, window_params = [{pipeline_mode = #tpu.pipeline_mode<synchronous>, transform_indices = @transform_0, window_bounds = array<i64: 128, 144>}, {pipeline_mode = #tpu.pipeline_mode<synchronous>, transform_indices = @transform_1, window_bounds = array<i64: 144, 128>}, {pipeline_mode = #tpu.pipeline_mode<synchronous>, transform_indices = @transform_2, window_bounds = array<i64: 1, 128>}, {pipeline_mode = #tpu.pipeline_mode<synchronous>, transform_indices = @transform_3, window_bounds = array<i64: 128, 128>}]} {
    %c0 = arith.constant 0 : index
    %c0_0 = arith.constant 0 : index
    %0 = vector.load %arg1[%c0, %c0_0] : memref<128x144xbf16, #tpu.memory_space<vmem>>, vector<128x144xbf16>
    %c0_1 = arith.constant 0 : index
    %c0_2 = arith.constant 0 : index
    %1 = vector.load %arg2[%c0_1, %c0_2] : memref<144x128xbf16, #tpu.memory_space<vmem>>, vector<144x128xbf16>
    %cst = arith.constant dense<0.000000e+00> : vector<128x128xf32>
    %2 = tpu.matmul %0, %1, %cst {dimension_numbers = #tpu.dot_dimension_numbers<[1], [0], [0], [1], [0, 0, 1, 1], [], []>} : vector<128x144xbf16>, vector<144x128xbf16>, vector<128x128xf32> -> vector<128x128xf32>
    %c0_3 = arith.constant 0 : index
    %c0_4 = arith.constant 0 : index
    %3 = vector.load %arg3[%c0_3, %c0_4] : memref<1x128xf32, #tpu.memory_space<vmem>>, vector<1x128xf32>
    %4 = vector.broadcast %3 : vector<1x128xf32> to vector<128x128xf32>
    %5 = arith.addf %2, %4 : vector<128x128xf32>
    %cst_5 = arith.constant 0.000000e+00 : f32
    %6 = vector.broadcast %cst_5 : f32 to vector<128x128xf32>
    %7 = arith.maximumf %5, %6 : vector<128x128xf32>
    %c0_6 = arith.constant 0 : index
    %c0_7 = arith.constant 0 : index
    %8 = vector.load %arg4[%c0_6, %c0_7] : memref<128x128xf32, #tpu.memory_space<vmem>>, vector<128x128xf32>
    tpu.vector_store %arg4[%c0_6, %c0_7], %7 {strides = array<i32>} : memref<128x128xf32, #tpu.memory_space<vmem>>, vector<128x128xf32>,
    return
  }
  func.func @transform_0(%arg0: i32) -> (i32, i32) {
    %c0_i32 = arith.constant 0 : i32
    %c0_i32_0 = arith.constant 0 : i32
    %c0_i32_1 = arith.constant 0 : i32
    return %c0_i32, %c0_i32_0 : i32, i32
  }
  func.func @transform_1(%arg0: i32) -> (i32, i32) {
    %c0_i32 = arith.constant 0 : i32
    %c0_i32_0 = arith.constant 0 : i32
    %c0_i32_1 = arith.constant 0 : i32
    return %c0_i32, %c0_i32_0 : i32, i32
  }
  func.func @transform_2(%arg0: i32) -> (i32, i32) {
    %c0_i32 = arith.constant 0 : i32
    %c0_i32_0 = arith.constant 0 : i32
    %c0_i32_1 = arith.constant 0 : i32
    return %c0_i32, %c0_i32_0 : i32, i32
  }
  func.func @transform_3(%arg0: i32) -> (i32, i32) {
    %c0_i32 = arith.constant 0 : i32
    %c0_i32_0 = arith.constant 0 : i32
    %c0_i32_1 = arith.constant 0 : i32
    return %c0_i32, %c0_i32_0 : i32, i32
  }
}

module attributes {stable_mosaic.version = 11 : i64} {
  func.func @_linear_kernel(%arg0: i32, %arg1: memref<32x144xbf16, #tpu.memory_space<vmem>>, %arg2: memref<144x128xbf16, #tpu.memory_space<vmem>>, %arg3: memref<1x128xf32, #tpu.memory_space<vmem>>, %arg4: memref<32x128xf32, #tpu.memory_space<vmem>>) attributes {dimension_semantics = [#tpu.dimension_semantics<arbitrary>], iteration_bounds = array<i64: 1>, scalar_prefetch = 0 : i64, scratch_operands = 0 : i64, tpu.core_type = #tpu.core_type<tc>, window_params = [{pipeline_mode = #tpu.pipeline_mode<synchronous>, transform_indices = @transform_0, window_bounds = array<i64: 32, 144>}, {pipeline_mode = #tpu.pipeline_mode<synchronous>, transform_indices = @transform_1, window_bounds = array<i64: 144, 128>}, {pipeline_mode = #tpu.pipeline_mode<synchronous>, transform_indices = @transform_2, window_bounds = array<i64: 1, 128>}, {pipeline_mode = #tpu.pipeline_mode<synchronous>, transform_indices = @transform_3, window_bounds = array<i64: 32, 128>}]} {
    %c0 = arith.constant 0 : index
    %c0_0 = arith.constant 0 : index
    %0 = vector.load %arg1[%c0, %c0_0] : memref<32x144xbf16, #tpu.memory_space<vmem>>, vector<32x144xbf16>
    %c0_1 = arith.constant 0 : index
    %c0_2 = arith.constant 0 : index
    %1 = vector.load %arg2[%c0_1, %c0_2] : memref<144x128xbf16, #tpu.memory_space<vmem>>, vector<144x128xbf16>
    %cst = arith.constant dense<0.000000e+00> : vector<32x128xf32>
    %2 = tpu.matmul %0, %1, %cst {dimension_numbers = #tpu.dot_dimension_numbers<[1], [0], [0], [1], [0, 0, 1, 1], [], []>} : vector<32x144xbf16>, vector<144x128xbf16>, vector<32x128xf32> -> vector<32x128xf32>
    %c0_3 = arith.constant 0 : index
    %c0_4 = arith.constant 0 : index
    %3 = vector.load %arg3[%c0_3, %c0_4] : memref<1x128xf32, #tpu.memory_space<vmem>>, vector<1x128xf32>
    %4 = vector.broadcast %3 : vector<1x128xf32> to vector<32x128xf32>
    %5 = arith.addf %2, %4 : vector<32x128xf32>
    %c0_5 = arith.constant 0 : index
    %c0_6 = arith.constant 0 : index
    %6 = vector.load %arg4[%c0_5, %c0_6] : memref<32x128xf32, #tpu.memory_space<vmem>>, vector<32x128xf32>
    tpu.vector_store %arg4[%c0_5, %c0_6], %5 {strides = array<i32>} : memref<32x128xf32, #tpu.memory_space<vmem>>, vector<32x128xf32>,
    return
  }
  func.func @transform_0(%arg0: i32) -> (i32, i32) {
    %c0_i32 = arith.constant 0 : i32
    %c0_i32_0 = arith.constant 0 : i32
    %c0_i32_1 = arith.constant 0 : i32
    return %c0_i32, %c0_i32_0 : i32, i32
  }
  func.func @transform_1(%arg0: i32) -> (i32, i32) {
    %c0_i32 = arith.constant 0 : i32
    %c0_i32_0 = arith.constant 0 : i32
    %c0_i32_1 = arith.constant 0 : i32
    return %c0_i32, %c0_i32_0 : i32, i32
  }
  func.func @transform_2(%arg0: i32) -> (i32, i32) {
    %c0_i32 = arith.constant 0 : i32
    %c0_i32_0 = arith.constant 0 : i32
    %c0_i32_1 = arith.constant 0 : i32
    return %c0_i32, %c0_i32_0 : i32, i32
  }
  func.func @transform_3(%arg0: i32) -> (i32, i32) {
    %c0_i32 = arith.constant 0 : i32
    %c0_i32_0 = arith.constant 0 : i32
    %c0_i32_1 = arith.constant 0 : i32
    return %c0_i32, %c0_i32_0 : i32, i32
  }
}

module attributes {stable_mosaic.version = 11 : i64} {
  func.func @_deform_conv_kernel(%arg0: i32, %arg1: memref<1x144x2xf32, #tpu.memory_space<vmem>>, %arg2: memref<1x64x16xbf16, #tpu.memory_space<vmem>>, %arg3: memref<144x128xbf16, #tpu.memory_space<vmem>>, %arg4: memref<1x128xf32, #tpu.memory_space<vmem>>, %arg5: memref<1x16x128xf32, #tpu.memory_space<vmem>>) attributes {dimension_semantics = [#tpu.dimension_semantics<parallel>], iteration_bounds = array<i64: 2>, scalar_prefetch = 0 : i64, scratch_operands = 0 : i64, tpu.core_type = #tpu.core_type<tc>, window_params = [{transform_indices = @transform_0, window_bounds = array<i64: 1, 144, 2>}, {transform_indices = @transform_1, window_bounds = array<i64: 1, 64, 16>}, {pipeline_mode = #tpu.pipeline_mode<synchronous>, transform_indices = @transform_2, window_bounds = array<i64: 144, 128>}, {pipeline_mode = #tpu.pipeline_mode<synchronous>, transform_indices = @transform_3, window_bounds = array<i64: 1, 128>}, {transform_indices = @transform_4, window_bounds = array<i64: 1, 16, 128>}]} {
    %c0 = arith.constant 0 : index
    %c0_0 = arith.constant 0 : index
    %c0_1 = arith.constant 0 : index
    %0 = vector.load %arg1[%c0, %c0_0, %c0_1] : memref<1x144x2xf32, #tpu.memory_space<vmem>>, vector<1x144x2xf32>
    %1 = vector.shape_cast %0 : vector<1x144x2xf32> to vector<144x2xf32>
    %2 = vector.extract_strided_slice %1 {offsets = [0, 0], sizes = [144, 1], strides = [1, 1]} : vector<144x2xf32> to vector<144x1xf32>
    %3 = vector.extract_strided_slice %1 {offsets = [0, 1], sizes = [144, 1], strides = [1, 1]} : vector<144x2xf32> to vector<144x1xf32>
    %4 = tpu.iota {dimensions = array<i32: 1>} : vector<144x64xi32>
    %5 = arith.sitofp %4 : vector<144x64xi32> to vector<144x64xf32>
    %6 = math.floor %2 : vector<144x1xf32>
    %7 = math.floor %3 : vector<144x1xf32>
    %8 = arith.subf %2, %6 : vector<144x1xf32>
    %9 = arith.subf %3, %7 : vector<144x1xf32>
    %cst = arith.constant 1.000000e+00 : f32
    %10 = vector.broadcast %cst : f32 to vector<144x1xf32>
    %11 = arith.subf %10, %8 : vector<144x1xf32>
    %cst_2 = arith.constant 1.000000e+00 : f32
    %12 = vector.broadcast %cst_2 : f32 to vector<144x1xf32>
    %13 = arith.subf %12, %9 : vector<144x1xf32>
    %14 = arith.mulf %11, %13 : vector<144x1xf32>
    %cst_3 = arith.constant 0.000000e+00 : f32
    %cst_4 = arith.constant 7.000000e+00 : f32
    %15 = vector.broadcast %cst_3 : f32 to vector<144x1xf32>
    %16 = arith.maximumf %15, %6 : vector<144x1xf32>
    %17 = vector.broadcast %cst_4 : f32 to vector<144x1xf32>
    %18 = arith.minimumf %17, %16 : vector<144x1xf32>
    %cst_5 = arith.constant 0.000000e+00 : f32
    %cst_6 = arith.constant 7.000000e+00 : f32
    %19 = vector.broadcast %cst_5 : f32 to vector<144x1xf32>
    %20 = arith.maximumf %19, %7 : vector<144x1xf32>
    %21 = vector.broadcast %cst_6 : f32 to vector<144x1xf32>
    %22 = arith.minimumf %21, %20 : vector<144x1xf32>
    %cst_7 = arith.constant 8.000000e+00 : f32
    %23 = vector.broadcast %cst_7 : f32 to vector<144x1xf32>
    %24 = arith.mulf %18, %23 : vector<144x1xf32>
    %25 = arith.addf %24, %22 : vector<144x1xf32>
    %26 = vector.broadcast %25 : vector<144x1xf32> to vector<144x64xf32>
    %27 = arith.cmpf oeq, %5, %26 : vector<144x64xf32>
    %28 = arith.extui %27 : vector<144x64xi1> to vector<144x64xi32>
    %29 = arith.sitofp %28 : vector<144x64xi32> to vector<144x64xf32>
    %30 = vector.broadcast %14 : vector<144x1xf32> to vector<144x64xf32>
    %31 = arith.mulf %30, %29 : vector<144x64xf32>
    %cst_8 = arith.constant 1.000000e+00 : f32
    %32 = vector.broadcast %cst_8 : f32 to vector<144x1xf32>
    %33 = arith.addf %7, %32 : vector<144x1xf32>
    %34 = arith.mulf %11, %9 : vector<144x1xf32>
    %cst_9 = arith.constant 0.000000e+00 : f32
    %cst_10 = arith.constant 7.000000e+00 : f32
    %35 = vector.broadcast %cst_9 : f32 to vector<144x1xf32>
    %36 = arith.maximumf %35, %6 : vector<144x1xf32>
    %37 = vector.broadcast %cst_10 : f32 to vector<144x1xf32>
    %38 = arith.minimumf %37, %36 : vector<144x1xf32>
    %cst_11 = arith.constant 0.000000e+00 : f32
    %cst_12 = arith.constant 7.000000e+00 : f32
    %39 = vector.broadcast %cst_11 : f32 to vector<144x1xf32>
    %40 = arith.maximumf %39, %33 : vector<144x1xf32>
    %41 = vector.broadcast %cst_12 : f32 to vector<144x1xf32>
    %42 = arith.minimumf %41, %40 : vector<144x1xf32>
    %cst_13 = arith.constant 8.000000e+00 : f32
    %43 = vector.broadcast %cst_13 : f32 to vector<144x1xf32>
    %44 = arith.mulf %38, %43 : vector<144x1xf32>
    %45 = arith.addf %44, %42 : vector<144x1xf32>
    %46 = vector.broadcast %45 : vector<144x1xf32> to vector<144x64xf32>
    %47 = arith.cmpf oeq, %5, %46 : vector<144x64xf32>
    %48 = arith.extui %47 : vector<144x64xi1> to vector<144x64xi32>
    %49 = arith.sitofp %48 : vector<144x64xi32> to vector<144x64xf32>
    %50 = vector.broadcast %34 : vector<144x1xf32> to vector<144x64xf32>
    %51 = arith.mulf %50, %49 : vector<144x64xf32>
    %52 = arith.addf %31, %51 : vector<144x64xf32>
    %cst_14 = arith.constant 1.000000e+00 : f32
    %53 = vector.broadcast %cst_14 : f32 to vector<144x1xf32>
    %54 = arith.addf %6, %53 : vector<144x1xf32>
    %55 = arith.mulf %8, %13 : vector<144x1xf32>
    %cst_15 = arith.constant 0.000000e+00 : f32
    %cst_16 = arith.constant 7.000000e+00 : f32
    %56 = vector.broadcast %cst_15 : f32 to vector<144x1xf32>
    %57 = arith.maximumf %56, %54 : vector<144x1xf32>
    %58 = vector.broadcast %cst_16 : f32 to vector<144x1xf32>
    %59 = arith.minimumf %58, %57 : vector<144x1xf32>
    %cst_17 = arith.constant 0.000000e+00 : f32
    %cst_18 = arith.constant 7.000000e+00 : f32
    %60 = vector.broadcast %cst_17 : f32 to vector<144x1xf32>
    %61 = arith.maximumf %60, %7 : vector<144x1xf32>
    %62 = vector.broadcast %cst_18 : f32 to vector<144x1xf32>
    %63 = arith.minimumf %62, %61 : vector<144x1xf32>
    %cst_19 = arith.constant 8.000000e+00 : f32
    %64 = vector.broadcast %cst_19 : f32 to vector<144x1xf32>
    %65 = arith.mulf %59, %64 : vector<144x1xf32>
    %66 = arith.addf %65, %63 : vector<144x1xf32>
    %67 = vector.broadcast %66 : vector<144x1xf32> to vector<144x64xf32>
    %68 = arith.cmpf oeq, %5, %67 : vector<144x64xf32>
    %69 = arith.extui %68 : vector<144x64xi1> to vector<144x64xi32>
    %70 = arith.sitofp %69 : vector<144x64xi32> to vector<144x64xf32>
    %71 = vector.broadcast %55 : vector<144x1xf32> to vector<144x64xf32>
    %72 = arith.mulf %71, %70 : vector<144x64xf32>
    %73 = arith.addf %52, %72 : vector<144x64xf32>
    %cst_20 = arith.constant 1.000000e+00 : f32
    %74 = vector.broadcast %cst_20 : f32 to vector<144x1xf32>
    %75 = arith.addf %6, %74 : vector<144x1xf32>
    %cst_21 = arith.constant 1.000000e+00 : f32
    %76 = vector.broadcast %cst_21 : f32 to vector<144x1xf32>
    %77 = arith.addf %7, %76 : vector<144x1xf32>
    %78 = arith.mulf %8, %9 : vector<144x1xf32>
    %cst_22 = arith.constant 0.000000e+00 : f32
    %cst_23 = arith.constant 7.000000e+00 : f32
    %79 = vector.broadcast %cst_22 : f32 to vector<144x1xf32>
    %80 = arith.maximumf %79, %75 : vector<144x1xf32>
    %81 = vector.broadcast %cst_23 : f32 to vector<144x1xf32>
    %82 = arith.minimumf %81, %80 : vector<144x1xf32>
    %cst_24 = arith.constant 0.000000e+00 : f32
    %cst_25 = arith.constant 7.000000e+00 : f32
    %83 = vector.broadcast %cst_24 : f32 to vector<144x1xf32>
    %84 = arith.maximumf %83, %77 : vector<144x1xf32>
    %85 = vector.broadcast %cst_25 : f32 to vector<144x1xf32>
    %86 = arith.minimumf %85, %84 : vector<144x1xf32>
    %cst_26 = arith.constant 8.000000e+00 : f32
    %87 = vector.broadcast %cst_26 : f32 to vector<144x1xf32>
    %88 = arith.mulf %82, %87 : vector<144x1xf32>
    %89 = arith.addf %88, %86 : vector<144x1xf32>
    %90 = vector.broadcast %89 : vector<144x1xf32> to vector<144x64xf32>
    %91 = arith.cmpf oeq, %5, %90 : vector<144x64xf32>
    %92 = arith.extui %91 : vector<144x64xi1> to vector<144x64xi32>
    %93 = arith.sitofp %92 : vector<144x64xi32> to vector<144x64xf32>
    %94 = vector.broadcast %78 : vector<144x1xf32> to vector<144x64xf32>
    %95 = arith.mulf %94, %93 : vector<144x64xf32>
    %96 = arith.addf %73, %95 : vector<144x64xf32>
    %cst_27 = arith.constant -1.000000e+00 : f32
    %97 = vector.broadcast %cst_27 : f32 to vector<144x1xf32>
    %98 = arith.cmpf ogt, %2, %97 : vector<144x1xf32>
    %cst_28 = arith.constant 8.000000e+00 : f32
    %99 = vector.broadcast %cst_28 : f32 to vector<144x1xf32>
    %100 = arith.cmpf olt, %2, %99 : vector<144x1xf32>
    %101 = arith.andi %98, %100 : vector<144x1xi1>
    %cst_29 = arith.constant -1.000000e+00 : f32
    %102 = vector.broadcast %cst_29 : f32 to vector<144x1xf32>
    %103 = arith.cmpf ogt, %3, %102 : vector<144x1xf32>
    %104 = arith.andi %101, %103 : vector<144x1xi1>
    %cst_30 = arith.constant 8.000000e+00 : f32
    %105 = vector.broadcast %cst_30 : f32 to vector<144x1xf32>
    %106 = arith.cmpf olt, %3, %105 : vector<144x1xf32>
    %107 = arith.andi %104, %106 : vector<144x1xi1>
    %108 = arith.extui %107 : vector<144x1xi1> to vector<144x1xi32>
    %109 = arith.sitofp %108 : vector<144x1xi32> to vector<144x1xf32>
    %110 = vector.broadcast %109 : vector<144x1xf32> to vector<144x64xf32>
    %111 = arith.mulf %96, %110 : vector<144x64xf32>
    %112 = arith.truncf %111 : vector<144x64xf32> to vector<144x64xbf16>
    %c0_31 = arith.constant 0 : index
    %c0_32 = arith.constant 0 : index
    %c0_33 = arith.constant 0 : index
    %113 = vector.load %arg2[%c0_31, %c0_32, %c0_33] : memref<1x64x16xbf16, #tpu.memory_space<vmem>>, vector<1x64x16xbf16>
    %114 = vector.shape_cast %113 : vector<1x64x16xbf16> to vector<64x16xbf16>
    %cst_34 = arith.constant dense<0.000000e+00> : vector<144x16xf32>
    %115 = tpu.matmul %112, %114, %cst_34 {dimension_numbers = #tpu.dot_dimension_numbers<[1], [0], [0], [1], [0, 0, 1, 1], [], []>} : vector<144x64xbf16>, vector<64x16xbf16>, vector<144x16xf32> -> vector<144x16xf32>
    %c0_35 = arith.constant 0 : index
    %c0_36 = arith.constant 0 : index
    %116 = vector.load %arg3[%c0_35, %c0_36] : memref<144x128xbf16, #tpu.memory_space<vmem>>, vector<144x128xbf16>
    %cst_37 = arith.constant 0.000000e+00 : f32
    %117 = vector.broadcast %cst_37 : f32 to vector<16x128xf32>
    %118 = vector.extract_strided_slice %115 {offsets = [0, 0], sizes = [16, 16], strides = [1, 1]} : vector<144x16xf32> to vector<16x16xf32>
    %119 = arith.truncf %118 : vector<16x16xf32> to vector<16x16xbf16>
    %120 = vector.extract_strided_slice %116 {offsets = [0, 0], sizes = [16, 128], strides = [1, 1]} : vector<144x128xbf16> to vector<16x128xbf16>
    %cst_38 = arith.constant dense<0.000000e+00> : vector<16x128xf32>
    %121 = tpu.matmul %119, %120, %cst_38 {dimension_numbers = #tpu.dot_dimension_numbers<[1], [0], [0], [1], [0, 0, 1, 1], [], []>} : vector<16x16xbf16>, vector<16x128xbf16>, vector<16x128xf32> -> vector<16x128xf32>
    %122 = arith.addf %117, %121 : vector<16x128xf32>
    %123 = vector.extract_strided_slice %115 {offsets = [16, 0], sizes = [16, 16], strides = [1, 1]} : vector<144x16xf32> to vector<16x16xf32>
    %124 = arith.truncf %123 : vector<16x16xf32> to vector<16x16xbf16>
    %125 = vector.extract_strided_slice %116 {offsets = [16, 0], sizes = [16, 128], strides = [1, 1]} : vector<144x128xbf16> to vector<16x128xbf16>
    %cst_39 = arith.constant dense<0.000000e+00> : vector<16x128xf32>
    %126 = tpu.matmul %124, %125, %cst_39 {dimension_numbers = #tpu.dot_dimension_numbers<[1], [0], [0], [1], [0, 0, 1, 1], [], []>} : vector<16x16xbf16>, vector<16x128xbf16>, vector<16x128xf32> -> vector<16x128xf32>
    %127 = arith.addf %122, %126 : vector<16x128xf32>
    %128 = vector.extract_strided_slice %115 {offsets = [32, 0], sizes = [16, 16], strides = [1, 1]} : vector<144x16xf32> to vector<16x16xf32>
    %129 = arith.truncf %128 : vector<16x16xf32> to vector<16x16xbf16>
    %130 = vector.extract_strided_slice %116 {offsets = [32, 0], sizes = [16, 128], strides = [1, 1]} : vector<144x128xbf16> to vector<16x128xbf16>
    %cst_40 = arith.constant dense<0.000000e+00> : vector<16x128xf32>
    %131 = tpu.matmul %129, %130, %cst_40 {dimension_numbers = #tpu.dot_dimension_numbers<[1], [0], [0], [1], [0, 0, 1, 1], [], []>} : vector<16x16xbf16>, vector<16x128xbf16>, vector<16x128xf32> -> vector<16x128xf32>
    %132 = arith.addf %127, %131 : vector<16x128xf32>
    %133 = vector.extract_strided_slice %115 {offsets = [48, 0], sizes = [16, 16], strides = [1, 1]} : vector<144x16xf32> to vector<16x16xf32>
    %134 = arith.truncf %133 : vector<16x16xf32> to vector<16x16xbf16>
    %135 = vector.extract_strided_slice %116 {offsets = [48, 0], sizes = [16, 128], strides = [1, 1]} : vector<144x128xbf16> to vector<16x128xbf16>
    %cst_41 = arith.constant dense<0.000000e+00> : vector<16x128xf32>
    %136 = tpu.matmul %134, %135, %cst_41 {dimension_numbers = #tpu.dot_dimension_numbers<[1], [0], [0], [1], [0, 0, 1, 1], [], []>} : vector<16x16xbf16>, vector<16x128xbf16>, vector<16x128xf32> -> vector<16x128xf32>
    %137 = arith.addf %132, %136 : vector<16x128xf32>
    %138 = vector.extract_strided_slice %115 {offsets = [64, 0], sizes = [16, 16], strides = [1, 1]} : vector<144x16xf32> to vector<16x16xf32>
    %139 = arith.truncf %138 : vector<16x16xf32> to vector<16x16xbf16>
    %140 = vector.extract_strided_slice %116 {offsets = [64, 0], sizes = [16, 128], strides = [1, 1]} : vector<144x128xbf16> to vector<16x128xbf16>
    %cst_42 = arith.constant dense<0.000000e+00> : vector<16x128xf32>
    %141 = tpu.matmul %139, %140, %cst_42 {dimension_numbers = #tpu.dot_dimension_numbers<[1], [0], [0], [1], [0, 0, 1, 1], [], []>} : vector<16x16xbf16>, vector<16x128xbf16>, vector<16x128xf32> -> vector<16x128xf32>
    %142 = arith.addf %137, %141 : vector<16x128xf32>
    %143 = vector.extract_strided_slice %115 {offsets = [80, 0], sizes = [16, 16], strides = [1, 1]} : vector<144x16xf32> to vector<16x16xf32>
    %144 = arith.truncf %143 : vector<16x16xf32> to vector<16x16xbf16>
    %145 = vector.extract_strided_slice %116 {offsets = [80, 0], sizes = [16, 128], strides = [1, 1]} : vector<144x128xbf16> to vector<16x128xbf16>
    %cst_43 = arith.constant dense<0.000000e+00> : vector<16x128xf32>
    %146 = tpu.matmul %144, %145, %cst_43 {dimension_numbers = #tpu.dot_dimension_numbers<[1], [0], [0], [1], [0, 0, 1, 1], [], []>} : vector<16x16xbf16>, vector<16x128xbf16>, vector<16x128xf32> -> vector<16x128xf32>
    %147 = arith.addf %142, %146 : vector<16x128xf32>
    %148 = vector.extract_strided_slice %115 {offsets = [96, 0], sizes = [16, 16], strides = [1, 1]} : vector<144x16xf32> to vector<16x16xf32>
    %149 = arith.truncf %148 : vector<16x16xf32> to vector<16x16xbf16>
    %150 = vector.extract_strided_slice %116 {offsets = [96, 0], sizes = [16, 128], strides = [1, 1]} : vector<144x128xbf16> to vector<16x128xbf16>
    %cst_44 = arith.constant dense<0.000000e+00> : vector<16x128xf32>
    %151 = tpu.matmul %149, %150, %cst_44 {dimension_numbers = #tpu.dot_dimension_numbers<[1], [0], [0], [1], [0, 0, 1, 1], [], []>} : vector<16x16xbf16>, vector<16x128xbf16>, vector<16x128xf32> -> vector<16x128xf32>
    %152 = arith.addf %147, %151 : vector<16x128xf32>
    %153 = vector.extract_strided_slice %115 {offsets = [112, 0], sizes = [16, 16], strides = [1, 1]} : vector<144x16xf32> to vector<16x16xf32>
    %154 = arith.truncf %153 : vector<16x16xf32> to vector<16x16xbf16>
    %155 = vector.extract_strided_slice %116 {offsets = [112, 0], sizes = [16, 128], strides = [1, 1]} : vector<144x128xbf16> to vector<16x128xbf16>
    %cst_45 = arith.constant dense<0.000000e+00> : vector<16x128xf32>
    %156 = tpu.matmul %154, %155, %cst_45 {dimension_numbers = #tpu.dot_dimension_numbers<[1], [0], [0], [1], [0, 0, 1, 1], [], []>} : vector<16x16xbf16>, vector<16x128xbf16>, vector<16x128xf32> -> vector<16x128xf32>
    %157 = arith.addf %152, %156 : vector<16x128xf32>
    %158 = vector.extract_strided_slice %115 {offsets = [128, 0], sizes = [16, 16], strides = [1, 1]} : vector<144x16xf32> to vector<16x16xf32>
    %159 = arith.truncf %158 : vector<16x16xf32> to vector<16x16xbf16>
    %160 = vector.extract_strided_slice %116 {offsets = [128, 0], sizes = [16, 128], strides = [1, 1]} : vector<144x128xbf16> to vector<16x128xbf16>
    %cst_46 = arith.constant dense<0.000000e+00> : vector<16x128xf32>
    %161 = tpu.matmul %159, %160, %cst_46 {dimension_numbers = #tpu.dot_dimension_numbers<[1], [0], [0], [1], [0, 0, 1, 1], [], []>} : vector<16x16xbf16>, vector<16x128xbf16>, vector<16x128xf32> -> vector<16x128xf32>
    %162 = arith.addf %157, %161 : vector<16x128xf32>
    %c0_47 = arith.constant 0 : index
    %c0_48 = arith.constant 0 : index
    %163 = vector.load %arg4[%c0_47, %c0_48] : memref<1x128xf32, #tpu.memory_space<vmem>>, vector<1x128xf32>
    %164 = vector.broadcast %163 : vector<1x128xf32> to vector<16x128xf32>
    %165 = arith.addf %162, %164 : vector<16x128xf32>
    %cst_49 = arith.constant 0.000000e+00 : f32
    %166 = vector.broadcast %cst_49 : f32 to vector<16x128xf32>
    %167 = arith.maximumf %165, %166 : vector<16x128xf32>
    %c0_50 = arith.constant 0 : index
    %c0_51 = arith.constant 0 : index
    %c0_52 = arith.constant 0 : index
    %168 = vector.load %arg5[%c0_50, %c0_51, %c0_52] : memref<1x16x128xf32, #tpu.memory_space<vmem>>, vector<1x16x128xf32>
    %169 = vector.shape_cast %168 : vector<1x16x128xf32> to vector<16x128xf32>
    %170 = vector.shape_cast %167 : vector<16x128xf32> to vector<1x16x128xf32>
    tpu.vector_store %arg5[%c0_50, %c0_51, %c0_52], %170 {strides = array<i32>} : memref<1x16x128xf32, #tpu.memory_space<vmem>>, vector<1x16x128xf32>,
    return
  }
  func.func @transform_0(%arg0: i32) -> (i32, i32, i32) {
    %c0_i32 = arith.constant 0 : i32
    %c0_i32_0 = arith.constant 0 : i32
    %c0_i32_1 = arith.constant 0 : i32
    return %arg0, %c0_i32, %c0_i32_0 : i32, i32, i32
  }
  func.func @transform_1(%arg0: i32) -> (i32, i32, i32) {
    %c0_i32 = arith.constant 0 : i32
    %c0_i32_0 = arith.constant 0 : i32
    %c0_i32_1 = arith.constant 0 : i32
    return %arg0, %c0_i32, %c0_i32_0 : i32, i32, i32
  }
  func.func @transform_2(%arg0: i32) -> (i32, i32) {
    %c0_i32 = arith.constant 0 : i32
    %c0_i32_0 = arith.constant 0 : i32
    %c0_i32_1 = arith.constant 0 : i32
    return %c0_i32, %c0_i32_0 : i32, i32
  }
  func.func @transform_3(%arg0: i32) -> (i32, i32) {
    %c0_i32 = arith.constant 0 : i32
    %c0_i32_0 = arith.constant 0 : i32
    %c0_i32_1 = arith.constant 0 : i32
    return %c0_i32, %c0_i32_0 : i32, i32
  }
  func.func @transform_4(%arg0: i32) -> (i32, i32, i32) {
    %c0_i32 = arith.constant 0 : i32
    %c0_i32_0 = arith.constant 0 : i32
    %c0_i32_1 = arith.constant 0 : i32
    return %arg0, %c0_i32, %c0_i32_0 : i32, i32, i32
  }
}

module attributes {stable_mosaic.version = 11 : i64} {
  func.func @_rpn_fused_kernel(%arg0: i32, %arg1: memref<128x144xbf16, #tpu.memory_space<vmem>>, %arg2: memref<144x16xbf16, #tpu.memory_space<vmem>>, %arg3: memref<1x16xf32, #tpu.memory_space<vmem>>, %arg4: memref<16x128xbf16, #tpu.memory_space<vmem>>, %arg5: memref<1x128xf32, #tpu.memory_space<vmem>>, %arg6: memref<128x128xf32, #tpu.memory_space<vmem>>) attributes {dimension_semantics = [#tpu.dimension_semantics<arbitrary>], iteration_bounds = array<i64: 1>, scalar_prefetch = 0 : i64, scratch_operands = 0 : i64, tpu.core_type = #tpu.core_type<tc>, window_params = [{pipeline_mode = #tpu.pipeline_mode<synchronous>, transform_indices = @transform_0, window_bounds = array<i64: 128, 144>}, {pipeline_mode = #tpu.pipeline_mode<synchronous>, transform_indices = @transform_1, window_bounds = array<i64: 144, 16>}, {pipeline_mode = #tpu.pipeline_mode<synchronous>, transform_indices = @transform_2, window_bounds = array<i64: 1, 16>}, {pipeline_mode = #tpu.pipeline_mode<synchronous>, transform_indices = @transform_3, window_bounds = array<i64: 16, 128>}, {pipeline_mode = #tpu.pipeline_mode<synchronous>, transform_indices = @transform_4, window_bounds = array<i64: 1, 128>}, {pipeline_mode = #tpu.pipeline_mode<synchronous>, transform_indices = @transform_5, window_bounds = array<i64: 128, 128>}]} {
    %c0 = arith.constant 0 : index
    %c0_0 = arith.constant 0 : index
    %0 = vector.load %arg1[%c0, %c0_0] : memref<128x144xbf16, #tpu.memory_space<vmem>>, vector<128x144xbf16>
    %c0_1 = arith.constant 0 : index
    %c0_2 = arith.constant 0 : index
    %1 = vector.load %arg2[%c0_1, %c0_2] : memref<144x16xbf16, #tpu.memory_space<vmem>>, vector<144x16xbf16>
    %cst = arith.constant dense<0.000000e+00> : vector<128x16xf32>
    %2 = tpu.matmul %0, %1, %cst {dimension_numbers = #tpu.dot_dimension_numbers<[1], [0], [0], [1], [0, 0, 1, 1], [], []>} : vector<128x144xbf16>, vector<144x16xbf16>, vector<128x16xf32> -> vector<128x16xf32>
    %c0_3 = arith.constant 0 : index
    %c0_4 = arith.constant 0 : index
    %3 = vector.load %arg3[%c0_3, %c0_4] : memref<1x16xf32, #tpu.memory_space<vmem>>, vector<1x16xf32>
    %4 = vector.broadcast %3 : vector<1x16xf32> to vector<128x16xf32>
    %5 = arith.addf %2, %4 : vector<128x16xf32>
    %cst_5 = arith.constant 0.000000e+00 : f32
    %6 = vector.broadcast %cst_5 : f32 to vector<128x16xf32>
    %7 = arith.maximumf %5, %6 : vector<128x16xf32>
    %8 = arith.truncf %7 : vector<128x16xf32> to vector<128x16xbf16>
    %c0_6 = arith.constant 0 : index
    %c0_7 = arith.constant 0 : index
    %9 = vector.load %arg4[%c0_6, %c0_7] : memref<16x128xbf16, #tpu.memory_space<vmem>>, vector<16x128xbf16>
    %cst_8 = arith.constant dense<0.000000e+00> : vector<128x128xf32>
    %10 = tpu.matmul %8, %9, %cst_8 {dimension_numbers = #tpu.dot_dimension_numbers<[1], [0], [0], [1], [0, 0, 1, 1], [], []>} : vector<128x16xbf16>, vector<16x128xbf16>, vector<128x128xf32> -> vector<128x128xf32>
    %c0_9 = arith.constant 0 : index
    %c0_10 = arith.constant 0 : index
    %11 = vector.load %arg5[%c0_9, %c0_10] : memref<1x128xf32, #tpu.memory_space<vmem>>, vector<1x128xf32>
    %12 = vector.broadcast %11 : vector<1x128xf32> to vector<128x128xf32>
    %13 = arith.addf %10, %12 : vector<128x128xf32>
    %c0_11 = arith.constant 0 : index
    %c0_12 = arith.constant 0 : index
    %14 = vector.load %arg6[%c0_11, %c0_12] : memref<128x128xf32, #tpu.memory_space<vmem>>, vector<128x128xf32>
    tpu.vector_store %arg6[%c0_11, %c0_12], %13 {strides = array<i32>} : memref<128x128xf32, #tpu.memory_space<vmem>>, vector<128x128xf32>,
    return
  }
  func.func @transform_0(%arg0: i32) -> (i32, i32) {
    %c0_i32 = arith.constant 0 : i32
    %c0_i32_0 = arith.constant 0 : i32
    %c0_i32_1 = arith.constant 0 : i32
    return %c0_i32, %c0_i32_0 : i32, i32
  }
  func.func @transform_1(%arg0: i32) -> (i32, i32) {
    %c0_i32 = arith.constant 0 : i32
    %c0_i32_0 = arith.constant 0 : i32
    %c0_i32_1 = arith.constant 0 : i32
    return %c0_i32, %c0_i32_0 : i32, i32
  }
  func.func @transform_2(%arg0: i32) -> (i32, i32) {
    %c0_i32 = arith.constant 0 : i32
    %c0_i32_0 = arith.constant 0 : i32
    %c0_i32_1 = arith.constant 0 : i32
    return %c0_i32, %c0_i32_0 : i32, i32
  }
  func.func @transform_3(%arg0: i32) -> (i32, i32) {
    %c0_i32 = arith.constant 0 : i32
    %c0_i32_0 = arith.constant 0 : i32
    %c0_i32_1 = arith.constant 0 : i32
    return %c0_i32, %c0_i32_0 : i32, i32
  }
  func.func @transform_4(%arg0: i32) -> (i32, i32) {
    %c0_i32 = arith.constant 0 : i32
    %c0_i32_0 = arith.constant 0 : i32
    %c0_i32_1 = arith.constant 0 : i32
    return %c0_i32, %c0_i32_0 : i32, i32
  }
  func.func @transform_5(%arg0: i32) -> (i32, i32) {
    %c0_i32 = arith.constant 0 : i32
    %c0_i32_0 = arith.constant 0 : i32
    %c0_i32_1 = arith.constant 0 : i32
    return %c0_i32, %c0_i32_0 : i32, i32
  }
}

module attributes {stable_mosaic.version = 11 : i64} {
  func.func @_roi_box_head_kernel(%arg0: i32, %arg1: memref<1x128x2xf32, #tpu.memory_space<vmem>>, %arg2: memref<1x16x32xbf16, #tpu.memory_space<vmem>>, %arg3: memref<512x128xbf16, #tpu.memory_space<vmem>>, %arg4: memref<1x128xf32, #tpu.memory_space<vmem>>, %arg5: memref<128x128xbf16, #tpu.memory_space<vmem>>, %arg6: memref<1x128xf32, #tpu.memory_space<vmem>>, %arg7: memref<128x128xbf16, #tpu.memory_space<vmem>>, %arg8: memref<1x128xf32, #tpu.memory_space<vmem>>, %arg9: memref<1x8x128xf32, #tpu.memory_space<vmem>>, %arg10: memref<1x8x128xf32, #tpu.memory_space<vmem>>) attributes {dimension_semantics = [#tpu.dimension_semantics<parallel>], iteration_bounds = array<i64: 2>, scalar_prefetch = 0 : i64, scratch_operands = 0 : i64, tpu.core_type = #tpu.core_type<tc>, window_params = [{transform_indices = @transform_0, window_bounds = array<i64: 1, 128, 2>}, {transform_indices = @transform_1, window_bounds = array<i64: 1, 16, 32>}, {pipeline_mode = #tpu.pipeline_mode<synchronous>, transform_indices = @transform_2, window_bounds = array<i64: 512, 128>}, {pipeline_mode = #tpu.pipeline_mode<synchronous>, transform_indices = @transform_3, window_bounds = array<i64: 1, 128>}, {pipeline_mode = #tpu.pipeline_mode<synchronous>, transform_indices = @transform_4, window_bounds = array<i64: 128, 128>}, {pipeline_mode = #tpu.pipeline_mode<synchronous>, transform_indices = @transform_5, window_bounds = array<i64: 1, 128>}, {pipeline_mode = #tpu.pipeline_mode<synchronous>, transform_indices = @transform_6, window_bounds = array<i64: 128, 128>}, {pipeline_mode = #tpu.pipeline_mode<synchronous>, transform_indices = @transform_7, window_bounds = array<i64: 1, 128>}, {transform_indices = @transform_8, window_bounds = array<i64: 1, 8, 128>}, {transform_indices = @transform_9, window_bounds = array<i64: 1, 8, 128>}]} {
    %c0 = arith.constant 0 : index
    %c0_0 = arith.constant 0 : index
    %c0_1 = arith.constant 0 : index
    %0 = vector.load %arg1[%c0, %c0_0, %c0_1] : memref<1x128x2xf32, #tpu.memory_space<vmem>>, vector<1x128x2xf32>
    %1 = vector.shape_cast %0 : vector<1x128x2xf32> to vector<128x2xf32>
    %2 = vector.extract_strided_slice %1 {offsets = [0, 0], sizes = [128, 1], strides = [1, 1]} : vector<128x2xf32> to vector<128x1xf32>
    %3 = vector.extract_strided_slice %1 {offsets = [0, 1], sizes = [128, 1], strides = [1, 1]} : vector<128x2xf32> to vector<128x1xf32>
    %4 = tpu.iota {dimensions = array<i32: 1>} : vector<128x16xi32>
    %5 = arith.sitofp %4 : vector<128x16xi32> to vector<128x16xf32>
    %6 = math.floor %2 : vector<128x1xf32>
    %7 = math.floor %3 : vector<128x1xf32>
    %8 = arith.subf %2, %6 : vector<128x1xf32>
    %9 = arith.subf %3, %7 : vector<128x1xf32>
    %cst = arith.constant 1.000000e+00 : f32
    %10 = vector.broadcast %cst : f32 to vector<128x1xf32>
    %11 = arith.subf %10, %8 : vector<128x1xf32>
    %cst_2 = arith.constant 1.000000e+00 : f32
    %12 = vector.broadcast %cst_2 : f32 to vector<128x1xf32>
    %13 = arith.subf %12, %9 : vector<128x1xf32>
    %14 = arith.mulf %11, %13 : vector<128x1xf32>
    %cst_3 = arith.constant 0.000000e+00 : f32
    %cst_4 = arith.constant 3.000000e+00 : f32
    %15 = vector.broadcast %cst_3 : f32 to vector<128x1xf32>
    %16 = arith.maximumf %15, %6 : vector<128x1xf32>
    %17 = vector.broadcast %cst_4 : f32 to vector<128x1xf32>
    %18 = arith.minimumf %17, %16 : vector<128x1xf32>
    %cst_5 = arith.constant 0.000000e+00 : f32
    %cst_6 = arith.constant 3.000000e+00 : f32
    %19 = vector.broadcast %cst_5 : f32 to vector<128x1xf32>
    %20 = arith.maximumf %19, %7 : vector<128x1xf32>
    %21 = vector.broadcast %cst_6 : f32 to vector<128x1xf32>
    %22 = arith.minimumf %21, %20 : vector<128x1xf32>
    %cst_7 = arith.constant 4.000000e+00 : f32
    %23 = vector.broadcast %cst_7 : f32 to vector<128x1xf32>
    %24 = arith.mulf %18, %23 : vector<128x1xf32>
    %25 = arith.addf %24, %22 : vector<128x1xf32>
    %26 = vector.broadcast %25 : vector<128x1xf32> to vector<128x16xf32>
    %27 = arith.cmpf oeq, %5, %26 : vector<128x16xf32>
    %28 = arith.extui %27 : vector<128x16xi1> to vector<128x16xi32>
    %29 = arith.sitofp %28 : vector<128x16xi32> to vector<128x16xf32>
    %30 = vector.broadcast %14 : vector<128x1xf32> to vector<128x16xf32>
    %31 = arith.mulf %30, %29 : vector<128x16xf32>
    %cst_8 = arith.constant 1.000000e+00 : f32
    %32 = vector.broadcast %cst_8 : f32 to vector<128x1xf32>
    %33 = arith.addf %7, %32 : vector<128x1xf32>
    %34 = arith.mulf %11, %9 : vector<128x1xf32>
    %cst_9 = arith.constant 0.000000e+00 : f32
    %cst_10 = arith.constant 3.000000e+00 : f32
    %35 = vector.broadcast %cst_9 : f32 to vector<128x1xf32>
    %36 = arith.maximumf %35, %6 : vector<128x1xf32>
    %37 = vector.broadcast %cst_10 : f32 to vector<128x1xf32>
    %38 = arith.minimumf %37, %36 : vector<128x1xf32>
    %cst_11 = arith.constant 0.000000e+00 : f32
    %cst_12 = arith.constant 3.000000e+00 : f32
    %39 = vector.broadcast %cst_11 : f32 to vector<128x1xf32>
    %40 = arith.maximumf %39, %33 : vector<128x1xf32>
    %41 = vector.broadcast %cst_12 : f32 to vector<128x1xf32>
    %42 = arith.minimumf %41, %40 : vector<128x1xf32>
    %cst_13 = arith.constant 4.000000e+00 : f32
    %43 = vector.broadcast %cst_13 : f32 to vector<128x1xf32>
    %44 = arith.mulf %38, %43 : vector<128x1xf32>
    %45 = arith.addf %44, %42 : vector<128x1xf32>
    %46 = vector.broadcast %45 : vector<128x1xf32> to vector<128x16xf32>
    %47 = arith.cmpf oeq, %5, %46 : vector<128x16xf32>
    %48 = arith.extui %47 : vector<128x16xi1> to vector<128x16xi32>
    %49 = arith.sitofp %48 : vector<128x16xi32> to vector<128x16xf32>
    %50 = vector.broadcast %34 : vector<128x1xf32> to vector<128x16xf32>
    %51 = arith.mulf %50, %49 : vector<128x16xf32>
    %52 = arith.addf %31, %51 : vector<128x16xf32>
    %cst_14 = arith.constant 1.000000e+00 : f32
    %53 = vector.broadcast %cst_14 : f32 to vector<128x1xf32>
    %54 = arith.addf %6, %53 : vector<128x1xf32>
    %55 = arith.mulf %8, %13 : vector<128x1xf32>
    %cst_15 = arith.constant 0.000000e+00 : f32
    %cst_16 = arith.constant 3.000000e+00 : f32
    %56 = vector.broadcast %cst_15 : f32 to vector<128x1xf32>
    %57 = arith.maximumf %56, %54 : vector<128x1xf32>
    %58 = vector.broadcast %cst_16 : f32 to vector<128x1xf32>
    %59 = arith.minimumf %58, %57 : vector<128x1xf32>
    %cst_17 = arith.constant 0.000000e+00 : f32
    %cst_18 = arith.constant 3.000000e+00 : f32
    %60 = vector.broadcast %cst_17 : f32 to vector<128x1xf32>
    %61 = arith.maximumf %60, %7 : vector<128x1xf32>
    %62 = vector.broadcast %cst_18 : f32 to vector<128x1xf32>
    %63 = arith.minimumf %62, %61 : vector<128x1xf32>
    %cst_19 = arith.constant 4.000000e+00 : f32
    %64 = vector.broadcast %cst_19 : f32 to vector<128x1xf32>
    %65 = arith.mulf %59, %64 : vector<128x1xf32>
    %66 = arith.addf %65, %63 : vector<128x1xf32>
    %67 = vector.broadcast %66 : vector<128x1xf32> to vector<128x16xf32>
    %68 = arith.cmpf oeq, %5, %67 : vector<128x16xf32>
    %69 = arith.extui %68 : vector<128x16xi1> to vector<128x16xi32>
    %70 = arith.sitofp %69 : vector<128x16xi32> to vector<128x16xf32>
    %71 = vector.broadcast %55 : vector<128x1xf32> to vector<128x16xf32>
    %72 = arith.mulf %71, %70 : vector<128x16xf32>
    %73 = arith.addf %52, %72 : vector<128x16xf32>
    %cst_20 = arith.constant 1.000000e+00 : f32
    %74 = vector.broadcast %cst_20 : f32 to vector<128x1xf32>
    %75 = arith.addf %6, %74 : vector<128x1xf32>
    %cst_21 = arith.constant 1.000000e+00 : f32
    %76 = vector.broadcast %cst_21 : f32 to vector<128x1xf32>
    %77 = arith.addf %7, %76 : vector<128x1xf32>
    %78 = arith.mulf %8, %9 : vector<128x1xf32>
    %cst_22 = arith.constant 0.000000e+00 : f32
    %cst_23 = arith.constant 3.000000e+00 : f32
    %79 = vector.broadcast %cst_22 : f32 to vector<128x1xf32>
    %80 = arith.maximumf %79, %75 : vector<128x1xf32>
    %81 = vector.broadcast %cst_23 : f32 to vector<128x1xf32>
    %82 = arith.minimumf %81, %80 : vector<128x1xf32>
    %cst_24 = arith.constant 0.000000e+00 : f32
    %cst_25 = arith.constant 3.000000e+00 : f32
    %83 = vector.broadcast %cst_24 : f32 to vector<128x1xf32>
    %84 = arith.maximumf %83, %77 : vector<128x1xf32>
    %85 = vector.broadcast %cst_25 : f32 to vector<128x1xf32>
    %86 = arith.minimumf %85, %84 : vector<128x1xf32>
    %cst_26 = arith.constant 4.000000e+00 : f32
    %87 = vector.broadcast %cst_26 : f32 to vector<128x1xf32>
    %88 = arith.mulf %82, %87 : vector<128x1xf32>
    %89 = arith.addf %88, %86 : vector<128x1xf32>
    %90 = vector.broadcast %89 : vector<128x1xf32> to vector<128x16xf32>
    %91 = arith.cmpf oeq, %5, %90 : vector<128x16xf32>
    %92 = arith.extui %91 : vector<128x16xi1> to vector<128x16xi32>
    %93 = arith.sitofp %92 : vector<128x16xi32> to vector<128x16xf32>
    %94 = vector.broadcast %78 : vector<128x1xf32> to vector<128x16xf32>
    %95 = arith.mulf %94, %93 : vector<128x16xf32>
    %96 = arith.addf %73, %95 : vector<128x16xf32>
    %cst_27 = arith.constant -1.000000e+00 : f32
    %97 = vector.broadcast %cst_27 : f32 to vector<128x1xf32>
    %98 = arith.cmpf ogt, %2, %97 : vector<128x1xf32>
    %cst_28 = arith.constant 4.000000e+00 : f32
    %99 = vector.broadcast %cst_28 : f32 to vector<128x1xf32>
    %100 = arith.cmpf olt, %2, %99 : vector<128x1xf32>
    %101 = arith.andi %98, %100 : vector<128x1xi1>
    %cst_29 = arith.constant -1.000000e+00 : f32
    %102 = vector.broadcast %cst_29 : f32 to vector<128x1xf32>
    %103 = arith.cmpf ogt, %3, %102 : vector<128x1xf32>
    %104 = arith.andi %101, %103 : vector<128x1xi1>
    %cst_30 = arith.constant 4.000000e+00 : f32
    %105 = vector.broadcast %cst_30 : f32 to vector<128x1xf32>
    %106 = arith.cmpf olt, %3, %105 : vector<128x1xf32>
    %107 = arith.andi %104, %106 : vector<128x1xi1>
    %108 = arith.extui %107 : vector<128x1xi1> to vector<128x1xi32>
    %109 = arith.sitofp %108 : vector<128x1xi32> to vector<128x1xf32>
    %110 = vector.broadcast %109 : vector<128x1xf32> to vector<128x16xf32>
    %111 = arith.mulf %96, %110 : vector<128x16xf32>
    %112 = arith.truncf %111 : vector<128x16xf32> to vector<128x16xbf16>
    %c0_31 = arith.constant 0 : index
    %c0_32 = arith.constant 0 : index
    %c0_33 = arith.constant 0 : index
    %113 = vector.load %arg2[%c0_31, %c0_32, %c0_33] : memref<1x16x32xbf16, #tpu.memory_space<vmem>>, vector<1x16x32xbf16>
    %114 = vector.shape_cast %113 : vector<1x16x32xbf16> to vector<16x32xbf16>
    %cst_34 = arith.constant dense<0.000000e+00> : vector<128x32xf32>
    %115 = tpu.matmul %112, %114, %cst_34 {dimension_numbers = #tpu.dot_dimension_numbers<[1], [0], [0], [1], [0, 0, 1, 1], [], []>} : vector<128x16xbf16>, vector<16x32xbf16>, vector<128x32xf32> -> vector<128x32xf32>
    %c0_35 = arith.constant 0 : index
    %c0_36 = arith.constant 0 : index
    %116 = vector.load %arg3[%c0_35, %c0_36] : memref<512x128xbf16, #tpu.memory_space<vmem>>, vector<512x128xbf16>
    %cst_37 = arith.constant 0.000000e+00 : f32
    %117 = vector.broadcast %cst_37 : f32 to vector<8x128xf32>
    %118 = vector.extract_strided_slice %115 {offsets = [0, 0], sizes = [8, 32], strides = [1, 1]} : vector<128x32xf32> to vector<8x32xf32>
    %119 = arith.truncf %118 : vector<8x32xf32> to vector<8x32xbf16>
    %120 = vector.extract_strided_slice %116 {offsets = [0, 0], sizes = [32, 128], strides = [1, 1]} : vector<512x128xbf16> to vector<32x128xbf16>
    %cst_38 = arith.constant dense<0.000000e+00> : vector<8x128xf32>
    %121 = tpu.matmul %119, %120, %cst_38 {dimension_numbers = #tpu.dot_dimension_numbers<[1], [0], [0], [1], [0, 0, 1, 1], [], []>} : vector<8x32xbf16>, vector<32x128xbf16>, vector<8x128xf32> -> vector<8x128xf32>
    %122 = arith.addf %117, %121 : vector<8x128xf32>
    %123 = vector.extract_strided_slice %115 {offsets = [8, 0], sizes = [8, 32], strides = [1, 1]} : vector<128x32xf32> to vector<8x32xf32>
    %124 = arith.truncf %123 : vector<8x32xf32> to vector<8x32xbf16>
    %125 = vector.extract_strided_slice %116 {offsets = [32, 0], sizes = [32, 128], strides = [1, 1]} : vector<512x128xbf16> to vector<32x128xbf16>
    %cst_39 = arith.constant dense<0.000000e+00> : vector<8x128xf32>
    %126 = tpu.matmul %124, %125, %cst_39 {dimension_numbers = #tpu.dot_dimension_numbers<[1], [0], [0], [1], [0, 0, 1, 1], [], []>} : vector<8x32xbf16>, vector<32x128xbf16>, vector<8x128xf32> -> vector<8x128xf32>
    %127 = arith.addf %122, %126 : vector<8x128xf32>
    %128 = vector.extract_strided_slice %115 {offsets = [16, 0], sizes = [8, 32], strides = [1, 1]} : vector<128x32xf32> to vector<8x32xf32>
    %129 = arith.truncf %128 : vector<8x32xf32> to vector<8x32xbf16>
    %130 = vector.extract_strided_slice %116 {offsets = [64, 0], sizes = [32, 128], strides = [1, 1]} : vector<512x128xbf16> to vector<32x128xbf16>
    %cst_40 = arith.constant dense<0.000000e+00> : vector<8x128xf32>
    %131 = tpu.matmul %129, %130, %cst_40 {dimension_numbers = #tpu.dot_dimension_numbers<[1], [0], [0], [1], [0, 0, 1, 1], [], []>} : vector<8x32xbf16>, vector<32x128xbf16>, vector<8x128xf32> -> vector<8x128xf32>
    %132 = arith.addf %127, %131 : vector<8x128xf32>
    %133 = vector.extract_strided_slice %115 {offsets = [24, 0], sizes = [8, 32], strides = [1, 1]} : vector<128x32xf32> to vector<8x32xf32>
    %134 = arith.truncf %133 : vector<8x32xf32> to vector<8x32xbf16>
    %135 = vector.extract_strided_slice %116 {offsets = [96, 0], sizes = [32, 128], strides = [1, 1]} : vector<512x128xbf16> to vector<32x128xbf16>
    %cst_41 = arith.constant dense<0.000000e+00> : vector<8x128xf32>
    %136 = tpu.matmul %134, %135, %cst_41 {dimension_numbers = #tpu.dot_dimension_numbers<[1], [0], [0], [1], [0, 0, 1, 1], [], []>} : vector<8x32xbf16>, vector<32x128xbf16>, vector<8x128xf32> -> vector<8x128xf32>
    %137 = arith.addf %132, %136 : vector<8x128xf32>
    %138 = vector.extract_strided_slice %115 {offsets = [32, 0], sizes = [8, 32], strides = [1, 1]} : vector<128x32xf32> to vector<8x32xf32>
    %139 = arith.truncf %138 : vector<8x32xf32> to vector<8x32xbf16>
    %140 = vector.extract_strided_slice %116 {offsets = [128, 0], sizes = [32, 128], strides = [1, 1]} : vector<512x128xbf16> to vector<32x128xbf16>
    %cst_42 = arith.constant dense<0.000000e+00> : vector<8x128xf32>
    %141 = tpu.matmul %139, %140, %cst_42 {dimension_numbers = #tpu.dot_dimension_numbers<[1], [0], [0], [1], [0, 0, 1, 1], [], []>} : vector<8x32xbf16>, vector<32x128xbf16>, vector<8x128xf32> -> vector<8x128xf32>
    %142 = arith.addf %137, %141 : vector<8x128xf32>
    %143 = vector.extract_strided_slice %115 {offsets = [40, 0], sizes = [8, 32], strides = [1, 1]} : vector<128x32xf32> to vector<8x32xf32>
    %144 = arith.truncf %143 : vector<8x32xf32> to vector<8x32xbf16>
    %145 = vector.extract_strided_slice %116 {offsets = [160, 0], sizes = [32, 128], strides = [1, 1]} : vector<512x128xbf16> to vector<32x128xbf16>
    %cst_43 = arith.constant dense<0.000000e+00> : vector<8x128xf32>
    %146 = tpu.matmul %144, %145, %cst_43 {dimension_numbers = #tpu.dot_dimension_numbers<[1], [0], [0], [1], [0, 0, 1, 1], [], []>} : vector<8x32xbf16>, vector<32x128xbf16>, vector<8x128xf32> -> vector<8x128xf32>
    %147 = arith.addf %142, %146 : vector<8x128xf32>
    %148 = vector.extract_strided_slice %115 {offsets = [48, 0], sizes = [8, 32], strides = [1, 1]} : vector<128x32xf32> to vector<8x32xf32>
    %149 = arith.truncf %148 : vector<8x32xf32> to vector<8x32xbf16>
    %150 = vector.extract_strided_slice %116 {offsets = [192, 0], sizes = [32, 128], strides = [1, 1]} : vector<512x128xbf16> to vector<32x128xbf16>
    %cst_44 = arith.constant dense<0.000000e+00> : vector<8x128xf32>
    %151 = tpu.matmul %149, %150, %cst_44 {dimension_numbers = #tpu.dot_dimension_numbers<[1], [0], [0], [1], [0, 0, 1, 1], [], []>} : vector<8x32xbf16>, vector<32x128xbf16>, vector<8x128xf32> -> vector<8x128xf32>
    %152 = arith.addf %147, %151 : vector<8x128xf32>
    %153 = vector.extract_strided_slice %115 {offsets = [56, 0], sizes = [8, 32], strides = [1, 1]} : vector<128x32xf32> to vector<8x32xf32>
    %154 = arith.truncf %153 : vector<8x32xf32> to vector<8x32xbf16>
    %155 = vector.extract_strided_slice %116 {offsets = [224, 0], sizes = [32, 128], strides = [1, 1]} : vector<512x128xbf16> to vector<32x128xbf16>
    %cst_45 = arith.constant dense<0.000000e+00> : vector<8x128xf32>
    %156 = tpu.matmul %154, %155, %cst_45 {dimension_numbers = #tpu.dot_dimension_numbers<[1], [0], [0], [1], [0, 0, 1, 1], [], []>} : vector<8x32xbf16>, vector<32x128xbf16>, vector<8x128xf32> -> vector<8x128xf32>
    %157 = arith.addf %152, %156 : vector<8x128xf32>
    %158 = vector.extract_strided_slice %115 {offsets = [64, 0], sizes = [8, 32], strides = [1, 1]} : vector<128x32xf32> to vector<8x32xf32>
    %159 = arith.truncf %158 : vector<8x32xf32> to vector<8x32xbf16>
    %160 = vector.extract_strided_slice %116 {offsets = [256, 0], sizes = [32, 128], strides = [1, 1]} : vector<512x128xbf16> to vector<32x128xbf16>
    %cst_46 = arith.constant dense<0.000000e+00> : vector<8x128xf32>
    %161 = tpu.matmul %159, %160, %cst_46 {dimension_numbers = #tpu.dot_dimension_numbers<[1], [0], [0], [1], [0, 0, 1, 1], [], []>} : vector<8x32xbf16>, vector<32x128xbf16>, vector<8x128xf32> -> vector<8x128xf32>
    %162 = arith.addf %157, %161 : vector<8x128xf32>
    %163 = vector.extract_strided_slice %115 {offsets = [72, 0], sizes = [8, 32], strides = [1, 1]} : vector<128x32xf32> to vector<8x32xf32>
    %164 = arith.truncf %163 : vector<8x32xf32> to vector<8x32xbf16>
    %165 = vector.extract_strided_slice %116 {offsets = [288, 0], sizes = [32, 128], strides = [1, 1]} : vector<512x128xbf16> to vector<32x128xbf16>
    %cst_47 = arith.constant dense<0.000000e+00> : vector<8x128xf32>
    %166 = tpu.matmul %164, %165, %cst_47 {dimension_numbers = #tpu.dot_dimension_numbers<[1], [0], [0], [1], [0, 0, 1, 1], [], []>} : vector<8x32xbf16>, vector<32x128xbf16>, vector<8x128xf32> -> vector<8x128xf32>
    %167 = arith.addf %162, %166 : vector<8x128xf32>
    %168 = vector.extract_strided_slice %115 {offsets = [80, 0], sizes = [8, 32], strides = [1, 1]} : vector<128x32xf32> to vector<8x32xf32>
    %169 = arith.truncf %168 : vector<8x32xf32> to vector<8x32xbf16>
    %170 = vector.extract_strided_slice %116 {offsets = [320, 0], sizes = [32, 128], strides = [1, 1]} : vector<512x128xbf16> to vector<32x128xbf16>
    %cst_48 = arith.constant dense<0.000000e+00> : vector<8x128xf32>
    %171 = tpu.matmul %169, %170, %cst_48 {dimension_numbers = #tpu.dot_dimension_numbers<[1], [0], [0], [1], [0, 0, 1, 1], [], []>} : vector<8x32xbf16>, vector<32x128xbf16>, vector<8x128xf32> -> vector<8x128xf32>
    %172 = arith.addf %167, %171 : vector<8x128xf32>
    %173 = vector.extract_strided_slice %115 {offsets = [88, 0], sizes = [8, 32], strides = [1, 1]} : vector<128x32xf32> to vector<8x32xf32>
    %174 = arith.truncf %173 : vector<8x32xf32> to vector<8x32xbf16>
    %175 = vector.extract_strided_slice %116 {offsets = [352, 0], sizes = [32, 128], strides = [1, 1]} : vector<512x128xbf16> to vector<32x128xbf16>
    %cst_49 = arith.constant dense<0.000000e+00> : vector<8x128xf32>
    %176 = tpu.matmul %174, %175, %cst_49 {dimension_numbers = #tpu.dot_dimension_numbers<[1], [0], [0], [1], [0, 0, 1, 1], [], []>} : vector<8x32xbf16>, vector<32x128xbf16>, vector<8x128xf32> -> vector<8x128xf32>
    %177 = arith.addf %172, %176 : vector<8x128xf32>
    %178 = vector.extract_strided_slice %115 {offsets = [96, 0], sizes = [8, 32], strides = [1, 1]} : vector<128x32xf32> to vector<8x32xf32>
    %179 = arith.truncf %178 : vector<8x32xf32> to vector<8x32xbf16>
    %180 = vector.extract_strided_slice %116 {offsets = [384, 0], sizes = [32, 128], strides = [1, 1]} : vector<512x128xbf16> to vector<32x128xbf16>
    %cst_50 = arith.constant dense<0.000000e+00> : vector<8x128xf32>
    %181 = tpu.matmul %179, %180, %cst_50 {dimension_numbers = #tpu.dot_dimension_numbers<[1], [0], [0], [1], [0, 0, 1, 1], [], []>} : vector<8x32xbf16>, vector<32x128xbf16>, vector<8x128xf32> -> vector<8x128xf32>
    %182 = arith.addf %177, %181 : vector<8x128xf32>
    %183 = vector.extract_strided_slice %115 {offsets = [104, 0], sizes = [8, 32], strides = [1, 1]} : vector<128x32xf32> to vector<8x32xf32>
    %184 = arith.truncf %183 : vector<8x32xf32> to vector<8x32xbf16>
    %185 = vector.extract_strided_slice %116 {offsets = [416, 0], sizes = [32, 128], strides = [1, 1]} : vector<512x128xbf16> to vector<32x128xbf16>
    %cst_51 = arith.constant dense<0.000000e+00> : vector<8x128xf32>
    %186 = tpu.matmul %184, %185, %cst_51 {dimension_numbers = #tpu.dot_dimension_numbers<[1], [0], [0], [1], [0, 0, 1, 1], [], []>} : vector<8x32xbf16>, vector<32x128xbf16>, vector<8x128xf32> -> vector<8x128xf32>
    %187 = arith.addf %182, %186 : vector<8x128xf32>
    %188 = vector.extract_strided_slice %115 {offsets = [112, 0], sizes = [8, 32], strides = [1, 1]} : vector<128x32xf32> to vector<8x32xf32>
    %189 = arith.truncf %188 : vector<8x32xf32> to vector<8x32xbf16>
    %190 = vector.extract_strided_slice %116 {offsets = [448, 0], sizes = [32, 128], strides = [1, 1]} : vector<512x128xbf16> to vector<32x128xbf16>
    %cst_52 = arith.constant dense<0.000000e+00> : vector<8x128xf32>
    %191 = tpu.matmul %189, %190, %cst_52 {dimension_numbers = #tpu.dot_dimension_numbers<[1], [0], [0], [1], [0, 0, 1, 1], [], []>} : vector<8x32xbf16>, vector<32x128xbf16>, vector<8x128xf32> -> vector<8x128xf32>
    %192 = arith.addf %187, %191 : vector<8x128xf32>
    %193 = vector.extract_strided_slice %115 {offsets = [120, 0], sizes = [8, 32], strides = [1, 1]} : vector<128x32xf32> to vector<8x32xf32>
    %194 = arith.truncf %193 : vector<8x32xf32> to vector<8x32xbf16>
    %195 = vector.extract_strided_slice %116 {offsets = [480, 0], sizes = [32, 128], strides = [1, 1]} : vector<512x128xbf16> to vector<32x128xbf16>
    %cst_53 = arith.constant dense<0.000000e+00> : vector<8x128xf32>
    %196 = tpu.matmul %194, %195, %cst_53 {dimension_numbers = #tpu.dot_dimension_numbers<[1], [0], [0], [1], [0, 0, 1, 1], [], []>} : vector<8x32xbf16>, vector<32x128xbf16>, vector<8x128xf32> -> vector<8x128xf32>
    %197 = arith.addf %192, %196 : vector<8x128xf32>
    %c0_54 = arith.constant 0 : index
    %c0_55 = arith.constant 0 : index
    %198 = vector.load %arg4[%c0_54, %c0_55] : memref<1x128xf32, #tpu.memory_space<vmem>>, vector<1x128xf32>
    %199 = vector.broadcast %198 : vector<1x128xf32> to vector<8x128xf32>
    %200 = arith.addf %197, %199 : vector<8x128xf32>
    %cst_56 = arith.constant 0.000000e+00 : f32
    %201 = vector.broadcast %cst_56 : f32 to vector<8x128xf32>
    %202 = arith.maximumf %200, %201 : vector<8x128xf32>
    %203 = arith.truncf %202 : vector<8x128xf32> to vector<8x128xbf16>
    %c0_57 = arith.constant 0 : index
    %c0_58 = arith.constant 0 : index
    %204 = vector.load %arg5[%c0_57, %c0_58] : memref<128x128xbf16, #tpu.memory_space<vmem>>, vector<128x128xbf16>
    %cst_59 = arith.constant dense<0.000000e+00> : vector<8x128xf32>
    %205 = tpu.matmul %203, %204, %cst_59 {dimension_numbers = #tpu.dot_dimension_numbers<[1], [0], [0], [1], [0, 0, 1, 1], [], []>} : vector<8x128xbf16>, vector<128x128xbf16>, vector<8x128xf32> -> vector<8x128xf32>
    %c0_60 = arith.constant 0 : index
    %c0_61 = arith.constant 0 : index
    %206 = vector.load %arg6[%c0_60, %c0_61] : memref<1x128xf32, #tpu.memory_space<vmem>>, vector<1x128xf32>
    %207 = vector.broadcast %206 : vector<1x128xf32> to vector<8x128xf32>
    %208 = arith.addf %205, %207 : vector<8x128xf32>
    %cst_62 = arith.constant 0.000000e+00 : f32
    %209 = vector.broadcast %cst_62 : f32 to vector<8x128xf32>
    %210 = arith.maximumf %208, %209 : vector<8x128xf32>
    %c0_63 = arith.constant 0 : index
    %c0_64 = arith.constant 0 : index
    %c0_65 = arith.constant 0 : index
    %211 = vector.load %arg9[%c0_63, %c0_64, %c0_65] : memref<1x8x128xf32, #tpu.memory_space<vmem>>, vector<1x8x128xf32>
    %212 = vector.shape_cast %211 : vector<1x8x128xf32> to vector<8x128xf32>
    %213 = vector.shape_cast %210 : vector<8x128xf32> to vector<1x8x128xf32>
    tpu.vector_store %arg9[%c0_63, %c0_64, %c0_65], %213 {strides = array<i32>} : memref<1x8x128xf32, #tpu.memory_space<vmem>>, vector<1x8x128xf32>,
    %214 = arith.truncf %210 : vector<8x128xf32> to vector<8x128xbf16>
    %c0_66 = arith.constant 0 : index
    %c0_67 = arith.constant 0 : index
    %215 = vector.load %arg7[%c0_66, %c0_67] : memref<128x128xbf16, #tpu.memory_space<vmem>>, vector<128x128xbf16>
    %cst_68 = arith.constant dense<0.000000e+00> : vector<8x128xf32>
    %216 = tpu.matmul %214, %215, %cst_68 {dimension_numbers = #tpu.dot_dimension_numbers<[1], [0], [0], [1], [0, 0, 1, 1], [], []>} : vector<8x128xbf16>, vector<128x128xbf16>, vector<8x128xf32> -> vector<8x128xf32>
    %c0_69 = arith.constant 0 : index
    %c0_70 = arith.constant 0 : index
    %217 = vector.load %arg8[%c0_69, %c0_70] : memref<1x128xf32, #tpu.memory_space<vmem>>, vector<1x128xf32>
    %218 = vector.broadcast %217 : vector<1x128xf32> to vector<8x128xf32>
    %219 = arith.addf %216, %218 : vector<8x128xf32>
    %c0_71 = arith.constant 0 : index
    %c0_72 = arith.constant 0 : index
    %c0_73 = arith.constant 0 : index
    %220 = vector.load %arg10[%c0_71, %c0_72, %c0_73] : memref<1x8x128xf32, #tpu.memory_space<vmem>>, vector<1x8x128xf32>
    %221 = vector.shape_cast %220 : vector<1x8x128xf32> to vector<8x128xf32>
    %222 = vector.shape_cast %219 : vector<8x128xf32> to vector<1x8x128xf32>
    tpu.vector_store %arg10[%c0_71, %c0_72, %c0_73], %222 {strides = array<i32>} : memref<1x8x128xf32, #tpu.memory_space<vmem>>, vector<1x8x128xf32>,
    return
  }
  func.func @transform_0(%arg0: i32) -> (i32, i32, i32) {
    %c0_i32 = arith.constant 0 : i32
    %c0_i32_0 = arith.constant 0 : i32
    %c0_i32_1 = arith.constant 0 : i32
    return %arg0, %c0_i32, %c0_i32_0 : i32, i32, i32
  }
  func.func @transform_1(%arg0: i32) -> (i32, i32, i32) {
    %c0_i32 = arith.constant 0 : i32
    %c0_i32_0 = arith.constant 0 : i32
    %c0_i32_1 = arith.constant 0 : i32
    return %arg0, %c0_i32, %c0_i32_0 : i32, i32, i32
  }
  func.func @transform_2(%arg0: i32) -> (i32, i32) {
    %c0_i32 = arith.constant 0 : i32
    %c0_i32_0 = arith.constant 0 : i32
    %c0_i32_1 = arith.constant 0 : i32
    return %c0_i32, %c0_i32_0 : i32, i32
  }
  func.func @transform_3(%arg0: i32) -> (i32, i32) {
    %c0_i32 = arith.constant 0 : i32
    %c0_i32_0 = arith.constant 0 : i32
    %c0_i32_1 = arith.constant 0 : i32
    return %c0_i32, %c0_i32_0 : i32, i32
  }
  func.func @transform_4(%arg0: i32) -> (i32, i32) {
    %c0_i32 = arith.constant 0 : i32
    %c0_i32_0 = arith.constant 0 : i32
    %c0_i32_1 = arith.constant 0 : i32
    return %c0_i32, %c0_i32_0 : i32, i32
  }
  func.func @transform_5(%arg0: i32) -> (i32, i32) {
    %c0_i32 = arith.constant 0 : i32
    %c0_i32_0 = arith.constant 0 : i32
    %c0_i32_1 = arith.constant 0 : i32
    return %c0_i32, %c0_i32_0 : i32, i32
  }
  func.func @transform_6(%arg0: i32) -> (i32, i32) {
    %c0_i32 = arith.constant 0 : i32
    %c0_i32_0 = arith.constant 0 : i32
    %c0_i32_1 = arith.constant 0 : i32
    return %c0_i32, %c0_i32_0 : i32, i32
  }
  func.func @transform_7(%arg0: i32) -> (i32, i32) {
    %c0_i32 = arith.constant 0 : i32
    %c0_i32_0 = arith.constant 0 : i32
    %c0_i32_1 = arith.constant 0 : i32
    return %c0_i32, %c0_i32_0 : i32, i32
  }
  func.func @transform_8(%arg0: i32) -> (i32, i32, i32) {
    %c0_i32 = arith.constant 0 : i32
    %c0_i32_0 = arith.constant 0 : i32
    %c0_i32_1 = arith.constant 0 : i32
    return %arg0, %c0_i32, %c0_i32_0 : i32, i32, i32
  }
  func.func @transform_9(%arg0: i32) -> (i32, i32, i32) {
    %c0_i32 = arith.constant 0 : i32
    %c0_i32_0 = arith.constant 0 : i32
    %c0_i32_1 = arith.constant 0 : i32
    return %arg0, %c0_i32, %c0_i32_0 : i32, i32, i32
  }
}

</mosaic_0001>

<bundles_post_ra>
// kernel: deform_conv_rcnn_forward.6
= control target key start
LH: loop header
LB: loop body
LE: loop exit
PB: predicated region body
PF: predicated region fallthrough
CT: control target
= control target key end

     0   :  { %vm358_vm0 = vcmask 1044480   ;;  %vm359_vm1 = vcmask 1045504   ;;  %vm261_vm2 = vcmask 220160   ;;  %v994_v1 = vmov 65535   ;;  %s1410_s1 = inlined_call_operand.vmem [shape: bf16[27,128], index: 1, kind: input, shape index: {}]   ;;  %s1411_s0 = inlined_call_operand.vmem [shape: bf16[512,27], index: 0, kind: input, shape index: {}]   ;;  %s1412_s2 = inlined_call_operand.vmem [shape: f32[1,128], index: 2, kind: input, shape index: {}]   ;;  %s1413_s3 = inlined_call_operand.vmem [shape: f32[512,128], index: 3, kind: output, shape index: {}]  }
   0x1   :  { %v960_v0 = vld [vmem:[%s1410_s1] sm:$0xff]   ;;  %v360_v2 = vsel %vm358_vm0, 4294967295, %v994_v1  ;;  %v961_v3 = vld [vmem:[%s1410_s1 + $0x8] sm:$0x3f]   ;;  %v966_v10 = vld [vmem:[%s1411_s0 + $0x10] sm:$0xff]  }
   0x2   :  { %887 = vmatprep.subr.bf16.mxu0 %v960_v0  ;;  %955 = vmatprep.subr.bf16.mxu1 %v960_v0  ;;  %v361_v4 = vsel %vm359_vm1, %v360_v2, 0  ;;  %v962_v5 = vld [vmem:[%s1411_s0] sm:$0xff]   ;;  %v964_v8 = vld [vmem:[%s1411_s0 + $0x8] sm:$0xff]   ;;  %v967_v11 = vld [vmem:[%s1411_s0 + $0x90] sm:$0xff]  }
   0x3   :  { %888 = vmatpush3.bf16.msra.mxu0 %v960_v0  ;;  %957 = vmatpush3.bf16.msra.mxu1 %v960_v0  ;;  %v363_v6 = vand.u32 %v961_v3, %v361_v4  ;;  %v963_v7 = vld [vmem:[%s1411_s0 + $0x80] sm:$0xff]   ;;  %v965_v9 = vld [vmem:[%s1411_s0 + $0x88] sm:$0xff]   ;;  %v968_v12 = vld [vmem:[%s1411_s0 + $0x18] sm:$0xff]  }
   0x4   :  { %891 = vmatprep.mubr.msk.bf16.mxu0 %vm261_vm2, %v962_v5  ;;  %923 = vmatprep.mubr.msk.bf16.mxu1 %vm261_vm2, %v963_v7  ;;  %v969_v13 = vld [vmem:[%s1411_s0 + $0x98] sm:$0xff]   ;;  %v970_v14 = vld [vmem:[%s1411_s0 + $0x20] sm:$0xff]   ;;  %v972_v16 = vld [vmem:[%s1411_s0 + $0x28] sm:$0xff]  }
   0x5   :  { %889 = vmatprep.subr.bf16.mxu0 %v363_v6  ;;  %956 = vmatprep.subr.bf16.mxu1 %v363_v6  ;;  %v971_v15 = vld [vmem:[%s1411_s0 + $0xa0] sm:$0xff]   ;;  %v973_v17 = vld [vmem:[%s1411_s0 + $0xa8] sm:$0xff]   ;;  %v974_v18 = vld [vmem:[%s1411_s0 + $0x30] sm:$0xff]  }
   0x6   :  { %v975_v19 = vld [vmem:[%s1411_s0 + $0xb0] sm:$0xff]   ;;  %v976_v20 = vld [vmem:[%s1411_s0 + $0x38] sm:$0xff]   ;;  %v978_v22 = vld [vmem:[%s1411_s0 + $0x40] sm:$0xff]  }
   0x7   :  { %890 = vmatpush3.bf16.msra.mxu0 %v363_v6  ;;  %958 = vmatpush3.bf16.msra.mxu1 %v363_v6  ;;  %v977_v21 = vld [vmem:[%s1411_s0 + $0xb8] sm:$0xff]   ;;  %v979_v23 = vld [vmem:[%s1411_s0 + $0xc0] sm:$0xff]   ;;  %v980_v24 = vld [vmem:[%s1411_s0 + $0x48] sm:$0xff]  }
   0x8   :  { %v981_v25 = vld [vmem:[%s1411_s0 + $0xc8] sm:$0xff]   ;;  %v982_v26 = vld [vmem:[%s1411_s0 + $0x50] sm:$0xff]   ;;  %v984_v28 = vld [vmem:[%s1411_s0 + $0x58] sm:$0xff]  }
   0x9   :  { %v983_v27 = vld [vmem:[%s1411_s0 + $0xd0] sm:$0xff]   ;;  %v985_v29 = vld [vmem:[%s1411_s0 + $0xd8] sm:$0xff]   ;;  %v986_v30 = vld [vmem:[%s1411_s0 + $0x60] sm:$0xff]  }
   0xa   :  { %892 = vmatmul.mubr.msk.bf16.vlgmr.msra.gmra.mrb[0].mxu0 %vm261_vm2, %v964_v8  ;;  %924 = vmatmul.mubr.msk.bf16.vlgmr.msra.gmra.mrb[0].mxu1 %vm261_vm2, %v965_v9  ;;  %v987_v31 = vld [vmem:[%s1411_s0 + $0xe0] sm:$0xff]   ;;  %v988_v32 = vld [vmem:[%s1411_s0 + $0x68] sm:$0xff]   ;;  %v990_v34 = vld [vmem:[%s1411_s0 + $0x70] sm:$0xff]  }
   0xb   :  { %895 = vmatprep.mubr.msk.bf16.mxu0 %vm261_vm2, %v966_v10  ;;  %927 = vmatprep.mubr.msk.bf16.mxu1 %vm261_vm2, %v967_v11  ;;  %v989_v33 = vld [vmem:[%s1411_s0 + $0xe8] sm:$0xff]   ;;  %v991_v35 = vld [vmem:[%s1411_s0 + $0xf0] sm:$0xff]   ;;  %v992_v36 = vld [vmem:[%s1411_s0 + $0x78] sm:$0xff]  }
   0xc   :  { %v993_v37 = vld [vmem:[%s1411_s0 + $0xf8] sm:$0xff]   ;;  %v1152_v38 = vld [vmem:[%s1412_s2] ss:$0 sm:$0xff] }
  0x12   :  { %896 = vmatmul.mubr.msk.bf16.gmra.mrb[4].mxu0 %vm261_vm2, %v968_v12  ;;  %928 = vmatmul.mubr.msk.bf16.gmra.mrb[4].mxu1 %vm261_vm2, %v969_v13 }
  0x13   :  { %899 = vmatprep.mubr.msk.bf16.mxu0 %vm261_vm2, %v970_v14  ;;  %931 = vmatprep.mubr.msk.bf16.mxu1 %vm261_vm2, %v971_v15 }
  0x1a   :  { %900 = vmatmul.mubr.msk.bf16.gmra.mrb[8].mxu0 %vm261_vm2, %v972_v16  ;;  %932 = vmatmul.mubr.msk.bf16.gmra.mrb[8].mxu1 %vm261_vm2, %v973_v17 }
  0x1b   :  { %903 = vmatprep.mubr.msk.bf16.mxu0 %vm261_vm2, %v974_v18  ;;  %935 = vmatprep.mubr.msk.bf16.mxu1 %vm261_vm2, %v975_v19 }
  0x22   :  { %904 = vmatmul.mubr.msk.bf16.gmra.mrb[12].mxu0 %vm261_vm2, %v976_v20  ;;  %936 = vmatmul.mubr.msk.bf16.gmra.mrb[12].mxu1 %vm261_vm2, %v977_v21 }
  0x23   :  { %907 = vmatprep.mubr.msk.bf16.mxu0 %vm261_vm2, %v978_v22  ;;  %939 = vmatprep.mubr.msk.bf16.mxu1 %vm261_vm2, %v979_v23 }
  0x2a   :  { %908 = vmatmul.mubr.msk.bf16.gmra.mrb[16].mxu0 %vm261_vm2, %v980_v24  ;;  %940 = vmatmul.mubr.msk.bf16.gmra.mrb[16].mxu1 %vm261_vm2, %v981_v25 }
  0x2b   :  { %911 = vmatprep.mubr.msk.bf16.mxu0 %vm261_vm2, %v982_v26  ;;  %943 = vmatprep.mubr.msk.bf16.mxu1 %vm261_vm2, %v983_v27 }
  0x32   :  { %912 = vmatmul.mubr.msk.bf16.gmra.mrb[20].mxu0 %vm261_vm2, %v984_v28  ;;  %944 = vmatmul.mubr.msk.bf16.gmra.mrb[20].mxu1 %vm261_vm2, %v985_v29 }
  0x33   :  { %915 = vmatprep.mubr.msk.bf16.mxu0 %vm261_vm2, %v986_v30  ;;  %947 = vmatprep.mubr.msk.bf16.mxu1 %vm261_vm2, %v987_v31 }
  0x3a   :  { %916 = vmatmul.mubr.msk.bf16.gmra.mrb[24].mxu0 %vm261_vm2, %v988_v32  ;;  %948 = vmatmul.mubr.msk.bf16.gmra.mrb[24].mxu1 %vm261_vm2, %v989_v33 }
  0x3b   :  { %919 = vmatprep.mubr.msk.bf16.mxu0 %vm261_vm2, %v990_v34  ;;  %951 = vmatprep.mubr.msk.bf16.mxu1 %vm261_vm2, %v991_v35 }
  0x42   :  { %920 = vmatmul.mubr.msk.bf16.gmra.mrb[28].mxu0 %vm261_vm2, %v992_v36  ;;  %952 = vmatmul.mubr.msk.bf16.gmra.mrb[28].mxu1 %vm261_vm2, %v993_v37 }
  0xdd   :  { %v893_v39 = vpop.f32.mrb[0].mxu0  ;;  %v925_v40 = vpop.f32.mrb[0].mxu1 }
  0xde   :  { %v408_v41 = vadd.f32 %v893_v39, %v1152_v38  ;;  %v536_v42 = vadd.f32 %v925_v40, %v1152_v38  ;;  %v399_v43 = vpop.f32.mrb[1].mxu0  ;;  %v527_v44 = vpop.f32.mrb[1].mxu1 }
  0xdf   :  { %v400_v45 = vadd.f32 %v1152_v38, %v399_v43  ;;  %v528_v46 = vadd.f32 %v1152_v38, %v527_v44  ;;  %v894_v47 = vpop.f32.mrb[2].mxu0  ;;  %v926_v48 = vpop.f32.mrb[2].mxu1 }
  0xe0   :  { %v656_v49 = vmax.f32 %v408_v41, 0.0  ;;  %v688_v50 = vmax.f32 %v536_v42, 0.0  ;;  %v411_v51 = vadd.f32 %v894_v47, %v1152_v38  ;;  %v539_v52 = vadd.f32 %v926_v48, %v1152_v38  ;;  %v402_v53 = vpop.f32.mrb[3].mxu0  ;;  %v530_v54 = vpop.f32.mrb[3].mxu1 }
  0xe1   :  { %v654_v55 = vmax.f32 %v400_v45, 0.0  ;;  %v686_v56 = vmax.f32 %v528_v46, 0.0  ;;  %v403_v57 = vadd.f32 %v1152_v38, %v402_v53  ;;  %v531_v58 = vadd.f32 %v1152_v38, %v530_v54 }
  0xe2   :  { %720 = vst [vmem:[%s1413_s3 + $0x10] sm:$0xff] %v656_v49  ;;  %752 = vst [vmem:[%s1413_s3 + $0x110] sm:$0xff] %v688_v50  ;;  %v657_v59 = vmax.f32 %v411_v51, 0.0  ;;  %v689_v60 = vmax.f32 %v539_v52, 0.0 }
  0xe3   :  { %718 = vst [vmem:[%s1413_s3] sm:$0xff] %v654_v55  ;;  %750 = vst [vmem:[%s1413_s3 + $0x100] sm:$0xff] %v686_v56  ;;  %v655_v61 = vmax.f32 %v403_v57, 0.0  ;;  %v687_v62 = vmax.f32 %v531_v58, 0.0 }
  0xe4   :  { %721 = vst [vmem:[%s1413_s3 + $0x18] sm:$0xff] %v657_v59  ;;  %753 = vst [vmem:[%s1413_s3 + $0x118] sm:$0xff] %v689_v60 }
  0xe5   :  { %719 = vst [vmem:[%s1413_s3 + $0x8] sm:$0xff] %v655_v61  ;;  %751 = vst [vmem:[%s1413_s3 + $0x108] sm:$0xff] %v687_v62  ;;  %v897_v63 = vpop.f32.mrb[4].mxu0  ;;  %v929_v0 = vpop.f32.mrb[4].mxu1 }
  0xe6   :  { %v424_v1 = vadd.f32 %v897_v63, %v1152_v38  ;;  %v552_v2 = vadd.f32 %v929_v0, %v1152_v38  ;;  %v415_v3 = vpop.f32.mrb[5].mxu0  ;;  %v543_v4 = vpop.f32.mrb[5].mxu1 }
  0xe7   :  { %v416_v5 = vadd.f32 %v1152_v38, %v415_v3  ;;  %v544_v6 = vadd.f32 %v1152_v38, %v543_v4  ;;  %v898_v7 = vpop.f32.mrb[6].mxu0  ;;  %v930_v8 = vpop.f32.mrb[6].mxu1 }
  0xe8   :  { %v660_v9 = vmax.f32 %v424_v1, 0.0  ;;  %v692_v10 = vmax.f32 %v552_v2, 0.0  ;;  %v427_v11 = vadd.f32 %v898_v7, %v1152_v38  ;;  %v555_v12 = vadd.f32 %v930_v8, %v1152_v38  ;;  %v418_v13 = vpop.f32.mrb[7].mxu0  ;;  %v546_v14 = vpop.f32.mrb[7].mxu1 }
  0xe9   :  { %v658_v15 = vmax.f32 %v416_v5, 0.0  ;;  %v690_v16 = vmax.f32 %v544_v6, 0.0  ;;  %v419_v17 = vadd.f32 %v1152_v38, %v418_v13  ;;  %v547_v18 = vadd.f32 %v1152_v38, %v546_v14 }
  0xea   :  { %724 = vst [vmem:[%s1413_s3 + $0x30] sm:$0xff] %v660_v9  ;;  %756 = vst [vmem:[%s1413_s3 + $0x130] sm:$0xff] %v692_v10  ;;  %v661_v19 = vmax.f32 %v427_v11, 0.0  ;;  %v693_v20 = vmax.f32 %v555_v12, 0.0 }
  0xeb   :  { %722 = vst [vmem:[%s1413_s3 + $0x20] sm:$0xff] %v658_v15  ;;  %754 = vst [vmem:[%s1413_s3 + $0x120] sm:$0xff] %v690_v16  ;;  %v659_v21 = vmax.f32 %v419_v17, 0.0  ;;  %v691_v22 = vmax.f32 %v547_v18, 0.0 }
  0xec   :  { %725 = vst [vmem:[%s1413_s3 + $0x38] sm:$0xff] %v661_v19  ;;  %757 = vst [vmem:[%s1413_s3 + $0x138] sm:$0xff] %v693_v20 }
  0xed   :  { %723 = vst [vmem:[%s1413_s3 + $0x28] sm:$0xff] %v659_v21  ;;  %755 = vst [vmem:[%s1413_s3 + $0x128] sm:$0xff] %v691_v22  ;;  %v901_v23 = vpop.f32.mrb[8].mxu0  ;;  %v933_v24 = vpop.f32.mrb[8].mxu1 }
  0xee   :  { %v440_v25 = vadd.f32 %v901_v23, %v1152_v38  ;;  %v568_v26 = vadd.f32 %v933_v24, %v1152_v38  ;;  %v431_v27 = vpop.f32.mrb[9].mxu0  ;;  %v559_v28 = vpop.f32.mrb[9].mxu1 }
  0xef   :  { %v432_v29 = vadd.f32 %v1152_v38, %v431_v27  ;;  %v560_v30 = vadd.f32 %v1152_v38, %v559_v28  ;;  %v902_v31 = vpop.f32.mrb[10].mxu0  ;;  %v934_v32 = vpop.f32.mrb[10].mxu1 }
  0xf0   :  { %v664_v33 = vmax.f32 %v440_v25, 0.0  ;;  %v696_v34 = vmax.f32 %v568_v26, 0.0  ;;  %v443_v35 = vadd.f32 %v902_v31, %v1152_v38  ;;  %v571_v36 = vadd.f32 %v934_v32, %v1152_v38  ;;  %v434_v37 = vpop.f32.mrb[11].mxu0  ;;  %v562_v39 = vpop.f32.mrb[11].mxu1 }
  0xf1   :  { %v662_v40 = vmax.f32 %v432_v29, 0.0  ;;  %v694_v41 = vmax.f32 %v560_v30, 0.0  ;;  %v435_v42 = vadd.f32 %v1152_v38, %v434_v37  ;;  %v563_v43 = vadd.f32 %v1152_v38, %v562_v39 }
  0xf2   :  { %728 = vst [vmem:[%s1413_s3 + $0x50] sm:$0xff] %v664_v33  ;;  %760 = vst [vmem:[%s1413_s3 + $0x150] sm:$0xff] %v696_v34  ;;  %v665_v44 = vmax.f32 %v443_v35, 0.0  ;;  %v697_v45 = vmax.f32 %v571_v36, 0.0 }
  0xf3   :  { %726 = vst [vmem:[%s1413_s3 + $0x40] sm:$0xff] %v662_v40  ;;  %758 = vst [vmem:[%s1413_s3 + $0x140] sm:$0xff] %v694_v41  ;;  %v663_v46 = vmax.f32 %v435_v42, 0.0  ;;  %v695_v47 = vmax.f32 %v563_v43, 0.0 }
  0xf4   :  { %729 = vst [vmem:[%s1413_s3 + $0x58] sm:$0xff] %v665_v44  ;;  %761 = vst [vmem:[%s1413_s3 + $0x158] sm:$0xff] %v697_v45 }
  0xf5   :  { %727 = vst [vmem:[%s1413_s3 + $0x48] sm:$0xff] %v663_v46  ;;  %759 = vst [vmem:[%s1413_s3 + $0x148] sm:$0xff] %v695_v47  ;;  %v905_v48 = vpop.f32.mrb[12].mxu0  ;;  %v937_v49 = vpop.f32.mrb[12].mxu1 }
  0xf6   :  { %v456_v50 = vadd.f32 %v905_v48, %v1152_v38  ;;  %v584_v51 = vadd.f32 %v937_v49, %v1152_v38  ;;  %v447_v52 = vpop.f32.mrb[13].mxu0  ;;  %v575_v53 = vpop.f32.mrb[13].mxu1 }
  0xf7   :  { %v448_v54 = vadd.f32 %v1152_v38, %v447_v52  ;;  %v576_v55 = vadd.f32 %v1152_v38, %v575_v53  ;;  %v906_v56 = vpop.f32.mrb[14].mxu0  ;;  %v938_v57 = vpop.f32.mrb[14].mxu1 }
  0xf8   :  { %v668_v58 = vmax.f32 %v456_v50, 0.0  ;;  %v700_v59 = vmax.f32 %v584_v51, 0.0  ;;  %v459_v60 = vadd.f32 %v906_v56, %v1152_v38  ;;  %v587_v61 = vadd.f32 %v938_v57, %v1152_v38  ;;  %v450_v62 = vpop.f32.mrb[15].mxu0  ;;  %v578_v63 = vpop.f32.mrb[15].mxu1 }
  0xf9   :  { %v666_v0 = vmax.f32 %v448_v54, 0.0  ;;  %v698_v1 = vmax.f32 %v576_v55, 0.0  ;;  %v451_v2 = vadd.f32 %v1152_v38, %v450_v62  ;;  %v579_v3 = vadd.f32 %v1152_v38, %v578_v63 }
  0xfa   :  { %732 = vst [vmem:[%s1413_s3 + $0x70] sm:$0xff] %v668_v58  ;;  %764 = vst [vmem:[%s1413_s3 + $0x170] sm:$0xff] %v700_v59  ;;  %v669_v4 = vmax.f32 %v459_v60, 0.0  ;;  %v701_v5 = vmax.f32 %v587_v61, 0.0 }
  0xfb   :  { %730 = vst [vmem:[%s1413_s3 + $0x60] sm:$0xff] %v666_v0  ;;  %762 = vst [vmem:[%s1413_s3 + $0x160] sm:$0xff] %v698_v1  ;;  %v667_v6 = vmax.f32 %v451_v2, 0.0  ;;  %v699_v7 = vmax.f32 %v579_v3, 0.0 }
  0xfc   :  { %733 = vst [vmem:[%s1413_s3 + $0x78] sm:$0xff] %v669_v4  ;;  %765 = vst [vmem:[%s1413_s3 + $0x178] sm:$0xff] %v701_v5 }
  0xfd   :  { %731 = vst [vmem:[%s1413_s3 + $0x68] sm:$0xff] %v667_v6  ;;  %763 = vst [vmem:[%s1413_s3 + $0x168] sm:$0xff] %v699_v7  ;;  %v909_v8 = vpop.f32.mrb[16].mxu0  ;;  %v941_v9 = vpop.f32.mrb[16].mxu1 }
  0xfe   :  { %v472_v10 = vadd.f32 %v909_v8, %v1152_v38  ;;  %v600_v11 = vadd.f32 %v941_v9, %v1152_v38  ;;  %v463_v12 = vpop.f32.mrb[17].mxu0  ;;  %v591_v13 = vpop.f32.mrb[17].mxu1 }
  0xff   :  { %v464_v14 = vadd.f32 %v1152_v38, %v463_v12  ;;  %v592_v15 = vadd.f32 %v1152_v38, %v591_v13  ;;  %v910_v16 = vpop.f32.mrb[18].mxu0  ;;  %v942_v17 = vpop.f32.mrb[18].mxu1 }
 0x100   :  { %v672_v18 = vmax.f32 %v472_v10, 0.0  ;;  %v704_v19 = vmax.f32 %v600_v11, 0.0  ;;  %v475_v20 = vadd.f32 %v910_v16, %v1152_v38  ;;  %v603_v21 = vadd.f32 %v942_v17, %v1152_v38  ;;  %v466_v22 = vpop.f32.mrb[19].mxu0  ;;  %v594_v23 = vpop.f32.mrb[19].mxu1 }
 0x101   :  { %v670_v24 = vmax.f32 %v464_v14, 0.0  ;;  %v702_v25 = vmax.f32 %v592_v15, 0.0  ;;  %v467_v26 = vadd.f32 %v1152_v38, %v466_v22  ;;  %v595_v27 = vadd.f32 %v1152_v38, %v594_v23 }
 0x102   :  { %736 = vst [vmem:[%s1413_s3 + $0x90] sm:$0xff] %v672_v18  ;;  %768 = vst [vmem:[%s1413_s3 + $0x190] sm:$0xff] %v704_v19  ;;  %v673_v28 = vmax.f32 %v475_v20, 0.0  ;;  %v705_v29 = vmax.f32 %v603_v21, 0.0 }
 0x103   :  { %734 = vst [vmem:[%s1413_s3 + $0x80] sm:$0xff] %v670_v24  ;;  %766 = vst [vmem:[%s1413_s3 + $0x180] sm:$0xff] %v702_v25  ;;  %v671_v30 = vmax.f32 %v467_v26, 0.0  ;;  %v703_v31 = vmax.f32 %v595_v27, 0.0 }
 0x104   :  { %737 = vst [vmem:[%s1413_s3 + $0x98] sm:$0xff] %v673_v28  ;;  %769 = vst [vmem:[%s1413_s3 + $0x198] sm:$0xff] %v705_v29 }
 0x105   :  { %735 = vst [vmem:[%s1413_s3 + $0x88] sm:$0xff] %v671_v30  ;;  %767 = vst [vmem:[%s1413_s3 + $0x188] sm:$0xff] %v703_v31  ;;  %v913_v32 = vpop.f32.mrb[20].mxu0  ;;  %v945_v33 = vpop.f32.mrb[20].mxu1 }
 0x106   :  { %v488_v34 = vadd.f32 %v913_v32, %v1152_v38  ;;  %v616_v35 = vadd.f32 %v945_v33, %v1152_v38  ;;  %v479_v36 = vpop.f32.mrb[21].mxu0  ;;  %v607_v37 = vpop.f32.mrb[21].mxu1 }
 0x107   :  { %v480_v39 = vadd.f32 %v1152_v38, %v479_v36  ;;  %v608_v40 = vadd.f32 %v1152_v38, %v607_v37  ;;  %v914_v41 = vpop.f32.mrb[22].mxu0  ;;  %v946_v42 = vpop.f32.mrb[22].mxu1 }
 0x108   :  { %v676_v43 = vmax.f32 %v488_v34, 0.0  ;;  %v708_v44 = vmax.f32 %v616_v35, 0.0  ;;  %v491_v45 = vadd.f32 %v914_v41, %v1152_v38  ;;  %v619_v46 = vadd.f32 %v946_v42, %v1152_v38  ;;  %v482_v47 = vpop.f32.mrb[23].mxu0  ;;  %v610_v48 = vpop.f32.mrb[23].mxu1 }
 0x109   :  { %v674_v49 = vmax.f32 %v480_v39, 0.0  ;;  %v706_v50 = vmax.f32 %v608_v40, 0.0  ;;  %v483_v51 = vadd.f32 %v1152_v38, %v482_v47  ;;  %v611_v52 = vadd.f32 %v1152_v38, %v610_v48 }
 0x10a   :  { %740 = vst [vmem:[%s1413_s3 + $0xb0] sm:$0xff] %v676_v43  ;;  %772 = vst [vmem:[%s1413_s3 + $0x1b0] sm:$0xff] %v708_v44  ;;  %v677_v53 = vmax.f32 %v491_v45, 0.0  ;;  %v709_v54 = vmax.f32 %v619_v46, 0.0 }
 0x10b   :  { %738 = vst [vmem:[%s1413_s3 + $0xa0] sm:$0xff] %v674_v49  ;;  %770 = vst [vmem:[%s1413_s3 + $0x1a0] sm:$0xff] %v706_v50  ;;  %v675_v55 = vmax.f32 %v483_v51, 0.0  ;;  %v707_v56 = vmax.f32 %v611_v52, 0.0 }
 0x10c   :  { %741 = vst [vmem:[%s1413_s3 + $0xb8] sm:$0xff] %v677_v53  ;;  %773 = vst [vmem:[%s1413_s3 + $0x1b8] sm:$0xff] %v709_v54 }
 0x10d   :  { %739 = vst [vmem:[%s1413_s3 + $0xa8] sm:$0xff] %v675_v55  ;;  %771 = vst [vmem:[%s1413_s3 + $0x1a8] sm:$0xff] %v707_v56  ;;  %v917_v57 = vpop.f32.mrb[24].mxu0  ;;  %v949_v58 = vpop.f32.mrb[24].mxu1 }
 0x10e   :  { %v504_v59 = vadd.f32 %v917_v57, %v1152_v38  ;;  %v632_v60 = vadd.f32 %v949_v58, %v1152_v38  ;;  %v495_v61 = vpop.f32.mrb[25].mxu0  ;;  %v623_v62 = vpop.f32.mrb[25].mxu1 }
 0x10f   :  { %v496_v63 = vadd.f32 %v1152_v38, %v495_v61  ;;  %v624_v0 = vadd.f32 %v1152_v38, %v623_v62  ;;  %v918_v1 = vpop.f32.mrb[26].mxu0  ;;  %v950_v2 = vpop.f32.mrb[26].mxu1 }
 0x110   :  { %v680_v3 = vmax.f32 %v504_v59, 0.0  ;;  %v712_v4 = vmax.f32 %v632_v60, 0.0  ;;  %v507_v5 = vadd.f32 %v918_v1, %v1152_v38  ;;  %v635_v6 = vadd.f32 %v950_v2, %v1152_v38  ;;  %v498_v7 = vpop.f32.mrb[27].mxu0  ;;  %v626_v8 = vpop.f32.mrb[27].mxu1 }
 0x111   :  { %v678_v9 = vmax.f32 %v496_v63, 0.0  ;;  %v710_v10 = vmax.f32 %v624_v0, 0.0  ;;  %v499_v11 = vadd.f32 %v1152_v38, %v498_v7  ;;  %v627_v12 = vadd.f32 %v1152_v38, %v626_v8 }
 0x112   :  { %744 = vst [vmem:[%s1413_s3 + $0xd0] sm:$0xff] %v680_v3  ;;  %776 = vst [vmem:[%s1413_s3 + $0x1d0] sm:$0xff] %v712_v4  ;;  %v681_v13 = vmax.f32 %v507_v5, 0.0  ;;  %v713_v14 = vmax.f32 %v635_v6, 0.0 }
 0x113   :  { %742 = vst [vmem:[%s1413_s3 + $0xc0] sm:$0xff] %v678_v9  ;;  %774 = vst [vmem:[%s1413_s3 + $0x1c0] sm:$0xff] %v710_v10  ;;  %v679_v15 = vmax.f32 %v499_v11, 0.0  ;;  %v711_v16 = vmax.f32 %v627_v12, 0.0 }
 0x114   :  { %745 = vst [vmem:[%s1413_s3 + $0xd8] sm:$0xff] %v681_v13  ;;  %777 = vst [vmem:[%s1413_s3 + $0x1d8] sm:$0xff] %v713_v14 }
 0x115   :  { %743 = vst [vmem:[%s1413_s3 + $0xc8] sm:$0xff] %v679_v15  ;;  %775 = vst [vmem:[%s1413_s3 + $0x1c8] sm:$0xff] %v711_v16  ;;  %v921_v17 = vpop.f32.mrb[28].mxu0  ;;  %v953_v18 = vpop.f32.mrb[28].mxu1 }
 0x116   :  { %v520_v19 = vadd.f32 %v921_v17, %v1152_v38  ;;  %v648_v20 = vadd.f32 %v953_v18, %v1152_v38  ;;  %v511_v21 = vpop.f32.mrb[29].mxu0  ;;  %v639_v22 = vpop.f32.mrb[29].mxu1 }
 0x117   :  { %v512_v23 = vadd.f32 %v1152_v38, %v511_v21  ;;  %v640_v24 = vadd.f32 %v1152_v38, %v639_v22  ;;  %v922_v25 = vpop.f32.mrb[30].mxu0  ;;  %v954_v26 = vpop.f32.mrb[30].mxu1 }
 0x118   :  { %v684_v27 = vmax.f32 %v520_v19, 0.0  ;;  %v716_v28 = vmax.f32 %v648_v20, 0.0  ;;  %v523_v29 = vadd.f32 %v922_v25, %v1152_v38  ;;  %v651_v30 = vadd.f32 %v954_v26, %v1152_v38  ;;  %v514_v31 = vpop.f32.mrb[31].mxu0  ;;  %v642_v32 = vpop.f32.mrb[31].mxu1 }
 0x119   :  { %v682_v33 = vmax.f32 %v512_v23, 0.0  ;;  %v714_v34 = vmax.f32 %v640_v24, 0.0  ;;  %v515_v35 = vadd.f32 %v1152_v38, %v514_v31  ;;  %v643_v36 = vadd.f32 %v1152_v38, %v642_v32 }
 0x11a   :  { %748 = vst [vmem:[%s1413_s3 + $0xf0] sm:$0xff] %v684_v27  ;;  %780 = vst [vmem:[%s1413_s3 + $0x1f0] sm:$0xff] %v716_v28  ;;  %v685_v37 = vmax.f32 %v523_v29, 0.0  ;;  %v717_v39 = vmax.f32 %v651_v30, 0.0 }
 0x11b   :  { %746 = vst [vmem:[%s1413_s3 + $0xe0] sm:$0xff] %v682_v33  ;;  %778 = vst [vmem:[%s1413_s3 + $0x1e0] sm:$0xff] %v714_v34  ;;  %v683_v40 = vmax.f32 %v515_v35, 0.0  ;;  %v715_v38 = vmax.f32 %v643_v36, 0.0 }
 0x11c   :  { %749 = vst [vmem:[%s1413_s3 + $0xf8] sm:$0xff] %v685_v37  ;;  %781 = vst [vmem:[%s1413_s3 + $0x1f8] sm:$0xff] %v717_v39 }
 0x11d   :  { %747 = vst [vmem:[%s1413_s3 + $0xe8] sm:$0xff] %v683_v40  ;;  %779 = vst [vmem:[%s1413_s3 + $0x1e8] sm:$0xff] %v715_v38 }

// kernel: deform_conv_rcnn_forward.7
= control target key start
LH: loop header
LB: loop body
LE: loop exit
PB: predicated region body
PF: predicated region fallthrough
CT: control target
= control target key end

     0   :  { %v426_v0 = vmov 0   ;;  %vm182_vm0 = vcmask 130048   ;;  %s599_s1 = inlined_call_operand.vmem [shape: bf16[144,128], index: 1, kind: input, shape index: {}]   ;;  %s600_s0 = inlined_call_operand.vmem [shape: bf16[128,144], index: 0, kind: input, shape index: {}]   ;;  %s601_s2 = inlined_call_operand.vmem [shape: f32[1,128], index: 2, kind: input, shape index: {}]   ;;  %s602_s3 = inlined_call_operand.vmem [shape: f32[128,128], index: 3, kind: output, shape index: {}]  }
   0x1   :  { %207 = vmatprep.subr.bf16.mxu0 %v426_v0  ;;  %374 = vmatprep.subr.bf16.mxu1 %v426_v0  ;;  %v393_v1 = vld [vmem:[%s599_s1] sm:$0xff]   ;;  %v394_v2 = vld [vmem:[%s599_s1 + $0x8] sm:$0xff]   ;;  %v395_v3 = vld [vmem:[%s599_s1 + $0x10] sm:$0xff]  }
   0x2   :  { %208 = vmatpush1.bf16.msra.mxu0 %v393_v1  ;;  %383 = vmatpush1.bf16.msra.mxu1 %v393_v1  ;;  %v396_v4 = vld [vmem:[%s599_s1 + $0x18] sm:$0xff]   ;;  %v404_v5 = vld [vmem:[%s600_s0 + $0x4] ss:$8 sps:$4 sm:$0xff]   ;;  %v399_v9 = vld [vmem:[%s599_s1 + $0x30] sm:$0xff]  }
   0x3   :  { %209 = vmatprep.subr.bf16.mxu0 %v426_v0  ;;  %375 = vmatprep.subr.bf16.mxu1 %v426_v0  ;;  %v407_v6 = vld [vmem:[%s600_s0 + $0x44] ss:$8 sps:$4 sm:$0xff]   ;;  %v400_v10 = vld [vmem:[%s599_s1 + $0x38] sm:$0xff]   ;;  %v402_v12 = vld [vmem:[%s600_s0] ss:$8 sps:$4 sm:$0xff]  }
   0x4   :  { %366 = vmatprep.mubr.msk.bf16.mxu0 %vm182_vm0, %v404_v5  ;;  %370 = vmatprep.mubr.msk.bf16.mxu1 %vm182_vm0, %v407_v6  ;;  %v397_v7 = vld [vmem:[%s599_s1 + $0x20] sm:$0xff]   ;;  %v398_v8 = vld [vmem:[%s599_s1 + $0x28] sm:$0xff]   ;;  %v408_v14 = vld [vmem:[%s600_s0 + $0x14] ss:$8 sps:$4 sm:$0xff]  }
   0x5   :  { %v401_v11 = vld [vmem:[%s599_s1 + $0x40] sm:$0xff]   ;;  %v410_v15 = vld [vmem:[%s600_s0 + $0x54] ss:$8 sps:$4 sm:$0xff]   ;;  %v412_v16 = vld [vmem:[%s600_s0 + $0x10] ss:$8 sps:$4 sm:$0xff]  }
   0x6   :  { %210 = vmatpush1.bf16.msra.mxu0 %v394_v2  ;;  %384 = vmatpush1.bf16.msra.mxu1 %v394_v2  ;;  %v405_v13 = vld [vmem:[%s600_s0 + $0x40] ss:$8 sps:$4 sm:$0xff]   ;;  %v413_v17 = vld [vmem:[%s600_s0 + $0x50] ss:$8 sps:$4 sm:$0xff]   ;;  %v414_v18 = vld [vmem:[%s600_s0 + $0x24] ss:$8 sps:$4 sm:$0xff]  }
   0x7   :  { %211 = vmatprep.subr.bf16.mxu0 %v426_v0  ;;  %376 = vmatprep.subr.bf16.mxu1 %v426_v0  ;;  %v416_v19 = vld [vmem:[%s600_s0 + $0x64] ss:$8 sps:$4 sm:$0xff]   ;;  %v418_v20 = vld [vmem:[%s600_s0 + $0x20] ss:$8 sps:$4 sm:$0xff]   ;;  %v420_v22 = vld [vmem:[%s600_s0 + $0x34] ss:$8 sps:$4 sm:$0xff]  }
   0x8   :  { %v419_v21 = vld [vmem:[%s600_s0 + $0x60] ss:$8 sps:$4 sm:$0xff]   ;;  %v422_v23 = vld [vmem:[%s600_s0 + $0x74] ss:$8 sps:$4 sm:$0xff]   ;;  %v424_v24 = vld [vmem:[%s600_s0 + $0x30] ss:$8 sps:$4 sm:$0xff]  }
   0x9   :  { %v425_v25 = vld [vmem:[%s600_s0 + $0x70] ss:$8 sps:$4 sm:$0xff]   ;;  %v533_v26 = vld [vmem:[%s601_s2] ss:$0 sm:$0xff] }
   0xa   :  { %212 = vmatpush1.bf16.msra.mxu0 %v395_v3  ;;  %385 = vmatpush1.bf16.msra.mxu1 %v395_v3 }
   0xb   :  { %213 = vmatprep.subr.bf16.mxu0 %v426_v0  ;;  %377 = vmatprep.subr.bf16.mxu1 %v426_v0 }
   0xe   :  { %214 = vmatpush1.bf16.msra.mxu0 %v396_v4  ;;  %386 = vmatpush1.bf16.msra.mxu1 %v396_v4 }
   0xf   :  { %215 = vmatprep.subr.bf16.mxu0 %v426_v0  ;;  %378 = vmatprep.subr.bf16.mxu1 %v426_v0 }
  0x12   :  { %216 = vmatpush1.bf16.msra.mxu0 %v397_v7  ;;  %387 = vmatpush1.bf16.msra.mxu1 %v397_v7 }
  0x13   :  { %217 = vmatprep.subr.bf16.mxu0 %v426_v0  ;;  %379 = vmatprep.subr.bf16.mxu1 %v426_v0 }
  0x16   :  { %218 = vmatpush1.bf16.msra.mxu0 %v398_v8  ;;  %388 = vmatpush1.bf16.msra.mxu1 %v398_v8 }
  0x17   :  { %219 = vmatprep.subr.bf16.mxu0 %v426_v0  ;;  %380 = vmatprep.subr.bf16.mxu1 %v426_v0 }
  0x1a   :  { %220 = vmatpush1.bf16.msra.mxu0 %v399_v9  ;;  %389 = vmatpush1.bf16.msra.mxu1 %v399_v9 }
  0x1b   :  { %221 = vmatprep.subr.bf16.mxu0 %v426_v0  ;;  %381 = vmatprep.subr.bf16.mxu1 %v426_v0 }
  0x1e   :  { %222 = vmatpush1.bf16.msra.mxu0 %v400_v10  ;;  %390 = vmatpush1.bf16.msra.mxu1 %v400_v10 }
  0x1f   :  { %223 = vmatprep.subr.bf16.mxu0 %v426_v0  ;;  %382 = vmatprep.subr.bf16.mxu1 %v426_v0 }
  0x22   :  { %224 = vmatpush1.bf16.msra.mxu0 %v401_v11  ;;  %391 = vmatpush1.bf16.msra.mxu1 %v401_v11 }
  0x25   :  { %240 = vmatmul.mubr.bf16.vlgmr.msra.gmra.mrb[0].mxu0 %v402_v12  ;;  %272 = vmatmul.mubr.bf16.vlgmr.msra.gmra.mrb[0].mxu1 %v405_v13 }
  0x26   :  { %367 = vmatprep.mubr.msk.bf16.mxu0 %vm182_vm0, %v408_v14  ;;  %371 = vmatprep.mubr.msk.bf16.mxu1 %vm182_vm0, %v410_v15 }
  0x2d   :  { %248 = vmatmul.mubr.bf16.gmra.mrb[4].mxu0 %v412_v16  ;;  %280 = vmatmul.mubr.bf16.gmra.mrb[4].mxu1 %v413_v17 }
  0x2e   :  { %368 = vmatprep.mubr.msk.bf16.mxu0 %vm182_vm0, %v414_v18  ;;  %372 = vmatprep.mubr.msk.bf16.mxu1 %vm182_vm0, %v416_v19 }
  0x35   :  { %256 = vmatmul.mubr.bf16.gmra.mrb[8].mxu0 %v418_v20  ;;  %288 = vmatmul.mubr.bf16.gmra.mrb[8].mxu1 %v419_v21 }
  0x36   :  { %369 = vmatprep.mubr.msk.bf16.mxu0 %vm182_vm0, %v420_v22  ;;  %373 = vmatprep.mubr.msk.bf16.mxu1 %vm182_vm0, %v422_v23 }
  0x3d   :  { %264 = vmatmul.mubr.bf16.gmra.mrb[12].mxu0 %v424_v24  ;;  %296 = vmatmul.mubr.bf16.gmra.mrb[12].mxu1 %v425_v25 }
  0xf8   :  { %v241_v27 = vpop.f32.mrb[0].mxu0  ;;  %v273_v28 = vpop.f32.mrb[0].mxu1 }
  0xf9   :  { %v242_v29 = vadd.f32 %v533_v26, %v241_v27  ;;  %v274_v30 = vadd.f32 %v533_v26, %v273_v28  ;;  %v243_v31 = vpop.f32.mrb[1].mxu0  ;;  %v275_v32 = vpop.f32.mrb[1].mxu1 }
  0xfa   :  { %v244_v33 = vpop.f32.mrb[2].mxu0  ;;  %v276_v34 = vpop.f32.mrb[2].mxu1 }
  0xfb   :  { %v304_v35 = vmax.f32 %v242_v29, 0.0  ;;  %v312_v36 = vmax.f32 %v274_v30, 0.0  ;;  %v245_v37 = vadd.f32 %v533_v26, %v244_v33  ;;  %v277_v38 = vadd.f32 %v533_v26, %v276_v34  ;;  %v246_v39 = vpop.f32.mrb[3].mxu0  ;;  %v278_v40 = vpop.f32.mrb[3].mxu1 }
  0xfd   :  { %320 = vst [vmem:[%s602_s3] sm:$0xff] %v304_v35  ;;  %328 = vst [vmem:[%s602_s3 + $0x40] sm:$0xff] %v312_v36  ;;  %v305_v41 = vmax.f32 %v245_v37, 0.0  ;;  %v313_v42 = vmax.f32 %v277_v38, 0.0 }
  0xff   :  { %321 = vst [vmem:[%s602_s3 + $0x8] sm:$0xff] %v305_v41  ;;  %329 = vst [vmem:[%s602_s3 + $0x48] sm:$0xff] %v313_v42 }
 0x100   :  { %v249_v43 = vpop.f32.mrb[4].mxu0  ;;  %v281_v44 = vpop.f32.mrb[4].mxu1 }
 0x101   :  { %v250_v45 = vadd.f32 %v533_v26, %v249_v43  ;;  %v282_v46 = vadd.f32 %v533_v26, %v281_v44  ;;  %v251_v47 = vpop.f32.mrb[5].mxu0  ;;  %v283_v48 = vpop.f32.mrb[5].mxu1 }
 0x102   :  { %v252_v49 = vpop.f32.mrb[6].mxu0  ;;  %v284_v50 = vpop.f32.mrb[6].mxu1 }
 0x103   :  { %v306_v51 = vmax.f32 %v250_v45, 0.0  ;;  %v314_v52 = vmax.f32 %v282_v46, 0.0  ;;  %v253_v53 = vadd.f32 %v533_v26, %v252_v49  ;;  %v285_v54 = vadd.f32 %v533_v26, %v284_v50  ;;  %v254_v55 = vpop.f32.mrb[7].mxu0  ;;  %v286_v56 = vpop.f32.mrb[7].mxu1 }
 0x105   :  { %322 = vst [vmem:[%s602_s3 + $0x10] sm:$0xff] %v306_v51  ;;  %330 = vst [vmem:[%s602_s3 + $0x50] sm:$0xff] %v314_v52  ;;  %v307_v57 = vmax.f32 %v253_v53, 0.0  ;;  %v315_v58 = vmax.f32 %v285_v54, 0.0 }
 0x107   :  { %323 = vst [vmem:[%s602_s3 + $0x18] sm:$0xff] %v307_v57  ;;  %331 = vst [vmem:[%s602_s3 + $0x58] sm:$0xff] %v315_v58 }
 0x108   :  { %v257_v59 = vpop.f32.mrb[8].mxu0  ;;  %v289_v60 = vpop.f32.mrb[8].mxu1 }
 0x109   :  { %v258_v61 = vadd.f32 %v533_v26, %v257_v59  ;;  %v290_v62 = vadd.f32 %v533_v26, %v289_v60  ;;  %v259_v63 = vpop.f32.mrb[9].mxu0  ;;  %v291_v0 = vpop.f32.mrb[9].mxu1 }
 0x10a   :  { %v260_v1 = vpop.f32.mrb[10].mxu0  ;;  %v292_v2 = vpop.f32.mrb[10].mxu1 }
 0x10b   :  { %v308_v3 = vmax.f32 %v258_v61, 0.0  ;;  %v316_v4 = vmax.f32 %v290_v62, 0.0  ;;  %v261_v5 = vadd.f32 %v533_v26, %v260_v1  ;;  %v293_v6 = vadd.f32 %v533_v26, %v292_v2  ;;  %v262_v7 = vpop.f32.mrb[11].mxu0  ;;  %v294_v8 = vpop.f32.mrb[11].mxu1 }
 0x10d   :  { %324 = vst [vmem:[%s602_s3 + $0x20] sm:$0xff] %v308_v3  ;;  %332 = vst [vmem:[%s602_s3 + $0x60] sm:$0xff] %v316_v4  ;;  %v309_v9 = vmax.f32 %v261_v5, 0.0  ;;  %v317_v10 = vmax.f32 %v293_v6, 0.0 }
 0x10f   :  { %325 = vst [vmem:[%s602_s3 + $0x28] sm:$0xff] %v309_v9  ;;  %333 = vst [vmem:[%s602_s3 + $0x68] sm:$0xff] %v317_v10 }
 0x110   :  { %v265_v11 = vpop.f32.mrb[12].mxu0  ;;  %v297_v12 = vpop.f32.mrb[12].mxu1 }
 0x111   :  { %v266_v13 = vadd.f32 %v533_v26, %v265_v11  ;;  %v298_v14 = vadd.f32 %v533_v26, %v297_v12  ;;  %v267_v15 = vpop.f32.mrb[13].mxu0  ;;  %v299_v16 = vpop.f32.mrb[13].mxu1 }
 0x112   :  { %v268_v17 = vpop.f32.mrb[14].mxu0  ;;  %v300_v18 = vpop.f32.mrb[14].mxu1 }
 0x113   :  { %v310_v19 = vmax.f32 %v266_v13, 0.0  ;;  %v318_v20 = vmax.f32 %v298_v14, 0.0  ;;  %v269_v21 = vadd.f32 %v533_v26, %v268_v17  ;;  %v301_v22 = vadd.f32 %v533_v26, %v300_v18  ;;  %v270_v23 = vpop.f32.mrb[15].mxu0  ;;  %v302_v24 = vpop.f32.mrb[15].mxu1 }
 0x115   :  { %326 = vst [vmem:[%s602_s3 + $0x30] sm:$0xff] %v310_v19  ;;  %334 = vst [vmem:[%s602_s3 + $0x70] sm:$0xff] %v318_v20  ;;  %v311_v25 = vmax.f32 %v269_v21, 0.0  ;;  %v319_v27 = vmax.f32 %v301_v22, 0.0 }
 0x117   :  { %327 = vst [vmem:[%s602_s3 + $0x38] sm:$0xff] %v311_v25  ;;  %335 = vst [vmem:[%s602_s3 + $0x78] sm:$0xff] %v319_v27 }

// kernel: deform_conv_rcnn_forward.8
= control target key start
LH: loop header
LB: loop body
LE: loop exit
PB: predicated region body
PF: predicated region fallthrough
CT: control target
= control target key end

     0   :  { %v230_v0 = vmov 0   ;;  %vm116_vm0 = vcmask 130048   ;;  %s305_s1 = inlined_call_operand.vmem [shape: bf16[144,128], index: 1, kind: input, shape index: {}]   ;;  %s306_s0 = inlined_call_operand.vmem [shape: bf16[32,144], index: 0, kind: input, shape index: {}]   ;;  %s307_s2 = inlined_call_operand.vmem [shape: f32[1,128], index: 2, kind: input, shape index: {}]   ;;  %s308_s3 = inlined_call_operand.vmem [shape: f32[32,128], index: 3, kind: output, shape index: {}]  }
   0x1   :  { %123 = vmatprep.subr.bf16.mxu0 %v230_v0  ;;  %196 = vmatprep.subr.bf16.mxu1 %v230_v0  ;;  %v215_v1 = vld [vmem:[%s305_s1] sm:$0xff]   ;;  %v216_v2 = vld [vmem:[%s305_s1 + $0x8] sm:$0xff]   ;;  %v217_v3 = vld [vmem:[%s305_s1 + $0x10] sm:$0xff]  }
   0x2   :  { %124 = vmatpush1.bf16.msra.mxu0 %v215_v1  ;;  %205 = vmatpush1.bf16.msra.mxu1 %v215_v1  ;;  %v218_v4 = vld [vmem:[%s305_s1 + $0x18] sm:$0xff]   ;;  %v226_v5 = vld [vmem:[%s306_s0 + $0x4] ss:$8 sps:$4 sm:$0xff]   ;;  %v221_v9 = vld [vmem:[%s305_s1 + $0x30] sm:$0xff]  }
   0x3   :  { %125 = vmatprep.subr.bf16.mxu0 %v230_v0  ;;  %197 = vmatprep.subr.bf16.mxu1 %v230_v0  ;;  %v229_v6 = vld [vmem:[%s306_s0 + $0x14] ss:$8 sps:$4 sm:$0xff]   ;;  %v219_v7 = vld [vmem:[%s305_s1 + $0x20] sm:$0xff]   ;;  %v220_v8 = vld [vmem:[%s305_s1 + $0x28] sm:$0xff]  }
   0x4   :  { %194 = vmatprep.mubr.msk.bf16.mxu0 %vm116_vm0, %v226_v5  ;;  %195 = vmatprep.mubr.msk.bf16.mxu1 %vm116_vm0, %v229_v6  ;;  %v222_v10 = vld [vmem:[%s305_s1 + $0x38] sm:$0xff]   ;;  %v223_v11 = vld [vmem:[%s305_s1 + $0x40] sm:$0xff]  }
   0x5   :  { %v224_v12 = vld [vmem:[%s306_s0] ss:$8 sps:$4 sm:$0xff]   ;;  %v227_v13 = vld [vmem:[%s306_s0 + $0x10] ss:$8 sps:$4 sm:$0xff]  }
   0x6   :  { %126 = vmatpush1.bf16.msra.mxu0 %v216_v2  ;;  %206 = vmatpush1.bf16.msra.mxu1 %v216_v2  ;;  %v180_v14 = vld [vmem:[%s307_s2] ss:$0 sm:$0xff] }
   0x7   :  { %127 = vmatprep.subr.bf16.mxu0 %v230_v0  ;;  %198 = vmatprep.subr.bf16.mxu1 %v230_v0 }
   0xa   :  { %128 = vmatpush1.bf16.msra.mxu0 %v217_v3  ;;  %207 = vmatpush1.bf16.msra.mxu1 %v217_v3 }
   0xb   :  { %129 = vmatprep.subr.bf16.mxu0 %v230_v0  ;;  %199 = vmatprep.subr.bf16.mxu1 %v230_v0 }
   0xe   :  { %130 = vmatpush1.bf16.msra.mxu0 %v218_v4  ;;  %208 = vmatpush1.bf16.msra.mxu1 %v218_v4 }
   0xf   :  { %131 = vmatprep.subr.bf16.mxu0 %v230_v0  ;;  %200 = vmatprep.subr.bf16.mxu1 %v230_v0 }
  0x12   :  { %132 = vmatpush1.bf16.msra.mxu0 %v219_v7  ;;  %209 = vmatpush1.bf16.msra.mxu1 %v219_v7 }
  0x13   :  { %133 = vmatprep.subr.bf16.mxu0 %v230_v0  ;;  %201 = vmatprep.subr.bf16.mxu1 %v230_v0 }
  0x16   :  { %134 = vmatpush1.bf16.msra.mxu0 %v220_v8  ;;  %210 = vmatpush1.bf16.msra.mxu1 %v220_v8 }
  0x17   :  { %135 = vmatprep.subr.bf16.mxu0 %v230_v0  ;;  %202 = vmatprep.subr.bf16.mxu1 %v230_v0 }
  0x1a   :  { %136 = vmatpush1.bf16.msra.mxu0 %v221_v9  ;;  %211 = vmatpush1.bf16.msra.mxu1 %v221_v9 }
  0x1b   :  { %137 = vmatprep.subr.bf16.mxu0 %v230_v0  ;;  %203 = vmatprep.subr.bf16.mxu1 %v230_v0 }
  0x1e   :  { %138 = vmatpush1.bf16.msra.mxu0 %v222_v10  ;;  %212 = vmatpush1.bf16.msra.mxu1 %v222_v10 }
  0x1f   :  { %139 = vmatprep.subr.bf16.mxu0 %v230_v0  ;;  %204 = vmatprep.subr.bf16.mxu1 %v230_v0 }
  0x22   :  { %140 = vmatpush1.bf16.msra.mxu0 %v223_v11  ;;  %213 = vmatpush1.bf16.msra.mxu1 %v223_v11 }
  0x25   :  { %156 = vmatmul.mubr.bf16.vlgmr.msra.gmra.mrb[0].mxu0 %v224_v12  ;;  %164 = vmatmul.mubr.bf16.vlgmr.msra.gmra.mrb[0].mxu1 %v227_v13 }
  0xf8   :  { %v157_v15 = vpop.f32.mrb[0].mxu0  ;;  %v165_v16 = vpop.f32.mrb[0].mxu1 }
  0xf9   :  { %v158_v17 = vadd.f32 %v180_v14, %v157_v15  ;;  %v166_v18 = vadd.f32 %v180_v14, %v165_v16  ;;  %v159_v19 = vpop.f32.mrb[1].mxu0  ;;  %v167_v20 = vpop.f32.mrb[1].mxu1 }
  0xfa   :  { %v160_v21 = vpop.f32.mrb[2].mxu0  ;;  %v168_v22 = vpop.f32.mrb[2].mxu1 }
  0xfb   :  { %172 = vst [vmem:[%s308_s3] sm:$0xff] %v158_v17  ;;  %174 = vst [vmem:[%s308_s3 + $0x10] sm:$0xff] %v166_v18  ;;  %v161_v23 = vadd.f32 %v180_v14, %v160_v21  ;;  %v169_v24 = vadd.f32 %v180_v14, %v168_v22  ;;  %v162_v25 = vpop.f32.mrb[3].mxu0  ;;  %v170_v26 = vpop.f32.mrb[3].mxu1 }
  0xfd   :  { %173 = vst [vmem:[%s308_s3 + $0x8] sm:$0xff] %v161_v23  ;;  %175 = vst [vmem:[%s308_s3 + $0x18] sm:$0xff] %v169_v24 }

// kernel: deform_conv_rcnn_forward.10
= control target key start
LH: loop header
LB: loop body
LE: loop exit
PB: predicated region body
PF: predicated region fallthrough
CT: control target
= control target key end

     0   :  { %v614_v0 = vmov 0   ;;  %vm188_vm0 = vcmask 130048   ;;  %s811_s1 = inlined_call_operand.vmem [shape: bf16[144,16], index: 1, kind: input, shape index: {}]   ;;  %s812_s0 = inlined_call_operand.vmem [shape: bf16[128,144], index: 0, kind: input, shape index: {}]   ;;  %s813_s3 = inlined_call_operand.vmem [shape: bf16[16,128], index: 3, kind: input, shape index: {}]   ;;  %s814_s2 = inlined_call_operand.vmem [shape: f32[1,16], index: 2, kind: input, shape index: {}]   ;;  %s815_s4 = inlined_call_operand.vmem [shape: f32[1,128], index: 4, kind: input, shape index: {}]   ;;  %s816_s5 = inlined_call_operand.vmem [shape: f32[128,128], index: 5, kind: output, shape index: {}]  }
   0x1   :  { %213 = vmatprep.subr.bf16.mxu0 %v614_v0  ;;  %v580_v1 = vld [vmem:[%s811_s1] sm:$0xff]   ;;  %561 = vmatprep.subr.bf16.mxu1 %v614_v0  ;;  %v581_v2 = vld [vmem:[%s811_s1 + $0x8] sm:$0xff]   ;;  %v582_v3 = vld [vmem:[%s811_s1 + $0x10] sm:$0xff]  }
   0x2   :  { %214 = vmatpush1.bf16.msra.mxu0 %v580_v1  ;;  %570 = vmatpush1.bf16.msra.mxu1 %v580_v1  ;;  %v583_v4 = vld [vmem:[%s811_s1 + $0x18] sm:$0xff]   ;;  %v591_v5 = vld [vmem:[%s812_s0 + $0x4] ss:$8 sps:$4 sm:$0xff]   ;;  %v586_v9 = vld [vmem:[%s811_s1 + $0x30] sm:$0xff]  }
   0x3   :  { %215 = vmatprep.subr.bf16.mxu0 %v614_v0  ;;  %562 = vmatprep.subr.bf16.mxu1 %v614_v0  ;;  %v584_v6 = vld [vmem:[%s811_s1 + $0x20] sm:$0xff]   ;;  %v585_v8 = vld [vmem:[%s811_s1 + $0x28] sm:$0xff]   ;;  %v587_v10 = vld [vmem:[%s811_s1 + $0x38] sm:$0xff]  }
   0x4   :  { %516 = vmatprep.mubr.msk.bf16.mxu0 %vm188_vm0, %v591_v5  ;;  %v606_v7 = vld [vmem:[%s812_s0 + $0x64] ss:$8 sps:$4 sm:$0xff]   ;;  %v589_v12 = vld [vmem:[%s812_s0] ss:$8 sps:$4 sm:$0xff]   ;;  %v592_v14 = vld [vmem:[%s812_s0 + $0x14] ss:$8 sps:$4 sm:$0xff]  }
   0x5   :  { %522 = vmatprep.mubr.msk.bf16.mxu1 %vm188_vm0, %v606_v7  ;;  %v588_v11 = vld [vmem:[%s811_s1 + $0x40] sm:$0xff]   ;;  %v610_v15 = vld [vmem:[%s812_s0 + $0x74] ss:$8 sps:$4 sm:$0xff]   ;;  %v594_v16 = vld [vmem:[%s812_s0 + $0x10] ss:$8 sps:$4 sm:$0xff]  }
   0x6   :  { %216 = vmatpush1.bf16.msra.mxu0 %v581_v2  ;;  %571 = vmatpush1.bf16.msra.mxu1 %v581_v2  ;;  %v604_v13 = vld [vmem:[%s812_s0 + $0x60] ss:$8 sps:$4 sm:$0xff]   ;;  %v612_v17 = vld [vmem:[%s812_s0 + $0x70] ss:$8 sps:$4 sm:$0xff]   ;;  %v595_v18 = vld [vmem:[%s812_s0 + $0x24] ss:$8 sps:$4 sm:$0xff]  }
   0x7   :  { %217 = vmatprep.subr.bf16.mxu0 %v614_v0  ;;  %563 = vmatprep.subr.bf16.mxu1 %v614_v0  ;;  %v597_v19 = vld [vmem:[%s812_s0 + $0x20] ss:$8 sps:$4 sm:$0xff]   ;;  %v598_v20 = vld [vmem:[%s812_s0 + $0x34] ss:$8 sps:$4 sm:$0xff]   ;;  %v600_v21 = vld [vmem:[%s812_s0 + $0x30] ss:$8 sps:$4 sm:$0xff]  }
   0x8   :  { %v601_v22 = vld [vmem:[%s812_s0 + $0x44] ss:$8 sps:$4 sm:$0xff]   ;;  %v603_v23 = vld [vmem:[%s812_s0 + $0x40] ss:$8 sps:$4 sm:$0xff]   ;;  %v607_v24 = vld [vmem:[%s812_s0 + $0x54] ss:$8 sps:$4 sm:$0xff]  }
   0x9   :  { %v609_v25 = vld [vmem:[%s812_s0 + $0x50] ss:$8 sps:$4 sm:$0xff]   ;;  %v613_v26 = vld [vmem:[%s813_s3] sm:$0xff]  }
   0xa   :  { %218 = vmatpush1.bf16.msra.mxu0 %v582_v3  ;;  %572 = vmatpush1.bf16.msra.mxu1 %v582_v3  ;;  %v734_v27 = vld [vmem:[%s814_s2] ss:$0 sm:$0xff] }
   0xb   :  { %219 = vmatprep.subr.bf16.mxu0 %v614_v0  ;;  %564 = vmatprep.subr.bf16.mxu1 %v614_v0 }
   0xe   :  { %220 = vmatpush1.bf16.msra.mxu0 %v583_v4  ;;  %573 = vmatpush1.bf16.msra.mxu1 %v583_v4 }
   0xf   :  { %221 = vmatprep.subr.bf16.mxu0 %v614_v0  ;;  %565 = vmatprep.subr.bf16.mxu1 %v614_v0 }
  0x12   :  { %222 = vmatpush1.bf16.msra.mxu0 %v584_v6  ;;  %574 = vmatpush1.bf16.msra.mxu1 %v584_v6 }
  0x13   :  { %223 = vmatprep.subr.bf16.mxu0 %v614_v0  ;;  %566 = vmatprep.subr.bf16.mxu1 %v614_v0 }
  0x16   :  { %224 = vmatpush1.bf16.msra.mxu0 %v585_v8  ;;  %575 = vmatpush1.bf16.msra.mxu1 %v585_v8 }
  0x17   :  { %225 = vmatprep.subr.bf16.mxu0 %v614_v0  ;;  %567 = vmatprep.subr.bf16.mxu1 %v614_v0 }
  0x1a   :  { %226 = vmatpush1.bf16.msra.mxu0 %v586_v9  ;;  %576 = vmatpush1.bf16.msra.mxu1 %v586_v9 }
  0x1b   :  { %227 = vmatprep.subr.bf16.mxu0 %v614_v0  ;;  %568 = vmatprep.subr.bf16.mxu1 %v614_v0 }
  0x1e   :  { %228 = vmatpush1.bf16.msra.mxu0 %v587_v10  ;;  %577 = vmatpush1.bf16.msra.mxu1 %v587_v10 }
  0x1f   :  { %229 = vmatprep.subr.bf16.mxu0 %v614_v0  ;;  %569 = vmatprep.subr.bf16.mxu1 %v614_v0 }
  0x22   :  { %230 = vmatpush1.bf16.msra.mxu0 %v588_v11  ;;  %578 = vmatpush1.bf16.msra.mxu1 %v588_v11 }
  0x23   :  { %543 = vmatprep.subr.bf16.mxu1 %v613_v26 }
  0x25   :  { %246 = vmatmul.mubr.bf16.vlgmr.msra.gmra.mrb[0].mxu0 %v589_v12  ;;  %294 = vmatmul.mubr.bf16.vlgmr.msra.gmra.mrb[0].mxu1 %v604_v13 }
  0x26   :  { %517 = vmatprep.mubr.msk.bf16.mxu0 %vm188_vm0, %v592_v14  ;;  %523 = vmatprep.mubr.msk.bf16.mxu1 %vm188_vm0, %v610_v15 }
  0x27   :  { %544 = vmatpush3.bf16.msra.mxu1 %v613_v26 }
  0x2d   :  { %254 = vmatmul.mubr.bf16.gmra.mrb[4].mxu0 %v594_v16  ;;  %302 = vmatmul.mubr.bf16.gmra.mrb[4].mxu1 %v612_v17 }
  0x2e   :  { %518 = vmatprep.mubr.msk.bf16.mxu0 %vm188_vm0, %v595_v18 }
  0x35   :  { %262 = vmatmul.mubr.bf16.gmra.mrb[8].mxu0 %v597_v19 }
  0x36   :  { %519 = vmatprep.mubr.msk.bf16.mxu0 %vm188_vm0, %v598_v20 }
  0x3d   :  { %270 = vmatmul.mubr.bf16.gmra.mrb[12].mxu0 %v600_v21 }
  0x3e   :  { %520 = vmatprep.mubr.msk.bf16.mxu0 %vm188_vm0, %v601_v22 }
  0x45   :  { %278 = vmatmul.mubr.bf16.gmra.mrb[16].mxu0 %v603_v23 }
  0x46   :  { %521 = vmatprep.mubr.msk.bf16.mxu0 %vm188_vm0, %v607_v24 }
  0x4d   :  { %286 = vmatmul.mubr.bf16.gmra.mrb[20].mxu0 %v609_v25 }
  0xf8   :  { %v247_v28 = vpop.f32.mrb[0].mxu0  ;;  %v295_v29 = vpop.f32.mrb[0].mxu1 }
  0xf9   :  { %v248_v30 = vadd.f32 %v734_v27, %v247_v28  ;;  %v249_v31 = vpop.f32.mrb[1].mxu0  ;;  %v296_v32 = vadd.f32 %v734_v27, %v295_v29  ;;  %v297_v33 = vpop.f32.mrb[1].mxu1 }
  0xfa   :  { %v250_v34 = vpop.f32.mrb[2].mxu0  ;;  %v298_v35 = vpop.f32.mrb[2].mxu1 }
  0xfb   :  { %v251_v36 = vadd.f32 %v734_v27, %v250_v34  ;;  %v252_v37 = vpop.f32.mrb[3].mxu0  ;;  %v322_v38 = vmax.f32 %v296_v32, 0.0  ;;  %v299_v39 = vadd.f32 %v734_v27, %v298_v35  ;;  %v300_v40 = vpop.f32.mrb[3].mxu1  ;;  %v310_v41 = vmax.f32 %v248_v30, 0.0 }
  0xfc   :  { %v524_v37 = vld [vmem:[%s815_s4] ss:$0 sm:$0xff] }
  0xfd   :  { %v311_v42 = vmax.f32 %v251_v36, 0.0  ;;  %v323_v43 = vmax.f32 %v299_v39, 0.0 }
  0xff   :  { %v326_v44 = vpack.c.bf16 %v311_v42, %v310_v41  ;;  %v332_v45 = vpack.c.bf16 %v323_v43, %v322_v38 }
 0x100   :  { %v255_v46 = vpop.f32.mrb[4].mxu0  ;;  %v303_v47 = vpop.f32.mrb[4].mxu1 }
 0x101   :  { %v256_v48 = vadd.f32 %v734_v27, %v255_v46  ;;  %v257_v49 = vpop.f32.mrb[5].mxu0  ;;  %545 = vmatprep.mubr.msk.bf16.mxu1 %vm188_vm0, %v326_v44  ;;  %v304_v50 = vadd.f32 %v734_v27, %v303_v47  ;;  %v305_v51 = vpop.f32.mrb[5].mxu1 }
 0x102   :  { %v258_v52 = vpop.f32.mrb[6].mxu0  ;;  %v306_v53 = vpop.f32.mrb[6].mxu1 }
 0x103   :  { %v259_v54 = vadd.f32 %v734_v27, %v258_v52  ;;  %v260_v55 = vpop.f32.mrb[7].mxu0  ;;  %v324_v56 = vmax.f32 %v304_v50, 0.0  ;;  %v307_v57 = vadd.f32 %v734_v27, %v306_v53  ;;  %v308_v58 = vpop.f32.mrb[7].mxu1  ;;  %v312_v59 = vmax.f32 %v256_v48, 0.0 }
 0x105   :  { %v313_v60 = vmax.f32 %v259_v54, 0.0  ;;  %v325_v61 = vmax.f32 %v307_v57, 0.0 }
 0x107   :  { %v327_v62 = vpack.c.bf16 %v313_v60, %v312_v59  ;;  %v333_v63 = vpack.c.bf16 %v325_v61, %v324_v56 }
 0x108   :  { %v263_v0 = vpop.f32.mrb[8].mxu0 }
 0x109   :  { %v264_v1 = vadd.f32 %v734_v27, %v263_v0  ;;  %v265_v2 = vpop.f32.mrb[9].mxu0  ;;  %546 = vmatmul.mubr.msk.bf16.vlgmr.msra.gmra.mrb[8].mxu1 %vm188_vm0, %v327_v62 }
 0x10a   :  { %v266_v3 = vpop.f32.mrb[10].mxu0 }
 0x10b   :  { %v267_v4 = vadd.f32 %v734_v27, %v266_v3  ;;  %v268_v5 = vpop.f32.mrb[11].mxu0  ;;  %v314_v6 = vmax.f32 %v264_v1, 0.0 }
 0x10d   :  { %v315_v7 = vmax.f32 %v267_v4, 0.0 }
 0x10f   :  { %v328_v8 = vpack.c.bf16 %v315_v7, %v314_v6 }
 0x110   :  { %v271_v9 = vpop.f32.mrb[12].mxu0 }
 0x111   :  { %v272_v10 = vadd.f32 %v734_v27, %v271_v9  ;;  %v273_v11 = vpop.f32.mrb[13].mxu0  ;;  %549 = vmatprep.mubr.msk.bf16.mxu1 %vm188_vm0, %v328_v8 }
 0x112   :  { %v274_v12 = vpop.f32.mrb[14].mxu0 }
 0x113   :  { %v275_v13 = vadd.f32 %v734_v27, %v274_v12  ;;  %v276_v14 = vpop.f32.mrb[15].mxu0  ;;  %v316_v15 = vmax.f32 %v272_v10, 0.0 }
 0x115   :  { %v317_v16 = vmax.f32 %v275_v13, 0.0 }
 0x117   :  { %v329_v17 = vpack.c.bf16 %v317_v16, %v316_v15 }
 0x118   :  { %v279_v18 = vpop.f32.mrb[16].mxu0 }
 0x119   :  { %v280_v19 = vadd.f32 %v734_v27, %v279_v18  ;;  %v281_v20 = vpop.f32.mrb[17].mxu0  ;;  %550 = vmatmul.mubr.msk.bf16.gmra.mrb[12].mxu1 %vm188_vm0, %v329_v17 }
 0x11a   :  { %v282_v21 = vpop.f32.mrb[18].mxu0 }
 0x11b   :  { %v283_v22 = vadd.f32 %v734_v27, %v282_v21  ;;  %v284_v23 = vpop.f32.mrb[19].mxu0  ;;  %v318_v24 = vmax.f32 %v280_v19, 0.0 }
 0x11d   :  { %v319_v25 = vmax.f32 %v283_v22, 0.0 }
 0x11f   :  { %v330_v26 = vpack.c.bf16 %v319_v25, %v318_v24 }
 0x120   :  { %v287_v28 = vpop.f32.mrb[20].mxu0 }
 0x121   :  { %v288_v29 = vadd.f32 %v734_v27, %v287_v28  ;;  %v289_v30 = vpop.f32.mrb[21].mxu0  ;;  %553 = vmatprep.mubr.msk.bf16.mxu1 %vm188_vm0, %v330_v26 }
 0x122   :  { %v290_v31 = vpop.f32.mrb[22].mxu0 }
 0x123   :  { %v291_v32 = vadd.f32 %v734_v27, %v290_v31  ;;  %v292_v33 = vpop.f32.mrb[23].mxu0  ;;  %v320_v34 = vmax.f32 %v288_v29, 0.0 }
 0x125   :  { %v321_v35 = vmax.f32 %v291_v32, 0.0 }
 0x127   :  { %v331_v36 = vpack.c.bf16 %v321_v35, %v320_v34 }
 0x129   :  { %554 = vmatmul.mubr.msk.bf16.gmra.mrb[16].mxu1 %vm188_vm0, %v331_v36 }
 0x12a   :  { %557 = vmatprep.mubr.msk.bf16.mxu1 %vm188_vm0, %v332_v45 }
 0x131   :  { %558 = vmatmul.mubr.msk.bf16.gmra.mrb[20].mxu1 %vm188_vm0, %v333_v63 }
 0x1dc   :  { %v547_v38 = vpop.f32.mrb[8].mxu1 }
 0x1dd   :  { %v416_v39 = vadd.f32 %v547_v38, %v524_v37  ;;  %v407_v40 = vpop.f32.mrb[9].mxu1 }
 0x1de   :  { %v408_v41 = vadd.f32 %v524_v37, %v407_v40  ;;  %v548_v42 = vpop.f32.mrb[10].mxu1 }
 0x1df   :  { %472 = vst [vmem:[%s816_s5 + $0x10] sm:$0xff] %v416_v39  ;;  %v419_v27 = vadd.f32 %v548_v42, %v524_v37  ;;  %v410_v43 = vpop.f32.mrb[11].mxu1 }
 0x1e0   :  { %470 = vst [vmem:[%s816_s5] sm:$0xff] %v408_v41  ;;  %v411_v44 = vadd.f32 %v524_v37, %v410_v43 }
 0x1e1   :  { %473 = vst [vmem:[%s816_s5 + $0x18] sm:$0xff] %v419_v27 }
 0x1e2   :  { %471 = vst [vmem:[%s816_s5 + $0x8] sm:$0xff] %v411_v44 }
 0x1ec   :  { %v551_v45 = vpop.f32.mrb[12].mxu1 }
 0x1ed   :  { %v432_v46 = vadd.f32 %v551_v45, %v524_v37  ;;  %v423_v47 = vpop.f32.mrb[13].mxu1 }
 0x1ee   :  { %v424_v48 = vadd.f32 %v524_v37, %v423_v47  ;;  %v552_v49 = vpop.f32.mrb[14].mxu1 }
 0x1ef   :  { %476 = vst [vmem:[%s816_s5 + $0x30] sm:$0xff] %v432_v46  ;;  %v435_v50 = vadd.f32 %v552_v49, %v524_v37  ;;  %v426_v51 = vpop.f32.mrb[15].mxu1 }
 0x1f0   :  { %474 = vst [vmem:[%s816_s5 + $0x20] sm:$0xff] %v424_v48  ;;  %v427_v52 = vadd.f32 %v524_v37, %v426_v51 }
 0x1f1   :  { %477 = vst [vmem:[%s816_s5 + $0x38] sm:$0xff] %v435_v50 }
 0x1f2   :  { %475 = vst [vmem:[%s816_s5 + $0x28] sm:$0xff] %v427_v52 }
 0x1fc   :  { %v555_v53 = vpop.f32.mrb[16].mxu1 }
 0x1fd   :  { %v448_v54 = vadd.f32 %v555_v53, %v524_v37  ;;  %v439_v55 = vpop.f32.mrb[17].mxu1 }
 0x1fe   :  { %v440_v56 = vadd.f32 %v524_v37, %v439_v55  ;;  %v556_v57 = vpop.f32.mrb[18].mxu1 }
 0x1ff   :  { %480 = vst [vmem:[%s816_s5 + $0x50] sm:$0xff] %v448_v54  ;;  %v451_v58 = vadd.f32 %v556_v57, %v524_v37  ;;  %v442_v59 = vpop.f32.mrb[19].mxu1 }
 0x200   :  { %478 = vst [vmem:[%s816_s5 + $0x40] sm:$0xff] %v440_v56  ;;  %v443_v60 = vadd.f32 %v524_v37, %v442_v59 }
 0x201   :  { %481 = vst [vmem:[%s816_s5 + $0x58] sm:$0xff] %v451_v58 }
 0x202   :  { %479 = vst [vmem:[%s816_s5 + $0x48] sm:$0xff] %v443_v60 }
 0x204   :  { %v559_v61 = vpop.f32.mrb[20].mxu1 }
 0x205   :  { %v464_v62 = vadd.f32 %v559_v61, %v524_v37  ;;  %v455_v63 = vpop.f32.mrb[21].mxu1 }
 0x206   :  { %v456_v0 = vadd.f32 %v524_v37, %v455_v63  ;;  %v560_v1 = vpop.f32.mrb[22].mxu1 }
 0x207   :  { %484 = vst [vmem:[%s816_s5 + $0x70] sm:$0xff] %v464_v62  ;;  %v467_v2 = vadd.f32 %v560_v1, %v524_v37  ;;  %v458_v3 = vpop.f32.mrb[23].mxu1 }
 0x208   :  { %482 = vst [vmem:[%s816_s5 + $0x60] sm:$0xff] %v456_v0  ;;  %v459_v4 = vadd.f32 %v524_v37, %v458_v3 }
 0x209   :  { %485 = vst [vmem:[%s816_s5 + $0x78] sm:$0xff] %v467_v2 }
 0x20a   :  { %483 = vst [vmem:[%s816_s5 + $0x68] sm:$0xff] %v459_v4 }

// kernel: deform_conv_rcnn_forward.9
= control target key start
LH: loop header
LB: loop body
LE: loop exit
PB: predicated region body
PF: predicated region fallthrough
CT: control target
= control target key end

     0   :  { %s3417_s15 = smov 0   ;;  %s5279_s0 = inlined_call_operand.vmem [shape: f32[2,144,2], index: 0, kind: input, shape index: {}]   ;;  %s5280_s1 = inlined_call_operand.vmem [shape: bf16[2,64,16], index: 1, kind: input, shape index: {}]   ;;  %s5281_s2 = inlined_call_operand.vmem [shape: bf16[144,128], index: 2, kind: input, shape index: {}]   ;;  %s5282_s3 = inlined_call_operand.vmem [shape: f32[1,128], index: 3, kind: input, shape index: {}]   ;;  %s5283_s4 = inlined_call_operand.vmem [shape: f32[2,16,128], index: 4, kind: output, shape index: {}]  }
   0x1 LB: > { %s3038_s16 = sadd.s32 4294967295, %s3386_s15   ;;  %p3042_p0 = scmp.ge.s32.totalorder %s3386_s15, 1  ;;  %s3386_s15 = sphi %s3417_s15, %s14_s15  }
   0x2   : > { %p172_p1 = scmp.lt.s32.totalorder %s3386_s15, 3 }
   0x4   : > { %p173_p2 = pnand %p3042_p0, %p172_p1 }
   0x6   : > { %176 = sbr.rel (%p173_p2) target bundleno = 1227 (0x4cb), region = 36 }
   0xd   : > { %p203_p3 = scmp.lt.s32.totalorder %s3038_s16, 1  ;;  %s3388_s21 = smov 127  }
   0xf   : > { %s5798_s16 = smov (!%p203_p3, %s3038_s16), 1 }
  0x10   : > { %s3303_s17 = smul.u32 144, %s5798_s16  ;;  %s3172_s22 = sshll.u32 %s5798_s16, 5 }
  0x11   : > { %s4369_s25 = scalar_lea.vmem %s5280_s1, %s3172_s22  ;;  %s3173_s22 = sshll.u32 %s5798_s16, 4 }
  0x12   : > { %s3431_s20 = scalar_lea.vmem %s5279_s0, %s3303_s17 }
  0x13   : > { %v3434_v0 = vld [vmem:[%s3431_s20 + $0x10] sm:$0xff]  ;;  %v3437_v1 = vld [vmem:[%s3431_s20] sm:$0xff]  ;;  %v3440_v2 = vld [vmem:[%s3431_s20 + $0x18] sm:$0xff] }
  0x14   : > { %5458 = vst [vmem:[#allocation2_spill] sm:$0xff] %v3434_v0  ;;  %5459 = vst [vmem:[#allocation3_spill] sm:$0xff] %v3437_v1  ;;  %v3443_v3 = vfloor.f32 %v3434_v0  ;;  %v3446_v4 = vfloor.f32 %v3437_v1  ;;  %v3449_v5 = vfloor.f32 %v3440_v2  ;;  %v3452_v6 = vld [vmem:[%s3431_s20 + $0x8] sm:$0xff]  ;;  %v3458_v8 = vld [vmem:[%s3431_s20 + $0x20] sm:$0xff] }
  0x15   : > { %5460 = vst [vmem:[#allocation4_spill] sm:$0xff] %v3440_v2  ;;  %5463 = vst [vmem:[#allocation7_spill] sm:$0xff] %v3452_v6  ;;  %v3455_v7 = vld [vmem:[%s3431_s20 + $0x28] sm:$0xff]  ;;  %v3461_v9 = vfloor.f32 %v3452_v6  ;;  %v3479_v14 = vfloor.f32 %v3458_v8  ;;  %v3482_v15 = vld [vmem:[%s3431_s20 + $0x38] sm:$0xff] }
  0x16   : > { %5461 = vst [vmem:[#allocation5_spill] sm:$0xff] %v3443_v3  ;;  %5462 = vst [vmem:[#allocation6_spill] sm:$0xff] %v3449_v5  ;;  %v3464_v10 = vfloor.f32 %v3455_v7  ;;  %v3468_v11 = vsub.f32 %v3434_v0, %v3443_v3  ;;  %v3472_v12 = vsub.f32 %v3437_v1, %v3446_v4  ;;  %v3476_v13 = vsub.f32 %v3440_v2, %v3449_v5  ;;  %v3489_v17 = vld [vmem:[%s3431_s20 + $0x30] sm:$0xff]  ;;  %v3522_v26 = vld [vmem:[%s3431_s20 + $0x48] sm:$0xff] }
  0x17   : > { %5464 = vst [vmem:[#allocation8_spill] sm:$0xff] %v3455_v7  ;;  %5465 = vst [vmem:[#allocation9_spill] sm:$0xff] %v3458_v8  ;;  %v3486_v16 = vsub.f32 %v3452_v6, %v3461_v9  ;;  %v3502_v21 = vfloor.f32 %v3482_v15  ;;  %v3516_v24 = vsub.f32 %v3458_v8, %v3479_v14  ;;  %v3519_v25 = vfloor.f32 %v3489_v17  ;;  %v3525_v27 = vld [vmem:[%s3431_s20 + $0x40] sm:$0xff]  ;;  %v3552_v34 = vld [vmem:[%s3431_s20 + $0x58] sm:$0xff] }
  0x18   : > { %5466 = vst [vmem:[#allocation10_spill] sm:$0xff] %v3461_v9  ;;  %5467 = vst [vmem:[#allocation11_spill] sm:$0xff] %v3464_v10  ;;  %v3492_v18 = vsub.f32 1.0, %v3468_v11  ;;  %v3495_v19 = vsub.f32 1.0, %v3472_v12  ;;  %v3499_v20 = vsub.f32 %v3455_v7, %v3464_v10  ;;  %v3509_v22 = vsub.f32 1.0, %v3476_v13  ;;  %v3555_v35 = vld [vmem:[%s3431_s20 + $0x50] sm:$0xff] }
  0x19   : > { %5468 = vst [vmem:[#allocation12_spill] sm:$0xff] %v3468_v11  ;;  %5469 = vst [vmem:[#allocation13_spill] sm:$0xff] %v3472_v12  ;;  %v3512_v23 = vsub.f32 1.0, %v3486_v16  ;;  %v3532_v29 = vsub.f32 %v3482_v15, %v3502_v21  ;;  %v3539_v30 = vsub.f32 1.0, %v3516_v24  ;;  %v3543_v31 = vsub.f32 %v3489_v17, %v3519_v25  ;;  %v3582_v42 = vld [vmem:[%s3431_s20 + $0x68] sm:$0xff]  ;;  %v3585_v43 = vld [vmem:[%s3431_s20 + $0x60] sm:$0xff] }
  0x1a   : > { %5470 = vst [vmem:[#allocation14_spill] sm:$0xff] %v3476_v13  ;;  %5471 = vst [vmem:[#allocation15_spill] sm:$0xff] %v3479_v14  ;;  %316 = vrot.lane.b32.xlu1 %v3492_v18, %s3388_s21  ;;  %312 = vrot.lane.b32.xlu0 %v3495_v19, %s3388_s21  ;;  %v3528_v28 = vsub.f32 1.0, %v3499_v20  ;;  %v3546_v32 = vfloor.f32 %v3522_v26  ;;  %v3549_v33 = vfloor.f32 %v3525_v27  ;;  %v3561_v37 = vfloor.f32 %v3552_v34  ;;  %v234_v50 = vld [vmem:[%s3431_s20 + $0x78] sm:$0xff]  ;;  %v233_v51 = vld [vmem:[%s3431_s20 + $0x70] sm:$0xff] }
  0x1b   : > { %5472 = vst [vmem:[#allocation16_spill] sm:$0xff] %v3482_v15  ;;  %5473 = vst [vmem:[#allocation17_spill] sm:$0xff] %v3486_v16  ;;  %v3558_v36 = vsub.f32 1.0, %v3532_v29  ;;  %v3568_v38 = vsub.f32 1.0, %v3543_v31  ;;  %v3579_v41 = vfloor.f32 %v3555_v35  ;;  %v3588_v44 = vfloor.f32 %v3582_v42  ;;  %v236_v58 = vld [vmem:[%s3431_s20 + $0x88] sm:$0xff]  ;;  %v235_v59 = vld [vmem:[%s3431_s20 + $0x80] sm:$0xff] }
  0x1c   : > { %5474 = vst [vmem:[#allocation18_spill] sm:$0xff] %v3489_v17  ;;  %5475 = vst [vmem:[#allocation19_spill] sm:$0xff] %v3499_v20  ;;  %v3572_v39 = vsub.f32 %v3522_v26, %v3546_v32  ;;  %v3576_v40 = vsub.f32 %v3525_v27, %v3549_v33  ;;  %v3591_v45 = vfloor.f32 %v3585_v43  ;;  %v3605_v48 = vsub.f32 %v3552_v34, %v3561_v37 }
  0x1d   : > { %5476 = vst [vmem:[#allocation20_spill] sm:$0xff] %v3502_v21  ;;  %5477 = vst [vmem:[#allocation21_spill] sm:$0xff] %v3516_v24  ;;  %v3609_v49 = vsub.f32 %v3555_v35, %v3579_v41  ;;  %v3615_v52 = vsub.f32 %v3582_v42, %v3588_v44  ;;  %v3617_v53 = vfloor.f32 %v234_v50  ;;  %v3633_v57 = vfloor.f32 %v233_v51 }
  0x1e   : > { %5478 = vst [vmem:[#allocation22_spill] sm:$0xff] %v3519_v25  ;;  %5479 = vst [vmem:[#allocation23_spill] sm:$0xff] %v3522_v26  ;;  %318 = vrot.lane.b32.xlu1 %v3509_v22, %s3388_s21  ;;  %314 = vrot.lane.b32.xlu0 %v3512_v23, %s3388_s21  ;;  %v3598_v46 = vsub.f32 1.0, %v3572_v39  ;;  %v3601_v47 = vsub.f32 1.0, %v3576_v40  ;;  %v3624_v54 = vsub.f32 1.0, %v3605_v48  ;;  %v3631_v56 = vsub.f32 %v3585_v43, %v3591_v45 }
  0x1f   : > { %5480 = vst [vmem:[#allocation24_spill] sm:$0xff] %v3525_v27  ;;  %5481 = vst [vmem:[#allocation25_spill] sm:$0xff] %v3532_v29  ;;  %v3627_v55 = vsub.f32 1.0, %v3609_v49  ;;  %v3638_v60 = vsub.f32 1.0, %v3615_v52  ;;  %v3641_v61 = vsub.f32 %v234_v50, %v3617_v53  ;;  %v3651_v63 = vsub.f32 %v233_v51, %v3633_v57 }
  0x20   : > { %5482 = vst [vmem:[#allocation26_spill] sm:$0xff] %v3543_v31  ;;  %5483 = vst [vmem:[#allocation27_spill] sm:$0xff] %v3546_v32  ;;  %v3648_v62 = vsub.f32 1.0, %v3631_v56  ;;  %v389_v27 = vmax.f32 %v3464_v10, 0.0  ;;  %v393_v17 = vmax.f32 %v3546_v32, 0.0  ;;  %v395_v31 = vmax.f32 %v3561_v37, 0.0 }
  0x21   : > { %5484 = vst [vmem:[#allocation28_spill] sm:$0xff] %v3549_v33  ;;  %5485 = vst [vmem:[#allocation29_spill] sm:$0xff] %v3552_v34  ;;  %v3662_v50 = vsub.f32 1.0, %v3641_v61 }
  0x22   : > { %5486 = vst [vmem:[#allocation30_spill] sm:$0xff] %v3555_v35  ;;  %5487 = vst [vmem:[#allocation31_spill] sm:$0xff] %v3561_v37  ;;  %322 = vrot.lane.b32.xlu1 %v3528_v28, %s3388_s21  ;;  %320 = vrot.lane.b32.xlu0 %v3539_v30, %s3388_s21  ;;  %v5298_v35 = vmov 0   ;;  %v399_v37 = vmax.f32 %v3617_v53, 0.0 }
  0x23   : > { %5488 = vst [vmem:[#allocation32_spill] sm:$0xff] %v3572_v39  ;;  %5489 = vst [vmem:[#allocation33_spill] sm:$0xff] %v3576_v40  ;;  %3317 = vset.pattern.permute.xlu1 %v5298_v35  ;;  %3316 = vset.pattern.permute.xlu0 %v5298_v35  ;;  %v391_v40 = vmax.f32 %v3502_v21, 0.0 }
  0x24   : > { %5490 = vst [vmem:[#allocation34_spill] sm:$0xff] %v3579_v41  ;;  %5491 = vst [vmem:[#allocation35_spill] sm:$0xff] %v3582_v42  ;;  %v3653_v42 = vfloor.f32 %v236_v58 }
  0x25   : > { %5492 = vst [vmem:[#allocation36_spill] sm:$0xff] %v3585_v43  ;;  %5493 = vst [vmem:[#allocation37_spill] sm:$0xff] %v3588_v44  ;;  %v3655_v43 = vfloor.f32 %v235_v59 }
  0x26   : > { %5494 = vst [vmem:[#allocation38_spill] sm:$0xff] %v3591_v45  ;;  %326 = vrot.lane.b32.xlu1 %v3558_v36, %s3388_s21  ;;  %324 = vrot.lane.b32.xlu0 %v3568_v38, %s3388_s21  ;;  %5495 = vst [vmem:[#allocation39_spill] sm:$0xff] %v3598_v46 }
  0x27   : > { %5496 = vst [vmem:[#allocation40_spill] sm:$0xff] %v3601_v47  ;;  %5497 = vst [vmem:[#allocation41_spill] sm:$0xff] %v3605_v48  ;;  %v3671_v51 = vsub.f32 %v235_v59, %v3655_v43  ;;  %v385_v59 = vmax.f32 %v3461_v9, 0.0  ;;  %v5369_v9 = vmov 0.0  }
  0x28   : > { %5498 = vst [vmem:[#allocation42_spill] sm:$0xff] %v3609_v49  ;;  %5499 = vst [vmem:[#allocation43_spill] sm:$0xff] %v3615_v52  ;;  %v3665_v52 = vsub.f32 1.0, %v3651_v63  ;;  %v386_v49 = vmax.f32 %v3443_v3, 0.0  ;;  %3205 = vmatprep.subr.bf16.mxu0 %v5369_v9  ;;  %3249 = vmatprep.subr.bf16.mxu1 %v5369_v9 }
  0x29   : > { %5500 = vst [vmem:[#allocation44_spill] sm:$0xff] %v3617_v53  ;;  %5501 = vst [vmem:[#allocation45_spill] sm:$0xff] %v3624_v54  ;;  %v3691_v35 = vmin.f32 %v385_v59, 7.0  ;;  %v388_v59 = vmax.f32 %v3479_v14, 0.0 }
  0x2a   : > { %330 = vrot.lane.b32.xlu1 %v3598_v46, %s3388_s21  ;;  %328 = vrot.lane.b32.xlu0 %v3601_v47, %s3388_s21  ;;  %5502 = vst [vmem:[#allocation46_spill] sm:$0xff] %v3627_v55  ;;  %5503 = vst [vmem:[#allocation47_spill] sm:$0xff] %v3631_v56  ;;  %v3668_v56 = vsub.f32 %v236_v58, %v3653_v42  ;;  %v3683_v58 = vsub.f32 1.0, %v3671_v51  ;;  %v3703_v48 = vmin.f32 %v386_v49, 7.0  ;;  %v3721_v49 = vmin.f32 %v391_v40, 7.0 }
  0x2b   : > { %5504 = vst [vmem:[#allocation48_spill] sm:$0xff] %v3633_v57  ;;  %5505 = vst [vmem:[#allocation49_spill] sm:$0xff] %v3638_v60  ;;  %v3713_v26 = vmin.f32 %v388_v59, 7.0  ;;  %v3731_v59 = vmin.f32 %v393_v17, 7.0  ;;  %v394_v40 = vmax.f32 %v3579_v41, 0.0  ;;  %v396_v17 = vmax.f32 %v3591_v45, 0.0 }
  0x2c   : > { %5506 = vst [vmem:[#allocation50_spill] sm:$0xff] %v3641_v61  ;;  %5507 = vst [vmem:[#allocation51_spill] sm:$0xff] %v3648_v62  ;;  %v3680_v61 = vsub.f32 1.0, %v3668_v56  ;;  %v3816_v2 = vmul.f32 8.0, %v3691_v35  ;;  %v3833_v3 = vmul.f32 8.0, %v3703_v48 }
  0x2d   : > { %5508 = vst [vmem:[#allocation52_spill] sm:$0xff] %v3651_v63  ;;  %5509 = vst [vmem:[#allocation53_spill] sm:$0xff] %v3653_v42  ;;  %v384_v63 = vmax.f32 %v3446_v4, 0.0  ;;  %v3743_v29 = vmin.f32 %v394_v40, 7.0  ;;  %v3753_v41 = vmin.f32 %v396_v17, 7.0  ;;  %v3761_v40 = vmin.f32 %v399_v37, 7.0 }
  0x2e   : > { %334 = vrot.lane.b32.xlu1 %v3624_v54, %s3388_s21  ;;  %332 = vrot.lane.b32.xlu0 %v3627_v55, %s3388_s21  ;;  %5510 = vst [vmem:[#allocation54_spill] sm:$0xff] %v3655_v43  ;;  %5511 = vst [vmem:[#allocation55_spill] sm:$0xff] %v3662_v50 }
  0x2f   : > { %5512 = vst [vmem:[#allocation56_spill] sm:$0xff] %v3665_v52  ;;  %5513 = vst [vmem:[#allocation57_spill] sm:$0xff] %v3668_v56  ;;  %v3693_v34 = vmin.f32 %v384_v63, 7.0  ;;  %v387_v56 = vmax.f32 %v3449_v5, 0.0  ;;  %v3711_v63 = vmin.f32 %v389_v27, 7.0  ;;  %v392_v27 = vmax.f32 %v3549_v33, 0.0 }
  0x30   : > { %5514 = vst [vmem:[#allocation58_spill] sm:$0xff] %v3671_v51  ;;  %5515 = vst [vmem:[#allocation59_spill] sm:$0xff] %v3680_v61  ;;  %v397_v33 = vmax.f32 %v3588_v44, 0.0  ;;  %v401_v44 = vmax.f32 %v3653_v42, 0.0 }
  0x31   : > { %5516 = vst [vmem:[#allocation60_spill] sm:$0xff] %v3683_v58  ;;  %v3701_v51 = vmin.f32 %v387_v56, 7.0  ;;  %v390_v56 = vmax.f32 %v3519_v25, 0.0  ;;  %v3733_v15 = vmin.f32 %v392_v27, 7.0  ;;  %v3819_v6 = vmul.f32 8.0, %v3693_v34 }
  0x32   : > { %338 = vrot.lane.b32.xlu1 %v3638_v60, %s3388_s21  ;;  %336 = vrot.lane.b32.xlu0 %v3648_v62, %s3388_s21  ;;  %v3751_v27 = vmin.f32 %v397_v33, 7.0  ;;  %v400_v33 = vmax.f32 %v3655_v43, 0.0  ;;  %v3771_v17 = vmin.f32 %v401_v44, 7.0 }
  0x33   : > { %v3723_v39 = vmin.f32 %v390_v56, 7.0  ;;  %v3741_v56 = vmin.f32 %v395_v31, 7.0  ;;  %v398_v31 = vmax.f32 %v3633_v57, 0.0  ;;  %v3830_v12 = vmul.f32 8.0, %v3701_v51 }
  0x34   : > { %v3773_v53 = vmin.f32 %v400_v33, 7.0 }
  0x35   : > { %v3763_v45 = vmin.f32 %v398_v31, 7.0 }
  0x36   : > { %342 = vrot.lane.b32.xlu1 %v3662_v50, %s3388_s21  ;;  %340 = vrot.lane.b32.xlu0 %v3665_v52, %s3388_s21 }
  0x3a   : > { %346 = vrot.lane.b32.xlu1 %v3680_v61, %s3388_s21  ;;  %344 = vrot.lane.b32.xlu0 %v3683_v58, %s3388_s21 }
  0x3e   : > { %458 = vrot.lane.b32.xlu1 %v3691_v35, %s3388_s21  ;;  %456 = vrot.lane.b32.xlu0 %v3693_v34, %s3388_s21 }
  0x42   : > { %462 = vrot.lane.b32.xlu1 %v3701_v51, %s3388_s21  ;;  %460 = vrot.lane.b32.xlu0 %v3703_v48, %s3388_s21  ;;  %v3846_v48 = vmul.f32 8.0, %v3711_v63 }
  0x46   : > { %466 = vrot.lane.b32.xlu1 %v3711_v63, %s3388_s21  ;;  %464 = vrot.lane.b32.xlu0 %v3713_v26, %s3388_s21  ;;  %v3863_v63 = vmul.f32 8.0, %v3723_v39 }
  0x4a   : > { %470 = vrot.lane.b32.xlu1 %v3721_v49, %s3388_s21  ;;  %468 = vrot.lane.b32.xlu0 %v3723_v39, %s3388_s21 }
  0x4e   : > { %474 = vrot.lane.b32.xlu1 %v3731_v59, %s3388_s21  ;;  %472 = vrot.lane.b32.xlu0 %v3733_v15, %s3388_s21 }
  0x52   : > { %478 = vrot.lane.b32.xlu1 %v3741_v56, %s3388_s21  ;;  %476 = vrot.lane.b32.xlu0 %v3743_v29, %s3388_s21 }
  0x56   : > { %482 = vrot.lane.b32.xlu1 %v3751_v27, %s3388_s21  ;;  %480 = vrot.lane.b32.xlu0 %v3753_v41, %s3388_s21 }
  0x5a   : > { %486 = vrot.lane.b32.xlu1 %v3761_v40, %s3388_s21  ;;  %484 = vrot.lane.b32.xlu0 %v3763_v45, %s3388_s21 }
  0x5e   : > { %490 = vrot.lane.b32.xlu1 %v3771_v17, %s3388_s21  ;;  %488 = vrot.lane.b32.xlu0 %v3773_v53, %s3388_s21 }
  0x8c   : > { %v3779_v37 = vpop.permute.xlu1 %316  ;;  %v3781_v31 = vpop.permute.xlu0 %312 }
  0x90   : > { %v3783_v43 = vpop.permute.xlu1 %318  ;;  %v3785_v42 = vpop.permute.xlu0 %314 }
  0x94   : > { %v3787_v57 = vpop.permute.xlu1 %322  ;;  %v3789_v44 = vpop.permute.xlu0 %320 }
  0x98   : > { %v3791_v33 = vpop.permute.xlu1 %326  ;;  %v3793_v32 = vpop.permute.xlu0 %324 }
  0x99   : > { %5517 = vst [vmem:[#allocation61_spill] sm:$0xff] %v3793_v32 }
  0x9c   : > { %v3795_v8 = vpop.permute.xlu1 %330  ;;  %v3797_v7 = vpop.permute.xlu0 %328 }
  0x9d   : > { %5518 = vst [vmem:[#allocation62_spill] sm:$0xff] %v3795_v8  ;;  %5519 = vst [vmem:[#allocation63_spill] sm:$0xff] %v3797_v7 }
  0xa0   : > { %v3799_v24 = vpop.permute.xlu1 %334  ;;  %v3801_v20 = vpop.permute.xlu0 %332 }
  0xa1   : > { %5520 = vst [vmem:[#allocation64_spill] sm:$0xff] %v3799_v24  ;;  %5521 = vst [vmem:[#allocation65_spill] sm:$0xff] %v3801_v20 }
  0xa4   : > { %v3803_v25 = vpop.permute.xlu1 %338  ;;  %v3805_v21 = vpop.permute.xlu0 %336 }
  0xa5   : > { %5522 = vst [vmem:[#allocation66_spill] sm:$0xff] %v3803_v25  ;;  %5523 = vst [vmem:[#allocation67_spill] sm:$0xff] %v3805_v21 }
  0xa8   : > { %v3807_v14 = vpop.permute.xlu1 %342  ;;  %v3809_v10 = vpop.permute.xlu0 %340 }
  0xa9   : > { %5524 = vst [vmem:[#allocation68_spill] sm:$0xff] %v3807_v14  ;;  %5525 = vst [vmem:[#allocation69_spill] sm:$0xff] %v3809_v10 }
  0xac   : > { %v3811_v13 = vpop.permute.xlu1 %346  ;;  %v3813_v0 = vpop.permute.xlu0 %344 }
  0xad   : > { %5526 = vst [vmem:[#allocation70_spill] sm:$0xff] %v3811_v13  ;;  %5527 = vst [vmem:[#allocation71_spill] sm:$0xff] %v3813_v0 }
  0xb0   : > { %v3821_v11 = vpop.permute.xlu1 %458  ;;  %v3823_v1 = vpop.permute.xlu0 %456 }
  0xb1   : > { %5528 = vst [vmem:[#allocation72_spill] sm:$0xff] %v3821_v11  ;;  %5529 = vst [vmem:[#allocation73_spill] sm:$0xff] %v3823_v1  ;;  %v511_v16 = vadd.f32 %v3821_v11, %v3816_v2  ;;  %v510_v5 = vadd.f32 %v3823_v1, %v3819_v6 }
  0xb3   : > { %535 = vperm.xlu1 %3317, %v511_v16   ;;  %530 = vperm.xlu0 %3316, %v510_v5   ;;  %v3849_v5 = vmul.f32 8.0, %v3713_v26 }
  0xb4   : > { %v3835_v34 = vpop.permute.xlu1 %462  ;;  %v3837_v35 = vpop.permute.xlu0 %460 }
  0xb5   : > { %5530 = vst [vmem:[#allocation74_spill] sm:$0xff] %v3835_v34  ;;  %5531 = vst [vmem:[#allocation75_spill] sm:$0xff] %v3837_v35  ;;  %v513_v11 = vadd.f32 %v3835_v34, %v3830_v12  ;;  %v512_v51 = vadd.f32 %v3837_v35, %v3833_v3  ;;  %v3860_v35 = vmul.f32 8.0, %v3721_v49  ;;  %v3877_v49 = vmul.f32 8.0, %v3733_v15 }
  0xb7   : > { %545 = vperm.xlu0 %3316, %v513_v11   ;;  %540 = vperm.xlu1 %3317, %v512_v51   ;;  %5537 = vst [vmem:[#allocation81_spill] sm:$0xff] %v3877_v49 }
  0xb8   : > { %v3851_v16 = vpop.permute.xlu1 %466  ;;  %v3853_v1 = vpop.permute.xlu0 %464 }
  0xb9   : > { %5532 = vst [vmem:[#allocation76_spill] sm:$0xff] %v3851_v16  ;;  %5533 = vst [vmem:[#allocation77_spill] sm:$0xff] %v3853_v1  ;;  %v515_v9 = vadd.f32 %v3851_v16, %v3846_v48  ;;  %v514_v34 = vadd.f32 %v3853_v1, %v3849_v5  ;;  %v3874_v1 = vmul.f32 8.0, %v3731_v59  ;;  %v3891_v59 = vmul.f32 8.0, %v3743_v29 }
  0xbb   : > { %555 = vperm.xlu0 %3316, %v515_v9   ;;  %550 = vperm.xlu1 %3317, %v514_v34   ;;  %5536 = vst [vmem:[#allocation80_spill] sm:$0xff] %v3874_v1  ;;  %5541 = vst [vmem:[#allocation85_spill] sm:$0xff] %v3891_v59 }
  0xbc   : > { %v3865_v11 = vpop.permute.xlu1 %470  ;;  %v3867_v26 = vpop.permute.xlu0 %468 }
  0xbd   : > { %5534 = vst [vmem:[#allocation78_spill] sm:$0xff] %v3865_v11  ;;  %5535 = vst [vmem:[#allocation79_spill] sm:$0xff] %v3867_v26  ;;  %v517_v51 = vadd.f32 %v3865_v11, %v3860_v35  ;;  %v516_v16 = vadd.f32 %v3867_v26, %v3863_v63  ;;  %v3888_v26 = vmul.f32 8.0, %v3741_v56  ;;  %v3905_v56 = vmul.f32 8.0, %v3753_v41 }
  0xbf   : > { %565 = vperm.xlu0 %3316, %v517_v51   ;;  %560 = vperm.xlu1 %3317, %v516_v16   ;;  %5540 = vst [vmem:[#allocation84_spill] sm:$0xff] %v3888_v26  ;;  %5545 = vst [vmem:[#allocation89_spill] sm:$0xff] %v3905_v56 }
  0xc0   : > { %v3879_v9 = vpop.permute.xlu1 %474  ;;  %v3881_v39 = vpop.permute.xlu0 %472 }
  0xc1   : > { %5538 = vst [vmem:[#allocation82_spill] sm:$0xff] %v3879_v9  ;;  %5539 = vst [vmem:[#allocation83_spill] sm:$0xff] %v3881_v39  ;;  %v519_v34 = vadd.f32 %v3879_v9, %v3874_v1  ;;  %v518_v11 = vadd.f32 %v3881_v39, %v3877_v49  ;;  %v3902_v39 = vmul.f32 8.0, %v3751_v27  ;;  %v3919_v27 = vmul.f32 8.0, %v3763_v45 }
  0xc3   : > { %575 = vperm.xlu0 %3316, %v519_v34   ;;  %570 = vperm.xlu1 %3317, %v518_v11   ;;  %5544 = vst [vmem:[#allocation88_spill] sm:$0xff] %v3902_v39  ;;  %5549 = vst [vmem:[#allocation93_spill] sm:$0xff] %v3919_v27 }
  0xc4   : > { %v3893_v15 = vpop.permute.xlu1 %478  ;;  %v3895_v16 = vpop.permute.xlu0 %476 }
  0xc5   : > { %5542 = vst [vmem:[#allocation86_spill] sm:$0xff] %v3893_v15  ;;  %5543 = vst [vmem:[#allocation87_spill] sm:$0xff] %v3895_v16  ;;  %v521_v51 = vadd.f32 %v3893_v15, %v3888_v26  ;;  %v520_v9 = vadd.f32 %v3895_v16, %v3891_v59  ;;  %v3916_v16 = vmul.f32 8.0, %v3761_v40  ;;  %v3933_v40 = vmul.f32 8.0, %v3773_v53  ;;  %v5582_v59 = vld [vmem:[#allocation16_spill] sm:$0xff] }
  0xc6   : > { %v367_v53 = vmul.f32 %v3785_v42, %v3512_v23  ;;  %vm5418_vm12 = vcmp.gt.f32.partialorder %v5582_v59, -1.0  ;;  %vm5419_vm14 = vcmp.lt.f32.partialorder %v5582_v59, 8.0  ;;  %v5640_v59 = vld [vmem:[#allocation44_spill] sm:$0xff] }
  0xc7   : > { %585 = vperm.xlu0 %3316, %v521_v51   ;;  %580 = vperm.xlu1 %3317, %v520_v9   ;;  %5548 = vst [vmem:[#allocation92_spill] sm:$0xff] %v3916_v16  ;;  %5553 = vst [vmem:[#allocation97_spill] sm:$0xff] %v3933_v40 }
  0xc8   : > { %v3907_v29 = vpop.permute.xlu1 %482  ;;  %v3909_v11 = vpop.permute.xlu0 %480 }
  0xc9   : > { %5546 = vst [vmem:[#allocation90_spill] sm:$0xff] %v3907_v29  ;;  %5547 = vst [vmem:[#allocation91_spill] sm:$0xff] %v3909_v11  ;;  %v523_v34 = vadd.f32 %v3907_v29, %v3902_v39  ;;  %v522_v15 = vadd.f32 %v3909_v11, %v3905_v56  ;;  %v3930_v11 = vmul.f32 8.0, %v3771_v17  ;;  %v366_v17 = vmul.f32 %v3781_v31, %v3495_v19  ;;  %v5577_v39 = vld [vmem:[#allocation28_spill] sm:$0xff] }
  0xcb   : > { %595 = vperm.xlu0 %3316, %v523_v34   ;;  %590 = vperm.xlu1 %3317, %v522_v15   ;;  %5552 = vst [vmem:[#allocation96_spill] sm:$0xff] %v3930_v11 }
  0xcc   : > { %v3921_v41 = vpop.permute.xlu1 %486  ;;  %v3923_v9 = vpop.permute.xlu0 %484 }
  0xcd   : > { %5550 = vst [vmem:[#allocation94_spill] sm:$0xff] %v3921_v41  ;;  %5551 = vst [vmem:[#allocation95_spill] sm:$0xff] %v3923_v9  ;;  %v525_v51 = vadd.f32 %v3921_v41, %v3916_v16  ;;  %v524_v29 = vadd.f32 %v3923_v9, %v3919_v27  ;;  %v5569_v9 = vld [vmem:[#allocation15_spill] sm:$0xff] }
  0xce   : > { %v784_v16 = vadd.f32 1.0, %v5569_v9 }
  0xcf   : > { %605 = vperm.xlu0 %3316, %v525_v51   ;;  %600 = vperm.xlu1 %3317, %v524_v29   ;;  %v368_v29 = vmul.f32 %v3779_v37, %v3492_v18  ;;  %v369_v51 = vmul.f32 %v3783_v43, %v3509_v22 }
  0xd0   : > { %v3935_v45 = vpop.permute.xlu1 %490  ;;  %v3937_v15 = vpop.permute.xlu0 %488 }
  0xd1   : > { %5554 = vst [vmem:[#allocation98_spill] sm:$0xff] %v3935_v45  ;;  %5555 = vst [vmem:[#allocation99_spill] sm:$0xff] %v3937_v15  ;;  %v527_v34 = vadd.f32 %v3935_v45, %v3930_v11  ;;  %v526_v41 = vadd.f32 %v3937_v15, %v3933_v40  ;;  %v780_v15 = vadd.f32 1.0, %v3446_v4  ;;  %v5556_v45 = vld [vmem:[#allocation10_spill] sm:$0xff]  ;;  %v5558_v4 = vld [vmem:[#allocation13_spill] sm:$0xff] }
  0xd2   : > { %v781_v40 = vadd.f32 1.0, %v5556_v45 }
  0xd3   : > { %615 = vperm.xlu0 %3316, %v527_v34   ;;  %610 = vperm.xlu1 %3317, %v526_v41   ;;  %v371_v34 = vmul.f32 %v3787_v57, %v3528_v28  ;;  %v370_v41 = vmul.f32 %v3789_v44, %v3539_v30 }
  0xd7   : > { %679 = vperm.xlu0 %3316, %v367_v53   ;;  %674 = vperm.xlu1 %3317, %v366_v17   ;;  %v373_v53 = vmul.f32 %v3791_v33, %v3558_v36  ;;  %v372_v17 = vmul.f32 %v3793_v32, %v3568_v38 }
  0xdb   : > { %689 = vperm.xlu0 %3316, %v369_v51   ;;  %684 = vperm.xlu1 %3317, %v368_v29   ;;  %v375_v51 = vmul.f32 %v3795_v8, %v3598_v46  ;;  %v374_v29 = vmul.f32 %v3797_v7, %v3601_v47  ;;  %v5589_v7 = vld [vmem:[#allocation34_spill] sm:$0xff] }
  0xdc   : > { %v790_v46 = vadd.f32 1.0, %v5589_v7 }
  0xdf   : > { %699 = vperm.xlu0 %3316, %v371_v34   ;;  %694 = vperm.xlu1 %3317, %v370_v41   ;;  %v377_v34 = vmul.f32 %v3799_v24, %v3624_v54  ;;  %v376_v41 = vmul.f32 %v3801_v20, %v3627_v55  ;;  %v788_v20 = vadd.f32 1.0, %v5577_v39  ;;  %v5579_v54 = vld [vmem:[#allocation26_spill] sm:$0xff] }
  0xe3   : > { %709 = vperm.xlu0 %3316, %v373_v53   ;;  %704 = vperm.xlu1 %3317, %v372_v17   ;;  %v379_v53 = vmul.f32 %v3803_v25, %v3638_v60  ;;  %v378_v17 = vmul.f32 %v3805_v21, %v3648_v62  ;;  %v5571_v21 = vld [vmem:[#allocation22_spill] sm:$0xff]  ;;  %v5576_v60 = vld [vmem:[#allocation27_spill] sm:$0xff] }
  0xe4   : > { %v786_v62 = vadd.f32 1.0, %v5571_v21  ;;  %v5575_v21 = vld [vmem:[#allocation9_spill] sm:$0xff]  ;;  %v789_v56 = vadd.f32 1.0, %v5576_v60  ;;  %v5583_v60 = vld [vmem:[#allocation18_spill] sm:$0xff] }
  0xe5   : > { %vm1918_vm9 = vcmp.gt.f32.partialorder %v5575_v21, -1.0  ;;  %vm1936_vm11 = vcmp.lt.f32.partialorder %v5575_v21, 8.0  ;;  %vm5420_vm13 = vcmp.gt.f32.partialorder %v5583_v60, -1.0  ;;  %vm5421_vm15 = vcmp.lt.f32.partialorder %v5583_v60, 8.0 }
  0xe6   : > { %v897_v24 = vmax.f32 %v789_v56, 0.0 }
  0xe7   : > { %719 = vperm.xlu0 %3316, %v375_v51   ;;  %714 = vperm.xlu1 %3317, %v374_v29   ;;  %v381_v51 = vmul.f32 %v3807_v14, %v3662_v50  ;;  %v380_v29 = vmul.f32 %v3809_v10, %v3665_v52  ;;  %v5557_v14 = vld [vmem:[#allocation5_spill] sm:$0xff] }
  0xe8   : > { %v782_v10 = vadd.f32 1.0, %v5557_v14  ;;  %v5561_v14 = vld [vmem:[#allocation3_spill] sm:$0xff]  ;;  %v4097_v55 = vmin.f32 %v897_v24, 7.0 }
  0xe9   : > { %vm1914_vm0 = vcmp.gt.f32.partialorder %v5561_v14, -1.0  ;;  %vm1932_vm2 = vcmp.lt.f32.partialorder %v5561_v14, 8.0 }
  0xea   : > { %5580 = vst [vmem:[#allocation10_spill] sm:$0xff] %v4097_v55 }
  0xeb   : > { %729 = vperm.xlu0 %3316, %v377_v34   ;;  %724 = vperm.xlu1 %3317, %v376_v41   ;;  %v383_v34 = vmul.f32 %v3811_v13, %v3680_v61  ;;  %v382_v41 = vmul.f32 %v3813_v0, %v3683_v58  ;;  %v890_v0 = vmax.f32 %v782_v10, 0.0  ;;  %v5567_v58 = vld [vmem:[#allocation14_spill] sm:$0xff] }
  0xef   : > { %739 = vperm.xlu0 %3316, %v379_v53   ;;  %734 = vperm.xlu1 %3317, %v378_v17   ;;  %v888_v53 = vmax.f32 %v780_v15, 0.0  ;;  %v889_v17 = vmax.f32 %v781_v40, 0.0  ;;  %v5560_v40 = vld [vmem:[#allocation17_spill] sm:$0xff]  ;;  %v3995_v15 = vmin.f32 %v890_v0, 7.0 }
  0xf1   : > { %v3981_v11 = vmin.f32 %v888_v53, 7.0 }
  0xf3   : > { %749 = vperm.xlu0 %3316, %v381_v51   ;;  %744 = vperm.xlu1 %3317, %v380_v29   ;;  %v3988_v51 = vmin.f32 %v889_v17, 7.0  ;;  %v5559_v29 = vld [vmem:[#allocation6_spill] sm:$0xff]  ;;  %v5564_v17 = vld [vmem:[#allocation7_spill] sm:$0xff] }
  0xf4   : > { %v783_v13 = vadd.f32 1.0, %v5559_v29  ;;  %vm1915_vm1 = vcmp.gt.f32.partialorder %v5564_v17, -1.0  ;;  %vm1933_vm3 = vcmp.lt.f32.partialorder %v5564_v17, 8.0 }
  0xf6   : > { %v891_v45 = vmax.f32 %v783_v13, 0.0 }
  0xf7   : > { %759 = vperm.xlu0 %3316, %v383_v34   ;;  %754 = vperm.xlu1 %3317, %v382_v41   ;;  %v5562_v34 = vld [vmem:[#allocation12_spill] sm:$0xff]  ;;  %v5563_v41 = vmov 0  }
  0xf8   : > { %v1968_v10 = vsel %vm1914_vm0, 1, %v5563_v41  ;;  %v4005_v53 = vmin.f32 %v891_v45, 7.0  ;;  %v1969_v0 = vsel %vm1915_vm1, 1, %v5563_v41  ;;  %v2058_v13 = vsel %vm1932_vm2, 1, %v5563_v41  ;;  %v5565_v45 = vld [vmem:[#allocation4_spill] sm:$0xff] }
  0xf9   : > { %v2059_v29 = vsel %vm1933_vm3, 1, %v5563_v41  ;;  %vm1917_vm4 = vcmp.gt.f32.partialorder %v5565_v45, -1.0  ;;  %vm1935_vm6 = vcmp.lt.f32.partialorder %v5565_v45, 8.0  ;;  %v1974_v24 = vsel %vm5420_vm13, 1, %v5563_v41  ;;  %v5653_v45 = vld [vmem:[#allocation57_spill] sm:$0xff] }
  0xfa   : > { %v1971_v61 = vsel %vm1917_vm4, 1, %v5563_v41 }
  0xfb   : > { %942 = vrot.lane.b32.xlu0 %v3981_v11, %s3388_s21  ;;  %816 = vrot.lane.b32.xlu1 %v5558_v4, %s3388_s21 }
  0xff   : > { %944 = vrot.lane.b32.xlu1 %v3988_v51, %s3388_s21  ;;  %818 = vrot.lane.b32.xlu0 %v5560_v40, %s3388_s21 }
 0x103   : > { %820 = vrot.lane.b32.xlu1 %v5562_v34, %s3388_s21  ;;  %946 = vrot.lane.b32.xlu0 %v3995_v15, %s3388_s21 }
 0x107   : > { %948 = vrot.lane.b32.xlu1 %v4005_v53, %s3388_s21  ;;  %1986 = vrot.lane.b32.xlu0 %v1968_v10, %s3388_s21  ;;  %v5566_v10 = vld [vmem:[#allocation2_spill] sm:$0xff] }
 0x108   : > { %vm1916_vm5 = vcmp.gt.f32.partialorder %v5566_v10, -1.0  ;;  %vm1934_vm7 = vcmp.lt.f32.partialorder %v5566_v10, 8.0 }
 0x109   : > { %v2060_v52 = vsel %vm1934_vm7, 1, %v5563_v41 }
 0x10b   : > { %1988 = vrot.lane.b32.xlu1 %v1969_v0, %s3388_s21  ;;  %2076 = vrot.lane.b32.xlu0 %v2058_v13, %s3388_s21  ;;  %v1970_v0 = vsel %vm1916_vm5, 1, %v5563_v41  ;;  %v5568_v13 = vld [vmem:[#allocation11_spill] sm:$0xff] }
 0x10c   : > { %v785_v50 = vadd.f32 1.0, %v5568_v13  ;;  %v892_v13 = vmax.f32 %v784_v16, 0.0  ;;  %v894_v16 = vmax.f32 %v786_v62, 0.0 }
 0x10e   : > { %v893_v27 = vmax.f32 %v785_v50, 0.0  ;;  %v4051_v25 = vmin.f32 %v892_v13, 7.0  ;;  %v4065_v13 = vmin.f32 %v894_v16, 7.0  ;;  %v2062_v16 = vsel %vm1936_vm11, 1, %v5563_v41 }
 0x10f   : > { %2078 = vrot.lane.b32.xlu1 %v2059_v29, %s3388_s21  ;;  %822 = vrot.lane.b32.xlu0 %v5567_v58, %s3388_s21  ;;  %v2061_v29 = vsel %vm1935_vm6, 1, %v5563_v41 }
 0x110   : > { %v4049_v9 = vmin.f32 %v893_v27, 7.0 }
 0x113   : > { %1992 = vrot.lane.b32.xlu0 %v1971_v61, %s3388_s21  ;;  %1990 = vrot.lane.b32.xlu1 %v1970_v0, %s3388_s21  ;;  %v5570_v61 = vld [vmem:[#allocation20_spill] sm:$0xff] }
 0x114   : > { %v787_v0 = vadd.f32 1.0, %v5570_v61  ;;  %v5574_v61 = vld [vmem:[#allocation8_spill] sm:$0xff] }
 0x115   : > { %vm5448_vm8 = vcmp.gt.f32.partialorder %v5574_v61, -1.0  ;;  %vm5449_vm10 = vcmp.lt.f32.partialorder %v5574_v61, 8.0 }
 0x116   : > { %v895_v50 = vmax.f32 %v787_v0, 0.0  ;;  %v1973_v62 = vsel %vm5448_vm8, 1, %v5563_v41  ;;  %v1972_v0 = vsel %vm1918_vm9, 1, %v5563_v41 }
 0x117   : > { %2082 = vrot.lane.b32.xlu0 %v2061_v29, %s3388_s21  ;;  %2080 = vrot.lane.b32.xlu1 %v2060_v52, %s3388_s21  ;;  %v5572_v29 = vld [vmem:[#allocation19_spill] sm:$0xff]  ;;  %v5573_v52 = vld [vmem:[#allocation21_spill] sm:$0xff] }
 0x118   : > { %v4063_v27 = vmin.f32 %v895_v50, 7.0  ;;  %v2063_v50 = vsel %vm5449_vm10, 1, %v5563_v41 }
 0x11b   : > { %952 = vrot.lane.b32.xlu0 %v4049_v9, %s3388_s21  ;;  %950 = vrot.lane.b32.xlu1 %v4051_v25, %s3388_s21 }
 0x11f   : > { %826 = vrot.lane.b32.xlu0 %v5572_v29, %s3388_s21  ;;  %824 = vrot.lane.b32.xlu1 %v5573_v52, %s3388_s21 }
 0x123   : > { %956 = vrot.lane.b32.xlu0 %v4063_v27, %s3388_s21  ;;  %954 = vrot.lane.b32.xlu1 %v4065_v13, %s3388_s21 }
 0x127   : > { %1996 = vrot.lane.b32.xlu0 %v1973_v62, %s3388_s21  ;;  %1994 = vrot.lane.b32.xlu1 %v1972_v0, %s3388_s21  ;;  %v896_v62 = vmax.f32 %v788_v20, 0.0  ;;  %v5578_v0 = vld [vmem:[#allocation25_spill] sm:$0xff]  ;;  %v1975_v20 = vsel %vm5418_vm12, 1, %v5563_v41 }
 0x129   : > { %v4099_v26 = vmin.f32 %v896_v62, 7.0  ;;  %v2065_v62 = vsel %vm5419_vm14, 1, %v5563_v41 }
 0x12b   : > { %2086 = vrot.lane.b32.xlu0 %v2063_v50, %s3388_s21  ;;  %2084 = vrot.lane.b32.xlu1 %v2062_v16, %s3388_s21  ;;  %5581 = vst [vmem:[#allocation5_spill] sm:$0xff] %v4099_v26 }
 0x12f   : > { %830 = vrot.lane.b32.xlu0 %v5578_v0, %s3388_s21  ;;  %828 = vrot.lane.b32.xlu1 %v5579_v54, %s3388_s21 }
 0x132   : > { %v4103_v39 = vpop.permute.xlu1 %535  ;;  %v4105_v50 = vpop.permute.xlu0 %530 }
 0x133   : > { %5584 = vst [vmem:[#allocation13_spill] sm:$0xff] %v4103_v39  ;;  %5585 = vst [vmem:[#allocation6_spill] sm:$0xff] %v4105_v50  ;;  %960 = vrot.lane.b32.xlu0 %v4097_v55, %s3388_s21  ;;  %958 = vrot.lane.b32.xlu1 %v4099_v26, %s3388_s21  ;;  %v2064_v39 = vsel %vm5421_vm15, 1, %v5563_v41  ;;  %v5588_v50 = vld [vmem:[#allocation31_spill] sm:$0xff]  ;;  %v5594_v55 = vld [vmem:[#allocation32_spill] sm:$0xff] }
 0x134   : > { %v791_v8 = vadd.f32 1.0, %v5588_v50  ;;  %v5595_v50 = vld [vmem:[#allocation33_spill] sm:$0xff] }
 0x136   : > { %v4119_v56 = vpop.permute.xlu1 %540  ;;  %v4121_v16 = vpop.permute.xlu0 %545 }
 0x137   : > { %5586 = vst [vmem:[#allocation17_spill] sm:$0xff] %v4119_v56  ;;  %5587 = vst [vmem:[#allocation3_spill] sm:$0xff] %v4121_v16  ;;  %2000 = vrot.lane.b32.xlu0 %v1975_v20, %s3388_s21  ;;  %1998 = vrot.lane.b32.xlu1 %v1974_v24, %s3388_s21  ;;  %v899_v20 = vmax.f32 %v791_v8, 0.0  ;;  %v898_v24 = vmax.f32 %v790_v46, 0.0 }
 0x139   : > { %v4147_v7 = vmin.f32 %v899_v20, 7.0 }
 0x13a   : > { %v4133_v47 = vpop.permute.xlu1 %550  ;;  %v4135_v56 = vpop.permute.xlu0 %555 }
 0x13b   : > { %5590 = vst [vmem:[#allocation12_spill] sm:$0xff] %v4133_v47  ;;  %5591 = vst [vmem:[#allocation7_spill] sm:$0xff] %v4135_v56  ;;  %2090 = vrot.lane.b32.xlu0 %v2065_v62, %s3388_s21  ;;  %2088 = vrot.lane.b32.xlu1 %v2064_v39, %s3388_s21  ;;  %v4149_v47 = vmin.f32 %v898_v24, 7.0  ;;  %v5598_v56 = vld [vmem:[#allocation23_spill] sm:$0xff]  ;;  %v5599_v62 = vld [vmem:[#allocation24_spill] sm:$0xff] }
 0x13c   : > { %5596 = vst [vmem:[#allocation14_spill] sm:$0xff] %v4147_v7  ;;  %vm5426_vm12 = vcmp.gt.f32.partialorder %v5598_v56, -1.0  ;;  %vm5428_vm14 = vcmp.gt.f32.partialorder %v5599_v62, -1.0  ;;  %vm5427_vm13 = vcmp.lt.f32.partialorder %v5598_v56, 8.0  ;;  %vm5429_vm15 = vcmp.lt.f32.partialorder %v5599_v62, 8.0  ;;  %v5610_v62 = vld [vmem:[#allocation41_spill] sm:$0xff] }
 0x13d   : > { %5597 = vst [vmem:[#allocation11_spill] sm:$0xff] %v4149_v47  ;;  %v1977_v39 = vsel %vm5426_vm12, 1, %v5563_v41  ;;  %v1976_v20 = vsel %vm5428_vm14, 1, %v5563_v41 }
 0x13e   : > { %v4139_v16 = vpop.permute.xlu1 %560  ;;  %v4141_v26 = vpop.permute.xlu0 %565 }
 0x13f   : > { %5592 = vst [vmem:[#allocation4_spill] sm:$0xff] %v4139_v16  ;;  %5593 = vst [vmem:[#allocation2_spill] sm:$0xff] %v4141_v26  ;;  %834 = vrot.lane.b32.xlu0 %v5594_v55, %s3388_s21  ;;  %832 = vrot.lane.b32.xlu1 %v5595_v50, %s3388_s21  ;;  %v2066_v26 = vsel %vm5429_vm15, 1, %v5563_v41  ;;  %v5604_v16 = vld [vmem:[#allocation37_spill] sm:$0xff] }
 0x142   : > { %v4153_v8 = vpop.permute.xlu1 %570  ;;  %v4155_v46 = vpop.permute.xlu0 %575 }
 0x143   : > { %5600 = vst [vmem:[#allocation15_spill] sm:$0xff] %v4153_v8  ;;  %5601 = vst [vmem:[#allocation20_spill] sm:$0xff] %v4155_v46  ;;  %964 = vrot.lane.b32.xlu0 %v4147_v7, %s3388_s21  ;;  %962 = vrot.lane.b32.xlu1 %v4149_v47, %s3388_s21  ;;  %v2067_v8 = vsel %vm5427_vm13, 1, %v5563_v41  ;;  %v793_v7 = vadd.f32 1.0, %v5604_v16  ;;  %v5605_v47 = vld [vmem:[#allocation38_spill] sm:$0xff] }
 0x144   : > { %v792_v55 = vadd.f32 1.0, %v5605_v47  ;;  %v5611_v16 = vld [vmem:[#allocation42_spill] sm:$0xff] }
 0x146   : > { %v4169_v24 = vpop.permute.xlu1 %580  ;;  %v4171_v46 = vpop.permute.xlu0 %585 }
 0x147   : > { %5602 = vst [vmem:[#allocation22_spill] sm:$0xff] %v4169_v24  ;;  %5603 = vst [vmem:[#allocation19_spill] sm:$0xff] %v4171_v46  ;;  %2004 = vrot.lane.b32.xlu0 %v1977_v39, %s3388_s21  ;;  %2002 = vrot.lane.b32.xlu1 %v1976_v20, %s3388_s21  ;;  %v901_v39 = vmax.f32 %v793_v7, 0.0  ;;  %v900_v20 = vmax.f32 %v792_v55, 0.0 }
 0x149   : > { %v4197_v47 = vmin.f32 %v901_v39, 7.0 }
 0x14a   : > { %v4183_v50 = vpop.permute.xlu1 %590  ;;  %v4185_v24 = vpop.permute.xlu0 %595 }
 0x14b   : > { %5606 = vst [vmem:[#allocation21_spill] sm:$0xff] %v4183_v50  ;;  %5607 = vst [vmem:[#allocation8_spill] sm:$0xff] %v4185_v24  ;;  %2094 = vrot.lane.b32.xlu0 %v2067_v8, %s3388_s21  ;;  %2092 = vrot.lane.b32.xlu1 %v2066_v26, %s3388_s21  ;;  %v4199_v50 = vmin.f32 %v900_v20, 7.0  ;;  %v5614_v24 = vld [vmem:[#allocation29_spill] sm:$0xff]  ;;  %v5615_v8 = vld [vmem:[#allocation30_spill] sm:$0xff] }
 0x14c   : > { %5612 = vst [vmem:[#allocation28_spill] sm:$0xff] %v4197_v47  ;;  %vm5438_vm12 = vcmp.gt.f32.partialorder %v5614_v24, -1.0  ;;  %vm5440_vm13 = vcmp.gt.f32.partialorder %v5615_v8, -1.0  ;;  %vm5439_vm14 = vcmp.lt.f32.partialorder %v5614_v24, 8.0  ;;  %vm5447_vm15 = vcmp.lt.f32.partialorder %v5615_v8, 8.0  ;;  %v5625_v24 = vld [vmem:[#allocation43_spill] sm:$0xff] }
 0x14d   : > { %5613 = vst [vmem:[#allocation25_spill] sm:$0xff] %v4199_v50  ;;  %v1979_v7 = vsel %vm5438_vm12, 1, %v5563_v41  ;;  %v1978_v39 = vsel %vm5440_vm13, 1, %v5563_v41 }
 0x14e   : > { %v4189_v46 = vpop.permute.xlu1 %600  ;;  %v4191_v56 = vpop.permute.xlu0 %605 }
 0x14f   : > { %5608 = vst [vmem:[#allocation9_spill] sm:$0xff] %v4189_v46  ;;  %5609 = vst [vmem:[#allocation27_spill] sm:$0xff] %v4191_v56  ;;  %838 = vrot.lane.b32.xlu0 %v5610_v62, %s3388_s21  ;;  %836 = vrot.lane.b32.xlu1 %v5611_v16, %s3388_s21  ;;  %v2068_v56 = vsel %vm5447_vm15, 1, %v5563_v41 }
 0x152   : > { %v4203_v26 = vpop.permute.xlu1 %610  ;;  %v4205_v55 = vpop.permute.xlu0 %615 }
 0x153   : > { %5616 = vst [vmem:[#allocation26_spill] sm:$0xff] %v4203_v26  ;;  %5617 = vst [vmem:[#allocation31_spill] sm:$0xff] %v4205_v55  ;;  %968 = vrot.lane.b32.xlu0 %v4197_v47, %s3388_s21  ;;  %966 = vrot.lane.b32.xlu1 %v4199_v50, %s3388_s21  ;;  %v2069_v26 = vsel %vm5439_vm14, 1, %v5563_v41 }
 0x156   : > { %v4219_v20 = vpop.permute.xlu1 %674  ;;  %v4221_v55 = vpop.permute.xlu0 %679 }
 0x157   : > { %5618 = vst [vmem:[#allocation34_spill] sm:$0xff] %v4219_v20  ;;  %5619 = vst [vmem:[#allocation37_spill] sm:$0xff] %v4221_v55  ;;  %2008 = vrot.lane.b32.xlu0 %v1979_v7, %s3388_s21  ;;  %2006 = vrot.lane.b32.xlu1 %v1978_v39, %s3388_s21  ;;  %v5624_v39 = vld [vmem:[#allocation47_spill] sm:$0xff]  ;;  %v5639_v20 = vld [vmem:[#allocation73_spill] sm:$0xff] }
 0x15a   : > { %v4231_v46 = vpop.permute.xlu1 %684  ;;  %v4233_v50 = vpop.permute.xlu0 %689 }
 0x15b   : > { %5620 = vst [vmem:[#allocation38_spill] sm:$0xff] %v4231_v46  ;;  %5621 = vst [vmem:[#allocation100_spill] sm:$0xff] %v4233_v50  ;;  %2098 = vrot.lane.b32.xlu0 %v2069_v26, %s3388_s21  ;;  %2096 = vrot.lane.b32.xlu1 %v2068_v56, %s3388_s21 }
 0x15e   : > { %v4237_v47 = vpop.permute.xlu1 %694  ;;  %v4239_v7 = vpop.permute.xlu0 %699 }
 0x15f   : > { %5622 = vst [vmem:[#allocation101_spill] sm:$0xff] %v4237_v47  ;;  %5623 = vst [vmem:[#allocation102_spill] sm:$0xff] %v4239_v7  ;;  %840 = vrot.lane.b32.xlu1 %v5624_v39, %s3388_s21  ;;  %842 = vrot.lane.b32.xlu0 %v5625_v24, %s3388_s21 }
 0x162   : > { %v4245_v8 = vpop.permute.xlu1 %704  ;;  %v4247_v16 = vpop.permute.xlu0 %709 }
 0x163   : > { %5626 = vst [vmem:[#allocation103_spill] sm:$0xff] %v4245_v8  ;;  %5627 = vst [vmem:[#allocation104_spill] sm:$0xff] %v4247_v16 }
 0x166   : > { %v4249_v46 = vpop.permute.xlu1 %714  ;;  %v4251_v50 = vpop.permute.xlu0 %719 }
 0x167   : > { %5628 = vst [vmem:[#allocation105_spill] sm:$0xff] %v4249_v46  ;;  %5629 = vst [vmem:[#allocation106_spill] sm:$0xff] %v4251_v50 }
 0x16a   : > { %v4253_v26 = vpop.permute.xlu1 %724  ;;  %v4255_v56 = vpop.permute.xlu0 %729 }
 0x16b   : > { %5630 = vst [vmem:[#allocation107_spill] sm:$0xff] %v4253_v26  ;;  %5631 = vst [vmem:[#allocation108_spill] sm:$0xff] %v4255_v56 }
 0x16e   : > { %v4257_v47 = vpop.permute.xlu1 %734  ;;  %v4259_v7 = vpop.permute.xlu0 %739 }
 0x16f   : > { %5632 = vst [vmem:[#allocation109_spill] sm:$0xff] %v4257_v47  ;;  %5633 = vst [vmem:[#allocation110_spill] sm:$0xff] %v4259_v7  ;;  %v1302_v47 = vmul.f32 8.0, %v3981_v11  ;;  %v5638_v7 = vld [vmem:[#allocation48_spill] sm:$0xff] }
 0x170   : > { %v794_v55 = vadd.f32 1.0, %v5638_v7  ;;  %v795_v7 = vadd.f32 1.0, %v5640_v59  ;;  %v1284_v59 = vmul.f32 %v3781_v31, %v5558_v4 }
 0x171   : > { %v1320_v11 = vadd.f32 %v1302_v47, %v5639_v20 }
 0x172   : > { %v4261_v39 = vpop.permute.xlu1 %744  ;;  %v4263_v62 = vpop.permute.xlu0 %749  ;;  %v902_v1 = vmax.f32 %v794_v55, 0.0  ;;  %v903_v49 = vmax.f32 %v795_v7, 0.0  ;;  %v5644_v7 = vld [vmem:[#allocation36_spill] sm:$0xff] }
 0x173   : > { %5634 = vst [vmem:[#allocation111_spill] sm:$0xff] %v4261_v39  ;;  %5635 = vst [vmem:[#allocation112_spill] sm:$0xff] %v4263_v62  ;;  %vm5441_vm12 = vcmp.gt.f32.partialorder %v5644_v7, -1.0  ;;  %vm5443_vm14 = vcmp.lt.f32.partialorder %v5644_v7, 8.0 }
 0x174   : > { %v4297_v55 = vmin.f32 %v903_v49, 7.0  ;;  %v1980_v31 = vsel %vm5441_vm12, 1, %v5563_v41 }
 0x176   : > { %v4265_v24 = vpop.permute.xlu1 %754  ;;  %v4267_v8 = vpop.permute.xlu0 %759  ;;  %5643 = vst [vmem:[#allocation73_spill] sm:$0xff] %v4297_v55 }
 0x177   : > { %5636 = vst [vmem:[#allocation113_spill] sm:$0xff] %v4265_v24  ;;  %5637 = vst [vmem:[#allocation114_spill] sm:$0xff] %v4267_v8 }
 0x17a   : > { %v4269_v16 = vpop.permute.xlu1 %816  ;;  %v943_v46 = vpop.permute.xlu0 %942 }
 0x17b   : > { %v996_v50 = vadd.f32 %v943_v46, %v3819_v6  ;;  %v870_v62 = vmul.f32 %v4269_v16, %v3495_v19 }
 0x17d   : > { %1016 = vperm.xlu1 %3317, %v996_v50   ;;  %v1303_v50 = vmul.f32 8.0, %v3988_v51 }
 0x17e   : > { %v945_v26 = vpop.permute.xlu1 %944  ;;  %v4272_v56 = vpop.permute.xlu0 %818 }
 0x17f   : > { %v997_v24 = vadd.f32 %v945_v26, %v3816_v2  ;;  %v871_v8 = vmul.f32 %v4272_v56, %v3512_v23  ;;  %v4291_v23 = vmin.f32 %v902_v1, 7.0  ;;  %v1285_v1 = vmul.f32 %v3785_v42, %v5560_v40 }
 0x180   : > { %v2070_v42 = vsel %vm5443_vm14, 1, %v5563_v41  ;;  %vm1950_vm14 = vmand %vm1914_vm0, %vm1932_vm2 }
 0x181   : > { %1021 = vperm.xlu0 %3316, %v997_v24   ;;  %1160 = vperm.xlu1 %3317, %v870_v62   ;;  %v5641_v62 = vld [vmem:[#allocation72_spill] sm:$0xff]  ;;  %5642 = vst [vmem:[#allocation48_spill] sm:$0xff] %v4291_v23 }
 0x182   : > { %v4281_v39 = vpop.permute.xlu1 %820  ;;  %v4283_v6 = vpop.permute.xlu0 %946  ;;  %v1321_v24 = vadd.f32 %v1303_v50, %v5641_v62 }
 0x183   : > { %v998_v7 = vadd.f32 %v4283_v6, %v3833_v3  ;;  %v1304_v3 = vmul.f32 8.0, %v3995_v15  ;;  %v5649_v15 = vld [vmem:[#allocation53_spill] sm:$0xff] }
 0x185   : > { %1340 = vperm.xlu1 %3317, %v1320_v11   ;;  %1165 = vperm.xlu0 %3316, %v871_v8   ;;  %v1626_v11 = vadd.f32 %v1302_v47, %v943_v46 }
 0x186   : > { %v4288_v19 = vpop.permute.xlu1 %948  ;;  %v1987_v2 = vpop.permute.xlu0 %1986 }
 0x187   : > { %v999_v17 = vadd.f32 %v4288_v19, %v3830_v12 }
 0x189   : > { %970 = vrot.lane.b32.xlu1 %v4291_v23, %s3388_s21  ;;  %1345 = vperm.xlu0 %3316, %v1321_v24   ;;  %v1627_v24 = vadd.f32 %v1303_v50, %v945_v26 }
 0x18a   : > { %v1989_v51 = vpop.permute.xlu1 %1988  ;;  %v2077_v60 = vpop.permute.xlu0 %2076 }
 0x18b   : > { %vm2023_vm15 = vcmp.ne.s32.totalorder %v1989_v51, 0  ;;  %vm2112_vm10 = vcmp.ne.s32.totalorder %v2077_v60, 0  ;;  %v3363_v60 = vld [vmem:[%s4369_s25] sm:$0xff]  }
 0x18c   : > { %3206 = vmatpush3.bf16.msra.mxu0 %v3363_v60  ;;  %v5652_v60 = vld [vmem:[#allocation74_spill] sm:$0xff] }
 0x18d   : > { %1484 = vperm.xlu1 %3317, %v1284_v59   ;;  %972 = vrot.lane.b32.xlu0 %v4297_v55, %s3388_s21  ;;  %v5645_v59 = vld [vmem:[#allocation35_spill] sm:$0xff] }
 0x18e   : > { %v2079_v8 = vpop.permute.xlu1 %2078  ;;  %v4301_v20 = vpop.permute.xlu0 %822  ;;  %vm5444_vm13 = vcmp.gt.f32.partialorder %v5645_v59, -1.0  ;;  %vm5446_vm12 = vcmp.lt.f32.partialorder %v5645_v59, 8.0 }
 0x18f   : > { %v1981_v46 = vsel %vm5444_vm13, 1, %v5563_v41  ;;  %v2071_v26 = vsel %vm5446_vm12, 1, %v5563_v41  ;;  %vm2022_vm13 = vcmp.ne.s32.totalorder %v1987_v2, 0  ;;  %vm1951_vm12 = vmand %vm1915_vm1, %vm1933_vm3  ;;  %vm2113_vm2 = vcmp.ne.s32.totalorder %v2079_v8, 0  ;;  %v5648_v2 = vld [vmem:[#allocation75_spill] sm:$0xff] }
 0x190   : > { %vm2040_vm8 = vmand %vm1950_vm14, %vm2022_vm13  ;;  %v1322_v51 = vadd.f32 %v1304_v3, %v5648_v2  ;;  %v797_v8 = vadd.f32 1.0, %v5649_v15  ;;  %v873_v12 = vmul.f32 %v4301_v20, %v3509_v22  ;;  %v3365_v22 = vld [vmem:[%s4369_s25 + $0x10] sm:$0xff]  }
 0x191   : > { %1646 = vperm.xlu1 %3317, %v1626_v11   ;;  %1489 = vperm.xlu0 %3316, %v1285_v1   ;;  %vm2041_vm0 = vmand %vm1951_vm12, %vm2023_vm15 }
 0x192   : > { %v4309_v49 = vpop.permute.xlu1 %1990  ;;  %v4311_v62 = vpop.permute.xlu0 %1992  ;;  %vm2130_vm1 = vmand %vm2040_vm8, %vm2112_vm10  ;;  %v905_v15 = vmax.f32 %v797_v8, 0.0  ;;  %v3366_v8 = vld [vmem:[%s4369_s25 + $0x18] sm:$0xff]   ;;  %vm3391_vm8 = vmmov 0  }
 0x193   : > { %vm2131_vm3 = vmand %vm2041_vm0, %vm2113_vm2  ;;  %vm2024_vm0 = vcmp.ne.s32.totalorder %v4309_v49, 0 }
 0x194   : > { %v4398_v32 = vmin.f32 %v905_v15, 7.0  ;;  %vm1952_vm15 = vmand %vm1916_vm5, %vm1934_vm7 }
 0x195   : > { %2010 = vrot.lane.b32.xlu1 %v1980_v31, %s3388_s21  ;;  %1651 = vperm.xlu0 %3316, %v1627_v24   ;;  %v5646_v31 = vld [vmem:[#allocation52_spill] sm:$0xff]  ;;  %vm1953_vm2 = vmand %vm1917_vm4, %vm1935_vm6 }
 0x196   : > { %v4322_v47 = vpop.permute.xlu1 %2080  ;;  %v4324_v1 = vpop.permute.xlu0 %2082  ;;  %vm2042_vm5 = vmand %vm1952_vm15, %vm2024_vm0  ;;  %vm5657_vm0 = vcmp.lt.f32.partialorder %v5574_v61, 8.0 }
 0x197   : > { %vm2114_vm7 = vcmp.ne.s32.totalorder %v4322_v47, 0  ;;  %v1610_v47 = vmul.f32 %v4281_v39, %v5562_v34 }
 0x199   : > { %2100 = vrot.lane.b32.xlu1 %v2070_v42, %s3388_s21  ;;  %2012 = vrot.lane.b32.xlu0 %v1981_v46, %s3388_s21  ;;  %v1608_v42 = vmul.f32 %v4269_v16, %v5558_v4  ;;  %v5647_v46 = vld [vmem:[#allocation50_spill] sm:$0xff]  ;;  %v1305_v16 = vmul.f32 8.0, %v4005_v53 }
 0x19a   : > { %v4332_v50 = vpop.permute.xlu1 %950  ;;  %v4334_v11 = vpop.permute.xlu0 %952 }
 0x19b   : > { %v1323_v2 = vadd.f32 %v1305_v16, %v5652_v60  ;;  %v4423_v60 = vld [vmem:[%s3431_s20 + $0x78] sm:$0xff] }
 0x19c   : > { %vm5455_vm10 = vcmp.gt.f32.partialorder %v4423_v60, -1.0  ;;  %vm1947_vm13 = vcmp.lt.f32.partialorder %v4423_v60, 8.0 }
 0x19d   : > { %844 = vrot.lane.b32.xlu1 %v5646_v31, %s3388_s21  ;;  %2102 = vrot.lane.b32.xlu0 %v2071_v26, %s3388_s21  ;;  %v1609_v26 = vmul.f32 %v4272_v56, %v5560_v40  ;;  %v872_v40 = vmul.f32 %v4281_v39, %v3492_v18 }
 0x19e   : > { %v4339_v24 = vpop.permute.xlu1 %824  ;;  %v4341_v55 = vpop.permute.xlu0 %826 }
 0x1a1   : > { %1790 = vperm.xlu1 %3317, %v1608_v42   ;;  %846 = vrot.lane.b32.xlu0 %v5647_v46, %s3388_s21  ;;  %v5651_v42 = vmov 0.0  }
 0x1a2   : > { %v4351_v31 = vpop.permute.xlu1 %954  ;;  %v4361_v4 = vpop.permute.xlu0 %956  ;;  %3207 = vmatprep.subr.bf16.mxu0 %v5651_v42  ;;  %v3120_v53 = vsel %vm2130_vm1, 1.0, %v5651_v42  ;;  %3213 = vmatprep.mubr.msk.bf16.mxu0 %vm3391_vm8, %v5651_v42  ;;  %vm2025_vm1 = vcmp.ne.s32.totalorder %v4311_v62, 0  ;;  %v5654_v62 = vld [vmem:[#allocation58_spill] sm:$0xff] }
 0x1a3   : > { %3251 = vmatprep.mubr.msk.bf16.mxu1 %vm3391_vm8, %v5651_v42 }
 0x1a5   : > { %1795 = vperm.xlu0 %3316, %v1609_v26   ;;  %1026 = vperm.xlu1 %3317, %v998_v7   ;;  %v5650_v7 = vld [vmem:[#allocation54_spill] sm:$0xff]  ;;  %v3364_v26 = vld [vmem:[%s4369_s25 + $0x8] sm:$0xff]   ;;  %s217_s25 = scalar_lea.vmem %s5283_s4, %s3173_s22 }
 0x1a6   : > { %v4364_v14 = vpop.permute.xlu1 %1994  ;;  %v4378_v56 = vpop.permute.xlu0 %1996  ;;  %v796_v18 = vadd.f32 1.0, %v5650_v7  ;;  %3208 = vmatpush3.bf16.msra.mxu0 %v3364_v26 }
 0x1a7   : > { %3209 = vmatprep.subr.bf16.mxu0 %v5651_v42  ;;  %vm2026_vm15 = vcmp.ne.s32.totalorder %v4364_v14, 0 }
 0x1a8   : > { %v904_v7 = vmax.f32 %v796_v18, 0.0  ;;  %v1286_v18 = vmul.f32 %v3779_v37, %v5562_v34 }
 0x1a9   : > { %1031 = vperm.xlu0 %3316, %v999_v17   ;;  %1170 = vperm.xlu1 %3317, %v872_v40   ;;  %v3121_v40 = vsel %vm2131_vm3, 1.0, %v5651_v42  ;;  %vm2043_vm3 = vmand %vm1953_vm2, %vm2025_vm1  ;;  %vm5658_vm2 = vcmp.gt.f32.partialorder %v5574_v61, -1.0 }
 0x1aa   : > { %v4389_v17 = vpop.permute.xlu1 %2084  ;;  %v3318_v46 = vpack.i.bf16 %v3121_v40, %v3120_v53  ;;  %v4394_v23 = vpop.permute.xlu0 %2086  ;;  %3210 = vmatpush3.bf16.msra.mxu0 %v3365_v22  ;;  %v1628_v53 = vadd.f32 %v1304_v3, %v4283_v6  ;;  %v1629_v40 = vadd.f32 %v1305_v16, %v4288_v19  ;;  %v2073_v16 = vsel %vm1947_vm13, 1, %v5563_v41  ;;  %vm1955_vm1 = vmand %vm5658_vm2, %vm5657_vm0 }
 0x1ab   : > { %3211 = vmatprep.subr.bf16.mxu0 %v5651_v42  ;;  %v1611_v22 = vmul.f32 %v4301_v20, %v5567_v58 }
 0x1ad   : > { %1350 = vperm.xlu1 %3317, %v1322_v51   ;;  %1175 = vperm.xlu0 %3316, %v873_v12   ;;  %v4400_v51 = vmin.f32 %v904_v7, 7.0  ;;  %v1287_v12 = vmul.f32 %v3783_v43, %v5567_v58  ;;  %v4427_v43 = vld [vmem:[%s3431_s20 + $0x70] sm:$0xff]  ;;  %v4493_v58 = vld [vmem:[%s3431_s20 + $0x88] sm:$0xff] }
 0x1ae   : > { %v4396_v59 = vpop.permute.xlu1 %828  ;;  %3212 = vmatpush3.bf16.msra.mxu0 %v3366_v8  ;;  %vm5453_vm12 = vcmp.gt.f32.partialorder %v4427_v43, -1.0  ;;  %vm5454_vm14 = vcmp.lt.f32.partialorder %v4427_v43, 8.0 }
 0x1af   : > { %v1982_v6 = vsel %vm5453_vm12, 1, %v5563_v41  ;;  %v2072_v15 = vsel %vm5454_vm14, 1, %v5563_v41  ;;  %vm2115_vm12 = vcmp.ne.s32.totalorder %v4324_v1, 0  ;;  %vm2132_vm14 = vmand %vm2042_vm5, %vm2114_vm7  ;;  %v4481_v1 = vld [vmem:[%s3431_s20 + $0x80] sm:$0xff]  ;;  %vm2027_vm5 = vcmp.ne.s32.totalorder %v4378_v56, 0 }
 0x1b0   : > { %vm5456_vm4 = vcmp.gt.f32.partialorder %v4481_v1, -1.0  ;;  %v3122_v8 = vsel %vm2132_vm14, 1.0, %v5651_v42  ;;  %vm5457_vm6 = vcmp.lt.f32.partialorder %v4481_v1, 8.0  ;;  %vm1954_vm14 = vmand %vm1918_vm9, %vm1936_vm11  ;;  %vm2116_vm9 = vcmp.ne.s32.totalorder %v4389_v17, 0  ;;  %v5660_v17 = vld [vmem:[#allocation78_spill] sm:$0xff] }
 0x1b1   : > { %3319 = vperm.xlu1 %3317, %v3318_v46   ;;  %1355 = vperm.xlu0 %3316, %v1323_v2   ;;  %v4408_v46 = vpop.permute.xlu0 %830  ;;  %v1983_v2 = vsel %vm5455_vm10, 1, %v5563_v41  ;;  %vm2133_vm10 = vmand %vm2043_vm3, %vm2115_vm12  ;;  %vm1931_vm12 = vcmp.gt.f32.partialorder %v4493_v58, -1.0  ;;  %v2074_v20 = vsel %vm5457_vm6, 1, %v5563_v41  ;;  %vm2117_vm3 = vcmp.ne.s32.totalorder %v4394_v23, 0 }
 0x1b2   : > { %v4418_v26 = vpop.permute.xlu1 %958  ;;  %vm2044_vm7 = vmand %vm1954_vm14, %vm2026_vm15  ;;  %v876_v61 = vmul.f32 %v4396_v59, %v3568_v38  ;;  %v877_v14 = vmul.f32 %v4408_v46, %v3558_v36  ;;  %v1291_v36 = vmul.f32 %v3791_v33, %v5578_v0  ;;  %v1614_v33 = vmul.f32 %v4396_v59, %v5579_v54 }
 0x1b3   : > { %vm2045_vm11 = vmand %vm1955_vm1, %vm2027_vm5 }
 0x1b4   : > { %vm2134_vm0 = vmand %vm2044_vm7, %vm2116_vm9 }
 0x1b5   : > { %976 = vrot.lane.b32.xlu1 %v4398_v32, %s3388_s21  ;;  %974 = vrot.lane.b32.xlu0 %v4400_v51, %s3388_s21  ;;  %v4430_v37 = vpop.permute.xlu0 %960  ;;  %vm2135_vm14 = vmand %vm2045_vm11, %vm2117_vm3 }
 0x1b6   : > { %v4438_v19 = vpop.permute.xlu1 %1998 }
 0x1b7   : > { %vm2028_vm5 = vcmp.ne.s32.totalorder %v4438_v19, 0  ;;  %v5670_v19 = vld [vmem:[#allocation10_spill] sm:$0xff] }
 0x1b9   : > { %1499 = vperm.xlu1 %3317, %v1287_v12   ;;  %1494 = vperm.xlu0 %3316, %v1286_v18   ;;  %v4449_v3 = vpop.permute.xlu0 %2000  ;;  %v3123_v18 = vsel %vm2133_vm10, 1.0, %v5651_v42  ;;  %vm1949_vm10 = vcmp.lt.f32.partialorder %v4493_v58, 8.0  ;;  %v5772_v58 = vld [vmem:[#allocation70_spill] sm:$0xff] }
 0x1ba   : > { %v4462_v10 = vpop.permute.xlu1 %2088  ;;  %v3323_v34 = vpack.i.bf16 %v3123_v18, %v3122_v8  ;;  %v1001_v8 = vadd.f32 %v4334_v11, %v3846_v48  ;;  %v874_v18 = vmul.f32 %v4339_v24, %v3539_v30  ;;  %v1288_v30 = vmul.f32 %v3789_v44, %v5573_v52  ;;  %v5656_v48 = vld [vmem:[#allocation76_spill] sm:$0xff] }
 0x1bb   : > { %v1612_v44 = vmul.f32 %v4339_v24, %v5573_v52  ;;  %v5659_v24 = vld [vmem:[#allocation79_spill] sm:$0xff]  ;;  %vm2029_vm3 = vcmp.ne.s32.totalorder %v4449_v3, 0 }
 0x1bc   : > { %v5673_v3 = vld [vmem:[#allocation39_spill] sm:$0xff] }
 0x1bd   : > { %1661 = vperm.xlu1 %3317, %v1629_v40   ;;  %1656 = vperm.xlu0 %3316, %v1628_v53   ;;  %v4468_v49 = vpop.permute.xlu0 %2090  ;;  %v1984_v53 = vsel %vm5456_vm4, 1, %v5563_v41  ;;  %v1985_v40 = vsel %vm1931_vm12, 1, %v5563_v41 }
 0x1be   : > { %v4474_v7 = vpop.permute.xlu1 %832 }
 0x1c1   : > { %2016 = vrot.lane.b32.xlu1 %v1983_v2, %s3388_s21  ;;  %2014 = vrot.lane.b32.xlu0 %v1982_v6, %s3388_s21  ;;  %v4486_v12 = vpop.permute.xlu0 %834 }
 0x1c2   : > { %v4496_v39 = vpop.permute.xlu1 %962 }
 0x1c5   : > { %2106 = vrot.lane.b32.xlu1 %v2073_v16, %s3388_s21  ;;  %2104 = vrot.lane.b32.xlu0 %v2072_v15, %s3388_s21  ;;  %v4506_v2 = vpop.permute.xlu0 %964  ;;  %v2075_v16 = vsel %vm1949_vm10, 1, %v5563_v41  ;;  %v1000_v15 = vadd.f32 %v4332_v50, %v3849_v5  ;;  %v1307_v41 = vmul.f32 8.0, %v4049_v9  ;;  %v5655_v5 = vld [vmem:[#allocation77_spill] sm:$0xff]  ;;  %v1289_v9 = vmul.f32 %v3787_v57, %v5572_v29 }
 0x1c6   : > { %v4510_v6 = vpop.permute.xlu1 %2002 }
 0x1c9   : > { %850 = vrot.lane.b32.xlu1 %v5653_v45, %s3388_s21  ;;  %848 = vrot.lane.b32.xlu0 %v5654_v62, %s3388_s21 }
 0x1cd   : > { %1805 = vperm.xlu1 %3317, %v1611_v22   ;;  %1800 = vperm.xlu0 %3316, %v1610_v47   ;;  %v4518_v47 = vpop.permute.xlu0 %2004  ;;  %v1306_v22 = vmul.f32 8.0, %v4051_v25 }
 0x1d1   : > { %2018 = vrot.lane.b32.xlu1 %v1984_v53, %s3388_s21  ;;  %3324 = vperm.xlu0 %3316, %v3323_v34   ;;  %v4525_v53 = vpop.permute.xlu1 %2092  ;;  %v1324_v34 = vadd.f32 %v1306_v22, %v5655_v5 }
 0x1d5   : > { %2108 = vrot.lane.b32.xlu1 %v2074_v20, %s3388_s21  ;;  %2020 = vrot.lane.b32.xlu0 %v1985_v40, %s3388_s21  ;;  %v875_v20 = vmul.f32 %v4341_v55, %v3528_v28  ;;  %v4531_v40 = vpop.permute.xlu0 %2094  ;;  %v4533_v25 = vpop.permute.xlu1 %836  ;;  %v1630_v28 = vadd.f32 %v1306_v22, %v4332_v50  ;;  %v1613_v50 = vmul.f32 %v4341_v55, %v5572_v29  ;;  %v1308_v29 = vmul.f32 8.0, %v4065_v13 }
 0x1d6   : > { %v1309_v55 = vmul.f32 8.0, %v4063_v27  ;;  %v3124_v13 = vsel %vm2134_vm0, 1.0, %v5651_v42 }
 0x1d7   : > { %v1326_v23 = vadd.f32 %v1308_v29, %v5659_v24  ;;  %v5671_v24 = vld [vmem:[#allocation5_spill] sm:$0xff] }
 0x1d8   : > { %v1327_v22 = vadd.f32 %v1309_v55, %v5660_v17 }
 0x1d9   : > { %1036 = vperm.xlu1 %3317, %v1000_v15   ;;  %2110 = vrot.lane.b32.xlu0 %v2075_v16, %s3388_s21  ;;  %v1325_v16 = vadd.f32 %v1307_v41, %v5656_v48  ;;  %v4538_v15 = vpop.permute.xlu0 %838 }
 0x1dd   : > { %1180 = vperm.xlu1 %3317, %v874_v18   ;;  %1041 = vperm.xlu0 %3316, %v1001_v8   ;;  %v4543_v8 = vpop.permute.xlu1 %966  ;;  %v1631_v18 = vadd.f32 %v1307_v41, %v4334_v11  ;;  %v4548_v5 = vpop.permute.xlu0 %968  ;;  %v1002_v11 = vadd.f32 %v4351_v31, %v3863_v63  ;;  %v1003_v63 = vadd.f32 %v4361_v4, %v3860_v35  ;;  %v3125_v35 = vsel %vm2135_vm14, 1.0, %v5651_v42 }
 0x1de   : > { %v3328_v41 = vpack.i.bf16 %v3125_v35, %v3124_v13  ;;  %vm2118_vm14 = vcmp.ne.s32.totalorder %v4462_v10, 0  ;;  %v879_v35 = vmul.f32 %v4486_v12, %v5673_v3  ;;  %v5674_v10 = vld [vmem:[#allocation82_spill] sm:$0xff] }
 0x1e1   : > { %1360 = vperm.xlu1 %3317, %v1324_v34   ;;  %1185 = vperm.xlu0 %3316, %v875_v20   ;;  %v4555_v57 = vpop.permute.xlu1 %2006  ;;  %v4568_v52 = vpop.permute.xlu0 %2008  ;;  %v5661_v20 = vld [vmem:[#allocation61_spill] sm:$0xff] }
 0x1e5   : > { %1504 = vperm.xlu1 %3317, %v1288_v30   ;;  %1365 = vperm.xlu0 %3316, %v1325_v16   ;;  %v4575_v21 = vpop.permute.xlu1 %2096  ;;  %v4583_v56 = vpop.permute.xlu0 %2098  ;;  %v1290_v30 = vmul.f32 %v5661_v20, %v5579_v54  ;;  %v5666_v54 = vld [vmem:[#allocation80_spill] sm:$0xff] }
 0x1e6   : > { %v1005_v59 = vadd.f32 %v4430_v37, %v5666_v54 }
 0x1e9   : > { %1666 = vperm.xlu1 %3317, %v1630_v28   ;;  %1509 = vperm.xlu0 %3316, %v1289_v9   ;;  %v4585_v38 = vpop.permute.xlu1 %840  ;;  %v4588_v34 = vpop.permute.xlu0 %842  ;;  %v1632_v9 = vadd.f32 %v1308_v29, %v4351_v31  ;;  %v1633_v28 = vadd.f32 %v1309_v55, %v4361_v4  ;;  %v5662_v31 = vld [vmem:[#allocation18_spill] sm:$0xff]  ;;  %v5665_v4 = vld [vmem:[#allocation81_spill] sm:$0xff]  ;;  %v1311_v55 = vmul.f32 8.0, %v5670_v19 }
 0x1ea   : > { %vm5663_vm15 = vcmp.lt.f32.partialorder %v5662_v31, 8.0  ;;  %vm5664_vm2 = vcmp.gt.f32.partialorder %v5662_v31, -1.0  ;;  %v1004_v29 = vadd.f32 %v4418_v26, %v5665_v4  ;;  %v5679_v19 = vld [vmem:[#allocation62_spill] sm:$0xff] }
 0x1eb   : > { %vm1956_vm1 = vmand %vm5664_vm2, %vm5663_vm15  ;;  %vm2119_vm2 = vcmp.ne.s32.totalorder %v4468_v49, 0  ;;  %v1329_v49 = vadd.f32 %v1311_v55, %v5674_v10  ;;  %v1635_v10 = vadd.f32 %v1311_v55, %v4430_v37  ;;  %v5683_v55 = vld [vmem:[#allocation85_spill] sm:$0xff] }
 0x1ec   : > { %vm2046_vm0 = vmand %vm1956_vm1, %vm2028_vm5 }
 0x1ed   : > { %1810 = vperm.xlu1 %3317, %v1612_v44   ;;  %1671 = vperm.xlu0 %3316, %v1631_v18  }
 0x1f1   : > { %1046 = vperm.xlu1 %3317, %v1002_v11   ;;  %1815 = vperm.xlu0 %3316, %v1613_v50   ;;  %v1615_v50 = vmul.f32 %v4408_v46, %v5578_v0  ;;  %v5667_v0 = vld [vmem:[#allocation16_spill] sm:$0xff] }
 0x1f2   : > { %vm5668_vm7 = vcmp.lt.f32.partialorder %v5667_v0, 8.0  ;;  %vm5669_vm9 = vcmp.gt.f32.partialorder %v5667_v0, -1.0  ;;  %v5678_v0 = vld [vmem:[#allocation32_spill] sm:$0xff] }
 0x1f3   : > { %vm1957_vm11 = vmand %vm5669_vm9, %vm5668_vm7  ;;  %v1617_v37 = vmul.f32 %v4486_v12, %v5678_v0 }
 0x1f4   : > { %vm2047_vm15 = vmand %vm1957_vm11, %vm2029_vm3  ;;  %vm2030_vm3 = vcmp.ne.s32.totalorder %v4510_v6, 0 }
 0x1f5   : > { %1190 = vperm.xlu1 %3317, %v876_v61   ;;  %1051 = vperm.xlu0 %3316, %v1003_v63   ;;  %vm2136_vm7 = vmand %vm2046_vm0, %vm2118_vm14 }
 0x1f6   : > { %vm2137_vm1 = vmand %vm2047_vm15, %vm2119_vm2  ;;  %v3126_v20 = vsel %vm2136_vm7, 1.0, %v5651_v42  ;;  %vm2031_vm2 = vcmp.ne.s32.totalorder %v4518_v47, 0  ;;  %v5693_v47 = vld [vmem:[#allocation14_spill] sm:$0xff] }
 0x1f9   : > { %1370 = vperm.xlu1 %3317, %v1326_v23   ;;  %1195 = vperm.xlu0 %3316, %v877_v14   ;;  %v1310_v23 = vmul.f32 8.0, %v5671_v24  ;;  %v5672_v14 = vld [vmem:[#allocation40_spill] sm:$0xff]  ;;  %v1293_v24 = vmul.f32 %v5679_v19, %v5678_v0 }
 0x1fa   : > { %v878_v13 = vmul.f32 %v4474_v7, %v5672_v14  ;;  %v5695_v0 = vld [vmem:[#allocation84_spill] sm:$0xff] }
 0x1fb   : > { %v1634_v14 = vadd.f32 %v1310_v23, %v4418_v26  ;;  %v5680_v26 = vld [vmem:[#allocation24_spill] sm:$0xff]  ;;  %v1007_v19 = vadd.f32 %v4506_v2, %v5695_v0 }
 0x1fc   : > { %v4590_v27 = vpop.permute.xlu1 %1016  ;;  %vm5681_vm5 = vcmp.lt.f32.partialorder %v5680_v26, 8.0  ;;  %vm5682_vm9 = vcmp.gt.f32.partialorder %v5680_v26, -1.0 }
 0x1fd   : > { %3329 = vperm.xlu1 %3317, %v3328_v41   ;;  %1375 = vperm.xlu0 %3316, %v1327_v22   ;;  %v5675_v41 = vld [vmem:[#allocation83_spill] sm:$0xff]  ;;  %vm1958_vm11 = vmand %vm5682_vm9, %vm5681_vm5  ;;  %vm2120_vm9 = vcmp.ne.s32.totalorder %v4525_v53, 0 }
 0x1fe   : > { %vm4699_vm5 = vmand %vm1958_vm11, %vm2030_vm3  ;;  %vm2121_vm3 = vcmp.ne.s32.totalorder %v4531_v40, 0 }
 0x200   : > { %v4596_v48 = vpop.permute.xlu1 %1160  ;;  %v4598_v16 = vpop.permute.xlu0 %1021 }
 0x201   : > { %1519 = vperm.xlu1 %3317, %v1291_v36   ;;  %1514 = vperm.xlu0 %3316, %v1290_v30   ;;  %v1328_v36 = vadd.f32 %v1310_v23, %v5675_v41  ;;  %v3127_v30 = vsel %vm2137_vm1, 1.0, %v5651_v42  ;;  %v5684_v23 = vld [vmem:[#allocation23_spill] sm:$0xff] }
 0x202   : > { %v3333_v4 = vpack.i.bf16 %v3127_v30, %v3126_v20  ;;  %vm5685_vm0 = vcmp.lt.f32.partialorder %v5684_v23, 8.0  ;;  %vm5686_vm14 = vcmp.gt.f32.partialorder %v5684_v23, -1.0 }
 0x203   : > { %vm4685_vm15 = vmand %vm5686_vm14, %vm5685_vm0 }
 0x204   : > { %v4602_v18 = vpop.permute.xlu1 %1340  ;;  %v4604_v44 = vpop.permute.xlu0 %1165  ;;  %vm2049_vm11 = vmand %vm4685_vm15, %vm2031_vm2 }
 0x205   : > { %1681 = vperm.xlu1 %3317, %v1633_v28   ;;  %1676 = vperm.xlu0 %3316, %v1632_v9   ;;  %vm4733_vm15 = vmand %vm4699_vm5, %vm2120_vm9 }
 0x206   : > { %vm2139_vm2 = vmand %vm2049_vm11, %vm2121_vm3 }
 0x208   : > { %v4610_v11 = vpop.permute.xlu1 %970  ;;  %v4612_v63 = vpop.permute.xlu0 %1345 }
 0x209   : > { %1825 = vperm.xlu1 %3317, %v1615_v50   ;;  %1820 = vperm.xlu0 %3316, %v1614_v33   ;;  %v5676_v33 = vld [vmem:[#allocation33_spill] sm:$0xff]  ;;  %v5677_v50 = vld [vmem:[#allocation63_spill] sm:$0xff] }
 0x20a   : > { %v1292_v31 = vmul.f32 %v5677_v50, %v5676_v33 }
 0x20c   : > { %v4628_v46 = vpop.permute.xlu1 %1484  ;;  %v4630_v61 = vpop.permute.xlu0 %972 }
 0x20d   : > { %1056 = vperm.xlu0 %3316, %v1004_v29   ;;  %1061 = vperm.xlu1 %3317, %v1005_v59   ;;  %v237_v59 = vlaneseq }
 0x210   : > { %v4640_v17 = vpop.permute.xlu1 %1646  ;;  %v4642_v22 = vpop.permute.xlu0 %1489 }
 0x211   : > { %1200 = vperm.xlu0 %3316, %v878_v13   ;;  %1205 = vperm.xlu1 %3317, %v879_v35   ;;  %v238_v35 = vand.u32 127, %v237_v59  ;;  %v4707_v59 = vmul.f32 8.0, %v5693_v47 }
 0x213   : > { %v4670_v20 = vcvt.s32.f32 %v238_v35 }
 0x214   : > { %v4648_v9 = vpop.permute.xlu1 %2010  ;;  %v4650_v28 = vpop.permute.xlu0 %1651 }
 0x215   : > { %1380 = vperm.xlu0 %3316, %v1328_v36   ;;  %1385 = vperm.xlu1 %3317, %v1329_v49   ;;  %v1616_v49 = vmul.f32 %v4474_v7, %v5676_v33  ;;  %v1006_v7 = vadd.f32 %v4496_v39, %v5683_v55  ;;  %v5689_v33 = vld [vmem:[#allocation11_spill] sm:$0xff]  ;;  %vm1104_vm7 = vcmp.eq.f32.partialorder %v4670_v20, %v4590_v27  ;;  %v5694_v27 = vld [vmem:[#allocation13_spill] sm:$0xff] }
 0x216   : > { %v4691_v50 = vmul.f32 8.0, %v5689_v33  ;;  %vm1105_vm0 = vcmp.eq.f32.partialorder %v4670_v20, %v4598_v16  ;;  %vm619_vm14 = vcmp.eq.f32.partialorder %v4670_v20, %v5694_v27  ;;  %v3066_v35 = vsel %vm1104_vm7, 1.0, %v5651_v42  ;;  %v5701_v33 = vld [vmem:[#allocation37_spill] sm:$0xff] }
 0x217   : > { %vm1428_vm4 = vcmp.eq.f32.partialorder %v4670_v20, %v4602_v18  ;;  %vm1429_vm6 = vcmp.eq.f32.partialorder %v4670_v20, %v4612_v63  ;;  %v3067_v55 = vsel %vm1105_vm0, 1.0, %v5651_v42  ;;  %v3049_v30 = vsel %vm619_vm14, 1.0, %v5651_v42 }
 0x218   : > { %v4654_v29 = vpop.permute.xlu1 %2100  ;;  %v4656_v54 = vpop.permute.xlu0 %2012  ;;  %v1249_v53 = vmul.f32 %v3067_v55, %v4604_v44  ;;  %vm1734_vm7 = vcmp.eq.f32.partialorder %v4670_v20, %v4640_v17  ;;  %v3085_v44 = vsel %vm1429_vm6, 1.0, %v5651_v42  ;;  %v3128_v17 = vsel %vm4733_vm15, 1.0, %v5651_v42  ;;  %v5703_v55 = vld [vmem:[#allocation86_spill] sm:$0xff] }
 0x219   : > { %3334 = vperm.xlu0 %3316, %v3333_v4   ;;  %1524 = vperm.xlu1 %3317, %v1292_v31   ;;  %v5690_v31 = vld [vmem:[#allocation6_spill] sm:$0xff]  ;;  %v3084_v4 = vsel %vm1428_vm4, 1.0, %v5651_v42  ;;  %v1573_v0 = vmul.f32 %v3085_v44, %v4642_v22  ;;  %vm2333_vm4 = vcmask 523264   ;;  %vm2032_vm0 = vcmp.ne.s32.totalorder %v4555_v57, 0  ;;  %v5716_v57 = vld [vmem:[#allocation28_spill] sm:$0xff] }
 0x21a   : > { %vm618_vm1 = vcmp.eq.f32.partialorder %v4670_v20, %v5690_v31  ;;  %v763_v31 = vmul.f32 %v3049_v30, %v5701_v33  ;;  %v1572_v27 = vmul.f32 %v3084_v4, %v4628_v46  ;;  %v1331_v46 = vadd.f32 %v4707_v59, %v5703_v55 }
 0x21b   : > { %v3048_v26 = vsel %vm618_vm1, 1.0, %v5651_v42  ;;  %vm1735_vm1 = vcmp.eq.f32.partialorder %v4670_v20, %v4650_v28  ;;  %v5702_v28 = vld [vmem:[#allocation45_spill] sm:$0xff]  ;;  %vm2033_vm15 = vcmp.ne.s32.totalorder %v4568_v52, 0 }
 0x21c   : > { %v4661_v13 = vpop.permute.xlu1 %844  ;;  %v4663_v3 = vpop.permute.xlu0 %2102  ;;  %v881_v47 = vmul.f32 %v4538_v15, %v5702_v28  ;;  %v5718_v52 = vld [vmem:[#allocation49_spill] sm:$0xff] }
 0x21d   : > { %1529 = vperm.xlu0 %3316, %v1293_v24   ;;  %1686 = vperm.xlu1 %3317, %v1634_v14   ;;  %v5696_v24 = vld [vmem:[#allocation46_spill] sm:$0xff] }
 0x21e   : > { %v880_v14 = vmul.f32 %v4533_v25, %v5696_v24  ;;  %v3102_v24 = vsel %vm1734_vm7, 1.0, %v5651_v42  ;;  %vm2122_vm7 = vcmp.ne.s32.totalorder %v4575_v21, 0 }
 0x220   : > { %v1791_v41 = vpop.permute.xlu1 %1790  ;;  %v4668_v36 = vpop.permute.xlu0 %846 }
 0x221   : > { %1830 = vperm.xlu1 %3317, %v1616_v49   ;;  %1691 = vperm.xlu0 %3316, %v1635_v10   ;;  %v5697_v10 = vld [vmem:[#allocation87_spill] sm:$0xff] }
 0x222   : > { %v1330_v49 = vadd.f32 %v4691_v50, %v5697_v10  ;;  %v1267_v10 = vadd.f32 %v1249_v53, %v763_v31  ;;  %v5704_v53 = vld [vmem:[#allocation41_spill] sm:$0xff] }
 0x224   : > { %v4695_v12 = vpop.permute.xlu1 %1026  ;;  %v1796_v6 = vpop.permute.xlu0 %1795 }
 0x225   : > { %1066 = vperm.xlu1 %3317, %v1006_v7   ;;  %1835 = vperm.xlu0 %3316, %v1617_v37   ;;  %v1248_v37 = vmul.f32 %v3066_v35, %v4596_v48  ;;  %v5700_v48 = vld [vmem:[#allocation34_spill] sm:$0xff] }
 0x226   : > { %v762_v16 = vmul.f32 %v3048_v26, %v5700_v48  ;;  %v1878_v26 = vmul.f32 %v3102_v24, %v1791_v41  ;;  %v1591_v48 = vadd.f32 %v1573_v0, %v1267_v10  ;;  %v5705_v41 = vld [vmem:[#allocation64_spill] sm:$0xff]  ;;  %v5707_v24 = vld [vmem:[#allocation65_spill] sm:$0xff] }
 0x228   : > { %v4742_v7 = vpop.permute.xlu1 %1170  ;;  %v4744_v23 = vpop.permute.xlu0 %1031  ;;  %v1266_v18 = vadd.f32 %v1248_v37, %v762_v16 }
 0x229   : > { %1210 = vperm.xlu1 %3317, %v880_v14   ;;  %1071 = vperm.xlu0 %3316, %v1007_v19   ;;  %v3129_v19 = vsel %vm2139_vm2, 1.0, %v5651_v42  ;;  %v3103_v14 = vsel %vm1735_vm1, 1.0, %v5651_v42 }
 0x22a   : > { %v1879_v40 = vmul.f32 %v3103_v14, %v1796_v6  ;;  %v3338_v22 = vpack.i.bf16 %v3129_v19, %v3128_v17  ;;  %v1590_v30 = vadd.f32 %v1572_v27, %v1266_v18  ;;  %v1295_v6 = vmul.f32 %v5705_v41, %v5704_v53 }
 0x22b   : > { %v1637_v19 = vadd.f32 %v4707_v59, %v4506_v2  ;;  %v1636_v18 = vadd.f32 %v4691_v50, %v4496_v39  ;;  %v5708_v59 = vld [vmem:[#allocation30_spill] sm:$0xff]  ;;  %v5711_v39 = vld [vmem:[#allocation88_spill] sm:$0xff] }
 0x22c   : > { %v4772_v63 = vpop.permute.xlu1 %1350  ;;  %v4774_v35 = vpop.permute.xlu0 %1175  ;;  %v1896_v33 = vadd.f32 %v1878_v26, %v1590_v30  ;;  %v1897_v4 = vadd.f32 %v1879_v40, %v1591_v48  ;;  %v1619_v40 = vmul.f32 %v4538_v15, %v5704_v53  ;;  %vm5709_vm6 = vcmp.lt.f32.partialorder %v5708_v59, 8.0  ;;  %v5721_v53 = vld [vmem:[#allocation51_spill] sm:$0xff] }
 0x22d   : > { %1390 = vperm.xlu1 %3317, %v1330_v49   ;;  %1215 = vperm.xlu0 %3316, %v881_v47   ;;  %v5706_v47 = vld [vmem:[#allocation42_spill] sm:$0xff]  ;;  %vm5710_vm5 = vcmp.gt.f32.partialorder %v5708_v59, -1.0  ;;  %v1009_v50 = vadd.f32 %v4548_v5, %v5711_v39  ;;  %v882_v21 = vmul.f32 %v4585_v38, %v5721_v53 }
 0x22e   : > { %v1294_v14 = vmul.f32 %v5707_v24, %v5706_v47  ;;  %v1618_v55 = vmul.f32 %v4533_v25, %v5706_v47  ;;  %vm1960_vm9 = vmand %vm5710_vm5, %vm5709_vm6  ;;  %v5715_v25 = vld [vmem:[#allocation89_spill] sm:$0xff]  ;;  %vm2123_vm6 = vcmp.ne.s32.totalorder %v4583_v56, 0  ;;  %v5722_v56 = vld [vmem:[#allocation47_spill] sm:$0xff] }
 0x22f   : > { %v1008_v15 = vadd.f32 %v4543_v8, %v5715_v25  ;;  %vm2050_vm2 = vmand %vm1960_vm9, %vm2032_vm0  ;;  %vm1106_vm0 = vcmp.eq.f32.partialorder %v4670_v20, %v4695_v12  ;;  %v5724_v47 = vld [vmem:[#allocation90_spill] sm:$0xff] }
 0x230   : > { %v3320_v37 = vpop.permute.xlu1 %3319  ;;  %v4778_v16 = vpop.permute.xlu0 %1355  ;;  %vm4825_vm5 = vmand %vm2050_vm2, %vm2122_vm7 }
 0x231   : > { %v3322_v44 = vunpack.i.h.bf16 %v3320_v37  ;;  %v3321_v28 = vunpack.i.l.bf16 %v3320_v37  ;;  %3339 = vperm.xlu1 %3317, %v3338_v22   ;;  %1395 = vperm.xlu0 %3316, %v1331_v46   ;;  %v5712_v22 = vld [vmem:[#allocation29_spill] sm:$0xff]  ;;  %v4819_v37 = vmul.f32 8.0, %v5716_v57  ;;  %vm1431_vm2 = vcmp.eq.f32.partialorder %v4670_v20, %v4778_v16 }
 0x232   : > { %vm5713_vm14 = vcmp.lt.f32.partialorder %v5712_v22, 8.0  ;;  %vm5714_vm11 = vcmp.gt.f32.partialorder %v5712_v22, -1.0  ;;  %v3130_v12 = vsel %vm4825_vm5, 1.0, %v5651_v42 }
 0x233   : > { %v2274_v49 = vmul.f32 %v3321_v28, %v1896_v33  ;;  %v2275_v31 = vmul.f32 %v3322_v44, %v1897_v4  ;;  %vm1961_vm3 = vmand %vm5714_vm11, %vm5713_vm14  ;;  %v5717_v33 = vld [vmem:[#allocation25_spill] sm:$0xff]  ;;  %v883_v44 = vmul.f32 %v4588_v34, %v5718_v52  ;;  %vm1107_vm14 = vcmp.eq.f32.partialorder %v4670_v20, %v4744_v23 }
 0x234   : > { %v4784_v17 = vpop.permute.xlu1 %976  ;;  %v4786_v27 = vpop.permute.xlu0 %974  ;;  %v1314_v4 = vmul.f32 8.0, %v5717_v33  ;;  %vm2051_vm1 = vmand %vm1961_vm3, %vm2033_vm15  ;;  %v1333_v24 = vadd.f32 %v4819_v37, %v5724_v47  ;;  %vm1430_vm15 = vcmp.eq.f32.partialorder %v4670_v20, %v4772_v63 }
 0x235   : > { %1539 = vperm.xlu1 %3317, %v1295_v6   ;;  %1534 = vperm.xlu0 %3316, %v1294_v14   ;;  %v2292_v0 = vpack.c.bf16 %v2275_v31, %v2274_v49  ;;  %vm2141_vm9 = vmand %vm2051_vm1, %vm2123_vm6  ;;  %v5723_v49 = vld [vmem:[#allocation67_spill] sm:$0xff]  ;;  %v3086_v57 = vsel %vm1430_vm15, 1.0, %v5651_v42 }
 0x236   : > { %v1296_v31 = vmul.f32 %v5723_v49, %v5722_v56  ;;  %v5725_v14 = vld [vmem:[#allocation91_spill] sm:$0xff]  ;;  %v3131_v23 = vsel %vm2141_vm9, 1.0, %v5651_v42  ;;  %v1638_v63 = vadd.f32 %v1314_v4, %v4543_v8  ;;  %v1639_v8 = vadd.f32 %v4819_v37, %v4548_v5  ;;  %v5736_v37 = vld [vmem:[#allocation48_spill] sm:$0xff] }
 0x237   : > { %3214 = vmatmul.mubr.msk.bf16.vlgmr.msra.gmra.mrb[0].mxu0 %vm2333_vm4, %v2292_v0  ;;  %v1332_v0 = vadd.f32 %v1314_v4, %v5725_v14  ;;  %v5733_v5 = vld [vmem:[#allocation35_spill] sm:$0xff] }
 0x238   : > { %v1500_v10 = vpop.permute.xlu1 %1499  ;;  %v1495_v26 = vpop.permute.xlu0 %1494  ;;  %3217 = vmatprep.mubr.msk.bf16.mxu0 %vm3391_vm8, %v5651_v42  ;;  %vm5734_vm6 = vcmp.lt.f32.partialorder %v5733_v5, 8.0  ;;  %vm5735_vm5 = vcmp.gt.f32.partialorder %v5733_v5, -1.0  ;;  %v5750_v5 = vld [vmem:[#allocation12_spill] sm:$0xff] }
 0x239   : > { %1701 = vperm.xlu1 %3317, %v1637_v19   ;;  %1696 = vperm.xlu0 %3316, %v1636_v18   ;;  %v5726_v19 = vld [vmem:[#allocation17_spill] sm:$0xff]  ;;  %v5727_v18 = vld [vmem:[#allocation3_spill] sm:$0xff]  ;;  %vm1963_vm9 = vmand %vm5735_vm5, %vm5734_vm6 }
 0x23a   : > { %vm620_vm11 = vcmp.eq.f32.partialorder %v4670_v20, %v5726_v19  ;;  %vm621_vm3 = vcmp.eq.f32.partialorder %v4670_v20, %v5727_v18 }
 0x23b   : > { %v3050_v16 = vsel %vm620_vm11, 1.0, %v5651_v42  ;;  %v3051_v25 = vsel %vm621_vm3, 1.0, %v5651_v42 }
 0x23c   : > { %v1662_v46 = vpop.permute.xlu1 %1661  ;;  %v1657_v2 = vpop.permute.xlu0 %1656 }
 0x23d   : > { %1845 = vperm.xlu1 %3317, %v1619_v40   ;;  %1840 = vperm.xlu0 %3316, %v1618_v55   ;;  %v3068_v40 = vsel %vm1106_vm0, 1.0, %v5651_v42  ;;  %v3069_v55 = vsel %vm1107_vm14, 1.0, %v5651_v42  ;;  %vm1737_vm7 = vcmp.eq.f32.partialorder %v4670_v20, %v1662_v46  ;;  %vm1736_vm1 = vcmp.eq.f32.partialorder %v4670_v20, %v1657_v2 }
 0x23e   : > { %v1251_v22 = vmul.f32 %v3069_v55, %v4774_v35  ;;  %v5729_v35 = vld [vmem:[#allocation100_spill] sm:$0xff]  ;;  %v3343_v2 = vpack.i.bf16 %v3131_v23, %v3130_v12  ;;  %v3105_v28 = vsel %vm1737_vm7, 1.0, %v5651_v42  ;;  %vm2035_vm0 = vcmp.ne.s32.totalorder %v4656_v54, 0 }
 0x23f   : > { %v765_v52 = vmul.f32 %v3051_v25, %v5729_v35  ;;  %vm2125_vm14 = vcmp.ne.s32.totalorder %v4663_v3, 0  ;;  %vm2124_vm7 = vcmp.ne.s32.totalorder %v4654_v29, 0 }
 0x240   : > { %v4813_v30 = vpop.permute.xlu1 %2016  ;;  %v4815_v48 = vpop.permute.xlu0 %2014 }
 0x241   : > { %1081 = vperm.xlu1 %3317, %v1009_v50   ;;  %1076 = vperm.xlu0 %3316, %v1008_v15   ;;  %v1250_v50 = vmul.f32 %v3068_v40, %v4742_v7  ;;  %v3087_v15 = vsel %vm1431_vm2, 1.0, %v5651_v42  ;;  %v5728_v7 = vld [vmem:[#allocation38_spill] sm:$0xff]  ;;  %v5730_v40 = vld [vmem:[#allocation43_spill] sm:$0xff]  ;;  %vm2034_vm2 = vcmp.ne.s32.totalorder %v4648_v9, 0 }
 0x242   : > { %v764_v33 = vmul.f32 %v3050_v16, %v5728_v7  ;;  %v1575_v46 = vmul.f32 %v3087_v15, %v1500_v10  ;;  %v5731_v10 = vld [vmem:[#allocation66_spill] sm:$0xff] }
 0x244   : > { %v4831_v41 = vpop.permute.xlu1 %2106  ;;  %v4833_v6 = vpop.permute.xlu0 %2104  ;;  %v1268_v47 = vadd.f32 %v1250_v50, %v764_v33  ;;  %v5732_v33 = vld [vmem:[#allocation93_spill] sm:$0xff] }
 0x245   : > { %1225 = vperm.xlu1 %3317, %v883_v44   ;;  %1220 = vperm.xlu0 %3316, %v882_v21   ;;  %v1574_v44 = vmul.f32 %v3086_v57, %v1495_v26  ;;  %v3104_v21 = vsel %vm1736_vm1, 1.0, %v5651_v42  ;;  %v1297_v26 = vmul.f32 %v5731_v10, %v5730_v40  ;;  %v1010_v35 = vadd.f32 %v4610_v11, %v5732_v33  ;;  %vm2053_vm1 = vmand %vm1963_vm9, %vm2035_vm0 }
 0x246   : > { %vm2143_vm6 = vmand %vm2053_vm1, %vm2125_vm14  ;;  %vm622_vm9 = vcmp.eq.f32.partialorder %v4670_v20, %v5750_v5 }
 0x247   : > { %v1592_v18 = vadd.f32 %v1574_v44, %v1268_v47  ;;  %v5740_v44 = vld [vmem:[#allocation56_spill] sm:$0xff]  ;;  %v5743_v47 = vld [vmem:[#allocation73_spill] sm:$0xff] }
 0x248   : > { %v4858_v59 = vpop.permute.xlu1 %850  ;;  %v4860_v39 = vpop.permute.xlu0 %848  ;;  %v1317_v9 = vmul.f32 8.0, %v5743_v47 }
 0x249   : > { %1405 = vperm.xlu1 %3317, %v1333_v24   ;;  %1400 = vperm.xlu0 %3316, %v1332_v0   ;;  %v1269_v24 = vadd.f32 %v1251_v22, %v765_v52 }
 0x24b   : > { %v1593_v0 = vadd.f32 %v1575_v46, %v1269_v24  ;;  %v5737_v46 = vld [vmem:[#allocation36_spill] sm:$0xff]  ;;  %v3133_v24 = vsel %vm2143_vm6, 1.0, %v5651_v42 }
 0x24c   : > { %v1806_v53 = vpop.permute.xlu1 %1805  ;;  %v1801_v49 = vpop.permute.xlu0 %1800  ;;  %vm5738_vm11 = vcmp.lt.f32.partialorder %v5737_v46, 8.0  ;;  %vm5739_vm3 = vcmp.gt.f32.partialorder %v5737_v46, -1.0 }
 0x24d   : > { %v1881_v14 = vmul.f32 %v3105_v28, %v1806_v53  ;;  %v1880_v19 = vmul.f32 %v3104_v21, %v1801_v49  ;;  %1544 = vperm.xlu1 %3317, %v1296_v31   ;;  %3344 = vperm.xlu0 %3316, %v3343_v2   ;;  %v1620_v31 = vmul.f32 %v4585_v38, %v5722_v56  ;;  %vm1962_vm15 = vmand %vm5739_vm3, %vm5738_vm11  ;;  %v5741_v28 = vld [vmem:[#allocation92_spill] sm:$0xff]  ;;  %v5742_v21 = vld [vmem:[#allocation95_spill] sm:$0xff] }
 0x24e   : > { %v1621_v38 = vmul.f32 %v4588_v34, %v5730_v40  ;;  %v1316_v34 = vmul.f32 8.0, %v5736_v37  ;;  %v884_v2 = vmul.f32 %v4661_v13, %v5740_v44  ;;  %v1011_v53 = vadd.f32 %v4630_v61, %v5741_v28  ;;  %vm2052_vm5 = vmand %vm1962_vm15, %vm2034_vm2  ;;  %v5745_v40 = vld [vmem:[#allocation94_spill] sm:$0xff]  ;;  %v5751_v37 = vld [vmem:[#allocation7_spill] sm:$0xff] }
 0x24f   : > { %v1899_v55 = vadd.f32 %v1881_v14, %v1593_v0  ;;  %v1898_v16 = vadd.f32 %v1880_v19, %v1592_v18  ;;  %vm2142_vm11 = vmand %vm2052_vm5, %vm2124_vm7  ;;  %v5744_v14 = vld [vmem:[#allocation55_spill] sm:$0xff]  ;;  %v1335_v10 = vadd.f32 %v1317_v9, %v5745_v40  ;;  %vm623_vm0 = vcmp.eq.f32.partialorder %v4670_v20, %v5751_v37 }
 0x250   : > { %v4880_v12 = vpop.permute.xlu1 %2018  ;;  %v3325_v23 = vpop.permute.xlu0 %3324  ;;  %v1334_v49 = vadd.f32 %v1316_v34, %v5742_v21  ;;  %v885_v19 = vmul.f32 %v4668_v36, %v5744_v14  ;;  %v3132_v29 = vsel %vm2142_vm11, 1.0, %v5651_v42  ;;  %v1640_v33 = vadd.f32 %v1316_v34, %v4610_v11 }
 0x251   : > { %v3327_v25 = vunpack.i.h.bf16 %v3325_v23  ;;  %v3326_v15 = vunpack.i.l.bf16 %v3325_v23  ;;  %1706 = vperm.xlu1 %3317, %v1638_v63   ;;  %1549 = vperm.xlu0 %3316, %v1297_v26   ;;  %v3348_v18 = vpack.i.bf16 %v3133_v24, %v3132_v29  ;;  %v4945_v11 = vmul.f32 8.0, %v4398_v32 }
 0x252   : > { %v3052_v34 = vsel %vm622_vm9, 1.0, %v5651_v42  ;;  %v3053_v28 = vsel %vm623_vm0, 1.0, %v5651_v42  ;;  %vm5754_vm15 = vcmp.gt.f32.partialorder %v4423_v60, -1.0  ;;  %vm2037_vm7 = vcmp.ne.s32.totalorder %v4813_v30, 0  ;;  %v5763_v30 = vld [vmem:[#allocation59_spill] sm:$0xff] }
 0x253   : > { %v2277_v50 = vmul.f32 %v3327_v25, %v1899_v55  ;;  %v2276_v22 = vmul.f32 %v3326_v15, %v1898_v16  ;;  %v5746_v55 = vld [vmem:[#allocation50_spill] sm:$0xff]  ;;  %v5747_v16 = vld [vmem:[#allocation68_spill] sm:$0xff]  ;;  %vm4957_vm2 = vmand %vm5754_vm15, %vm1947_vm13  ;;  %vm5757_vm5 = vcmp.lt.f32.partialorder %v4427_v43, 8.0  ;;  %vm5758_vm11 = vcmp.gt.f32.partialorder %v4427_v43, -1.0 }
 0x254   : > { %v4886_v4 = vpop.permute.xlu1 %2108  ;;  %v4888_v57 = vpop.permute.xlu0 %2020  ;;  %v1299_v25 = vmul.f32 %v5747_v16, %v5746_v55  ;;  %v5748_v15 = vld [vmem:[#allocation52_spill] sm:$0xff]  ;;  %v1623_v46 = vmul.f32 %v4668_v36, %v5746_v55  ;;  %vm4968_vm9 = vmand %vm5758_vm11, %vm5757_vm5  ;;  %vm2036_vm0 = vcmp.ne.s32.totalorder %v4815_v48, 0  ;;  %vm2127_vm13 = vcmp.ne.s32.totalorder %v4831_v41, 0 }
 0x255   : > { %v2293_v7 = vpack.c.bf16 %v2277_v50, %v2276_v22  ;;  %1850 = vperm.xlu1 %3317, %v1620_v31   ;;  %1711 = vperm.xlu0 %3316, %v1639_v8   ;;  %v5749_v31 = vld [vmem:[#allocation69_spill] sm:$0xff]  ;;  %v1622_v44 = vmul.f32 %v4661_v13, %v5748_v15  ;;  %v5752_v36 = vld [vmem:[#allocation96_spill] sm:$0xff]  ;;  %vm2054_vm11 = vmand %vm4968_vm9, %vm2036_vm0  ;;  %vm5770_vm0 = vcmp.lt.f32.partialorder %v4481_v1, 8.0 }
 0x256   : > { %v1298_v50 = vmul.f32 %v5749_v31, %v5748_v15  ;;  %v5753_v13 = vld [vmem:[#allocation97_spill] sm:$0xff]  ;;  %v5766_v55 = vld [vmem:[#allocation60_spill] sm:$0xff] }
 0x257   : > { %3218 = vmatmul.mubr.msk.bf16.gmra.mrb[4].mxu0 %vm2333_vm4, %v2293_v7  ;;  %v1641_v7 = vadd.f32 %v1317_v9, %v4630_v61  ;;  %v1012_v21 = vadd.f32 %v4786_v27, %v5753_v13  ;;  %v886_v16 = vmul.f32 %v4860_v39, %v5766_v55  ;;  %v5776_v55 = vld [vmem:[#allocation104_spill] sm:$0xff] }
 0x258   : > { %v4895_v56 = vpop.permute.xlu1 %1036  ;;  %v4897_v52 = vpop.permute.xlu0 %2110  ;;  %3221 = vmatprep.mubr.msk.bf16.mxu0 %vm3391_vm8, %v5651_v42 }
 0x259   : > { %1086 = vperm.xlu1 %3317, %v1010_v35   ;;  %1855 = vperm.xlu0 %3316, %v1621_v38   ;;  %vm1108_vm14 = vcmp.eq.f32.partialorder %v4670_v20, %v4895_v56  ;;  %vm2129_vm9 = vcmp.ne.s32.totalorder %v4897_v52, 0 }
 0x25a   : > { %v3070_v60 = vsel %vm1108_vm14, 1.0, %v5651_v42  ;;  %vm2055_vm14 = vmand %vm4957_vm2, %vm2037_vm7 }
 0x25b   : > { %vm5009_vm2 = vmand %vm2055_vm14, %vm2127_vm13  ;;  %vm5771_vm13 = vcmp.gt.f32.partialorder %v4481_v1, -1.0  ;;  %v1624_v1 = vmul.f32 %v4860_v39, %v5654_v62 }
 0x25c   : > { %v1181_v54 = vpop.permute.xlu1 %1180  ;;  %v1042_v3 = vpop.permute.xlu0 %1041  ;;  %v3135_v37 = vsel %vm5009_vm2, 1.0, %v5651_v42 }
 0x25d   : > { %1230 = vperm.xlu1 %3317, %v884_v2   ;;  %1091 = vperm.xlu0 %3316, %v1011_v53   ;;  %vm1109_vm3 = vcmp.eq.f32.partialorder %v4670_v20, %v1042_v3  ;;  %v1013_v53 = vadd.f32 %v4784_v17, %v5752_v36  ;;  %v1252_v24 = vmul.f32 %v3070_v60, %v1181_v54  ;;  %v5762_v3 = vld [vmem:[#allocation102_spill] sm:$0xff]  ;;  %v5769_v36 = vld [vmem:[#allocation71_spill] sm:$0xff] }
 0x25e   : > { %v3071_v47 = vsel %vm1109_vm3, 1.0, %v5651_v42  ;;  %vm2126_vm3 = vcmp.ne.s32.totalorder %v4833_v6, 0 }
 0x25f   : > { %vm2144_vm7 = vmand %vm2054_vm11, %vm2126_vm3 }
 0x260   : > { %v1361_v63 = vpop.permute.xlu1 %1360  ;;  %v1186_v0 = vpop.permute.xlu0 %1185  ;;  %v3134_v6 = vsel %vm2144_vm7, 1.0, %v5651_v42 }
 0x261   : > { %1410 = vperm.xlu1 %3317, %v1334_v49   ;;  %1235 = vperm.xlu0 %3316, %v885_v19   ;;  %vm1432_vm1 = vcmp.eq.f32.partialorder %v4670_v20, %v1361_v63  ;;  %v1253_v14 = vmul.f32 %v3071_v47, %v1186_v0  ;;  %v5761_v19 = vld [vmem:[#allocation101_spill] sm:$0xff]  ;;  %v767_v0 = vmul.f32 %v3053_v28, %v5762_v3  ;;  %v1318_v63 = vmul.f32 8.0, %v4400_v51 }
 0x262   : > { %v766_v29 = vmul.f32 %v3052_v34, %v5761_v19  ;;  %v3088_v56 = vsel %vm1432_vm1, 1.0, %v5651_v42  ;;  %v3353_v49 = vpack.i.bf16 %v3135_v37, %v3134_v6  ;;  %vm1967_vm1 = vmand %vm1931_vm12, %vm1949_vm10  ;;  %vm2128_vm12 = vcmp.ne.s32.totalorder %v4886_v4, 0 }
 0x263   : > { %v1271_v15 = vadd.f32 %v1253_v14, %v767_v0  ;;  %v1301_v14 = vmul.f32 %v5772_v58, %v5653_v45 }
 0x264   : > { %v1505_v26 = vpop.permute.xlu1 %1504  ;;  %v1366_v23 = vpop.permute.xlu0 %1365  ;;  %v1270_v41 = vadd.f32 %v1252_v24, %v766_v29  ;;  %v1642_v24 = vadd.f32 %v1318_v63, %v4786_v27  ;;  %v1643_v27 = vadd.f32 %v4945_v11, %v4784_v17  ;;  %v5774_v17 = vld [vmem:[#allocation2_spill] sm:$0xff] }
 0x265   : > { %3349 = vperm.xlu1 %3317, %v3348_v18   ;;  %1415 = vperm.xlu0 %3316, %v1335_v10   ;;  %vm1433_vm6 = vcmp.eq.f32.partialorder %v4670_v20, %v1366_v23  ;;  %v887_v18 = vmul.f32 %v4858_v59, %v5763_v30  ;;  %v1576_v40 = vmul.f32 %v3088_v56, %v1505_v26 }
 0x266   : > { %v3089_v54 = vsel %vm1433_vm6, 1.0, %v5651_v42  ;;  %vm2039_vm6 = vcmp.ne.s32.totalorder %v4888_v57, 0 }
 0x267   : > { %vm2057_vm10 = vmand %vm1967_vm1, %vm2039_vm6  ;;  %vm625_vm6 = vcmp.eq.f32.partialorder %v4670_v20, %v5774_v17 }
 0x268   : > { %v1667_v22 = vpop.permute.xlu1 %1666  ;;  %v1510_v8 = vpop.permute.xlu0 %1509  ;;  %vm2147_vm14 = vmand %vm2057_vm10, %vm2129_vm9 }
 0x269   : > { %1559 = vperm.xlu1 %3317, %v1299_v25   ;;  %1554 = vperm.xlu0 %3316, %v1298_v50   ;;  %vm1738_vm15 = vcmp.eq.f32.partialorder %v4670_v20, %v1667_v22  ;;  %v1577_v10 = vmul.f32 %v3089_v54, %v1510_v8  ;;  %v5767_v8 = vld [vmem:[#allocation98_spill] sm:$0xff]  ;;  %v1625_v54 = vmul.f32 %v4858_v59, %v5653_v45 }
 0x26a   : > { %v3106_v48 = vsel %vm1738_vm15, 1.0, %v5651_v42  ;;  %v1337_v22 = vadd.f32 %v4945_v11, %v5767_v8  ;;  %vm1966_vm15 = vmand %vm5771_vm13, %vm5770_vm0 }
 0x26c   : > { %v1811_v35 = vpop.permute.xlu1 %1810  ;;  %v1672_v38 = vpop.permute.xlu0 %1671 }
 0x26d   : > { %1721 = vperm.xlu1 %3317, %v1641_v7   ;;  %1716 = vperm.xlu0 %3316, %v1640_v33   ;;  %vm1739_vm5 = vcmp.eq.f32.partialorder %v4670_v20, %v1672_v38  ;;  %v1882_v31 = vmul.f32 %v3106_v48, %v1811_v35  ;;  %v1594_v7 = vadd.f32 %v1576_v40, %v1270_v41  ;;  %v5768_v38 = vld [vmem:[#allocation99_spill] sm:$0xff] }
 0x26e   : > { %v3107_v26 = vsel %vm1739_vm5, 1.0, %v5651_v42  ;;  %v1595_v33 = vadd.f32 %v1577_v10, %v1271_v15  ;;  %v1336_v5 = vadd.f32 %v1318_v63, %v5768_v38  ;;  %vm2038_vm5 = vcmp.ne.s32.totalorder %v4880_v12, 0  ;;  %v5775_v63 = vld [vmem:[#allocation103_spill] sm:$0xff] }
 0x26f   : > { %v1900_v35 = vadd.f32 %v1882_v31, %v1594_v7  ;;  %vm2056_vm3 = vmand %vm1966_vm15, %vm2038_vm5  ;;  %v3137_v12 = vsel %vm2147_vm14, 1.0, %v5651_v42 }
 0x270   : > { %v4939_v2 = vpop.permute.xlu1 %1046  ;;  %v1816_v61 = vpop.permute.xlu0 %1815  ;;  %vm2146_vm11 = vmand %vm2056_vm3, %vm2128_vm12 }
 0x271   : > { %1865 = vperm.xlu1 %3317, %v1623_v46   ;;  %1860 = vperm.xlu0 %3316, %v1622_v44   ;;  %v1883_v50 = vmul.f32 %v3107_v26, %v1816_v61  ;;  %v3136_v29 = vsel %vm2146_vm11, 1.0, %v5651_v42  ;;  %vm1110_vm2 = vcmp.eq.f32.partialorder %v4670_v20, %v4939_v2 }
 0x272   : > { %v3358_v56 = vpack.i.bf16 %v3137_v12, %v3136_v29  ;;  %v3072_v45 = vsel %vm1110_vm2, 1.0, %v5651_v42  ;;  %v5780_v29 = vld [vmem:[#allocation106_spill] sm:$0xff] }
 0x273   : > { %v1901_v61 = vadd.f32 %v1883_v50, %v1595_v33 }
 0x274   : > { %v4981_v9 = vpop.permute.xlu1 %1190  ;;  %v4983_v43 = vpop.permute.xlu0 %1051 }
 0x275   : > { %1101 = vperm.xlu1 %3317, %v1013_v53   ;;  %1096 = vperm.xlu0 %3316, %v1012_v21   ;;  %v1300_v53 = vmul.f32 %v5769_v36, %v5654_v62  ;;  %vm1111_vm7 = vcmp.eq.f32.partialorder %v4670_v20, %v4983_v43  ;;  %v5773_v62 = vld [vmem:[#allocation4_spill] sm:$0xff]  ;;  %v1254_v11 = vmul.f32 %v3072_v45, %v4981_v9 }
 0x276   : > { %vm624_vm1 = vcmp.eq.f32.partialorder %v4670_v20, %v5773_v62  ;;  %v3073_v59 = vsel %vm1111_vm7, 1.0, %v5651_v42 }
 0x277   : > { %v3054_v30 = vsel %vm624_vm1, 1.0, %v5651_v42 }
 0x278   : > { %v5021_v25 = vpop.permute.xlu1 %1370  ;;  %v5023_v51 = vpop.permute.xlu0 %1195  ;;  %v768_v23 = vmul.f32 %v3054_v30, %v5775_v63 }
 0x279   : > { %1245 = vperm.xlu1 %3317, %v887_v18   ;;  %1240 = vperm.xlu0 %3316, %v886_v16   ;;  %vm1434_vm9 = vcmp.eq.f32.partialorder %v4670_v20, %v5021_v25  ;;  %v1255_v43 = vmul.f32 %v3073_v59, %v5023_v51  ;;  %v3055_v18 = vsel %vm625_vm6, 1.0, %v5651_v42 }
 0x27a   : > { %v3090_v10 = vsel %vm1434_vm9, 1.0, %v5651_v42  ;;  %v769_v16 = vmul.f32 %v3055_v18, %v5776_v55  ;;  %v1272_v15 = vadd.f32 %v1254_v11, %v768_v23 }
 0x27c   : > { %v3330_v46 = vpop.permute.xlu1 %3329  ;;  %v5034_v44 = vpop.permute.xlu0 %1375  ;;  %v1273_v31 = vadd.f32 %v1255_v43, %v769_v16 }
 0x27d   : > { %v3332_v34 = vunpack.i.h.bf16 %v3330_v46  ;;  %v3331_v28 = vunpack.i.l.bf16 %v3330_v46  ;;  %1425 = vperm.xlu1 %3317, %v1337_v22   ;;  %1420 = vperm.xlu0 %3316, %v1336_v5   ;;  %vm1435_vm0 = vcmp.eq.f32.partialorder %v4670_v20, %v5034_v44 }
 0x27e   : > { %v3091_v40 = vsel %vm1435_vm0, 1.0, %v5651_v42 }
 0x27f   : > { %v2278_v13 = vmul.f32 %v3331_v28, %v1900_v35  ;;  %v2279_v21 = vmul.f32 %v3332_v34, %v1901_v61 }
 0x280   : > { %v1520_v32 = vpop.permute.xlu1 %1519  ;;  %v1515_v60 = vpop.permute.xlu0 %1514 }
 0x281   : > { %v2294_v47 = vpack.c.bf16 %v2279_v21, %v2278_v13  ;;  %1564 = vperm.xlu1 %3317, %v1300_v53   ;;  %3354 = vperm.xlu0 %3316, %v3353_v49   ;;  %v1579_v48 = vmul.f32 %v3091_v40, %v1520_v32  ;;  %v1578_v9 = vmul.f32 %v3090_v10, %v1515_v60  ;;  %v5777_v49 = vld [vmem:[#allocation15_spill] sm:$0xff]  ;;  %v5778_v32 = vld [vmem:[#allocation20_spill] sm:$0xff] }
 0x282   : > { %vm626_vm10 = vcmp.eq.f32.partialorder %v4670_v20, %v5777_v49  ;;  %vm627_vm14 = vcmp.eq.f32.partialorder %v4670_v20, %v5778_v32 }
 0x283   : > { %3222 = vmatmul.mubr.msk.bf16.gmra.mrb[8].mxu0 %vm2333_vm4, %v2294_v47  ;;  %v1597_v22 = vadd.f32 %v1579_v48, %v1273_v31  ;;  %v1596_v7 = vadd.f32 %v1578_v9, %v1272_v15 }
 0x284   : > { %v1682_v57 = vpop.permute.xlu1 %1681  ;;  %v1677_v52 = vpop.permute.xlu0 %1676  ;;  %3225 = vmatprep.mubr.msk.bf16.mxu0 %vm3391_vm8, %v5651_v42 }
 0x285   : > { %1726 = vperm.xlu1 %3317, %v1642_v24   ;;  %1569 = vperm.xlu0 %3316, %v1301_v14   ;;  %vm1741_vm13 = vcmp.eq.f32.partialorder %v4670_v20, %v1682_v57  ;;  %vm1740_vm15 = vcmp.eq.f32.partialorder %v4670_v20, %v1677_v52  ;;  %v3056_v52 = vsel %vm626_vm10, 1.0, %v5651_v42 }
 0x286   : > { %v3109_v26 = vsel %vm1741_vm13, 1.0, %v5651_v42  ;;  %v3108_v25 = vsel %vm1740_vm15, 1.0, %v5651_v42 }
 0x288   : > { %v1826_v4 = vpop.permute.xlu1 %1825  ;;  %v1821_v19 = vpop.permute.xlu0 %1820 }
 0x289   : > { %1870 = vperm.xlu1 %3317, %v1624_v1   ;;  %1731 = vperm.xlu0 %3316, %v1643_v27   ;;  %v1885_v50 = vmul.f32 %v3109_v26, %v1826_v4  ;;  %v1884_v8 = vmul.f32 %v3108_v25, %v1821_v19  ;;  %v3057_v1 = vsel %vm627_vm14, 1.0, %v5651_v42  ;;  %v5779_v4 = vld [vmem:[#allocation105_spill] sm:$0xff] }
 0x28a   : > { %v770_v19 = vmul.f32 %v3056_v52, %v5779_v4 }
 0x28b   : > { %v1903_v5 = vadd.f32 %v1885_v50, %v1597_v22  ;;  %v1902_v37 = vadd.f32 %v1884_v8, %v1596_v7  ;;  %v5781_v7 = vld [vmem:[#allocation22_spill] sm:$0xff] }
 0x28c   : > { %v1062_v3 = vpop.permute.xlu1 %1061  ;;  %v1057_v0 = vpop.permute.xlu0 %1056  ;;  %vm628_vm9 = vcmp.eq.f32.partialorder %v4670_v20, %v5781_v7 }
 0x28d   : > { %3359 = vperm.xlu1 %3317, %v3358_v56   ;;  %1875 = vperm.xlu0 %3316, %v1625_v54   ;;  %vm1113_vm5 = vcmp.eq.f32.partialorder %v4670_v20, %v1062_v3  ;;  %vm1112_vm12 = vcmp.eq.f32.partialorder %v4670_v20, %v1057_v0  ;;  %v771_v56 = vmul.f32 %v3057_v1, %v5780_v29  ;;  %v3367_v0 = vld [vmem:[%s5281_s2 + $0x8] sm:$0xff]  }
 0x28e   : > { %v3075_v60 = vsel %vm1113_vm5, 1.0, %v5651_v42  ;;  %v3074_v47 = vsel %vm1112_vm12, 1.0, %v5651_v42  ;;  %3250 = vmatpush3.bf16.msra.mxu1 %v3367_v0 }
 0x28f   : > { %3255 = vmatprep.subr.bf16.mxu1 %v5651_v42 }
 0x290   : > { %v1206_v39 = vpop.permute.xlu1 %1205  ;;  %v1201_v2 = vpop.permute.xlu0 %1200 }
 0x291   : > { %v1257_v14 = vmul.f32 %v3075_v60, %v1206_v39  ;;  %v1256_v57 = vmul.f32 %v3074_v47, %v1201_v2 }
 0x293   : > { %v1275_v39 = vadd.f32 %v1257_v14, %v771_v56  ;;  %v1274_v2 = vadd.f32 %v1256_v57, %v770_v19 }
 0x294   : > { %v1386_v51 = vpop.permute.xlu1 %1385  ;;  %v1381_v41 = vpop.permute.xlu0 %1380 }
 0x295   : > { %vm1437_vm3 = vcmp.eq.f32.partialorder %v4670_v20, %v1386_v51  ;;  %vm1436_vm11 = vcmp.eq.f32.partialorder %v4670_v20, %v1381_v41 }
 0x296   : > { %v3092_v27 = vsel %vm1436_vm11, 1.0, %v5651_v42  ;;  %v3093_v12 = vsel %vm1437_vm3, 1.0, %v5651_v42 }
 0x298   : > { %v1525_v33 = vpop.permute.xlu1 %1524  ;;  %v3335_v38 = vpop.permute.xlu0 %3334 }
 0x299   : > { %v3337_v6 = vunpack.i.h.bf16 %v3335_v38  ;;  %v3336_v46 = vunpack.i.l.bf16 %v3335_v38  ;;  %v1580_v54 = vmul.f32 %v3092_v27, %v1525_v33  ;;  %v5782_v33 = vld [vmem:[#allocation19_spill] sm:$0xff] }
 0x29a   : > { %vm629_vm0 = vcmp.eq.f32.partialorder %v4670_v20, %v5782_v33 }
 0x29b   : > { %v2281_v44 = vmul.f32 %v3337_v6, %v1903_v5  ;;  %v2280_v35 = vmul.f32 %v3336_v46, %v1902_v37  ;;  %v1598_v30 = vadd.f32 %v1580_v54, %v1274_v2 }
 0x29c   : > { %v1687_v61 = vpop.permute.xlu1 %1686  ;;  %v1530_v34 = vpop.permute.xlu0 %1529 }
 0x29d   : > { %v2295_v28 = vpack.c.bf16 %v2281_v44, %v2280_v35  ;;  %vm1742_vm2 = vcmp.eq.f32.partialorder %v4670_v20, %v1687_v61  ;;  %v1581_v3 = vmul.f32 %v3093_v12, %v1530_v34  ;;  %v3058_v35 = vsel %vm628_vm9, 1.0, %v5651_v42 }
 0x29e   : > { %v3110_v62 = vsel %vm1742_vm2, 1.0, %v5651_v42  ;;  %v3059_v61 = vsel %vm629_vm0, 1.0, %v5651_v42 }
 0x29f   : > { %3226 = vmatmul.mubr.msk.bf16.gmra.mrb[12].mxu0 %vm2333_vm4, %v2295_v28  ;;  %v1599_v18 = vadd.f32 %v1581_v3, %v1275_v39 }
 0x2a0   : > { %v1831_v36 = vpop.permute.xlu1 %1830  ;;  %v1692_v53 = vpop.permute.xlu0 %1691  ;;  %3229 = vmatprep.mubr.msk.bf16.mxu0 %vm3391_vm8, %v5651_v42 }
 0x2a1   : > { %vm1743_vm7 = vcmp.eq.f32.partialorder %v4670_v20, %v1692_v53  ;;  %v1886_v11 = vmul.f32 %v3110_v62, %v1831_v36  ;;  %v5783_v36 = vld [vmem:[#allocation107_spill] sm:$0xff] }
 0x2a2   : > { %v3111_v17 = vsel %vm1743_vm7, 1.0, %v5651_v42  ;;  %v772_v53 = vmul.f32 %v3058_v35, %v5783_v36 }
 0x2a3   : > { %v1904_v63 = vadd.f32 %v1886_v11, %v1598_v30  ;;  %v5785_v30 = vld [vmem:[#allocation21_spill] sm:$0xff] }
 0x2a4   : > { %v5093_v13 = vpop.permute.xlu1 %1066  ;;  %v1836_v21 = vpop.permute.xlu0 %1835  ;;  %vm630_vm3 = vcmp.eq.f32.partialorder %v4670_v20, %v5785_v30 }
 0x2a5   : > { %v1887_v43 = vmul.f32 %v3111_v17, %v1836_v21  ;;  %vm1114_vm1 = vcmp.eq.f32.partialorder %v4670_v20, %v5093_v13  ;;  %v5784_v13 = vld [vmem:[#allocation108_spill] sm:$0xff] }
 0x2a6   : > { %v3076_v5 = vsel %vm1114_vm1, 1.0, %v5651_v42  ;;  %v773_v21 = vmul.f32 %v3059_v61, %v5784_v13 }
 0x2a7   : > { %v1905_v23 = vadd.f32 %v1887_v43, %v1599_v18  ;;  %v5786_v18 = vld [vmem:[#allocation8_spill] sm:$0xff] }
 0x2a8   : > { %v1211_v24 = vpop.permute.xlu1 %1210  ;;  %v1072_v58 = vpop.permute.xlu0 %1071  ;;  %vm631_vm11 = vcmp.eq.f32.partialorder %v4670_v20, %v5786_v18 }
 0x2a9   : > { %vm1115_vm6 = vcmp.eq.f32.partialorder %v4670_v20, %v1072_v58  ;;  %v1258_v46 = vmul.f32 %v3076_v5, %v1211_v24 }
 0x2aa   : > { %v3077_v37 = vsel %vm1115_vm6, 1.0, %v5651_v42 }
 0x2ab   : > { %v1276_v14 = vadd.f32 %v1258_v46, %v772_v53 }
 0x2ac   : > { %v1391_v45 = vpop.permute.xlu1 %1390  ;;  %v1216_v59 = vpop.permute.xlu0 %1215 }
 0x2ad   : > { %vm1438_vm13 = vcmp.eq.f32.partialorder %v4670_v20, %v1391_v45  ;;  %v1259_v44 = vmul.f32 %v3077_v37, %v1216_v59 }
 0x2ae   : > { %v3094_v28 = vsel %vm1438_vm13, 1.0, %v5651_v42 }
 0x2af   : > { %v1277_v57 = vadd.f32 %v1259_v44, %v773_v21 }
 0x2b0   : > { %v3340_v40 = vpop.permute.xlu1 %3339  ;;  %v1396_v10 = vpop.permute.xlu0 %1395 }
 0x2b1   : > { %v3342_v55 = vunpack.i.h.bf16 %v3340_v40  ;;  %v3341_v16 = vunpack.i.l.bf16 %v3340_v40  ;;  %vm1439_vm15 = vcmp.eq.f32.partialorder %v4670_v20, %v1396_v10 }
 0x2b2   : > { %v3095_v34 = vsel %vm1439_vm15, 1.0, %v5651_v42 }
 0x2b3   : > { %v2282_v48 = vmul.f32 %v3341_v16, %v1904_v63  ;;  %v2283_v9 = vmul.f32 %v3342_v55, %v1905_v23 }
 0x2b4   : > { %v1540_v26 = vpop.permute.xlu1 %1539  ;;  %v1535_v51 = vpop.permute.xlu0 %1534 }
 0x2b5   : > { %v2296_v25 = vpack.c.bf16 %v2283_v9, %v2282_v48  ;;  %v1583_v49 = vmul.f32 %v3095_v34, %v1540_v26  ;;  %v1582_v32 = vmul.f32 %v3094_v28, %v1535_v51  ;;  %v3060_v48 = vsel %vm630_vm3, 1.0, %v5651_v42  ;;  %v5787_v51 = vld [vmem:[#allocation109_spill] sm:$0xff] }
 0x2b6   : > { %v3061_v9 = vsel %vm631_vm11, 1.0, %v5651_v42 }
 0x2b7   : > { %3230 = vmatmul.mubr.msk.bf16.gmra.mrb[16].mxu0 %vm2333_vm4, %v2296_v25  ;;  %v1601_v27 = vadd.f32 %v1583_v49, %v1277_v57  ;;  %v1600_v12 = vadd.f32 %v1582_v32, %v1276_v14 }
 0x2b8   : > { %v1702_v41 = vpop.permute.xlu1 %1701  ;;  %3233 = vmatprep.mubr.msk.bf16.mxu0 %vm3391_vm8, %v5651_v42  ;;  %v1697_v15 = vpop.permute.xlu0 %1696 }
 0x2b9   : > { %vm1745_vm5 = vcmp.eq.f32.partialorder %v4670_v20, %v1702_v41  ;;  %vm1744_vm12 = vcmp.eq.f32.partialorder %v4670_v20, %v1697_v15  ;;  %v774_v41 = vmul.f32 %v3060_v48, %v5787_v51  ;;  %v5788_v15 = vld [vmem:[#allocation110_spill] sm:$0xff] }
 0x2ba   : > { %v3113_v47 = vsel %vm1745_vm5, 1.0, %v5651_v42  ;;  %v3112_v24 = vsel %vm1744_vm12, 1.0, %v5651_v42 }
 0x2bc   : > { %v1846_v31 = vpop.permute.xlu1 %1845  ;;  %v1841_v50 = vpop.permute.xlu0 %1840 }
 0x2bd   : > { %v1889_v52 = vmul.f32 %v3113_v47, %v1846_v31  ;;  %v1888_v1 = vmul.f32 %v3112_v24, %v1841_v50  ;;  %v775_v31 = vmul.f32 %v3061_v9, %v5788_v15 }
 0x2bf   : > { %v1907_v29 = vadd.f32 %v1889_v52, %v1601_v27  ;;  %v1906_v56 = vadd.f32 %v1888_v1, %v1600_v12  ;;  %v5789_v27 = vld [vmem:[#allocation9_spill] sm:$0xff]  ;;  %v5790_v12 = vld [vmem:[#allocation27_spill] sm:$0xff] }
 0x2c0   : > { %v1082_v8 = vpop.permute.xlu1 %1081  ;;  %v1077_v22 = vpop.permute.xlu0 %1076  ;;  %vm632_vm13 = vcmp.eq.f32.partialorder %v4670_v20, %v5789_v27  ;;  %vm633_vm15 = vcmp.eq.f32.partialorder %v4670_v20, %v5790_v12 }
 0x2c1   : > { %vm1117_vm10 = vcmp.eq.f32.partialorder %v4670_v20, %v1082_v8  ;;  %vm1116_vm14 = vcmp.eq.f32.partialorder %v4670_v20, %v1077_v22 }
 0x2c2   : > { %v3079_v40 = vsel %vm1117_vm10, 1.0, %v5651_v42  ;;  %v3078_v10 = vsel %vm1116_vm14, 1.0, %v5651_v42 }
 0x2c4   : > { %v1226_v38 = vpop.permute.xlu1 %1225  ;;  %v1221_v6 = vpop.permute.xlu0 %1220 }
 0x2c5   : > { %v1261_v23 = vmul.f32 %v3079_v40, %v1226_v38  ;;  %v1260_v55 = vmul.f32 %v3078_v10, %v1221_v6 }
 0x2c7   : > { %v1279_v38 = vadd.f32 %v1261_v23, %v775_v31  ;;  %v1278_v5 = vadd.f32 %v1260_v55, %v774_v41 }
 0x2c8   : > { %v1406_v60 = vpop.permute.xlu1 %1405  ;;  %v1401_v58 = vpop.permute.xlu0 %1400 }
 0x2c9   : > { %vm1441_vm2 = vcmp.eq.f32.partialorder %v4670_v20, %v1406_v60  ;;  %vm1440_vm7 = vcmp.eq.f32.partialorder %v4670_v20, %v1401_v58 }
 0x2ca   : > { %v3096_v26 = vsel %vm1440_vm7, 1.0, %v5651_v42  ;;  %v3097_v25 = vsel %vm1441_vm2, 1.0, %v5651_v42 }
 0x2cc   : > { %v1545_v4 = vpop.permute.xlu1 %1544  ;;  %v3345_v19 = vpop.permute.xlu0 %3344 }
 0x2cd   : > { %v3347_v54 = vunpack.i.h.bf16 %v3345_v19  ;;  %v3346_v3 = vunpack.i.l.bf16 %v3345_v19  ;;  %v1584_v50 = vmul.f32 %v3096_v26, %v1545_v4 }
 0x2cf   : > { %v2285_v0 = vmul.f32 %v3347_v54, %v1907_v29  ;;  %v2284_v62 = vmul.f32 %v3346_v3, %v1906_v56  ;;  %v1602_v44 = vadd.f32 %v1584_v50, %v1278_v5  ;;  %v5794_v5 = vld [vmem:[#allocation31_spill] sm:$0xff] }
 0x2d0   : > { %v1707_v17 = vpop.permute.xlu1 %1706  ;;  %v1550_v45 = vpop.permute.xlu0 %1549 }
 0x2d1   : > { %v2297_v59 = vpack.c.bf16 %v2285_v0, %v2284_v62  ;;  %vm1746_vm1 = vcmp.eq.f32.partialorder %v4670_v20, %v1707_v17  ;;  %v1585_v8 = vmul.f32 %v3097_v25, %v1550_v45  ;;  %v3062_v0 = vsel %vm632_vm13, 1.0, %v5651_v42 }
 0x2d2   : > { %v3114_v22 = vsel %vm1746_vm1, 1.0, %v5651_v42  ;;  %v3063_v62 = vsel %vm633_vm15, 1.0, %v5651_v42  ;;  %vm635_vm1 = vcmp.eq.f32.partialorder %v4670_v20, %v5794_v5  ;;  %vm2492_vm13 = vcmask 130048  }
 0x2d3   : > { %3234 = vmatmul.mubr.msk.bf16.gmra.mrb[20].mxu0 %vm2333_vm4, %v2297_v59  ;;  %v1603_v35 = vadd.f32 %v1585_v8, %v1279_v38  ;;  %v5791_v59 = vld [vmem:[#allocation111_spill] sm:$0xff] }
 0x2d4   : > { %v1851_v39 = vpop.permute.xlu1 %1850  ;;  %v1712_v2 = vpop.permute.xlu0 %1711  ;;  %3237 = vmatprep.mubr.msk.bf16.mxu0 %vm3391_vm8, %v5651_v42 }
 0x2d5   : > { %vm1747_vm6 = vcmp.eq.f32.partialorder %v4670_v20, %v1712_v2  ;;  %v1890_v37 = vmul.f32 %v3114_v22, %v1851_v39  ;;  %v776_v39 = vmul.f32 %v3062_v0, %v5791_v59  ;;  %v5792_v2 = vld [vmem:[#allocation112_spill] sm:$0xff] }
 0x2d6   : > { %v3115_v7 = vsel %vm1747_vm6, 1.0, %v5651_v42 }
 0x2d7   : > { %v1908_v34 = vadd.f32 %v1890_v37, %v1602_v44 }
 0x2d8   : > { %v1087_v11 = vpop.permute.xlu1 %1086  ;;  %v1856_v43 = vpop.permute.xlu0 %1855 }
 0x2d9   : > { %v1891_v6 = vmul.f32 %v3115_v7, %v1856_v43  ;;  %vm1118_vm9 = vcmp.eq.f32.partialorder %v4670_v20, %v1087_v11  ;;  %v777_v11 = vmul.f32 %v3063_v62, %v5792_v2 }
 0x2da   : > { %v3080_v19 = vsel %vm1118_vm9, 1.0, %v5651_v42 }
 0x2db   : > { %v1909_v28 = vadd.f32 %v1891_v6, %v1603_v35 }
 0x2dc   : > { %v1231_v63 = vpop.permute.xlu1 %1230  ;;  %v1092_v16 = vpop.permute.xlu0 %1091 }
 0x2dd   : > { %vm1119_vm0 = vcmp.eq.f32.partialorder %v4670_v20, %v1092_v16  ;;  %v1262_v54 = vmul.f32 %v3080_v19, %v1231_v63 }
 0x2de   : > { %v3081_v29 = vsel %vm1119_vm0, 1.0, %v5651_v42 }
 0x2df   : > { %v1280_v23 = vadd.f32 %v1262_v54, %v776_v39 }
 0x2e0   : > { %v1411_v33 = vpop.permute.xlu1 %1410  ;;  %v1236_v46 = vpop.permute.xlu0 %1235 }
 0x2e1   : > { %vm1442_vm5 = vcmp.eq.f32.partialorder %v4670_v20, %v1411_v33  ;;  %v1263_v3 = vmul.f32 %v3081_v29, %v1236_v46  ;;  %v5793_v33 = vld [vmem:[#allocation26_spill] sm:$0xff] }
 0x2e2   : > { %v3098_v45 = vsel %vm1442_vm5, 1.0, %v5651_v42  ;;  %vm634_vm2 = vcmp.eq.f32.partialorder %v4670_v20, %v5793_v33 }
 0x2e3   : > { %v1281_v55 = vadd.f32 %v1263_v3, %v777_v11  ;;  %v3064_v35 = vsel %vm634_vm2, 1.0, %v5651_v42 }
 0x2e4   : > { %v3350_v61 = vpop.permute.xlu1 %3349  ;;  %v1416_v13 = vpop.permute.xlu0 %1415 }
 0x2e5   : > { %v3352_v36 = vunpack.i.h.bf16 %v3350_v61  ;;  %v3351_v53 = vunpack.i.l.bf16 %v3350_v61  ;;  %vm1443_vm12 = vcmp.eq.f32.partialorder %v4670_v20, %v1416_v13  ;;  %v3065_v13 = vsel %vm635_vm1, 1.0, %v5651_v42 }
 0x2e6   : > { %v3099_v17 = vsel %vm1443_vm12, 1.0, %v5651_v42 }
 0x2e7   : > { %v2286_v21 = vmul.f32 %v3351_v53, %v1908_v34  ;;  %v2287_v49 = vmul.f32 %v3352_v36, %v1909_v28  ;;  %v5795_v36 = vld [vmem:[#allocation113_spill] sm:$0xff] }
 0x2e8   : > { %v1560_v32 = vpop.permute.xlu1 %1559  ;;  %v1555_v47 = vpop.permute.xlu0 %1554  ;;  %v778_v53 = vmul.f32 %v3064_v35, %v5795_v36  ;;  %v3373_v35 = vld [vmem:[%s5281_s2 + $0x30] sm:$0xff]  }
 0x2e9   : > { %v2298_v60 = vpack.c.bf16 %v2287_v49, %v2286_v21  ;;  %v1587_v43 = vmul.f32 %v3099_v17, %v1560_v32  ;;  %v1586_v30 = vmul.f32 %v3098_v45, %v1555_v47 }
 0x2eb   : > { %3238 = vmatmul.mubr.msk.bf16.gmra.mrb[24].mxu0 %vm2333_vm4, %v2298_v60  ;;  %v1605_v9 = vadd.f32 %v1587_v43, %v1281_v55  ;;  %v1604_v26 = vadd.f32 %v1586_v30, %v1280_v23  ;;  %v5796_v60 = vld [vmem:[#allocation114_spill] sm:$0xff]  ;;  %v3369_v23 = vld [vmem:[%s5281_s2 + $0x10] sm:$0xff]  }
 0x2ec   : > { %v1722_v24 = vpop.permute.xlu1 %1721  ;;  %3241 = vmatprep.mubr.msk.bf16.mxu0 %vm3391_vm8, %v5651_v42  ;;  %v1717_v58 = vpop.permute.xlu0 %1716  ;;  %v779_v47 = vmul.f32 %v3065_v13, %v5796_v60  ;;  %v3374_v13 = vld [vmem:[%s5281_s2 + $0x38] sm:$0xff]  }
 0x2ed   : > { %vm1749_vm10 = vcmp.eq.f32.partialorder %v4670_v20, %v1722_v24  ;;  %vm1748_vm14 = vcmp.eq.f32.partialorder %v4670_v20, %v1717_v58 }
 0x2ee   : > { %v3117_v40 = vsel %vm1749_vm10, 1.0, %v5651_v42  ;;  %v3116_v10 = vsel %vm1748_vm14, 1.0, %v5651_v42 }
 0x2f0   : > { %v1866_v14 = vpop.permute.xlu1 %1865  ;;  %v1861_v57 = vpop.permute.xlu0 %1860 }
 0x2f1   : > { %v1893_v16 = vmul.f32 %v3117_v40, %v1866_v14  ;;  %v1892_v48 = vmul.f32 %v3116_v10, %v1861_v57  ;;  %v3368_v40 = vld [vmem:[%s5281_s2] sm:$0xff]  }
 0x2f3   : > { %v1911_v41 = vadd.f32 %v1893_v16, %v1605_v9  ;;  %v1910_v15 = vadd.f32 %v1892_v48, %v1604_v26  ;;  %v3370_v9 = vld [vmem:[%s5281_s2 + $0x18] sm:$0xff]  }
 0x2f4   : > { %v1102_v52 = vpop.permute.xlu1 %1101  ;;  %v1097_v1 = vpop.permute.xlu0 %1096 }
 0x2f5   : > { %vm1120_vm3 = vcmp.eq.f32.partialorder %v4670_v20, %v1097_v1  ;;  %vm1121_vm11 = vcmp.eq.f32.partialorder %v4670_v20, %v1102_v52 }
 0x2f6   : > { %v3082_v37 = vsel %vm1120_vm3, 1.0, %v5651_v42  ;;  %v3083_v46 = vsel %vm1121_vm11, 1.0, %v5651_v42 }
 0x2f8   : > { %v1246_v4 = vpop.permute.xlu1 %1245  ;;  %v1241_v56 = vpop.permute.xlu0 %1240 }
 0x2f9   : > { %v1264_v44 = vmul.f32 %v3082_v37, %v1241_v56  ;;  %v1265_v61 = vmul.f32 %v3083_v46, %v1246_v4 }
 0x2fb   : > { %v1282_v58 = vadd.f32 %v1264_v44, %v778_v53  ;;  %v1283_v52 = vadd.f32 %v1265_v61, %v779_v47 }
 0x2fc   : > { %v1426_v18 = vpop.permute.xlu1 %1425  ;;  %v1421_v63 = vpop.permute.xlu0 %1420 }
 0x2fd   : > { %vm1444_vm7 = vcmp.eq.f32.partialorder %v4670_v20, %v1421_v63  ;;  %vm1445_vm6 = vcmp.eq.f32.partialorder %v4670_v20, %v1426_v18 }
 0x2fe   : > { %v3100_v34 = vsel %vm1444_vm7, 1.0, %v5651_v42  ;;  %v3101_v49 = vsel %vm1445_vm6, 1.0, %v5651_v42 }
 0x300   : > { %v1565_v25 = vpop.permute.xlu1 %1564  ;;  %v3355_v51 = vpop.permute.xlu0 %3354 }
 0x301   : > { %v3357_v31 = vunpack.i.h.bf16 %v3355_v51  ;;  %v3356_v50 = vunpack.i.l.bf16 %v3355_v51  ;;  %v1588_v21 = vmul.f32 %v3100_v34, %v1565_v25 }
 0x303   : > { %v2289_v8 = vmul.f32 %v3357_v31, %v1911_v41  ;;  %v2288_v22 = vmul.f32 %v3356_v50, %v1910_v15  ;;  %v1606_v4 = vadd.f32 %v1588_v21, %v1282_v58  ;;  %v3371_v31 = vld [vmem:[%s5281_s2 + $0x20] sm:$0xff]  }
 0x304   : > { %v1727_v7 = vpop.permute.xlu1 %1726  ;;  %v1570_v38 = vpop.permute.xlu0 %1569 }
 0x305   : > { %v2299_v6 = vpack.c.bf16 %v2289_v8, %v2288_v22  ;;  %vm1750_vm9 = vcmp.eq.f32.partialorder %v4670_v20, %v1727_v7  ;;  %v1589_v24 = vmul.f32 %v3101_v49, %v1570_v38  ;;  %v3372_v38 = vld [vmem:[%s5281_s2 + $0x28] sm:$0xff]  }
 0x306   : > { %v3118_v14 = vsel %vm1750_vm9, 1.0, %v5651_v42 }
 0x307   : > { %3242 = vmatmul.mubr.msk.bf16.gmra.mrb[28].mxu0 %vm2333_vm4, %v2299_v6  ;;  %v1607_v54 = vadd.f32 %v1589_v24, %v1283_v52  ;;  %v3375_v24 = vld [vmem:[%s5281_s2 + $0x40] sm:$0xff]  }
 0x308   : > { %v1871_v28 = vpop.permute.xlu1 %1870  ;;  %v1732_v32 = vpop.permute.xlu0 %1731  ;;  %3245 = vmatprep.mubr.msk.bf16.mxu0 %vm3391_vm8, %v5651_v42 }
 0x309   : > { %vm1751_vm0 = vcmp.eq.f32.partialorder %v4670_v20, %v1732_v32  ;;  %v1894_v1 = vmul.f32 %v3118_v14, %v1871_v28 }
 0x30a   : > { %v2395_v57 = vpop.f32.mrb[0].mxu0  ;;  %v3119_v29 = vsel %vm1751_vm0, 1.0, %v5651_v42 }
 0x30b   : > { %v3215_v27 = vpop.f32.mrb[1].mxu0  ;;  %v1912_v45 = vadd.f32 %v1894_v1, %v1606_v4 }
 0x30c   : > { %v3360_v12 = vpop.permute.xlu1 %3359  ;;  %v2398_v19 = vpop.f32.mrb[2].mxu0 }
 0x30d   : > { %v1876_v56 = vpop.permute.xlu0 %1875  ;;  %v2484_v3 = vpack.c.bf16 %v2398_v19, %v2395_v57  ;;  %v3361_v0 = vunpack.i.l.bf16 %v3360_v12  ;;  %v3216_v17 = vpop.f32.mrb[3].mxu0  ;;  %v3362_v20 = vunpack.i.h.bf16 %v3360_v12 }
 0x30e   : > { %v1895_v62 = vmul.f32 %v3119_v29, %v1876_v56 }
 0x30f   : > { %v2290_v39 = vmul.f32 %v3361_v0, %v1912_v45 }
 0x310   : > { %v1913_v59 = vadd.f32 %v1895_v62, %v1607_v54 }
 0x312   : > { %v2291_v2 = vmul.f32 %v3362_v20, %v1913_v59 }
 0x314   : > { %v2300_v11 = vpack.c.bf16 %v2291_v2, %v2290_v39 }
 0x316   : > { %3246 = vmatmul.mubr.msk.bf16.gmra.mrb[32].mxu0 %vm2333_vm4, %v2300_v11 }
 0x32a   : > { %v2403_v43 = vpop.f32.mrb[4].mxu0 }
 0x32b   : > { %v3219_v30 = vpop.f32.mrb[5].mxu0 }
 0x32c   : > { %v2406_v18 = vpop.f32.mrb[6].mxu0 }
 0x32d   : > { %v2485_v10 = vpack.c.bf16 %v2406_v18, %v2403_v43  ;;  %v3220_v63 = vpop.f32.mrb[7].mxu0 }
 0x32f   : > { %3252 = vmatmul.mubr.msk.bf16.vlgmr.msra.gmra.mrb[0].mxu1 %vm2492_vm13, %v2485_v10 }
 0x330   : > { %3256 = vmatpush3.bf16.msra.mxu1 %v3368_v40  ;;  %3257 = vmatprep.mubr.msk.bf16.mxu1 %vm3391_vm8, %v5651_v42 }
 0x331   : > { %3261 = vmatprep.subr.bf16.mxu1 %v5651_v42 }
 0x337   : > { %3258 = vmatmul.mubr.msk.bf16.vlgmr.msra.gmra.mrb[4].mxu1 %vm2492_vm13, %v2484_v3 }
 0x338   : > { %3262 = vmatpush3.bf16.msra.mxu1 %v3369_v23  ;;  %3263 = vmatprep.mubr.msk.bf16.mxu1 %vm3391_vm8, %v5651_v42 }
 0x339   : > { %3267 = vmatprep.subr.bf16.mxu1 %v5651_v42 }
 0x356   : > { %v2411_v55 = vpop.f32.mrb[8].mxu0 }
 0x357   : > { %v3223_v16 = vpop.f32.mrb[9].mxu0 }
 0x358   : > { %v2414_v48 = vpop.f32.mrb[10].mxu0 }
 0x359   : > { %v2587_v26 = vpack.c.bf16 %v2414_v48, %v2411_v55  ;;  %v3224_v25 = vpop.f32.mrb[11].mxu0 }
 0x35b   : > { %3264 = vmatmul.mubr.msk.bf16.vlgmr.msra.gmra.mrb[8].mxu1 %vm2492_vm13, %v2587_v26 }
 0x35c   : > { %3268 = vmatpush3.bf16.msra.mxu1 %v3370_v9  ;;  %3269 = vmatprep.mubr.msk.bf16.mxu1 %vm3391_vm8, %v5651_v42 }
 0x35d   : > { %3273 = vmatprep.subr.bf16.mxu1 %v5651_v42 }
 0x372   : > { %v2419_v51 = vpop.f32.mrb[12].mxu0 }
 0x373   : > { %v3227_v41 = vpop.f32.mrb[13].mxu0 }
 0x374   : > { %v2422_v15 = vpop.f32.mrb[14].mxu0 }
 0x375   : > { %v2640_v50 = vpack.c.bf16 %v2422_v15, %v2419_v51  ;;  %v3228_v8 = vpop.f32.mrb[15].mxu0 }
 0x377   : > { %3270 = vmatmul.mubr.msk.bf16.vlgmr.msra.gmra.mrb[12].mxu1 %vm2492_vm13, %v2640_v50 }
 0x378   : > { %3274 = vmatpush3.bf16.msra.mxu1 %v3371_v31  ;;  %3275 = vmatprep.mubr.msk.bf16.mxu1 %vm3391_vm8, %v5651_v42 }
 0x379   : > { %3279 = vmatprep.subr.bf16.mxu1 %v5651_v42 }
 0x38a   : > { %v2427_v22 = vpop.f32.mrb[16].mxu0 }
 0x38b   : > { %v3231_v7 = vpop.f32.mrb[17].mxu0 }
 0x38c   : > { %v2430_v33 = vpop.f32.mrb[18].mxu0 }
 0x38d   : > { %v2693_v5 = vpack.c.bf16 %v2430_v33, %v2427_v22  ;;  %v3232_v37 = vpop.f32.mrb[19].mxu0 }
 0x38f   : > { %3276 = vmatmul.mubr.msk.bf16.vlgmr.msra.gmra.mrb[16].mxu1 %vm2492_vm13, %v2693_v5 }
 0x390   : > { %3280 = vmatpush3.bf16.msra.mxu1 %v3372_v38  ;;  %3281 = vmatprep.mubr.msk.bf16.mxu1 %vm3391_vm8, %v5651_v42 }
 0x391   : > { %3285 = vmatprep.subr.bf16.mxu1 %v5651_v42 }
 0x3a6   : > { %v2435_v6 = vpop.f32.mrb[20].mxu0 }
 0x3a7   : > { %v3235_v46 = vpop.f32.mrb[21].mxu0 }
 0x3a8   : > { %v2438_v44 = vpop.f32.mrb[22].mxu0 }
 0x3a9   : > { %v2746_v61 = vpack.c.bf16 %v2438_v44, %v2435_v6  ;;  %v3236_v34 = vpop.f32.mrb[23].mxu0 }
 0x3ab   : > { %3282 = vmatmul.mubr.msk.bf16.vlgmr.msra.gmra.mrb[20].mxu1 %vm2492_vm13, %v2746_v61 }
 0x3ac   : > { %3286 = vmatpush3.bf16.msra.mxu1 %v3373_v35  ;;  %3287 = vmatprep.mubr.msk.bf16.mxu1 %vm3391_vm8, %v5651_v42 }
 0x3ad   : > { %3291 = vmatprep.subr.bf16.mxu1 %v5651_v42 }
 0x3be   : > { %v2443_v28 = vpop.f32.mrb[24].mxu0 }
 0x3bf   : > { %v3239_v36 = vpop.f32.mrb[25].mxu0 }
 0x3c0   : > { %v2446_v53 = vpop.f32.mrb[26].mxu0 }
 0x3c1   : > { %v2799_v21 = vpack.c.bf16 %v2446_v53, %v2443_v28  ;;  %v3240_v49 = vpop.f32.mrb[27].mxu0  ;;  %v3169_v28 = vld [vmem:[%s5282_s3] ss:$0 sm:$0xff] }
 0x3c3   : > { %3288 = vmatmul.mubr.msk.bf16.vlgmr.msra.gmra.mrb[24].mxu1 %vm2492_vm13, %v2799_v21 }
 0x3c4   : > { %3292 = vmatpush3.bf16.msra.mxu1 %v3374_v13  ;;  %3293 = vmatprep.mubr.msk.bf16.mxu1 %vm3391_vm8, %v5651_v42 }
 0x3c5   : > { %3297 = vmatprep.subr.bf16.mxu1 %v5651_v42 }
 0x3da   : > { %v2451_v32 = vpop.f32.mrb[28].mxu0 }
 0x3db   : > { %v3243_v60 = vpop.f32.mrb[29].mxu0 }
 0x3dc   : > { %v2454_v47 = vpop.f32.mrb[30].mxu0 }
 0x3dd   : > { %v2852_v58 = vpack.c.bf16 %v2454_v47, %v2451_v32  ;;  %v3244_v14 = vpop.f32.mrb[31].mxu0 }
 0x3df   : > { %3294 = vmatmul.mubr.msk.bf16.vlgmr.msra.gmra.mrb[28].mxu1 %vm2492_vm13, %v2852_v58 }
 0x3e0   : > { %3298 = vmatpush3.bf16.msra.mxu1 %v3375_v24  ;;  %3299 = vmatprep.mubr.msk.bf16.mxu1 %vm3391_vm8, %v5651_v42 }
 0x3e9   : > { %v2459_v57 = vpop.f32.mrb[32].mxu0 }
 0x3ea   : > { %v3247_v52 = vpop.f32.mrb[33].mxu0 }
 0x3eb   : > { %v2462_v1 = vpop.f32.mrb[34].mxu0 }
 0x3ec   : > { %v2905_v27 = vpack.c.bf16 %v2462_v1, %v2459_v57  ;;  %v3248_v12 = vpop.f32.mrb[35].mxu0 }
 0x3ee   : > { %3300 = vmatmul.mubr.msk.bf16.vlgmr.msra.gmra.mrb[32].mxu1 %vm2492_vm13, %v2905_v27 }
 0x402   : > { %v2530_v4 = vpop.f32.mrb[0].mxu1 }
 0x403   : > { %v3253_v19 = vpop.f32.mrb[1].mxu1 }
 0x404   : > { %v2533_v29 = vpop.f32.mrb[2].mxu1 }
 0x405   : > { %v3254_v56 = vpop.f32.mrb[3].mxu1 }
 0x40a   : > { %v2580_v54 = vpop.f32.mrb[4].mxu1 }
 0x40b   : > { %v2581_v3 = vadd.f32 %v2580_v54, %v2530_v4  ;;  %v3259_v0 = vpop.f32.mrb[5].mxu1 }
 0x40c   : > { %v2583_v62 = vpop.f32.mrb[6].mxu1 }
 0x40d   : > { %v2584_v17 = vadd.f32 %v2583_v62, %v2533_v29  ;;  %v3260_v45 = vpop.f32.mrb[7].mxu1 }
 0x42e   : > { %v2631_v20 = vpop.f32.mrb[8].mxu1 }
 0x42f   : > { %v2638_v59 = vadd.f32 %v2631_v20, %v2581_v3  ;;  %v3265_v42 = vpop.f32.mrb[9].mxu1 }
 0x430   : > { %v2634_v39 = vpop.f32.mrb[10].mxu1 }
 0x431   : > { %v2639_v2 = vadd.f32 %v2634_v39, %v2584_v17  ;;  %v3266_v11 = vpop.f32.mrb[11].mxu1 }
 0x44a   : > { %v2684_v43 = vpop.f32.mrb[12].mxu1 }
 0x44b   : > { %v2691_v30 = vadd.f32 %v2684_v43, %v2638_v59  ;;  %v3271_v18 = vpop.f32.mrb[13].mxu1 }
 0x44c   : > { %v2687_v40 = vpop.f32.mrb[14].mxu1 }
 0x44d   : > { %v2692_v10 = vadd.f32 %v2687_v40, %v2639_v2  ;;  %v3272_v63 = vpop.f32.mrb[15].mxu1 }
 0x462   : > { %v2737_v23 = vpop.f32.mrb[16].mxu1 }
 0x463   : > { %v2744_v55 = vadd.f32 %v2737_v23, %v2691_v30  ;;  %v3277_v16 = vpop.f32.mrb[17].mxu1 }
 0x464   : > { %v2740_v48 = vpop.f32.mrb[18].mxu1 }
 0x465   : > { %v2745_v9 = vadd.f32 %v2740_v48, %v2692_v10  ;;  %v3278_v26 = vpop.f32.mrb[19].mxu1 }
 0x47e   : > { %v2790_v25 = vpop.f32.mrb[20].mxu1 }
 0x47f   : > { %v2797_v51 = vadd.f32 %v2790_v25, %v2744_v55  ;;  %v3283_v41 = vpop.f32.mrb[21].mxu1 }
 0x480   : > { %v2793_v15 = vpop.f32.mrb[22].mxu1 }
 0x481   : > { %v2798_v31 = vadd.f32 %v2793_v15, %v2745_v9  ;;  %v3284_v50 = vpop.f32.mrb[23].mxu1 }
 0x496   : > { %v2843_v8 = vpop.f32.mrb[24].mxu1 }
 0x497   : > { %v2850_v22 = vadd.f32 %v2843_v8, %v2797_v51  ;;  %v3289_v7 = vpop.f32.mrb[25].mxu1 }
 0x498   : > { %v2846_v33 = vpop.f32.mrb[26].mxu1 }
 0x499   : > { %v2851_v38 = vadd.f32 %v2846_v33, %v2798_v31  ;;  %v3290_v5 = vpop.f32.mrb[27].mxu1 }
 0x4b2   : > { %v2896_v37 = vpop.f32.mrb[28].mxu1 }
 0x4b3   : > { %v2903_v6 = vadd.f32 %v2896_v37, %v2850_v22  ;;  %v3295_v46 = vpop.f32.mrb[29].mxu1 }
 0x4b4   : > { %v2899_v44 = vpop.f32.mrb[30].mxu1 }
 0x4b5   : > { %v2904_v35 = vadd.f32 %v2899_v44, %v2851_v38  ;;  %v3296_v61 = vpop.f32.mrb[31].mxu1 }
 0x4c1   : > { %v2949_v34 = vpop.f32.mrb[32].mxu1 }
 0x4c2   : > { %v2956_v36 = vadd.f32 %v2949_v34, %v2903_v6  ;;  %v3301_v53 = vpop.f32.mrb[33].mxu1 }
 0x4c3   : > { %v2952_v13 = vpop.f32.mrb[34].mxu1 }
 0x4c4   : > { %v2965_v21 = vadd.f32 %v3169_v28, %v2956_v36  ;;  %v2957_v49 = vadd.f32 %v2952_v13, %v2904_v35  ;;  %v3302_v32 = vpop.f32.mrb[35].mxu1 }
 0x4c6   : > { %v2967_v60 = vmax.f32 %v2965_v21, 0.0  ;;  %v2966_v47 = vadd.f32 %v3169_v28, %v2957_v49 }
 0x4c8   : > { %2969 = vst [vmem:[%s217_s25] sm:$0xff] %v2967_v60  ;;  %v2968_v24 = vmax.f32 %v2966_v47, 0.0 }
 0x4ca   : > { %2970 = vst [vmem:[%s217_s25 + $0x8] sm:$0xff] %v2968_v24 }
 0x4cb PF: > { %s14_s15 = sadd.s32 1, %s3386_s15  }
 0x4cc   : > { %p11_p4 = scmp.ge.s32.totalorder %s14_s15, 4  }
 0x4ce   :  { %13 = sbr.rel (!%p11_p4) target bundleno = 1 (0x1), region = 69 }

// kernel: deform_conv_rcnn_forward.11
= control target key start
LH: loop header
LB: loop body
LE: loop exit
PB: predicated region body
PF: predicated region fallthrough
CT: control target
= control target key end

     0   :  { %s6315_s0 = inlined_call_operand.vmem [shape: f32[2,128,2], index: 0, kind: input, shape index: {}]   ;;  %s6316_s1 = inlined_call_operand.vmem [shape: bf16[2,16,32], index: 1, kind: input, shape index: {}]   ;;  %s6317_s2 = inlined_call_operand.vmem [shape: bf16[512,128], index: 2, kind: input, shape index: {}]   ;;  %s6318_s3 = inlined_call_operand.vmem [shape: f32[1,128], index: 3, kind: input, shape index: {}]   ;;  %s6319_s4 = inlined_call_operand.vmem [shape: bf16[128,128], index: 4, kind: input, shape index: {}]   ;;  %s6320_s5 = inlined_call_operand.vmem [shape: f32[1,128], index: 5, kind: input, shape index: {}]   ;;  %s6321_s6 = inlined_call_operand.vmem [shape: bf16[128,128], index: 6, kind: input, shape index: {}]   ;;  %s6322_s7 = inlined_call_operand.vmem [shape: f32[1,128], index: 7, kind: input, shape index: {}]   ;;  %s6323_s8 = inlined_call_operand.hbm [shape: f32[2,8,128], index: 8, kind: output, shape index: {0}]   ;;  %s6324_s9 = inlined_call_operand.vmem [shape: f32[2,8,128], index: 9, kind: output, shape index: {1}]  }
   0x1   :  { %6444 = sst [smem:[#allocation71_spill]] %s6315_s0 }
   0x2   :  { %15 = vsyncpa [#allocation3], 0 }
   0x3   :  { %17 = vsyncpa [#allocation3 + $0x1], 0  ;;  %s4357_s30 = smov 0   ;;  %s4359_s10 = smov 0  }
   0x4   :  { %s4361_s11 = smov 0   ;;  %s4363_s12 = smov 0  }
   0x5 LB: > { %s4378_s13 = sadd.s32 4294967295, %s4300_s12   ;;  %s3671_s14 = sadd.s32 4294967294, %s4300_s12   ;;  %s4300_s12 = sphi %s4363_s12, %s6677_s12   ;;  %s4296_s11 = sphi %s4361_s11, %s6676_s11   ;;  %s4292_s10 = sphi %s4359_s10, %s6675_s10   ;;  %s4288_s30 = sphi %s4357_s30, %s6674_s30  }
   0x6   : > { %s4382_s15 = sadd.s32 1, %s4300_s12   ;;  %s208_s16 = sadd.s32 1, %s4296_s11 }
   0x7   : > { %s205_s17 = ssub.s32 %s4300_s12, %s4382_s15  ;;  %p218_p0 = scmp.ne.s32.totalorder %s4296_s11, %s4292_s10 }
   0x8   : > { %p206_p1 = scmp.eq.s32.totalorder %s205_s17, 0  ;;  %p219_p2 = scmp.eq.s32.totalorder %s4378_s13, 1 }
   0x9   : > { %p224_p3 = scmp.ne.s32.totalorder %s4292_s10, %s4288_s30  ;;  %p225_p4 = scmp.eq.s32.totalorder %s3671_s14, 1 }
   0xa   : > { %s4393_s18 = scalar_select %p206_p1, %s4296_s11, %s208_s16  }
   0xb   : > { %p4395_p5 = por %p219_p2, %p218_p0  ;;  %p4399_p6 = por %p225_p4, %p224_p3 }
   0xc   : > { %p3674_p7 = scmp.ge.s32.totalorder %s4300_s12, 1  ;;  %p303_p8 = scmp.lt.s32.totalorder %s4300_s12, 3 }
   0xe   : > { %p304_p9 = pnand %p3674_p7, %p303_p8 }
  0x10   : > { %307 = sbr.rel (%p304_p9) target bundleno = 1510 (0x5e6), region = 52 }
  0x17   : > { %p348_p10 = scmp.lt.s32.totalorder %s4378_s13, 1  ;;  %v6327_v0 = vmov 0   ;;  %s6447_s0 = sld [smem:[#allocation71_spill]]  ;;  %v6325_v49 = vmov 0.0  }
  0x18   : > { %4148 = vset.pattern.permute.xlu1 %v6327_v0  ;;  %4147 = vset.pattern.permute.xlu0 %v6327_v0  ;;  %s4303_s26 = smov 127   ;;  %s339_s29 = sand.u32 1, %s4292_s10  }
  0x19   : > { %s4409_s21 = scalar_select %p348_p10, %s4378_s13, 1  ;;  %3936 = vmatprep.subr.bf16.mxu1 %v6325_v49 }
  0x1a   : > { %s3675_s17 = sshll.u32 %s339_s29, 3  ;;  %s3838_s23 = sshll.u32 %s4378_s13, 7 }
  0x1b   : > { %s3841_s22 = sshll.u32 %s4409_s21, 7  ;;  %s6443_s27 = sshll.u32 %s4409_s21, 3 }
  0x1c   : > { %s357_s14 = scalar_lea.vmem %s6316_s1, %s6443_s27  ;;  %s6271_s28 = scalar_lea.hbm %s6323_s8, %s3838_s23 }
  0x1d   : > { %s4415_s25 = scalar_lea.vmem %s6447_s0, %s3841_s22  ;;  %s341_s22 = scalar_lea.vmem [#allocation2], %s3675_s17 }
  0x1e   : > { %v4418_v1 = vld [vmem:[%s4415_s25 + $0x18] sm:$0xff]  ;;  %v4421_v2 = vld [vmem:[%s4415_s25] sm:$0xff]  ;;  %v4424_v3 = vld [vmem:[%s4415_s25 + $0x8] sm:$0xff]  ;;  %s3573_s24 = sshll.u32 %s341_s22, 4  ;;  %s4306_s27 = smov [#allocation2]   ;;  %s3574_s24 = int_to_ptr.vmem [resolvable:$true] %s3573_s24 }
  0x1f   : > { %v385_v4 = vfloor.f32 %v4418_v1  ;;  %v382_v5 = vfloor.f32 %v4421_v2  ;;  %v383_v6 = vfloor.f32 %v4424_v3  ;;  %v4430_v7 = vld [vmem:[%s4415_s25 + $0x10] sm:$0xff]  ;;  %vm1871_vm0 = vcmp.gt.f32.partialorder %v4424_v3, -1.0  ;;  %v4548_v43 = vld [vmem:[%s4415_s25 + $0x28] sm:$0xff]  ;;  %v4551_v44 = vld [vmem:[%s4415_s25 + $0x20] sm:$0xff]  ;;  %s4238_s16 = scalar_lea.vmem %s3574_s24, 128  ;;  %s4242_s0 = sshll.u32 %s4306_s27, 4  ;;  %s4243_s0 = int_to_ptr.vmem [resolvable:$false] %s4242_s0 }
  0x20   : > { %v384_v8 = vfloor.f32 %v4430_v7  ;;  %vm1887_vm1 = vcmp.lt.f32.partialorder %v4424_v3, 4.0  ;;  %vm1870_vm3 = vcmp.gt.f32.partialorder %v4421_v2, -1.0  ;;  %vm1886_vm4 = vcmp.lt.f32.partialorder %v4421_v2, 4.0  ;;  %v4575_v56 = vld [vmem:[%s4415_s25 + $0x38] sm:$0xff]  ;;  %v4578_v57 = vld [vmem:[%s4415_s25 + $0x30] sm:$0xff]  ;;  %p4239_p11 = scmp.ne.s32.totalorder %s3574_s24, %s4238_s16  ;;  %s4244_s17 = scalar_lea.vmem %s4243_s0, 256 }
  0x21   : > { %v513_v9 = vmax.f32 %v385_v4, 0.0  ;;  %v510_v10 = vmax.f32 %v382_v5, 0.0  ;;  %v862_v11 = vadd.f32 1.0, %v382_v5  ;;  %v511_v12 = vmax.f32 %v383_v6, 0.0  ;;  %vm4493_vm2 = vmand %vm1871_vm0, %vm1887_vm1  ;;  %p4245_p0 = scmp.lt.s32.totalorder %s3574_s24, %s4243_s0  ;;  %p4246_p1 = scmp.lt.s32.totalorder %s4244_s17, %s4238_s16 }
  0x22   : > { %v863_v13 = vadd.f32 1.0, %v383_v6  ;;  %v512_v17 = vmax.f32 %v384_v8, 0.0  ;;  %v865_v20 = vadd.f32 1.0, %v385_v4  ;;  %v864_v21 = vadd.f32 1.0, %v384_v8  ;;  %vm4515_vm7 = vmand %vm1870_vm3, %vm1886_vm4  ;;  %p4240_p12 = pnand %p4239_p11, %p4395_p5 }
  0x23   : > { %v4433_v14 = vmin.f32 %v513_v9, 3.0  ;;  %v4435_v15 = vmin.f32 %v510_v10, 3.0  ;;  %v958_v16 = vmax.f32 %v862_v11, 0.0  ;;  %v4441_v18 = vmin.f32 %v511_v12, 3.0  ;;  %p4247_p2 = por %p4246_p1, %p4245_p0 }
  0x24   : > { %v959_v19 = vmax.f32 %v863_v13, 0.0  ;;  %v4451_v24 = vmin.f32 %v512_v17, 3.0  ;;  %v961_v25 = vmax.f32 %v865_v20, 0.0  ;;  %v960_v26 = vmax.f32 %v864_v21, 0.0  ;;  %p4241_p13 = pneg %p4240_p12 }
  0x25   : > { %580 = vrot.lane.b32.xlu1 %v4433_v14, %s4303_s26  ;;  %574 = vrot.lane.b32.xlu0 %v4435_v15, %s4303_s26  ;;  %v4443_v22 = vmin.f32 %v958_v16, 3.0  ;;  %v4454_v27 = vsub.f32 %v4421_v2, %v382_v5  ;;  %v4465_v30 = vsub.f32 %v4424_v3, %v383_v6  ;;  %v4480_v33 = vsub.f32 %v4418_v1, %v385_v4 }
  0x26   : > { %v4449_v23 = vmin.f32 %v959_v19, 3.0  ;;  %v4460_v28 = vmin.f32 %v961_v25, 3.0  ;;  %v4462_v29 = vmin.f32 %v960_v26, 3.0  ;;  %v4487_v34 = vsub.f32 %v4430_v7, %v384_v8  ;;  %p4248_p3 = pnand %p4247_p2, %p4241_p13 }
  0x27   : > { %v4472_v31 = vsub.f32 1.0, %v4465_v30  ;;  %v4475_v32 = vsub.f32 1.0, %v4454_v27  ;;  %v4504_v36 = vsub.f32 1.0, %v4480_v33  ;;  %vm1873_vm5 = vcmp.gt.f32.partialorder %v4418_v1, -1.0 }
  0x28   : > { %v4507_v37 = vsub.f32 1.0, %v4487_v34  ;;  %vm1889_vm6 = vcmp.lt.f32.partialorder %v4418_v1, 4.0  ;;  %vm1872_vm9 = vcmp.gt.f32.partialorder %v4430_v7, -1.0  ;;  %vm1888_vm10 = vcmp.lt.f32.partialorder %v4430_v7, 4.0 }
  0x29   : > { %1006 = vrot.lane.b32.xlu1 %v4443_v22, %s4303_s26  ;;  %576 = vrot.lane.b32.xlu0 %v4441_v18, %s4303_s26  ;;  %vm4521_vm8 = vmand %vm1873_vm5, %vm1889_vm6  ;;  %v1919_v41 = vsel %vm1871_vm0, 1, %v6327_v0  ;;  %v1918_v42 = vsel %vm1870_vm3, 1, %v6327_v0  ;;  %v1921_v45 = vsel %vm1873_vm5, 1, %v6327_v0  ;;  %v1920_v46 = vsel %vm1872_vm9, 1, %v6327_v0 }
  0x2a   : > { %vm4533_vm11 = vmand %vm1872_vm9, %vm1888_vm10  ;;  %v387_v47 = vfloor.f32 %v4548_v43  ;;  %v386_v48 = vfloor.f32 %v4551_v44  ;;  %v1999_v50 = vsel %vm1887_vm1, 1, %v6327_v0  ;;  %v1998_v51 = vsel %vm1886_vm4, 1, %v6327_v0 }
  0x2b   : > { %v2001_v52 = vsel %vm1889_vm6, 1, %v6327_v0  ;;  %v2000_v53 = vsel %vm1888_vm10, 1, %v6327_v0  ;;  %v389_v62 = vfloor.f32 %v4575_v56  ;;  %v388_v63 = vfloor.f32 %v4578_v57 }
  0x2c   : > { %v515_v54 = vmax.f32 %v387_v47, 0.0  ;;  %v514_v55 = vmax.f32 %v386_v48, 0.0  ;;  %v867_v58 = vadd.f32 1.0, %v387_v47  ;;  %v866_v59 = vadd.f32 1.0, %v386_v48 }
  0x2d   : > { %1008 = vrot.lane.b32.xlu1 %v4449_v23, %s4303_s26  ;;  %578 = vrot.lane.b32.xlu0 %v4451_v24, %s4303_s26  ;;  %v517_v3 = vmax.f32 %v389_v62, 0.0  ;;  %v516_v4 = vmax.f32 %v388_v63, 0.0  ;;  %v869_v7 = vadd.f32 1.0, %v389_v62  ;;  %v868_v8 = vadd.f32 1.0, %v388_v63 }
  0x2e   : > { %v4582_v60 = vmin.f32 %v515_v54, 3.0  ;;  %v4584_v61 = vmin.f32 %v514_v55, 3.0  ;;  %v963_v1 = vmax.f32 %v867_v58, 0.0  ;;  %v962_v2 = vmax.f32 %v866_v59, 0.0  ;;  %v4705_v54 = vld [vmem:[%s4415_s25 + $0x48] sm:$0xff]  ;;  %v4708_v55 = vld [vmem:[%s4415_s25 + $0x40] sm:$0xff] }
  0x2f   : > { %v4602_v9 = vmin.f32 %v517_v3, 3.0  ;;  %v4604_v10 = vmin.f32 %v516_v4, 3.0  ;;  %v965_v11 = vmax.f32 %v869_v7, 0.0  ;;  %v964_v12 = vmax.f32 %v868_v8, 0.0  ;;  %6475 = vst [vmem:[#allocation16_spill] sm:$0xff] %v4705_v54  ;;  %6476 = vst [vmem:[#allocation17_spill] sm:$0xff] %v4708_v55 }
  0x30   : > { %v4594_v5 = vmin.f32 %v963_v1, 3.0  ;;  %v4596_v6 = vmin.f32 %v962_v2, 3.0  ;;  %v4615_v17 = vsub.f32 %v4548_v43, %v387_v47  ;;  %v4618_v19 = vsub.f32 %v4551_v44, %v386_v48  ;;  %v4723_v7 = vld [vmem:[%s4415_s25 + $0x58] sm:$0xff]  ;;  %v4726_v8 = vld [vmem:[%s4415_s25 + $0x50] sm:$0xff] }
  0x31   : > { %1012 = vrot.lane.b32.xlu1 %v4460_v28, %s4303_s26  ;;  %1010 = vrot.lane.b32.xlu0 %v4462_v29, %s4303_s26  ;;  %v4610_v13 = vmin.f32 %v965_v11, 3.0  ;;  %v4612_v16 = vmin.f32 %v964_v12, 3.0  ;;  %vm1875_vm12 = vcmp.gt.f32.partialorder %v4548_v43, -1.0  ;;  %vm1891_vm13 = vcmp.lt.f32.partialorder %v4548_v43, 4.0  ;;  %6477 = vst [vmem:[#allocation18_spill] sm:$0xff] %v4723_v7  ;;  %6478 = vst [vmem:[#allocation19_spill] sm:$0xff] %v4726_v8 }
  0x32   : > { %6456 = vst [vmem:[#allocation5_spill] sm:$0xff] %v4594_v5  ;;  %6457 = vst [vmem:[#allocation6_spill] sm:$0xff] %v4596_v6  ;;  %v4625_v20 = vsub.f32 1.0, %v4615_v17  ;;  %v4628_v21 = vsub.f32 1.0, %v4618_v19  ;;  %v4637_v25 = vsub.f32 %v4575_v56, %v389_v62  ;;  %v4640_v26 = vsub.f32 %v4578_v57, %v388_v63 }
  0x33   : > { %6458 = vst [vmem:[#allocation7_spill] sm:$0xff] %v4610_v13  ;;  %6459 = vst [vmem:[#allocation8_spill] sm:$0xff] %v4612_v16  ;;  %vm1874_vm15 = vcmp.gt.f32.partialorder %v4551_v44, -1.0  ;;  %vm1890_vm0 = vcmp.lt.f32.partialorder %v4551_v44, 4.0  ;;  %vm1877_vm1 = vcmp.gt.f32.partialorder %v4575_v56, -1.0  ;;  %vm1893_vm3 = vcmp.lt.f32.partialorder %v4575_v56, 4.0 }
  0x34   : > { %6460 = vst [vmem:[#allocation9_spill] sm:$0xff] %v4615_v17  ;;  %6461 = vst [vmem:[#allocation10_spill] sm:$0xff] %v4618_v19  ;;  %v6471_v47 = vmov 0  ;;  %vm1876_vm6 = vcmp.gt.f32.partialorder %v4578_v57, -1.0  ;;  %vm1892_vm9 = vcmp.lt.f32.partialorder %v4578_v57, 4.0  ;;  %v6473_v48 = vmov 0 }
  0x35   : > { %448 = vrot.lane.b32.xlu1 %v4472_v31, %s4303_s26  ;;  %446 = vrot.lane.b32.xlu0 %v4475_v32, %s4303_s26  ;;  %6462 = vst [vmem:[#allocation11_spill] sm:$0xff] %v4628_v21  ;;  %6463 = vst [vmem:[#allocation12_spill] sm:$0xff] %v4637_v25  ;;  %v391_v58 = vfloor.f32 %v4705_v54  ;;  %v390_v59 = vfloor.f32 %v4708_v55  ;;  %v2003_v62 = vsel %vm1891_vm13, 1, %v6327_v0  ;;  %v2002_v63 = vsel %vm1890_vm0, 1, %v6327_v0 }
  0x36   : > { %6464 = vst [vmem:[#allocation13_spill] sm:$0xff] %v4640_v26  ;;  %vm4646_vm14 = vmand %vm1875_vm12, %vm1891_vm13  ;;  %v2005_v43 = vsel %vm1893_vm3, 1, %v6327_v0  ;;  %v2004_v44 = vsel %vm1892_vm9, 1, %v6327_v0  ;;  %v393_v11 = vfloor.f32 %v4723_v7  ;;  %v392_v12 = vfloor.f32 %v4726_v8 }
  0x37   : > { %vm4668_vm4 = vmand %vm1874_vm15, %vm1890_vm0  ;;  %v519_v1 = vmax.f32 %v391_v58, 0.0  ;;  %v518_v2 = vmax.f32 %v390_v59, 0.0  ;;  %v871_v3 = vadd.f32 1.0, %v391_v58  ;;  %v870_v4 = vadd.f32 1.0, %v390_v59 }
  0x38   : > { %vm4674_vm5 = vmand %vm1877_vm1, %vm1893_vm3  ;;  %v521_v56 = vmax.f32 %v393_v11, 0.0  ;;  %v4767_v49 = vsub.f32 %v4705_v54, %v391_v58  ;;  %v4787_v58 = vsub.f32 %v4723_v7, %v393_v11  ;;  %vm6374_vm13 = vcmp.gt.f32.partialorder %v4708_v55, -1.0 }
  0x39   : > { %896 = vrot.lane.b32.xlu1 %v4465_v30, %s4303_s26  ;;  %894 = vrot.lane.b32.xlu0 %v4454_v27, %s4303_s26  ;;  %v6472_v47 = vsel %vm4674_vm5, 4294967295, %v6471_v47  ;;  %vm4686_vm10 = vmand %vm1876_vm6, %vm1892_vm9  ;;  %vm6370_vm0 = vcmp.gt.f32.partialorder %v4726_v8, -1.0  ;;  %vm6375_vm3 = vcmp.lt.f32.partialorder %v4708_v55, 4.0  ;;  %vm6371_vm9 = vcmp.lt.f32.partialorder %v4726_v8, 4.0 }
  0x3a   : > { %v6474_v48 = vsel %vm4686_vm10, 4294967295, %v6473_v48  ;;  %6487 = vst [vmem:[#allocation28_spill] sm:$0xff] %v4767_v49  ;;  %6491 = vst [vmem:[#allocation32_spill] sm:$0xff] %v4787_v58 }
  0x3d   : > { %452 = vrot.lane.b32.xlu1 %v4504_v36, %s4303_s26  ;;  %450 = vrot.lane.b32.xlu0 %v4507_v37, %s4303_s26 }
  0x41   : > { %900 = vrot.lane.b32.xlu1 %v4480_v33, %s4303_s26  ;;  %898 = vrot.lane.b32.xlu0 %v4487_v34, %s4303_s26 }
  0x45   : > { %1936 = vrot.lane.b32.xlu1 %v1919_v41, %s4303_s26  ;;  %1934 = vrot.lane.b32.xlu0 %v1918_v42, %s4303_s26  ;;  %v4657_v42 = vsub.f32 1.0, %v4637_v25 }
  0x47   : > { %6467 = vst [vmem:[#allocation14_spill] sm:$0xff] %v4657_v42 }
  0x49   : > { %1940 = vrot.lane.b32.xlu1 %v1921_v45, %s4303_s26  ;;  %1938 = vrot.lane.b32.xlu0 %v1920_v46, %s4303_s26  ;;  %v4660_v45 = vsub.f32 1.0, %v4640_v26 }
  0x4b   : > { %6468 = vst [vmem:[#allocation15_spill] sm:$0xff] %v4660_v45 }
  0x4d   : > { %2016 = vrot.lane.b32.xlu1 %v1999_v50, %s4303_s26  ;;  %2014 = vrot.lane.b32.xlu0 %v1998_v51, %s4303_s26  ;;  %v1923_v50 = vsel %vm1875_vm12, 1, %v6327_v0  ;;  %v1922_v51 = vsel %vm1874_vm15, 1, %v6327_v0  ;;  %vm6376_vm12 = vcmp.gt.f32.partialorder %v4705_v54, -1.0  ;;  %vm6372_vm15 = vcmp.gt.f32.partialorder %v4723_v7, -1.0 }
  0x51   : > { %2020 = vrot.lane.b32.xlu1 %v2001_v52, %s4303_s26  ;;  %2018 = vrot.lane.b32.xlu0 %v2000_v53, %s4303_s26  ;;  %v1925_v52 = vsel %vm1877_vm1, 1, %v6327_v0  ;;  %v1924_v53 = vsel %vm1876_vm6, 1, %v6327_v0  ;;  %vm6377_vm1 = vcmp.lt.f32.partialorder %v4705_v54, 4.0  ;;  %vm6373_vm6 = vcmp.lt.f32.partialorder %v4723_v7, 4.0 }
  0x52   : > { %v543_v54 = vmul.f32 4.0, %v4441_v18 }
  0x55   : > { %584 = vrot.lane.b32.xlu1 %v4582_v60, %s4303_s26  ;;  %582 = vrot.lane.b32.xlu0 %v4584_v61, %s4303_s26 }
  0x59   : > { %1016 = vrot.lane.b32.xlu1 %v4594_v5, %s4303_s26  ;;  %1014 = vrot.lane.b32.xlu0 %v4596_v6, %s4303_s26 }
  0x5d   : > { %588 = vrot.lane.b32.xlu1 %v4602_v9, %s4303_s26  ;;  %586 = vrot.lane.b32.xlu0 %v4604_v10, %s4303_s26 }
  0x61   : > { %1020 = vrot.lane.b32.xlu1 %v4610_v13, %s4303_s26  ;;  %1018 = vrot.lane.b32.xlu0 %v4612_v16, %s4303_s26 }
  0x65   : > { %456 = vrot.lane.b32.xlu1 %v4625_v20, %s4303_s26  ;;  %454 = vrot.lane.b32.xlu0 %v4628_v21, %s4303_s26 }
  0x69   : > { %904 = vrot.lane.b32.xlu1 %v4615_v17, %s4303_s26  ;;  %902 = vrot.lane.b32.xlu0 %v4618_v19, %s4303_s26 }
  0x6d   : > { %460 = vrot.lane.b32.xlu1 %v4657_v42, %s4303_s26  ;;  %458 = vrot.lane.b32.xlu0 %v4660_v45, %s4303_s26 }
  0x71   : > { %908 = vrot.lane.b32.xlu1 %v4637_v25, %s4303_s26  ;;  %906 = vrot.lane.b32.xlu0 %v4640_v26, %s4303_s26 }
  0x75   : > { %1944 = vrot.lane.b32.xlu1 %v1923_v50, %s4303_s26  ;;  %1942 = vrot.lane.b32.xlu0 %v1922_v51, %s4303_s26  ;;  %v4738_v50 = vmin.f32 %v519_v1, 3.0  ;;  %v4740_v51 = vmin.f32 %v518_v2, 3.0  ;;  %v4754_v1 = vmin.f32 %v521_v56, 3.0  ;;  %v4770_v56 = vsub.f32 %v4708_v55, %v390_v59 }
  0x76   : > { %v4790_v59 = vsub.f32 %v4726_v8, %v392_v12  ;;  %v542_v55 = vmul.f32 4.0, %v4435_v15  ;;  %v545_v15 = vmul.f32 4.0, %v4433_v14 }
  0x77   : > { %6479 = vst [vmem:[#allocation20_spill] sm:$0xff] %v4738_v50  ;;  %6480 = vst [vmem:[#allocation21_spill] sm:$0xff] %v4740_v51 }
  0x78   : > { %6483 = vst [vmem:[#allocation24_spill] sm:$0xff] %v4754_v1  ;;  %6488 = vst [vmem:[#allocation29_spill] sm:$0xff] %v4770_v56  ;;  %v4804_v0 = vsub.f32 1.0, %v4790_v59 }
  0x79   : > { %1948 = vrot.lane.b32.xlu1 %v1925_v52, %s4303_s26  ;;  %1946 = vrot.lane.b32.xlu0 %v1924_v53, %s4303_s26  ;;  %v967_v52 = vmax.f32 %v871_v3, 0.0  ;;  %v966_v53 = vmax.f32 %v870_v4, 0.0  ;;  %6492 = vst [vmem:[#allocation33_spill] sm:$0xff] %v4790_v59 }
  0x7a   : > { %6494 = vst [vmem:[#allocation35_spill] sm:$0xff] %v4804_v0 }
  0x7b   : > { %v4746_v57 = vmin.f32 %v967_v52, 3.0 }
  0x7d   : > { %2024 = vrot.lane.b32.xlu1 %v2003_v62, %s4303_s26  ;;  %2022 = vrot.lane.b32.xlu0 %v2002_v63, %s4303_s26  ;;  %v520_v62 = vmax.f32 %v392_v12, 0.0  ;;  %6481 = vst [vmem:[#allocation22_spill] sm:$0xff] %v4746_v57  ;;  %v4748_v63 = vmin.f32 %v966_v53, 3.0 }
  0x7f   : > { %6482 = vst [vmem:[#allocation23_spill] sm:$0xff] %v4748_v63  ;;  %v4756_v2 = vmin.f32 %v520_v62, 3.0  ;;  %v4777_v62 = vsub.f32 1.0, %v4767_v49 }
  0x81   : > { %2028 = vrot.lane.b32.xlu1 %v2005_v43, %s4303_s26  ;;  %2026 = vrot.lane.b32.xlu0 %v2004_v44, %s4303_s26  ;;  %v873_v43 = vadd.f32 1.0, %v393_v11  ;;  %v872_v44 = vadd.f32 1.0, %v392_v12  ;;  %6484 = vst [vmem:[#allocation25_spill] sm:$0xff] %v4756_v2  ;;  %6489 = vst [vmem:[#allocation30_spill] sm:$0xff] %v4777_v62 }
  0x83   : > { %v969_v3 = vmax.f32 %v873_v43, 0.0  ;;  %v968_v4 = vmax.f32 %v872_v44, 0.0  ;;  %v4780_v43 = vsub.f32 1.0, %v4770_v56 }
  0x85   : > { %592 = vrot.lane.b32.xlu1 %v4738_v50, %s4303_s26  ;;  %590 = vrot.lane.b32.xlu0 %v4740_v51, %s4303_s26  ;;  %v4762_v52 = vmin.f32 %v969_v3, 3.0  ;;  %v4764_v53 = vmin.f32 %v968_v4, 3.0  ;;  %6490 = vst [vmem:[#allocation31_spill] sm:$0xff] %v4780_v43  ;;  %v4801_v4 = vsub.f32 1.0, %v4787_v58 }
  0x87   : > { %6485 = vst [vmem:[#allocation26_spill] sm:$0xff] %v4762_v52  ;;  %6486 = vst [vmem:[#allocation27_spill] sm:$0xff] %v4764_v53 }
  0x88   : > { %6493 = vst [vmem:[#allocation34_spill] sm:$0xff] %v4801_v4 }
  0x89   : > { %1024 = vrot.lane.b32.xlu1 %v4746_v57, %s4303_s26  ;;  %1022 = vrot.lane.b32.xlu0 %v4748_v63, %s4303_s26 }
  0x8d   : > { %596 = vrot.lane.b32.xlu1 %v4754_v1, %s4303_s26  ;;  %594 = vrot.lane.b32.xlu0 %v4756_v2, %s4303_s26 }
  0x91   : > { %1028 = vrot.lane.b32.xlu1 %v4762_v52, %s4303_s26  ;;  %1026 = vrot.lane.b32.xlu0 %v4764_v53, %s4303_s26 }
  0x95   : > { %464 = vrot.lane.b32.xlu1 %v4777_v62, %s4303_s26  ;;  %462 = vrot.lane.b32.xlu0 %v4780_v43, %s4303_s26 }
  0x97   : > { %v4792_v44 = vpop.permute.xlu1 %580  ;;  %v4794_v3 = vpop.permute.xlu0 %574 }
  0x98   : > { %v625_v25 = vadd.f32 %v4792_v44, %v545_v15 }
  0x99   : > { %912 = vrot.lane.b32.xlu1 %v4767_v49, %s4303_s26  ;;  %910 = vrot.lane.b32.xlu0 %v4770_v56, %s4303_s26  ;;  %v6495_v56 = vmov 0  }
  0x9b   : > { %v4806_v11 = vpop.permute.xlu1 %1006  ;;  %v4808_v12 = vpop.permute.xlu0 %576 }
  0x9c   : > { %v1054_v18 = vadd.f32 %v4806_v11, %v542_v55 }
  0x9d   : > { %468 = vrot.lane.b32.xlu1 %v4801_v4, %s4303_s26  ;;  %466 = vrot.lane.b32.xlu0 %v4804_v0, %s4303_s26  ;;  %v1927_v4 = vsel %vm6376_vm12, 1, %v6495_v56  ;;  %v1926_v0 = vsel %vm6374_vm13, 1, %v6495_v56 }
  0x9f   : > { %v4814_v49 = vpop.permute.xlu1 %1008  ;;  %v4816_v53 = vpop.permute.xlu0 %578 }
  0xa0   : > { %v1055_v51 = vadd.f32 %v4814_v49, %v543_v54 }
  0xa1   : > { %916 = vrot.lane.b32.xlu1 %v4787_v58, %s4303_s26  ;;  %914 = vrot.lane.b32.xlu0 %v4790_v59, %s4303_s26  ;;  %v1929_v58 = vsel %vm6372_vm15, 1, %v6495_v56  ;;  %v1928_v59 = vsel %vm6370_vm0, 1, %v6495_v56 }
  0xa3   : > { %v4830_v52 = vpop.permute.xlu1 %1012  ;;  %v4832_v63 = vpop.permute.xlu0 %1010 }
  0xa4   : > { %v1057_v14 = vadd.f32 %v4830_v52, %v545_v15 }
  0xa5   : > { %1952 = vrot.lane.b32.xlu1 %v1927_v4, %s4303_s26  ;;  %1950 = vrot.lane.b32.xlu0 %v1926_v0, %s4303_s26  ;;  %v2007_v0 = vsel %vm6377_vm1, 1, %v6495_v56  ;;  %v2006_v4 = vsel %vm6375_vm3, 1, %v6495_v56 }
  0xa7   : > { %v4844_v57 = vpop.permute.xlu1 %448  ;;  %v4846_v62 = vpop.permute.xlu0 %446 }
  0xa8   : > { %v495_v35 = vmul.f32 %v4844_v57, %v4472_v31 }
  0xa9   : > { %1956 = vrot.lane.b32.xlu1 %v1929_v58, %s4303_s26  ;;  %1954 = vrot.lane.b32.xlu0 %v1928_v59, %s4303_s26  ;;  %v2009_v58 = vsel %vm6373_vm6, 1, %v6495_v56  ;;  %v2008_v59 = vsel %vm6371_vm9, 1, %v6495_v56 }
  0xab   : > { %v4858_v43 = vpop.permute.xlu1 %896  ;;  %v4860_v1 = vpop.permute.xlu0 %894 }
  0xac   : > { %v943_v40 = vmul.f32 %v4858_v43, %v4472_v31  ;;  %v942_v15 = vmul.f32 %v4860_v1, %v4475_v32 }
  0xad   : > { %2032 = vrot.lane.b32.xlu1 %v2007_v0, %s4303_s26  ;;  %2030 = vrot.lane.b32.xlu0 %v2006_v4, %s4303_s26  ;;  %v622_v0 = vadd.f32 %v4794_v3, %v542_v55  ;;  %v623_v4 = vadd.f32 %v4808_v12, %v543_v54 }
  0xaf   : > { %v4874_v2 = vpop.permute.xlu1 %452  ;;  %v4876_v50 = vpop.permute.xlu0 %450 }
  0xb1   : > { %2036 = vrot.lane.b32.xlu1 %v2009_v58, %s4303_s26  ;;  %2034 = vrot.lane.b32.xlu0 %v2008_v59, %s4303_s26  ;;  %v544_v58 = vmul.f32 4.0, %v4451_v24 }
  0xb3   : > { %v4882_v7 = vpop.permute.xlu1 %900  ;;  %v4884_v8 = vpop.permute.xlu0 %898  ;;  %v624_v19 = vadd.f32 %v4816_v53, %v544_v58  ;;  %v1056_v54 = vadd.f32 %v4832_v63, %v544_v58 }
  0xb5   : > { %645 = vperm.xlu1 %4148, %v623_v4   ;;  %640 = vperm.xlu0 %4147, %v622_v0   ;;  %v4915_v0 = vmul.f32 4.0, %v4443_v22  ;;  %v4921_v4 = vmul.f32 4.0, %v4449_v23 }
  0xb7   : > { %v1937_v26 = vpop.permute.xlu1 %1936  ;;  %v1935_v59 = vpop.permute.xlu0 %1934  ;;  %v1342_v23 = vadd.f32 %v4915_v0, %v4794_v3  ;;  %v1343_v31 = vadd.f32 %v4921_v4, %v4808_v12 }
  0xb8   : > { %vm1967_vm0 = vcmp.ne.s32.totalorder %v1937_v26, 0  ;;  %vm1966_vm9 = vcmp.ne.s32.totalorder %v1935_v59, 0  ;;  %v494_v26 = vmul.f32 %v4846_v62, %v4475_v32 }
  0xb9   : > { %1072 = vperm.xlu1 %4148, %v1054_v18   ;;  %1077 = vperm.xlu0 %4147, %v1055_v51   ;;  %vm1983_vm15 = vmand %vm4493_vm2, %vm1967_vm0 }
  0xba   : > { %vm1982_vm6 = vmand %vm4515_vm7, %vm1966_vm9 }
  0xbb   : > { %v1941_v17 = vpop.permute.xlu1 %1940  ;;  %v1939_v16 = vpop.permute.xlu0 %1938 }
  0xbc   : > { %vm1969_vm13 = vcmp.ne.s32.totalorder %v1941_v17, 0  ;;  %vm1968_vm1 = vcmp.ne.s32.totalorder %v1939_v16, 0 }
  0xbd   : > { %650 = vperm.xlu1 %4148, %v624_v19   ;;  %655 = vperm.xlu0 %4147, %v625_v25   ;;  %v6496_v19 = vmov 0.0   ;;  %vm1985_vm2 = vmand %vm4521_vm8, %vm1969_vm13 }
  0xbe   : > { %vm1984_vm7 = vmand %vm4533_vm11, %vm1968_vm1 }
  0xbf   : > { %v2017_v24 = vpop.permute.xlu1 %2016  ;;  %v2015_v55 = vpop.permute.xlu0 %2014 }
  0xc0   : > { %vm2047_vm3 = vcmp.ne.s32.totalorder %v2017_v24, 0  ;;  %vm2046_vm12 = vcmp.ne.s32.totalorder %v2015_v55, 0  ;;  %v4948_v24 = vld [vmem:[%s4415_s25 + $0x60] sm:$0xff]  ;;  %v497_v55 = vmul.f32 %v4874_v2, %v4504_v36 }
  0xc1   : > { %vm2063_vm10 = vmand %vm1983_vm15, %vm2047_vm3  ;;  %1082 = vperm.xlu1 %4148, %v1056_v54   ;;  %1087 = vperm.xlu0 %4147, %v1057_v14   ;;  %v4945_v54 = vld [vmem:[%s4415_s25 + $0x68] sm:$0xff]  ;;  %6498 = vst [vmem:[#allocation37_spill] sm:$0xff] %v4948_v24 }
  0xc2   : > { %v4899_v25 = vsel %vm2063_vm10, 1.0, %v6496_v19  ;;  %vm2062_vm5 = vmand %vm1982_vm6, %vm2046_vm12  ;;  %6497 = vst [vmem:[#allocation36_spill] sm:$0xff] %v4945_v54  ;;  %v4959_v12 = vfloor.f32 %v4945_v54 }
  0xc3   : > { %v4908_v38 = vsel %vm2062_vm5, 1.0, %v6496_v19  ;;  %v2021_v16 = vpop.permute.xlu1 %2020  ;;  %v2019_v17 = vpop.permute.xlu0 %2018 }
  0xc4   : > { %vm2049_vm10 = vcmp.ne.s32.totalorder %v2021_v16, 0  ;;  %vm2048_vm12 = vcmp.ne.s32.totalorder %v2019_v17, 0  ;;  %v4962_v16 = vfloor.f32 %v4948_v24  ;;  %v4965_v17 = vmul.f32 4.0, %v4460_v28 }
  0xc5   : > { %vm2065_vm15 = vmand %vm1985_vm2, %vm2049_vm10  ;;  %773 = vperm.xlu0 %4147, %v495_v35   ;;  %768 = vperm.xlu1 %4148, %v494_v26   ;;  %v496_v35 = vmul.f32 %v4876_v50, %v4507_v37  ;;  %v875_v59 = vadd.f32 1.0, %v4959_v12  ;;  %vm6517_vm10 = vnez %v6474_v48 }
  0xc6   : > { %v4918_v39 = vsel %vm2065_vm15, 1.0, %v6496_v19  ;;  %vm2064_vm8 = vmand %vm1984_vm7, %vm2048_vm12  ;;  %v522_v28 = vmax.f32 %v4962_v16, 0.0  ;;  %v1617_v48 = vadd.f32 %v4965_v17, %v4830_v52 }
  0xc7   : > { %v4928_v18 = vsel %vm2064_vm8, 1.0, %v6496_v19  ;;  %v4930_v22 = vpop.permute.xlu1 %584  ;;  %v4932_v58 = vpop.permute.xlu0 %582  ;;  %v971_v45 = vmax.f32 %v875_v59, 0.0 }
  0xc8   : > { %v4992_v13 = vmin.f32 %v522_v28, 3.0  ;;  %v5010_v28 = vld [vmem:[%s4415_s25 + $0x70] sm:$0xff] }
  0xc9   : > { %1205 = vperm.xlu0 %4147, %v943_v40   ;;  %1200 = vperm.xlu1 %4148, %v942_v15   ;;  %v4968_v40 = vmul.f32 4.0, %v4462_v29  ;;  %v945_v15 = vmul.f32 %v4882_v7, %v4504_v36  ;;  %v874_v29 = vadd.f32 1.0, %v4962_v16  ;;  %v1345_v36 = vadd.f32 %v4965_v17, %v4792_v44  ;;  %6507 = vst [vmem:[#allocation46_spill] sm:$0xff] %v5010_v28 }
  0xca   : > { %6501 = vst [vmem:[#allocation40_spill] sm:$0xff] %v4992_v13 }
  0xcb   : > { %v4940_v14 = vpop.permute.xlu1 %1016  ;;  %v4942_v32 = vpop.permute.xlu0 %1014  ;;  %v970_v42 = vmax.f32 %v874_v29, 0.0 }
  0xcd   : > { %1365 = vperm.xlu0 %4147, %v1343_v31   ;;  %1360 = vperm.xlu1 %4148, %v1342_v23   ;;  %v944_v23 = vmul.f32 %v4884_v8, %v4507_v37  ;;  %v1344_v37 = vadd.f32 %v4968_v40, %v4816_v53  ;;  %v5002_v53 = vmin.f32 %v971_v45, 3.0  ;;  %v1311_v45 = vmul.f32 %v4844_v57, %v4465_v30 }
  0xce   : > { %v1614_v57 = vadd.f32 %v4915_v0, %v4806_v11 }
  0xcf   : > { %v4954_v3 = vpop.permute.xlu1 %588  ;;  %v4956_v26 = vpop.permute.xlu0 %586  ;;  %6504 = vst [vmem:[#allocation43_spill] sm:$0xff] %v5002_v53 }
  0xd1   : > { %783 = vperm.xlu0 %4147, %v497_v55   ;;  %778 = vperm.xlu1 %4148, %v496_v35   ;;  %v523_v35 = vmax.f32 %v4959_v12, 0.0 }
  0xd3   : > { %v4974_v31 = vpop.permute.xlu1 %1020  ;;  %v4976_v55 = vpop.permute.xlu0 %1018 }
  0xd5   : > { %1215 = vperm.xlu0 %4147, %v945_v15   ;;  %1210 = vperm.xlu1 %4148, %v944_v23   ;;  %v4990_v23 = vmin.f32 %v523_v35, 3.0  ;;  %v5007_v35 = vld [vmem:[%s4415_s25 + $0x78] sm:$0xff] }
  0xd6   : > { %6506 = vst [vmem:[#allocation45_spill] sm:$0xff] %v5007_v35 }
  0xd7   : > { %v4986_v51 = vpop.permute.xlu1 %456  ;;  %v4988_v15 = vpop.permute.xlu0 %454  ;;  %6500 = vst [vmem:[#allocation39_spill] sm:$0xff] %v4990_v23 }
  0xd8   : > { %6499 = vst [vmem:[#allocation38_spill] sm:$0xff] %v4988_v15 }
  0xd9   : > { %1375 = vperm.xlu0 %4147, %v1345_v36   ;;  %1370 = vperm.xlu1 %4148, %v1344_v37   ;;  %v5004_v36 = vmin.f32 %v970_v42, 3.0  ;;  %v5021_v37 = vfloor.f32 %v5007_v35  ;;  %v5024_v42 = vfloor.f32 %v5010_v28 }
  0xdb   : > { %v4994_v6 = vpop.permute.xlu1 %904  ;;  %v4996_v44 = vpop.permute.xlu0 %902  ;;  %6505 = vst [vmem:[#allocation44_spill] sm:$0xff] %v5004_v36 }
  0xdc   : > { %6502 = vst [vmem:[#allocation41_spill] sm:$0xff] %v4994_v6  ;;  %6503 = vst [vmem:[#allocation42_spill] sm:$0xff] %v4996_v44  ;;  %v876_v44 = vadd.f32 1.0, %v5024_v42 }
  0xdd   : > { %600 = vrot.lane.b32.xlu0 %v4990_v23, %s4303_s26  ;;  %598 = vrot.lane.b32.xlu1 %v4992_v13, %s4303_s26  ;;  %v1310_v23 = vmul.f32 %v4846_v62, %v4454_v27  ;;  %v1615_v62 = vadd.f32 %v4921_v4, %v4814_v49 }
  0xde   : > { %v972_v5 = vmax.f32 %v876_v44, 0.0  ;;  %v1616_v44 = vadd.f32 %v4968_v40, %v4832_v63 }
  0xdf   : > { %v5012_v59 = vpop.permute.xlu1 %460  ;;  %v5014_v29 = vpop.permute.xlu0 %458 }
  0xe0   : > { %6508 = vst [vmem:[#allocation47_spill] sm:$0xff] %v5012_v59  ;;  %6509 = vst [vmem:[#allocation48_spill] sm:$0xff] %v5014_v29  ;;  %v877_v59 = vadd.f32 1.0, %v5021_v37  ;;  %v5052_v11 = vmin.f32 %v972_v5, 3.0 }
  0xe1   : > { %1032 = vrot.lane.b32.xlu0 %v5002_v53, %s4303_s26  ;;  %1030 = vrot.lane.b32.xlu1 %v5004_v36, %s4303_s26  ;;  %v525_v53 = vmax.f32 %v5021_v37, 0.0  ;;  %v524_v36 = vmax.f32 %v5024_v42, 0.0 }
  0xe2   : > { %6515 = vst [vmem:[#allocation54_spill] sm:$0xff] %v5052_v11 }
  0xe3   : > { %v5030_v13 = vpop.permute.xlu1 %908  ;;  %v5032_v29 = vpop.permute.xlu0 %906 }
  0xe4   : > { %6510 = vst [vmem:[#allocation49_spill] sm:$0xff] %v5030_v13  ;;  %6511 = vst [vmem:[#allocation50_spill] sm:$0xff] %v5032_v29  ;;  %v973_v29 = vmax.f32 %v877_v59, 0.0 }
  0xe5   : > { %1493 = vperm.xlu0 %4147, %v1311_v45   ;;  %1488 = vperm.xlu1 %4148, %v1310_v23   ;;  %v5042_v45 = vmin.f32 %v525_v53, 3.0  ;;  %v5044_v23 = vmin.f32 %v524_v36, 3.0 }
  0xe6   : > { %v5050_v49 = vmin.f32 %v973_v29, 3.0 }
  0xe7   : > { %v1945_v6 = vpop.permute.xlu1 %1944  ;;  %v1943_v13 = vpop.permute.xlu0 %1942  ;;  %6512 = vst [vmem:[#allocation51_spill] sm:$0xff] %v5042_v45  ;;  %6513 = vst [vmem:[#allocation52_spill] sm:$0xff] %v5044_v23 }
  0xe8   : > { %vm1971_vm11 = vcmp.ne.s32.totalorder %v1945_v6, 0  ;;  %vm1970_vm5 = vcmp.ne.s32.totalorder %v1943_v13, 0  ;;  %6514 = vst [vmem:[#allocation53_spill] sm:$0xff] %v5050_v49  ;;  %v1313_v6 = vmul.f32 %v4874_v2, %v4480_v33  ;;  %v1312_v13 = vmul.f32 %v4876_v50, %v4487_v34 }
  0xe9   : > { %1637 = vperm.xlu0 %4147, %v1615_v62   ;;  %1632 = vperm.xlu1 %4148, %v1614_v57   ;;  %vm1987_vm13 = vmand %vm4646_vm14, %vm1971_vm11  ;;  %v5080_v2 = vsub.f32 %v4945_v54, %v4959_v12  ;;  %v5126_v57 = vsub.f32 %v5010_v28, %v5024_v42  ;;  %v5130_v62 = vsub.f32 %v5007_v35, %v5021_v37 }
  0xea   : > { %vm1986_vm0 = vmand %vm4668_vm4, %vm1970_vm5  ;;  %vm6516_vm4 = vnez %v6472_v47  ;;  %v5084_v47 = vsub.f32 %v4948_v24, %v4962_v16 }
  0xeb   : > { %v1949_v15 = vpop.permute.xlu1 %1948  ;;  %v1947_v21 = vpop.permute.xlu0 %1946  ;;  %6518 = vst [vmem:[#allocation55_spill] sm:$0xff] %v5080_v2  ;;  %v5103_v59 = vsub.f32 1.0, %v5080_v2  ;;  %6522 = vst [vmem:[#allocation59_spill] sm:$0xff] %v5126_v57  ;;  %v5144_v42 = vsub.f32 1.0, %v5130_v62 }
  0xec   : > { %vm1973_vm1 = vcmp.ne.s32.totalorder %v1949_v15, 0  ;;  %vm1972_vm9 = vcmp.ne.s32.totalorder %v1947_v21, 0  ;;  %6519 = vst [vmem:[#allocation56_spill] sm:$0xff] %v5084_v47  ;;  %v5106_v52 = vsub.f32 1.0, %v5084_v47  ;;  %6523 = vst [vmem:[#allocation60_spill] sm:$0xff] %v5130_v62  ;;  %v549_v15 = vmul.f32 4.0, %v4602_v9 }
  0xed   : > { %604 = vrot.lane.b32.xlu0 %v5042_v45, %s4303_s26  ;;  %602 = vrot.lane.b32.xlu1 %v5044_v23, %s4303_s26  ;;  %vm1989_vm7 = vmand %vm6516_vm4, %vm1973_vm1  ;;  %6520 = vst [vmem:[#allocation57_spill] sm:$0xff] %v5103_v59  ;;  %vm6437_vm1 = vcmp.gt.f32.partialorder %v5010_v28, -1.0  ;;  %v6548_v23 = vld [vmem:[#allocation49_spill] sm:$0xff] }
  0xee   : > { %vm1988_vm12 = vmand %vm6517_vm10, %vm1972_vm9  ;;  %6521 = vst [vmem:[#allocation58_spill] sm:$0xff] %v5106_v52  ;;  %vm6441_vm9 = vcmp.lt.f32.partialorder %v4945_v54, 4.0 }
  0xef   : > { %v2025_v0 = vpop.permute.xlu1 %2024  ;;  %v2023_v4 = vpop.permute.xlu0 %2022  ;;  %6525 = vst [vmem:[#allocation62_spill] sm:$0xff] %v5144_v42 }
  0xf0   : > { %vm2051_vm3 = vcmp.ne.s32.totalorder %v2025_v0, 0  ;;  %vm2050_vm6 = vcmp.ne.s32.totalorder %v2023_v4, 0  ;;  %v1599_v0 = vmul.f32 %v4858_v43, %v4465_v30  ;;  %v1598_v4 = vmul.f32 %v4860_v1, %v4454_v27 }
  0xf1   : > { %vm2067_vm2 = vmand %vm1987_vm13, %vm2051_vm3  ;;  %1036 = vrot.lane.b32.xlu0 %v5050_v49, %s4303_s26  ;;  %1034 = vrot.lane.b32.xlu1 %v5052_v11, %s4303_s26  ;;  %v1601_v1 = vmul.f32 %v4882_v7, %v4480_v33  ;;  %v1600_v43 = vmul.f32 %v4884_v8, %v4487_v34  ;;  %vm6442_vm13 = vcmp.gt.f32.partialorder %v4948_v24, -1.0  ;;  %v6527_v33 = vpack.i.bf16 %v4918_v39, %v4928_v18  ;;  %v4189_v8 = vld [vmem:[%s357_s14] sm:$0xff]   ;;  %s3556_s14 = scalar_lea.sflag [#allocation3], %s339_s29 }
  0xf2   : > { %v5063_v5 = vsel %vm2067_vm2, 1.0, %v6496_v19  ;;  %vm2066_vm14 = vmand %vm1986_vm0, %vm2050_vm6  ;;  %vm6440_vm0 = vcmp.gt.f32.partialorder %v4945_v54, -1.0  ;;  %v1930_v34 = vsel %vm6442_vm13, 1, %v6495_v56  ;;  %vm6435_vm3 = vcmp.gt.f32.partialorder %v5007_v35, -1.0  ;;  %3918 = vmatprep.subr.bf16.mxu0 %v4189_v8 }
  0xf3   : > { %v5072_v21 = vsel %vm2066_vm14, 1.0, %v6496_v19  ;;  %v2029_v41 = vpop.permute.xlu1 %2028  ;;  %v2027_v46 = vpop.permute.xlu0 %2026  ;;  %v1931_v7 = vsel %vm6440_vm0, 1, %v6495_v56  ;;  %v1932_v39 = vsel %vm6437_vm1, 1, %v6495_v56  ;;  %v1933_v18 = vsel %vm6435_vm3, 1, %v6495_v56  ;;  %3919 = vmatpush3.bf16.msra.mxu0 %v4189_v8 }
  0xf4   : > { %vm2053_vm15 = vcmp.ne.s32.totalorder %v2029_v41, 0  ;;  %vm2052_vm8 = vcmp.ne.s32.totalorder %v2027_v46, 0  ;;  %v5141_v41 = vsub.f32 1.0, %v5126_v57  ;;  %vm1898_vm6 = vcmp.lt.f32.partialorder %v4948_v24, 4.0  ;;  %3968 = vmatprep.subr.bf16.mxu0 %v6496_v19 }
  0xf5   : > { %vm2069_vm11 = vmand %vm1989_vm7, %vm2053_vm15  ;;  %1503 = vperm.xlu0 %4147, %v1313_v6   ;;  %1498 = vperm.xlu1 %4148, %v1312_v13   ;;  %vm6438_vm2 = vcmp.lt.f32.partialorder %v5010_v28, 4.0  ;;  %vm6436_vm14 = vcmp.lt.f32.partialorder %v5007_v35, 4.0  ;;  %v546_v8 = vmul.f32 4.0, %v4584_v61 }
  0xf6   : > { %v5087_v50 = vsel %vm2069_vm11, 1.0, %v6496_v19  ;;  %vm2068_vm5 = vmand %vm1988_vm12, %vm2052_vm8  ;;  %6524 = vst [vmem:[#allocation61_spill] sm:$0xff] %v5141_v41 }
  0xf7   : > { %v5094_v12 = vsel %vm2068_vm5, 1.0, %v6496_v19  ;;  %v5096_v53 = vpop.permute.xlu1 %592  ;;  %v5098_v16 = vpop.permute.xlu0 %590  ;;  %v1058_v61 = vadd.f32 %v4942_v32, %v546_v8 }
  0xf9   : > { %1647 = vperm.xlu0 %4147, %v1617_v48   ;;  %1642 = vperm.xlu1 %4148, %v1616_v44  }
  0xfb   : > { %v5108_v17 = vpop.permute.xlu1 %1024  ;;  %v5110_v63 = vpop.permute.xlu0 %1022 }
  0xfd   : > { %472 = vrot.lane.b32.xlu0 %v5103_v59, %s4303_s26  ;;  %470 = vrot.lane.b32.xlu1 %v5106_v52, %s4303_s26 }
  0xff   : > { %v5116_v40 = vpop.permute.xlu1 %596  ;;  %v5118_v29 = vpop.permute.xlu0 %594 }
 0x101   : > { %920 = vrot.lane.b32.xlu0 %v5080_v2, %s4303_s26  ;;  %918 = vrot.lane.b32.xlu1 %v5084_v47, %s4303_s26 }
 0x103   : > { %v5136_v6 = vpop.permute.xlu1 %1028  ;;  %v5138_v13 = vpop.permute.xlu0 %1026 }
 0x105   : > { %1760 = vperm.xlu1 %4148, %v1598_v4   ;;  %1765 = vperm.xlu0 %4147, %v1599_v0   ;;  %v6526_v0 = vpack.i.bf16 %v4899_v25, %v4908_v38 }
 0x107   : > { %v5146_v37 = vpop.permute.xlu1 %464  ;;  %v5148_v46 = vpop.permute.xlu0 %462 }
 0x109   : > { %474 = vrot.lane.b32.xlu1 %v5141_v41, %s4303_s26  ;;  %476 = vrot.lane.b32.xlu0 %v5144_v42, %s4303_s26  ;;  %v6545_v41 = vld [vmem:[#allocation48_spill] sm:$0xff] }
 0x10b   : > { %v5154_v27 = vpop.permute.xlu1 %912  ;;  %v5156_v30 = vpop.permute.xlu0 %910 }
 0x10d   : > { %922 = vrot.lane.b32.xlu1 %v5126_v57, %s4303_s26  ;;  %924 = vrot.lane.b32.xlu0 %v5130_v62, %s4303_s26  ;;  %v6540_v57 = vld [vmem:[#allocation41_spill] sm:$0xff] }
 0x10f   : > { %v5166_v48 = vpop.permute.xlu1 %468  ;;  %v5168_v44 = vpop.permute.xlu0 %466 }
 0x111   : > { %1770 = vperm.xlu1 %4148, %v1600_v43   ;;  %1775 = vperm.xlu0 %4147, %v1601_v1   ;;  %v2010_v43 = vsel %vm1898_vm6, 1, %v6495_v56 }
 0x113   : > { %v5192_v25 = vpop.permute.xlu1 %916  ;;  %v5194_v38 = vpop.permute.xlu0 %914 }
 0x115   : > { %4150 = vperm.xlu1 %4148, %v6526_v0   ;;  %4155 = vperm.xlu0 %4147, %v6527_v33   ;;  %v2011_v0 = vsel %vm6441_vm9, 1, %v6495_v56  ;;  %v2012_v33 = vsel %vm6438_vm2, 1, %v6495_v56 }
 0x117   : > { %v5209_v4 = vpop.permute.xlu1 %1952  ;;  %v5211_v1 = vpop.permute.xlu0 %1950 }
 0x118   : > { %6528 = vst [vmem:[#allocation63_spill] sm:$0xff] %v5209_v4  ;;  %6529 = vst [vmem:[#allocation64_spill] sm:$0xff] %v5211_v1 }
 0x119   : > { %1958 = vrot.lane.b32.xlu1 %v1930_v34, %s4303_s26  ;;  %1960 = vrot.lane.b32.xlu0 %v1931_v7, %s4303_s26  ;;  %v2013_v34 = vsel %vm6436_vm14, 1, %v6495_v56  ;;  %v547_v7 = vmul.f32 4.0, %v4582_v60 }
 0x11b   : > { %v1059_v60 = vadd.f32 %v4940_v14, %v547_v7 }
 0x11d   : > { %1962 = vrot.lane.b32.xlu1 %v1932_v39, %s4303_s26  ;;  %1964 = vrot.lane.b32.xlu0 %v1933_v18, %s4303_s26  ;;  %v5231_v39 = vpop.permute.xlu1 %1956  ;;  %v5233_v18 = vpop.permute.xlu0 %1954 }
 0x11e   : > { %6530 = vst [vmem:[#allocation65_spill] sm:$0xff] %v5231_v39  ;;  %6531 = vst [vmem:[#allocation66_spill] sm:$0xff] %v5233_v18 }
 0x121   : > { %2038 = vrot.lane.b32.xlu1 %v2010_v43, %s4303_s26  ;;  %2040 = vrot.lane.b32.xlu0 %v2011_v0, %s4303_s26  ;;  %v627_v43 = vadd.f32 %v4930_v22, %v547_v7  ;;  %v626_v0 = vadd.f32 %v4932_v58, %v546_v8  ;;  %v5239_v36 = vpop.permute.xlu1 %2032  ;;  %v5241_v56 = vpop.permute.xlu0 %2030  ;;  %v1061_v7 = vadd.f32 %v4974_v31, %v549_v15 }
 0x122   : > { %6532 = vst [vmem:[#allocation67_spill] sm:$0xff] %v5239_v36  ;;  %6533 = vst [vmem:[#allocation68_spill] sm:$0xff] %v5241_v56 }
 0x125   : > { %2042 = vrot.lane.b32.xlu1 %v2012_v33, %s4303_s26  ;;  %2044 = vrot.lane.b32.xlu0 %v2013_v34, %s4303_s26  ;;  %v548_v33 = vmul.f32 4.0, %v4604_v10  ;;  %v629_v34 = vadd.f32 %v4954_v3, %v549_v15  ;;  %v499_v10 = vmul.f32 %v4986_v51, %v4625_v20  ;;  %v6538_v15 = vld [vmem:[#allocation5_spill] sm:$0xff] }
 0x127   : > { %v628_v35 = vadd.f32 %v4956_v26, %v548_v33  ;;  %v1060_v8 = vadd.f32 %v4976_v55, %v548_v33  ;;  %v1331_v33 = vmul.f32 4.0, %v6538_v15 }
 0x129   : > { %660 = vperm.xlu1 %4148, %v626_v0   ;;  %665 = vperm.xlu0 %4147, %v627_v43   ;;  %v5249_v0 = vpop.permute.xlu1 %2036  ;;  %v5251_v43 = vpop.permute.xlu0 %2034  ;;  %v1347_v11 = vadd.f32 %v1331_v33, %v4930_v22  ;;  %v6546_v22 = vld [vmem:[#allocation7_spill] sm:$0xff] }
 0x12a   : > { %6534 = vst [vmem:[#allocation69_spill] sm:$0xff] %v5249_v0  ;;  %6535 = vst [vmem:[#allocation70_spill] sm:$0xff] %v5251_v43 }
 0x12d   : > { %1092 = vperm.xlu1 %4148, %v1058_v61   ;;  %1097 = vperm.xlu0 %4147, %v1059_v60   ;;  %v6536_v60 = vld [vmem:[#allocation11_spill] sm:$0xff]  ;;  %v6537_v61 = vld [vmem:[#allocation38_spill] sm:$0xff] }
 0x12e   : > { %v498_v54 = vmul.f32 %v6537_v61, %v6536_v60 }
 0x131   : > { %670 = vperm.xlu1 %4148, %v628_v35   ;;  %675 = vperm.xlu0 %4147, %v629_v34   ;;  %v6539_v34 = vld [vmem:[#allocation6_spill] sm:$0xff] }
 0x132   : > { %v1330_v62 = vmul.f32 4.0, %v6539_v34  ;;  %v6543_v34 = vld [vmem:[#allocation47_spill] sm:$0xff] }
 0x134   : > { %v5255_v28 = vpop.permute.xlu1 %645  ;;  %v5257_v9 = vpop.permute.xlu0 %640 }
 0x135   : > { %1102 = vperm.xlu1 %4148, %v1060_v8   ;;  %1107 = vperm.xlu0 %4147, %v1061_v7   ;;  %v947_v8 = vmul.f32 %v6540_v57, %v4625_v20  ;;  %v6541_v7 = vld [vmem:[#allocation42_spill] sm:$0xff] }
 0x136   : > { %v946_v2 = vmul.f32 %v6541_v7, %v6536_v60  ;;  %v6542_v20 = vld [vmem:[#allocation14_spill] sm:$0xff]  ;;  %v6544_v60 = vld [vmem:[#allocation15_spill] sm:$0xff] }
 0x137   : > { %v501_v42 = vmul.f32 %v6543_v34, %v6542_v20  ;;  %v500_v59 = vmul.f32 %v6545_v41, %v6544_v60 }
 0x138   : > { %v5263_v24 = vpop.permute.xlu1 %1072  ;;  %v5265_v35 = vpop.permute.xlu0 %1077 }
 0x139   : > { %788 = vperm.xlu1 %4148, %v498_v54   ;;  %793 = vperm.xlu0 %4147, %v499_v10   ;;  %v1346_v54 = vadd.f32 %v1330_v62, %v4932_v58  ;;  %v1333_v58 = vmul.f32 4.0, %v6546_v22 }
 0x13b   : > { %v1349_v36 = vadd.f32 %v1333_v58, %v4954_v3  ;;  %v1619_v3 = vadd.f32 %v1331_v33, %v4940_v14 }
 0x13c   : > { %v5273_v47 = vpop.permute.xlu1 %650  ;;  %v5275_v49 = vpop.permute.xlu0 %655 }
 0x13d   : > { %1220 = vperm.xlu1 %4148, %v946_v2   ;;  %1225 = vperm.xlu0 %4147, %v947_v8   ;;  %v6547_v8 = vld [vmem:[#allocation8_spill] sm:$0xff] }
 0x13e   : > { %v1332_v45 = vmul.f32 4.0, %v6547_v8 }
 0x140   : > { %v5279_v10 = vpop.permute.xlu1 %1082  ;;  %v5281_v15 = vpop.permute.xlu0 %1087  ;;  %v1620_v14 = vadd.f32 %v1332_v45, %v4976_v55 }
 0x141   : > { %1380 = vperm.xlu1 %4148, %v1346_v54   ;;  %1385 = vperm.xlu0 %4147, %v1347_v11   ;;  %v949_v54 = vmul.f32 %v6548_v23, %v6542_v20  ;;  %v6549_v11 = vld [vmem:[#allocation50_spill] sm:$0xff]  ;;  %v6550_v20 = vld [vmem:[#allocation9_spill] sm:$0xff] }
 0x142   : > { %v948_v43 = vmul.f32 %v6549_v11, %v6544_v60  ;;  %v1315_v8 = vmul.f32 %v4986_v51, %v6550_v20  ;;  %v6551_v60 = vld [vmem:[#allocation10_spill] sm:$0xff]  ;;  %v6552_v51 = vld [vmem:[#allocation12_spill] sm:$0xff] }
 0x143   : > { %v1314_v18 = vmul.f32 %v6537_v61, %v6551_v60  ;;  %v6553_v61 = vld [vmem:[#allocation13_spill] sm:$0xff]  ;;  %v1605_v55 = vmul.f32 %v6548_v23, %v6552_v51  ;;  %v6558_v23 = vpack.i.bf16 %v5087_v50, %v5094_v12 }
 0x144   : > { %v5287_v52 = vpop.permute.xlu1 %768  ;;  %v5289_v2 = vpop.permute.xlu0 %773  ;;  %v1316_v1 = vmul.f32 %v6545_v41, %v6553_v61  ;;  %v1603_v41 = vmul.f32 %v6540_v57, %v6550_v20  ;;  %v6556_v20 = vld [vmem:[#allocation20_spill] sm:$0xff] }
 0x145   : > { %798 = vperm.xlu1 %4148, %v500_v59   ;;  %803 = vperm.xlu0 %4147, %v501_v42   ;;  %v1348_v59 = vadd.f32 %v1332_v45, %v4956_v26  ;;  %v1618_v26 = vadd.f32 %v1330_v62, %v4942_v32  ;;  %v1621_v32 = vadd.f32 %v1333_v58, %v4974_v31 }
 0x146   : > { %v1604_v31 = vmul.f32 %v6549_v11, %v6553_v61  ;;  %v6557_v11 = vpack.i.bf16 %v5063_v5, %v5072_v21  ;;  %v6562_v21 = vld [vmem:[#allocation24_spill] sm:$0xff] }
 0x148   : > { %v5297_v0 = vpop.permute.xlu1 %1200  ;;  %v5299_v56 = vpop.permute.xlu0 %1205 }
 0x149   : > { %1230 = vperm.xlu1 %4148, %v948_v43   ;;  %1235 = vperm.xlu0 %4147, %v949_v54  }
 0x14c   : > { %v5303_v42 = vpop.permute.xlu1 %1360  ;;  %v5305_v22 = vpop.permute.xlu0 %1365 }
 0x14d   : > { %1390 = vperm.xlu1 %4148, %v1348_v59   ;;  %1395 = vperm.xlu0 %4147, %v1349_v36   ;;  %v1317_v36 = vmul.f32 %v6543_v34, %v6552_v51  ;;  %v1602_v34 = vmul.f32 %v6541_v7, %v6551_v60  ;;  %v6555_v7 = vld [vmem:[#allocation21_spill] sm:$0xff]  ;;  %v551_v60 = vmul.f32 4.0, %v6556_v20 }
 0x14e   : > { %v550_v57 = vmul.f32 4.0, %v6555_v7 }
 0x14f   : > { %v1063_v5 = vadd.f32 %v5108_v17, %v551_v60 }
 0x150   : > { %v5311_v39 = vpop.permute.xlu1 %778  ;;  %v5313_v43 = vpop.permute.xlu0 %783  ;;  %v630_v51 = vadd.f32 %v5098_v16, %v550_v57 }
 0x151   : > { %1508 = vperm.xlu1 %4148, %v1314_v18   ;;  %1513 = vperm.xlu0 %4147, %v1315_v8  }
 0x154   : > { %v5317_v54 = vpop.permute.xlu1 %1210  ;;  %v5319_v59 = vpop.permute.xlu0 %1215 }
 0x155   : > { %1652 = vperm.xlu1 %4148, %v1618_v26   ;;  %1657 = vperm.xlu0 %4147, %v1619_v3  }
 0x158   : > { %v5325_v4 = vpop.permute.xlu1 %1370  ;;  %v5327_v18 = vpop.permute.xlu0 %1375 }
 0x159   : > { %1518 = vperm.xlu1 %4148, %v1316_v1   ;;  %1523 = vperm.xlu0 %4147, %v1317_v36   ;;  %v631_v36 = vadd.f32 %v5096_v53, %v551_v60 }
 0x15c   : > { %v5331_v62 = vpop.permute.xlu1 %598  ;;  %v5333_v33 = vpop.permute.xlu0 %600 }
 0x15d   : > { %1662 = vperm.xlu1 %4148, %v1620_v14   ;;  %1667 = vperm.xlu0 %4147, %v1621_v32   ;;  %v1062_v32 = vadd.f32 %v5110_v63, %v550_v57 }
 0x160   : > { %v5339_v8 = vpop.permute.xlu1 %1030  ;;  %v5341_v1 = vpop.permute.xlu0 %1032 }
 0x161   : > { %6554 = vst [vmem:[#allocation11_spill] sm:$0xff] %v5341_v1  ;;  %1780 = vperm.xlu1 %4148, %v1602_v34   ;;  %1785 = vperm.xlu0 %4147, %v1603_v41   ;;  %v6561_v34 = vld [vmem:[#allocation25_spill] sm:$0xff] }
 0x162   : > { %v552_v41 = vmul.f32 4.0, %v6561_v34 }
 0x164   : > { %v5347_v45 = vpop.permute.xlu1 %1488  ;;  %v5349_v58 = vpop.permute.xlu0 %1493  ;;  %v1064_v57 = vadd.f32 %v5138_v13, %v552_v41 }
 0x165   : > { %1790 = vperm.xlu1 %4148, %v1604_v31   ;;  %1795 = vperm.xlu0 %4147, %v1605_v55   ;;  %v553_v31 = vmul.f32 4.0, %v6562_v21  ;;  %v632_v55 = vadd.f32 %v5118_v29, %v552_v41  ;;  %v6569_v41 = vld [vmem:[#allocation22_spill] sm:$0xff] }
 0x167   : > { %v633_v7 = vadd.f32 %v5116_v40, %v553_v31  ;;  %v1065_v60 = vadd.f32 %v5136_v6, %v553_v31  ;;  %v5398_v31 = vmul.f32 4.0, %v6569_v41 }
 0x168   : > { %v5353_v3 = vpop.permute.xlu1 %1632  ;;  %v5355_v26 = vpop.permute.xlu0 %1637 }
 0x169   : > { %4160 = vperm.xlu1 %4148, %v6557_v11   ;;  %4165 = vperm.xlu0 %4147, %v6558_v23   ;;  %v379_v23 = vlaneseq }
 0x16c   : > { %v5365_v61 = vpop.permute.xlu1 %602  ;;  %v5367_v14 = vpop.permute.xlu0 %604 }
 0x16d   : > { %6559 = vst [vmem:[#allocation38_spill] sm:$0xff] %v5365_v61  ;;  %6560 = vst [vmem:[#allocation5_spill] sm:$0xff] %v5367_v14  ;;  %680 = vperm.xlu1 %4148, %v630_v51   ;;  %685 = vperm.xlu0 %4147, %v631_v36   ;;  %v6572_v61 = vld [vmem:[#allocation27_spill] sm:$0xff] }
 0x16e   : > { %v5407_v1 = vmul.f32 4.0, %v6572_v61  ;;  %v1351_v61 = vadd.f32 %v5398_v31, %v5096_v53 }
 0x170   : > { %v5373_v50 = vpop.permute.xlu1 %1034  ;;  %v5375_v12 = vpop.permute.xlu0 %1036 }
 0x171   : > { %6563 = vst [vmem:[#allocation6_spill] sm:$0xff] %v5373_v50  ;;  %6564 = vst [vmem:[#allocation41_spill] sm:$0xff] %v5375_v12  ;;  %1112 = vperm.xlu1 %4148, %v1062_v32   ;;  %1117 = vperm.xlu0 %4147, %v1063_v5   ;;  %v6565_v32 = vld [vmem:[#allocation31_spill] sm:$0xff]  ;;  %v6566_v5 = vld [vmem:[#allocation30_spill] sm:$0xff]  ;;  %v380_v12 = vand.u32 127, %v379_v23 }
 0x172   : > { %v502_v34 = vmul.f32 %v5148_v46, %v6565_v32  ;;  %v503_v21 = vmul.f32 %v5146_v37, %v6566_v5  ;;  %v6570_v50 = vld [vmem:[#allocation23_spill] sm:$0xff]  ;;  %v950_v23 = vmul.f32 %v5156_v30, %v6565_v32  ;;  %v5433_v32 = vadd.f32 %v5407_v1, %v5118_v29 }
 0x173   : > { %v5401_v14 = vmul.f32 4.0, %v6570_v50 }
 0x174   : > { %v5379_v20 = vpop.permute.xlu1 %1498  ;;  %v5381_v11 = vpop.permute.xlu0 %1503 }
 0x175   : > { %690 = vperm.xlu1 %4148, %v632_v55   ;;  %695 = vperm.xlu0 %4147, %v633_v7   ;;  %v1350_v50 = vadd.f32 %v5401_v14, %v5098_v16 }
 0x178   : > { %v5385_v51 = vpop.permute.xlu1 %1642  ;;  %v5387_v36 = vpop.permute.xlu0 %1647 }
 0x179   : > { %1122 = vperm.xlu1 %4148, %v1064_v57   ;;  %1127 = vperm.xlu0 %4147, %v1065_v60   ;;  %v6571_v57 = vld [vmem:[#allocation26_spill] sm:$0xff] }
 0x17a   : > { %v5404_v60 = vmul.f32 4.0, %v6571_v57  ;;  %v6576_v57 = vld [vmem:[#allocation35_spill] sm:$0xff] }
 0x17c   : > { %v5393_v55 = vpop.permute.xlu1 %470  ;;  %v5395_v7 = vpop.permute.xlu0 %472 }
 0x17d   : > { %6567 = vst [vmem:[#allocation42_spill] sm:$0xff] %v5393_v55  ;;  %6568 = vst [vmem:[#allocation14_spill] sm:$0xff] %v5395_v7  ;;  %808 = vperm.xlu1 %4148, %v502_v34   ;;  %813 = vperm.xlu0 %4147, %v503_v21   ;;  %v951_v7 = vmul.f32 %v5154_v27, %v6566_v5  ;;  %v5413_v34 = vcvt.s32.f32 %v380_v12  ;;  %v5429_v12 = vadd.f32 %v5404_v60, %v5116_v40  ;;  %v6575_v5 = vld [vmem:[#allocation34_spill] sm:$0xff] }
 0x17f   : > { %vm1150_vm4 = vcmp.eq.f32.partialorder %v5413_v34, %v5263_v24  ;;  %vm1151_vm7 = vcmp.eq.f32.partialorder %v5413_v34, %v5265_v35  ;;  %v505_v24 = vmul.f32 %v5166_v48, %v6575_v5  ;;  %v504_v35 = vmul.f32 %v5168_v44, %v6576_v57 }
 0x180   : > { %v5415_v41 = vpop.permute.xlu1 %918  ;;  %v5417_v21 = vpop.permute.xlu0 %920  ;;  %vm719_vm10 = vcmp.eq.f32.partialorder %v5413_v34, %v5255_v28  ;;  %vm718_vm12 = vcmp.eq.f32.partialorder %v5413_v34, %v5257_v9  ;;  %vm720_vm15 = vcmp.eq.f32.partialorder %v5413_v34, %v5273_v47  ;;  %vm721_vm8 = vcmp.eq.f32.partialorder %v5413_v34, %v5275_v49 }
 0x181   : > { %6573 = vst [vmem:[#allocation47_spill] sm:$0xff] %v5415_v41  ;;  %6574 = vst [vmem:[#allocation15_spill] sm:$0xff] %v5417_v21  ;;  %1240 = vperm.xlu1 %4148, %v950_v23   ;;  %1245 = vperm.xlu0 %4147, %v951_v7   ;;  %v3697_v40 = vsel %vm1150_vm4, 1.0, %v6496_v19  ;;  %v3698_v29 = vsel %vm1151_vm7, 1.0, %v6496_v19  ;;  %vm1152_vm11 = vcmp.eq.f32.partialorder %v5413_v34, %v5279_v10  ;;  %v3681_v41 = vsel %vm718_vm12, 1.0, %v6496_v19 }
 0x182   : > { %vm1153_vm5 = vcmp.eq.f32.partialorder %v5413_v34, %v5281_v15  ;;  %v1278_v9 = vmul.f32 %v3697_v40, %v5297_v0  ;;  %v1279_v7 = vmul.f32 %v3698_v29, %v5299_v56  ;;  %v953_v23 = vmul.f32 %v5192_v25, %v6575_v5 }
 0x183   : > { %v952_v21 = vmul.f32 %v5194_v38, %v6576_v57  ;;  %v846_v55 = vmul.f32 %v3681_v41, %v5287_v52  ;;  %vm1438_vm4 = vcmp.eq.f32.partialorder %v5413_v34, %v5303_v42  ;;  %vm1439_vm7 = vcmp.eq.f32.partialorder %v5413_v34, %v5305_v22 }
 0x184   : > { %v1761_v53 = vpop.permute.xlu1 %1760  ;;  %v1766_v16 = vpop.permute.xlu0 %1765  ;;  %v3683_v28 = vsel %vm720_vm15, 1.0, %v6496_v19  ;;  %v3684_v52 = vsel %vm721_vm8, 1.0, %v6496_v19  ;;  %v3700_v41 = vsel %vm1153_vm5, 1.0, %v6496_v19  ;;  %vm1441_vm12 = vcmp.eq.f32.partialorder %v5413_v34, %v5327_v18 }
 0x185   : > { %1400 = vperm.xlu1 %4148, %v1350_v50   ;;  %1405 = vperm.xlu0 %4147, %v1351_v61   ;;  %v3682_v50 = vsel %vm719_vm10, 1.0, %v6496_v19  ;;  %v1294_v5 = vadd.f32 %v1278_v9, %v846_v55  ;;  %vm1440_vm10 = vcmp.eq.f32.partialorder %v5413_v34, %v5325_v4  ;;  %v1281_v47 = vmul.f32 %v3700_v41, %v5319_v59 }
 0x186   : > { %v847_v0 = vmul.f32 %v3682_v50, %v5289_v2  ;;  %v3699_v2 = vsel %vm1152_vm11, 1.0, %v6496_v19  ;;  %v3713_v10 = vsel %vm1438_vm4, 1.0, %v6496_v19  ;;  %v3714_v15 = vsel %vm1439_vm7, 1.0, %v6496_v19 }
 0x187   : > { %v1280_v49 = vmul.f32 %v3699_v2, %v5317_v54  ;;  %v848_v4 = vmul.f32 %v3683_v28, %v5311_v39  ;;  %v849_v55 = vmul.f32 %v3684_v52, %v5313_v43  ;;  %vm1710_vm15 = vcmp.eq.f32.partialorder %v5413_v34, %v5353_v3 }
 0x188   : > { %v5470_v56 = vpop.permute.xlu1 %474  ;;  %v5472_v61 = vpop.permute.xlu0 %476  ;;  %v1295_v57 = vadd.f32 %v1279_v7, %v847_v0  ;;  %vm1711_vm8 = vcmp.eq.f32.partialorder %v5413_v34, %v5355_v26  ;;  %v3715_v42 = vsel %vm1440_vm10, 1.0, %v6496_v19  ;;  %v3716_v18 = vsel %vm1441_vm12, 1.0, %v6496_v19  ;;  %v6577_v26 = vld [vmem:[#allocation28_spill] sm:$0xff] }
 0x189   : > { %818 = vperm.xlu1 %4148, %v504_v35   ;;  %823 = vperm.xlu0 %4147, %v505_v24   ;;  %vm1712_vm11 = vcmp.eq.f32.partialorder %v5413_v34, %v5385_v51  ;;  %vm1713_vm5 = vcmp.eq.f32.partialorder %v5413_v34, %v5387_v36  ;;  %v1566_v39 = vmul.f32 %v3713_v10, %v5347_v45  ;;  %v3729_v51 = vsel %vm1710_vm15, 1.0, %v6496_v19 }
 0x18a   : > { %v1567_v22 = vmul.f32 %v3714_v15, %v5349_v58  ;;  %v1568_v43 = vmul.f32 %v3715_v42, %v5379_v20  ;;  %v1569_v24 = vmul.f32 %v3716_v18, %v5381_v11  ;;  %v1296_v35 = vadd.f32 %v1280_v49, %v848_v4 }
 0x18b   : > { %v1297_v40 = vadd.f32 %v1281_v47, %v849_v55  ;;  %v3730_v36 = vsel %vm1711_vm8, 1.0, %v6496_v19  ;;  %v1838_v45 = vmul.f32 %v3729_v51, %v1761_v53  ;;  %v3731_v58 = vsel %vm1712_vm11, 1.0, %v6496_v19  ;;  %v6587_v51 = vld [vmem:[#allocation17_spill] sm:$0xff] }
 0x18c   : > { %v5510_v54 = vpop.permute.xlu1 %922  ;;  %v5512_v59 = vpop.permute.xlu0 %924  ;;  %v3732_v11 = vsel %vm1713_vm5, 1.0, %v6496_v19  ;;  %v1583_v3 = vadd.f32 %v1567_v22, %v1295_v57  ;;  %v1584_v50 = vadd.f32 %v1568_v43, %v1296_v35  ;;  %v1319_v53 = vmul.f32 %v5146_v37, %v6577_v26  ;;  %v6608_v35 = vld [vmem:[#allocation38_spill] sm:$0xff] }
 0x18d   : > { %1250 = vperm.xlu1 %4148, %v952_v21   ;;  %1255 = vperm.xlu0 %4147, %v953_v23   ;;  %v1839_v21 = vmul.f32 %v3730_v36, %v1766_v16  ;;  %v1582_v23 = vadd.f32 %v1566_v39, %v1294_v5  ;;  %v1585_v0 = vadd.f32 %v1569_v24, %v1297_v40  ;;  %v6578_v16 = vld [vmem:[#allocation29_spill] sm:$0xff]  ;;  %vm6439_vm4 = vcmask 130048   ;;  %v6586_v40 = vld [vmem:[#allocation63_spill] sm:$0xff] }
 0x18e   : > { %v1318_v28 = vmul.f32 %v5148_v46, %v6578_v16  ;;  %v1623_v46 = vadd.f32 %v5398_v31, %v5108_v17  ;;  %v6579_v24 = vld [vmem:[#allocation33_spill] sm:$0xff]  ;;  %v6585_v17 = vld [vmem:[#allocation32_spill] sm:$0xff]  ;;  %vm1975_vm15 = vcmp.ne.s32.totalorder %v6586_v40, 0  ;;  %vm6588_vm8 = vcmp.lt.f32.partialorder %v6587_v51, 4.0 }
 0x18f   : > { %v1854_v52 = vadd.f32 %v1838_v45, %v1582_v23  ;;  %v1855_v2 = vadd.f32 %v1839_v21, %v1583_v3  ;;  %v1321_v31 = vmul.f32 %v5166_v48, %v6585_v17  ;;  %vm6589_vm11 = vcmp.gt.f32.partialorder %v6587_v51, -1.0  ;;  %v6590_v45 = vld [vmem:[#allocation64_spill] sm:$0xff]  ;;  %v6591_v21 = vld [vmem:[#allocation18_spill] sm:$0xff]  ;;  %v6594_v48 = vld [vmem:[#allocation65_spill] sm:$0xff] }
 0x190   : > { %v1771_v20 = vpop.permute.xlu1 %1770  ;;  %v1776_v29 = vpop.permute.xlu0 %1775  ;;  %vm1910_vm5 = vmand %vm6589_vm11, %vm6588_vm8  ;;  %vm6593_vm3 = vcmp.gt.f32.partialorder %v6591_v21, -1.0  ;;  %vm1977_vm1 = vcmp.ne.s32.totalorder %v6594_v48, 0  ;;  %v6600_v3 = vld [vmem:[#allocation68_spill] sm:$0xff] }
 0x191   : > { %v1840_v9 = vmul.f32 %v3731_v58, %v1771_v20  ;;  %v1841_v7 = vmul.f32 %v3732_v11, %v1776_v29  ;;  %1410 = vperm.xlu1 %4148, %v5433_v32   ;;  %1415 = vperm.xlu0 %4147, %v5429_v12   ;;  %v1622_v12 = vadd.f32 %v5401_v14, %v5110_v63  ;;  %v6580_v14 = vld [vmem:[#allocation16_spill] sm:$0xff]  ;;  %v6595_v58 = vld [vmem:[#allocation19_spill] sm:$0xff]  ;;  %v6598_v11 = vld [vmem:[#allocation66_spill] sm:$0xff] }
 0x192   : > { %v1320_v63 = vmul.f32 %v5168_v44, %v6579_v24  ;;  %vm6581_vm7 = vcmp.lt.f32.partialorder %v6580_v14, 4.0  ;;  %vm6582_vm10 = vcmp.gt.f32.partialorder %v6580_v14, -1.0  ;;  %vm6596_vm2 = vcmp.lt.f32.partialorder %v6595_v58, 4.0 }
 0x193   : > { %v1856_v41 = vadd.f32 %v1840_v9, %v1584_v50  ;;  %v1857_v49 = vadd.f32 %v1841_v7, %v1585_v0  ;;  %vm5554_vm12 = vmand %vm6582_vm10, %vm6581_vm7  ;;  %vm1974_vm7 = vcmp.ne.s32.totalorder %v6590_v45, 0  ;;  %vm6592_vm10 = vcmp.lt.f32.partialorder %v6591_v21, 4.0  ;;  %v6599_v9 = vld [vmem:[#allocation67_spill] sm:$0xff]  ;;  %v6610_v21 = vld [vmem:[#allocation6_spill] sm:$0xff] }
 0x194   : > { %v4151_v47 = vpop.permute.xlu1 %4150  ;;  %v4156_v10 = vpop.permute.xlu0 %4155  ;;  %vm1913_vm14 = vmand %vm6593_vm3, %vm6592_vm10  ;;  %vm6597_vm8 = vcmp.gt.f32.partialorder %v6595_v58, -1.0  ;;  %v1624_v20 = vadd.f32 %v5407_v1, %v5138_v13  ;;  %vm1976_vm0 = vcmp.ne.s32.totalorder %v6598_v11, 0  ;;  %v1625_v29 = vadd.f32 %v5404_v60, %v5136_v6  ;;  %v6601_v13 = vld [vmem:[#allocation69_spill] sm:$0xff]  ;;  %v6602_v6 = vld [vmem:[#allocation70_spill] sm:$0xff] }
 0x195   : > { %v4153_v15 = vunpack.i.h.bf16 %v4151_v47  ;;  %v4152_v32 = vunpack.i.l.bf16 %v4151_v47  ;;  %v4158_v5 = vunpack.i.h.bf16 %v4156_v10  ;;  %v4157_v57 = vunpack.i.l.bf16 %v4156_v10  ;;  %1528 = vperm.xlu1 %4148, %v1318_v28   ;;  %1533 = vperm.xlu0 %4147, %v1319_v53   ;;  %vm1912_vm11 = vmand %vm6597_vm8, %vm6596_vm2  ;;  %v6604_v10 = vld [vmem:[#allocation39_spill] sm:$0xff]  ;;  %v6611_v58 = vld [vmem:[#allocation41_spill] sm:$0xff] }
 0x196   : > { %vm1990_vm3 = vmand %vm1910_vm5, %vm1974_vm7  ;;  %vm2055_vm10 = vcmp.ne.s32.totalorder %v6599_v9, 0  ;;  %vm2054_vm8 = vcmp.ne.s32.totalorder %v6600_v3, 0  ;;  %vm2057_vm13 = vcmp.ne.s32.totalorder %v6601_v13, 0  ;;  %v1606_v1 = vmul.f32 %v5156_v30, %v6578_v16  ;;  %v6612_v9 = vld [vmem:[#allocation58_spill] sm:$0xff] }
 0x197   : > { %v2193_v4 = vmul.f32 %v4158_v5, %v1857_v49  ;;  %v2192_v37 = vmul.f32 %v4157_v57, %v1856_v41  ;;  %v2190_v55 = vmul.f32 %v4152_v32, %v1854_v52  ;;  %v2191_v42 = vmul.f32 %v4153_v15, %v1855_v2  ;;  %vm1993_vm2 = vmand %vm1913_vm14, %vm1977_vm1  ;;  %v6603_v49 = vld [vmem:[#allocation40_spill] sm:$0xff]  ;;  %v6613_v3 = vld [vmem:[#allocation42_spill] sm:$0xff] }
 0x198   : > { %v5544_v18 = vpop.permute.xlu1 %1958  ;;  %v5546_v39 = vpop.permute.xlu0 %1960  ;;  %vm1992_vm9 = vmand %vm1912_vm11, %vm1976_vm0  ;;  %v1607_v60 = vmul.f32 %v5154_v27, %v6577_v26  ;;  %v1608_v53 = vmul.f32 %v5194_v38, %v6579_v24  ;;  %v1609_v30 = vmul.f32 %v5192_v25, %v6585_v17  ;;  %v554_v38 = vmul.f32 4.0, %v6603_v49 }
 0x199   : > { %1672 = vperm.xlu1 %4148, %v1622_v12   ;;  %v2206_v22 = vpack.c.bf16 %v2191_v42, %v2190_v55  ;;  %v2207_v43 = vpack.c.bf16 %v2193_v4, %v2192_v37  ;;  %1677 = vperm.xlu0 %4147, %v1623_v46   ;;  %vm2070_vm5 = vmand %vm1990_vm3, %vm2054_vm8  ;;  %v555_v25 = vmul.f32 4.0, %v6604_v10  ;;  %v6605_v55 = vld [vmem:[#allocation52_spill] sm:$0xff]  ;;  %v6606_v46 = vld [vmem:[#allocation11_spill] sm:$0xff]  ;;  %v506_v13 = vmul.f32 %v6613_v3, %v6612_v9 }
 0x19a   : > { %vm2073_vm1 = vmand %vm1993_vm2, %vm2057_vm13  ;;  %v3753_v28 = vsel %vm2070_vm5, 1.0, %v6496_v19  ;;  %v634_v5 = vadd.f32 %v5331_v62, %v554_v38  ;;  %v1066_v37 = vadd.f32 %v5339_v8, %v554_v38  ;;  %v556_v42 = vmul.f32 4.0, %v6605_v55  ;;  %v6619_v38 = vld [vmem:[#allocation15_spill] sm:$0xff] }
 0x19b   : > { %3920 = vmatprep.mubr.msk.bf16.mxu0 %vm6439_vm4, %v2206_v22  ;;  %v3756_v52 = vsel %vm2073_vm1, 1.0, %v6496_v19  ;;  %v635_v57 = vadd.f32 %v5333_v33, %v555_v25  ;;  %v1067_v22 = vadd.f32 %v6606_v46, %v555_v25  ;;  %vm1978_vm14 = vcmp.ne.s32.totalorder %v5544_v18, 0 }
 0x19c   : > { %v5566_v44 = vpop.permute.xlu1 %1962  ;;  %v5568_v36 = vpop.permute.xlu0 %1964  ;;  %3921 = vmatmul.mubr.msk.bf16.vlgmr.msra.gmra.mrb[0].mxu0 %vm6439_vm4, %v2207_v43  ;;  %vm1991_vm4 = vmand %vm5554_vm12, %vm1975_vm15  ;;  %vm2056_vm15 = vcmp.ne.s32.totalorder %v6602_v6, 0  ;;  %v6607_v43 = vld [vmem:[#allocation51_spill] sm:$0xff]  ;;  %v636_v17 = vadd.f32 %v6608_v35, %v556_v42  ;;  %v1068_v48 = vadd.f32 %v6610_v21, %v556_v42  ;;  %v6615_v6 = vld [vmem:[#allocation14_spill] sm:$0xff]  ;;  %vm1979_vm11 = vcmp.ne.s32.totalorder %v5546_v39, 0 }
 0x19d   : > { %1538 = vperm.xlu1 %4148, %v1320_v63   ;;  %1543 = vperm.xlu0 %4147, %v1321_v31   ;;  %vm2071_vm12 = vmand %vm1991_vm4, %vm2055_vm10  ;;  %v557_v24 = vmul.f32 4.0, %v6607_v43  ;;  %v6609_v31 = vld [vmem:[#allocation5_spill] sm:$0xff]  ;;  %v6621_v43 = vld [vmem:[#allocation62_spill] sm:$0xff]  ;;  %vm1980_vm3 = vcmp.ne.s32.totalorder %v5566_v44, 0 }
 0x19e   : > { %vm2072_vm0 = vmand %vm1992_vm9, %vm2056_vm15  ;;  %v3754_v16 = vsel %vm2071_vm12, 1.0, %v6496_v19  ;;  %v6620_v42 = vld [vmem:[#allocation61_spill] sm:$0xff] }
 0x19f   : > { %v3755_v2 = vsel %vm2072_vm0, 1.0, %v6496_v19  ;;  %v4169_v41 = vpack.i.bf16 %v3754_v16, %v3753_v28  ;;  %v637_v40 = vadd.f32 %v6609_v31, %v557_v24  ;;  %v6616_v16 = vld [vmem:[#allocation44_spill] sm:$0xff] }
 0x1a0   : > { %v5589_v7 = vpop.permute.xlu1 %2038  ;;  %v5591_v23 = vpop.permute.xlu0 %2040  ;;  %v4174_v47 = vpack.i.bf16 %v3756_v52, %v3755_v2  ;;  %v1338_v28 = vmul.f32 4.0, %v6616_v16  ;;  %v6617_v52 = vld [vmem:[#allocation47_spill] sm:$0xff] }
 0x1a1   : > { %1682 = vperm.xlu1 %4148, %v1624_v20   ;;  %1687 = vperm.xlu0 %4147, %v1625_v29   ;;  %v1069_v20 = vadd.f32 %v6611_v58, %v557_v24  ;;  %v954_v2 = vmul.f32 %v6617_v52, %v6612_v9  ;;  %v509_v24 = vmul.f32 %v5472_v61, %v6621_v43 }
 0x1a4   : > { %v5600_v50 = vpop.permute.xlu1 %2042  ;;  %v5602_v0 = vpop.permute.xlu0 %2044 }
 0x1a5   : > { %1800 = vperm.xlu1 %4148, %v1606_v1   ;;  %1805 = vperm.xlu0 %4147, %v1607_v60   ;;  %v6614_v1 = vld [vmem:[#allocation57_spill] sm:$0xff] }
 0x1a6   : > { %v507_v60 = vmul.f32 %v6615_v6, %v6614_v1 }
 0x1a8   : > { %v5610_v27 = vpop.permute.xlu1 %660  ;;  %v5612_v26 = vpop.permute.xlu0 %665 }
 0x1a9   : > { %1810 = vperm.xlu1 %4148, %v1608_v53   ;;  %1815 = vperm.xlu0 %4147, %v1609_v30   ;;  %vm722_vm4 = vcmp.eq.f32.partialorder %v5413_v34, %v5610_v27  ;;  %vm723_vm7 = vcmp.eq.f32.partialorder %v5413_v34, %v5612_v26 }
 0x1ac   : > { %v5618_v15 = vpop.permute.xlu1 %1092  ;;  %v5620_v32 = vpop.permute.xlu0 %1097 }
 0x1ad   : > { %4170 = vperm.xlu1 %4148, %v4169_v41   ;;  %4175 = vperm.xlu0 %4147, %v4174_v47   ;;  %v6618_v41 = vld [vmem:[#allocation43_spill] sm:$0xff]  ;;  %v955_v47 = vmul.f32 %v6619_v38, %v6614_v1  ;;  %vm1154_vm13 = vcmp.eq.f32.partialorder %v5413_v34, %v5618_v15  ;;  %vm1155_vm9 = vcmp.eq.f32.partialorder %v5413_v34, %v5620_v32  ;;  %v6627_v15 = vld [vmem:[#allocation60_spill] sm:$0xff] }
 0x1ae   : > { %v1339_v49 = vmul.f32 4.0, %v6618_v41  ;;  %v3702_v32 = vsel %vm1155_vm9, 1.0, %v6496_v19 }
 0x1b0   : > { %v5624_v12 = vpop.permute.xlu1 %670  ;;  %v5626_v4 = vpop.permute.xlu0 %675 }
 0x1b1   : > { %700 = vperm.xlu1 %4148, %v634_v5   ;;  %705 = vperm.xlu0 %4147, %v635_v57   ;;  %v1354_v5 = vadd.f32 %v1338_v28, %v5331_v62  ;;  %v1355_v57 = vadd.f32 %v1339_v49, %v5333_v33  ;;  %v6622_v62 = vld [vmem:[#allocation54_spill] sm:$0xff]  ;;  %vm724_vm2 = vcmp.eq.f32.partialorder %v5413_v34, %v5624_v12 }
 0x1b2   : > { %v1340_v33 = vmul.f32 4.0, %v6622_v62  ;;  %vm725_vm8 = vcmp.eq.f32.partialorder %v5413_v34, %v5626_v4  ;;  %v3687_v27 = vsel %vm724_vm2, 1.0, %v6496_v19 }
 0x1b3   : > { %v3688_v26 = vsel %vm725_vm8, 1.0, %v6496_v19 }
 0x1b4   : > { %v5632_v63 = vpop.permute.xlu1 %1102  ;;  %v5634_v14 = vpop.permute.xlu0 %1107  ;;  %v1356_v16 = vadd.f32 %v1340_v33, %v6608_v35  ;;  %v5705_v35 = vadd.f32 %v1340_v33, %v6610_v21 }
 0x1b5   : > { %1132 = vperm.xlu1 %4148, %v1066_v37   ;;  %1137 = vperm.xlu0 %4147, %v1067_v22   ;;  %v508_v22 = vmul.f32 %v5470_v56, %v6620_v42  ;;  %vm1156_vm15 = vcmp.eq.f32.partialorder %v5413_v34, %v5632_v63  ;;  %vm1157_vm5 = vcmp.eq.f32.partialorder %v5413_v34, %v5634_v14 }
 0x1b6   : > { %v3703_v12 = vsel %vm1156_vm15, 1.0, %v6496_v19  ;;  %v3704_v4 = vsel %vm1157_vm5, 1.0, %v6496_v19 }
 0x1b8   : > { %v5638_v51 = vpop.permute.xlu1 %788  ;;  %v5640_v45 = vpop.permute.xlu0 %793 }
 0x1b9   : > { %710 = vperm.xlu1 %4148, %v636_v17   ;;  %715 = vperm.xlu0 %4147, %v637_v40  }
 0x1bc   : > { %v5644_v11 = vpop.permute.xlu1 %1220  ;;  %v5646_v29 = vpop.permute.xlu0 %1225 }
 0x1bd   : > { %1142 = vperm.xlu1 %4148, %v1068_v48   ;;  %1147 = vperm.xlu0 %4147, %v1069_v20   ;;  %v956_v48 = vmul.f32 %v5510_v54, %v6620_v42  ;;  %v6623_v20 = vld [vmem:[#allocation53_spill] sm:$0xff]  ;;  %v6624_v42 = vld [vmem:[#allocation56_spill] sm:$0xff]  ;;  %v1283_v21 = vmul.f32 %v3702_v32, %v5646_v29 }
 0x1be   : > { %v1341_v9 = vmul.f32 4.0, %v6623_v20 }
 0x1c0   : > { %v5652_v53 = vpop.permute.xlu1 %1380  ;;  %v5654_v30 = vpop.permute.xlu0 %1385 }
 0x1c1   : > { %828 = vperm.xlu1 %4148, %v506_v13   ;;  %833 = vperm.xlu0 %4147, %v507_v60   ;;  %v957_v13 = vmul.f32 %v5512_v59, %v6621_v43  ;;  %v6625_v43 = vld [vmem:[#allocation55_spill] sm:$0xff]  ;;  %vm1442_vm1 = vcmp.eq.f32.partialorder %v5413_v34, %v5652_v53  ;;  %vm1443_vm0 = vcmp.eq.f32.partialorder %v5413_v34, %v5654_v30  ;;  %v6642_v30 = vld [vmem:[#allocation45_spill] sm:$0xff] }
 0x1c2   : > { %v3717_v63 = vsel %vm1442_vm1, 1.0, %v6496_v19  ;;  %v3718_v14 = vsel %vm1443_vm0, 1.0, %v6496_v19  ;;  %vm6643_vm0 = vcmp.lt.f32.partialorder %v6642_v30, 4.0 }
 0x1c4   : > { %v5662_v10 = vpop.permute.xlu1 %798  ;;  %v5664_v25 = vpop.permute.xlu0 %803 }
 0x1c5   : > { %1260 = vperm.xlu1 %4148, %v954_v2   ;;  %1265 = vperm.xlu0 %4147, %v955_v47   ;;  %v1357_v2 = vadd.f32 %v1341_v9, %v6609_v31  ;;  %v5708_v31 = vadd.f32 %v1341_v9, %v6611_v58  ;;  %v3685_v58 = vsel %vm722_vm4, 1.0, %v6496_v19  ;;  %v6632_v9 = vld [vmem:[#allocation36_spill] sm:$0xff] }
 0x1c6   : > { %v850_v29 = vmul.f32 %v3685_v58, %v5638_v51  ;;  %v6628_v51 = vld [vmem:[#allocation37_spill] sm:$0xff]  ;;  %vm6633_vm2 = vcmp.lt.f32.partialorder %v6632_v9, 4.0  ;;  %vm6634_vm8 = vcmp.gt.f32.partialorder %v6632_v9, -1.0  ;;  %v1613_v9 = vmul.f32 %v5512_v59, %v6627_v15 }
 0x1c7   : > { %vm6629_vm4 = vcmp.gt.f32.partialorder %v6628_v51, -1.0 }
 0x1c8   : > { %v5668_v37 = vpop.permute.xlu1 %1230  ;;  %v5670_v55 = vpop.permute.xlu0 %1235 }
 0x1c9   : > { %1420 = vperm.xlu1 %4148, %v1354_v5   ;;  %1425 = vperm.xlu0 %4147, %v1355_v57   ;;  %v1626_v5 = vadd.f32 %v1338_v28, %v5339_v8  ;;  %v1627_v57 = vadd.f32 %v1339_v49, %v6606_v46  ;;  %v1323_v8 = vmul.f32 %v6615_v6, %v6625_v43  ;;  %v6626_v28 = vld [vmem:[#allocation59_spill] sm:$0xff] }
 0x1ca   : > { %v1324_v46 = vmul.f32 %v5470_v56, %v6626_v28  ;;  %v3701_v56 = vsel %vm1154_vm13, 1.0, %v6496_v19  ;;  %vm6644_vm13 = vcmp.gt.f32.partialorder %v6642_v30, -1.0 }
 0x1cc   : > { %v5676_v17 = vpop.permute.xlu1 %1390  ;;  %v5678_v40 = vpop.permute.xlu0 %1395 }
 0x1cd   : > { %838 = vperm.xlu1 %4148, %v508_v22   ;;  %843 = vperm.xlu0 %4147, %v509_v24   ;;  %v1322_v22 = vmul.f32 %v6613_v3, %v6624_v42  ;;  %v1325_v24 = vmul.f32 %v5472_v61, %v6627_v15  ;;  %v1282_v61 = vmul.f32 %v3701_v56, %v5644_v11  ;;  %v3686_v11 = vsel %vm723_vm7, 1.0, %v6496_v19  ;;  %vm5769_vm7 = vmand %vm6629_vm4, %vm1898_vm6 }
 0x1ce   : > { %v851_v62 = vmul.f32 %v3686_v11, %v5640_v45  ;;  %vm5785_vm6 = vmand %vm6634_vm8, %vm6633_vm2  ;;  %vm1444_vm4 = vcmp.eq.f32.partialorder %v5413_v34, %v5676_v17  ;;  %vm1445_vm9 = vcmp.eq.f32.partialorder %v5413_v34, %v5678_v40 }
 0x1cf   : > { %vm5831_vm10 = vmand %vm5769_vm7, %vm1978_vm14  ;;  %v3720_v18 = vsel %vm1445_vm9, 1.0, %v6496_v19  ;;  %vm2061_vm7 = vcmp.ne.s32.totalorder %v5602_v0, 0 }
 0x1d0   : > { %v5686_v1 = vpop.permute.xlu1 %1508  ;;  %v5688_v60 = vpop.permute.xlu0 %1513  ;;  %v1299_v20 = vadd.f32 %v1283_v21, %v851_v62  ;;  %vm5849_vm14 = vmand %vm5785_vm6, %vm1979_vm11  ;;  %vm6659_vm6 = vcmp.ne.s32.totalorder %v5591_v23, 0 }
 0x1d1   : > { %1270 = vperm.xlu1 %4148, %v956_v48   ;;  %1275 = vperm.xlu0 %4147, %v957_v13   ;;  %v1298_v48 = vadd.f32 %v1282_v61, %v850_v29  ;;  %v1570_v56 = vmul.f32 %v3717_v63, %v5686_v1  ;;  %v1571_v32 = vmul.f32 %v3718_v14, %v5688_v60 }
 0x1d2   : > { %v1610_v29 = vmul.f32 %v6617_v52, %v6624_v42 }
 0x1d3   : > { %v1587_v62 = vadd.f32 %v1571_v32, %v1299_v20 }
 0x1d4   : > { %v5692_v41 = vpop.permute.xlu1 %1652  ;;  %v5694_v47 = vpop.permute.xlu0 %1657 }
 0x1d5   : > { %1430 = vperm.xlu1 %4148, %v1356_v16   ;;  %1435 = vperm.xlu0 %4147, %v1357_v2   ;;  %v6637_v2 = vld [vmem:[#allocation46_spill] sm:$0xff]  ;;  %vm1714_vm1 = vcmp.eq.f32.partialorder %v5413_v34, %v5692_v41  ;;  %vm1715_vm8 = vcmp.eq.f32.partialorder %v5413_v34, %v5694_v47 }
 0x1d6   : > { %vm6638_vm15 = vcmp.lt.f32.partialorder %v6637_v2, 4.0  ;;  %vm6639_vm5 = vcmp.gt.f32.partialorder %v6637_v2, -1.0  ;;  %v3733_v17 = vsel %vm1714_vm1, 1.0, %v6496_v19  ;;  %v3734_v39 = vsel %vm1715_vm8, 1.0, %v6496_v19 }
 0x1d7   : > { %vm5805_vm2 = vmand %vm6639_vm5, %vm6638_vm15  ;;  %vm6667_vm8 = vcmask 130048  }
 0x1d8   : > { %v5714_v49 = vpop.permute.xlu1 %1518  ;;  %v5716_v3 = vpop.permute.xlu0 %1523  ;;  %vm5819_vm15 = vmand %vm6644_vm13, %vm6643_vm0  ;;  %vm6653_vm13 = vcmp.ne.s32.totalorder %v5568_v36, 0 }
 0x1d9   : > { %1548 = vperm.xlu1 %4148, %v1322_v22   ;;  %1553 = vperm.xlu0 %4147, %v1323_v8   ;;  %v853_v22 = vmul.f32 %v3688_v26, %v5664_v25  ;;  %v1285_v25 = vmul.f32 %v3704_v4, %v5670_v55  ;;  %v1573_v60 = vmul.f32 %v3720_v18, %v5716_v3  ;;  %vm5867_vm11 = vmand %vm5805_vm2, %vm1980_vm3 }
 0x1da   : > { %vm5882_vm3 = vmand %vm5819_vm15, %vm6653_vm13  ;;  %v1612_v4 = vmul.f32 %v5510_v54, %v6626_v28  ;;  %vm4305_vm15 = vmmov 0  }
 0x1db   : > { %v1301_v58 = vadd.f32 %v1285_v25, %v853_v22  ;;  %vm5920_vm1 = vmand %vm5882_vm3, %vm2061_vm7  ;;  %v4191_v25 = vld [vmem:[%s6317_s2 + $0x18] sm:$0xff]   ;;  %3940 = vmatprep.mubr.msk.bf16.mxu1 %vm4305_vm15, %v6496_v19 }
 0x1dc   : > { %v1663_v6 = vpop.permute.xlu1 %1662  ;;  %v1668_v33 = vpop.permute.xlu0 %1667  ;;  %v3760_v59 = vsel %vm5920_vm1, 1.0, %v6496_v19  ;;  %vm6668_vm0 = vmmov %vm6667_vm8 }
 0x1dd   : > { %1692 = vperm.xlu1 %4148, %v1626_v5   ;;  %1697 = vperm.xlu0 %4147, %v1627_v57   ;;  %v852_v57 = vmul.f32 %v3687_v27, %v5662_v10  ;;  %v1284_v10 = vmul.f32 %v3703_v12, %v5668_v37  ;;  %vm1716_vm5 = vcmp.eq.f32.partialorder %v5413_v34, %v1663_v6  ;;  %v3719_v37 = vsel %vm1444_vm4, 1.0, %v6496_v19  ;;  %vm5904_vm4 = vmand %vm5849_vm14, %vm6659_vm6 }
 0x1de   : > { %vm1717_vm12 = vcmp.eq.f32.partialorder %v5413_v34, %v1668_v33  ;;  %v1572_v1 = vmul.f32 %v3719_v37, %v5714_v49  ;;  %v3735_v41 = vsel %vm1716_vm5, 1.0, %v6496_v19  ;;  %v1611_v33 = vmul.f32 %v6619_v38, %v6625_v43 }
 0x1df   : > { %v3736_v47 = vsel %vm1717_vm12, 1.0, %v6496_v19  ;;  %v1300_v21 = vadd.f32 %v1284_v10, %v852_v57  ;;  %vm6656_vm12 = vcmp.ne.s32.totalorder %v5589_v7, 0  ;;  %v1589_v42 = vadd.f32 %v1573_v60, %v1301_v58  ;;  %v4190_v57 = vld [vmem:[%s6317_s2 + $0x10] sm:$0xff]  }
 0x1e0   : > { %v1781_v16 = vpop.permute.xlu1 %1780  ;;  %v1786_v53 = vpop.permute.xlu0 %1785  ;;  %vm5893_vm9 = vmand %vm5831_vm10, %vm6656_vm12  ;;  %vm6662_vm10 = vcmp.ne.s32.totalorder %v5600_v50, 0  ;;  %v3758_v14 = vsel %vm5904_vm4, 1.0, %v6496_v19  ;;  %3937 = vmatpush3.bf16.msra.mxu1 %v4190_v57 }
 0x1e1   : > { %1558 = vperm.xlu1 %4148, %v1324_v46   ;;  %1563 = vperm.xlu0 %4147, %v1325_v24   ;;  %v1842_v49 = vmul.f32 %v3733_v17, %v1781_v16  ;;  %v1843_v3 = vmul.f32 %v3734_v39, %v1786_v53  ;;  %v1588_v7 = vadd.f32 %v1572_v1, %v1300_v21  ;;  %vm5912_vm2 = vmand %vm5867_vm11, %vm6662_vm10  ;;  %v3757_v0 = vsel %vm5893_vm9, 1.0, %v6496_v19 }
 0x1e2   : > { %v3759_v54 = vsel %vm5912_vm2, 1.0, %v6496_v19  ;;  %v4179_v53 = vpack.i.bf16 %v3758_v14, %v3757_v0  ;;  %3938 = vmatprep.subr.bf16.mxu1 %v6496_v19 }
 0x1e3   : > { %v1859_v43 = vadd.f32 %v1843_v3, %v1587_v62  ;;  %v4184_v30 = vpack.i.bf16 %v3760_v59, %v3759_v54 }
 0x1e4   : > { %v1791_v40 = vpop.permute.xlu1 %1790  ;;  %v1796_v61 = vpop.permute.xlu0 %1795  ;;  %3939 = vmatpush3.bf16.msra.mxu1 %v4191_v25 }
 0x1e5   : > { %1702 = vperm.xlu1 %4148, %v5705_v35   ;;  %v1844_v11 = vmul.f32 %v3735_v41, %v1791_v40  ;;  %v1845_v6 = vmul.f32 %v3736_v47, %v1796_v61  ;;  %1707 = vperm.xlu0 %4147, %v5708_v31   ;;  %v1586_v35 = vadd.f32 %v1570_v56, %v1298_v48  ;;  %v4198_v41 = vld [vmem:[%s6317_s2 + $0x40] sm:$0xff]  }
 0x1e6   : > { %3944 = vmatprep.subr.bf16.mxu1 %v6496_v19  ;;  %3969 = vmatpush3.bf16.msra.mxu0 %v4198_v41 }
 0x1e7   : > { %v1858_v38 = vadd.f32 %v1842_v49, %v1586_v35  ;;  %v1860_v50 = vadd.f32 %v1844_v11, %v1588_v7  ;;  %v1861_v48 = vadd.f32 %v1845_v6, %v1589_v42  ;;  %3970 = vmatprep.subr.bf16.mxu0 %v6496_v19 }
 0x1e8   : > { %v4161_v31 = vpop.permute.xlu1 %4160  ;;  %v4166_v51 = vpop.permute.xlu0 %4165 }
 0x1e9   : > { %v4163_v23 = vunpack.i.h.bf16 %v4161_v31  ;;  %v4162_v26 = vunpack.i.l.bf16 %v4161_v31  ;;  %1820 = vperm.xlu1 %4148, %v1610_v29   ;;  %v4168_v20 = vunpack.i.h.bf16 %v4166_v51  ;;  %v4167_v12 = vunpack.i.l.bf16 %v4166_v51  ;;  %1825 = vperm.xlu0 %4147, %v1611_v33  }
 0x1eb   : > { %v2194_v13 = vmul.f32 %v4162_v26, %v1858_v38  ;;  %v2195_v63 = vmul.f32 %v4163_v23, %v1859_v43  ;;  %v2197_v16 = vmul.f32 %v4168_v20, %v1861_v48  ;;  %v2196_v2 = vmul.f32 %v4167_v12, %v1860_v50 }
 0x1ec   : > { %v681_v5 = vpop.permute.xlu1 %680  ;;  %v686_v15 = vpop.permute.xlu0 %685 }
 0x1ed   : > { %v2208_v28 = vpack.c.bf16 %v2195_v63, %v2194_v13  ;;  %1830 = vperm.xlu1 %4148, %v1612_v4   ;;  %v2209_v22 = vpack.c.bf16 %v2197_v16, %v2196_v2  ;;  %1835 = vperm.xlu0 %4147, %v1613_v9   ;;  %vm726_vm11 = vcmp.eq.f32.partialorder %v5413_v34, %v681_v5 }
 0x1ee   : > { %vm727_vm13 = vcmp.eq.f32.partialorder %v5413_v34, %v686_v15  ;;  %v3689_v52 = vsel %vm726_vm11, 1.0, %v6496_v19 }
 0x1ef   : > { %3924 = vmatprep.mubr.msk.bf16.mxu0 %vm6667_vm8, %v2208_v28  ;;  %v3690_v7 = vsel %vm727_vm13, 1.0, %v6496_v19 }
 0x1f0   : > { %v1113_v8 = vpop.permute.xlu1 %1112  ;;  %3925 = vmatmul.mubr.msk.bf16.gmra.mrb[4].mxu0 %vm6668_vm0, %v2209_v22  ;;  %v1118_v10 = vpop.permute.xlu0 %1117 }
 0x1f1   : > { %4180 = vperm.xlu1 %4148, %v4179_v53   ;;  %4185 = vperm.xlu0 %4147, %v4184_v30   ;;  %vm1158_vm5 = vcmp.eq.f32.partialorder %v5413_v34, %v1113_v8  ;;  %vm1159_vm14 = vcmp.eq.f32.partialorder %v5413_v34, %v1118_v10 }
 0x1f2   : > { %v3705_v36 = vsel %vm1158_vm5, 1.0, %v6496_v19  ;;  %v3706_v35 = vsel %vm1159_vm14, 1.0, %v6496_v19  ;;  %vm6669_vm14 = vcmask 130048  }
 0x1f3   : > { %vm6670_vm11 = vmmov %vm6669_vm14 }
 0x1f4   : > { %v691_v46 = vpop.permute.xlu1 %690  ;;  %v696_v56 = vpop.permute.xlu0 %695 }
 0x1f5   : > { %vm728_vm3 = vcmp.eq.f32.partialorder %v5413_v34, %v691_v46  ;;  %vm729_vm12 = vcmp.eq.f32.partialorder %v5413_v34, %v696_v56 }
 0x1f6   : > { %v3691_v43 = vsel %vm728_vm3, 1.0, %v6496_v19  ;;  %v3692_v23 = vsel %vm729_vm12, 1.0, %v6496_v19 }
 0x1f8   : > { %v1123_v32 = vpop.permute.xlu1 %1122  ;;  %v1128_v37 = vpop.permute.xlu0 %1127 }
 0x1f9   : > { %vm1160_vm9 = vcmp.eq.f32.partialorder %v5413_v34, %v1123_v32  ;;  %vm1161_vm7 = vcmp.eq.f32.partialorder %v5413_v34, %v1128_v37 }
 0x1fa   : > { %v3707_v45 = vsel %vm1160_vm9, 1.0, %v6496_v19  ;;  %v3708_v50 = vsel %vm1161_vm7, 1.0, %v6496_v19 }
 0x1fc   : > { %v809_v18 = vpop.permute.xlu1 %808  ;;  %v814_v55 = vpop.permute.xlu0 %813 }
 0x1fd   : > { %v854_v31 = vmul.f32 %v3689_v52, %v809_v18  ;;  %v855_v27 = vmul.f32 %v3690_v7, %v814_v55 }
 0x200   : > { %v1241_v1 = vpop.permute.xlu1 %1240  ;;  %v1246_v60 = vpop.permute.xlu0 %1245 }
 0x201   : > { %v1286_v62 = vmul.f32 %v3705_v36, %v1241_v1  ;;  %v1287_v33 = vmul.f32 %v3706_v35, %v1246_v60 }
 0x203   : > { %v1302_v26 = vadd.f32 %v1286_v62, %v854_v31  ;;  %v1303_v51 = vadd.f32 %v1287_v33, %v855_v27 }
 0x204   : > { %v1401_v17 = vpop.permute.xlu1 %1400  ;;  %v1406_v39 = vpop.permute.xlu0 %1405 }
 0x205   : > { %vm1446_vm6 = vcmp.eq.f32.partialorder %v5413_v34, %v1401_v17  ;;  %vm1447_vm4 = vcmp.eq.f32.partialorder %v5413_v34, %v1406_v39 }
 0x206   : > { %v3721_v48 = vsel %vm1446_vm6, 1.0, %v6496_v19  ;;  %v3722_v20 = vsel %vm1447_vm4, 1.0, %v6496_v19 }
 0x208   : > { %v819_v40 = vpop.permute.xlu1 %818  ;;  %v824_v24 = vpop.permute.xlu0 %823 }
 0x209   : > { %v856_v4 = vmul.f32 %v3691_v43, %v819_v40  ;;  %v857_v9 = vmul.f32 %v3692_v23, %v824_v24  ;;  %v4200_v43 = vld [vmem:[%s6317_s2 + $0x48] sm:$0xff]  }
 0x20a   : > { %3971 = vmatpush3.bf16.msra.mxu0 %v4200_v43 }
 0x20b   : > { %3984 = vmatprep.subr.bf16.mxu0 %v6496_v19 }
 0x20c   : > { %v1251_v49 = vpop.permute.xlu1 %1250  ;;  %v1256_v3 = vpop.permute.xlu0 %1255 }
 0x20d   : > { %v1288_v63 = vmul.f32 %v3707_v45, %v1251_v49  ;;  %v1289_v0 = vmul.f32 %v3708_v50, %v1256_v3 }
 0x20f   : > { %v1304_v25 = vadd.f32 %v1288_v63, %v856_v4  ;;  %v1305_v46 = vadd.f32 %v1289_v0, %v857_v9 }
 0x210   : > { %v1411_v47 = vpop.permute.xlu1 %1410  ;;  %v1416_v61 = vpop.permute.xlu0 %1415 }
 0x211   : > { %vm1448_vm10 = vcmp.eq.f32.partialorder %v5413_v34, %v1411_v47  ;;  %vm1449_vm2 = vcmp.eq.f32.partialorder %v5413_v34, %v1416_v61 }
 0x212   : > { %v3723_v2 = vsel %vm1448_vm10, 1.0, %v6496_v19  ;;  %v3724_v5 = vsel %vm1449_vm2, 1.0, %v6496_v19 }
 0x214   : > { %v1529_v44 = vpop.permute.xlu1 %1528  ;;  %v1534_v21 = vpop.permute.xlu0 %1533 }
 0x215   : > { %v1574_v14 = vmul.f32 %v3721_v48, %v1529_v44  ;;  %v1575_v16 = vmul.f32 %v3722_v20, %v1534_v21 }
 0x217   : > { %v1590_v37 = vadd.f32 %v1574_v14, %v1302_v26  ;;  %v1591_v18 = vadd.f32 %v1575_v16, %v1303_v51 }
 0x218   : > { %v1673_v58 = vpop.permute.xlu1 %1672  ;;  %v1678_v11 = vpop.permute.xlu0 %1677 }
 0x219   : > { %vm1718_vm1 = vcmp.eq.f32.partialorder %v5413_v34, %v1673_v58  ;;  %vm1719_vm8 = vcmp.eq.f32.partialorder %v5413_v34, %v1678_v11 }
 0x21a   : > { %v3737_v28 = vsel %vm1718_vm1, 1.0, %v6496_v19  ;;  %v3738_v15 = vsel %vm1719_vm8, 1.0, %v6496_v19 }
 0x21c   : > { %v1539_v6 = vpop.permute.xlu1 %1538  ;;  %v1544_v29 = vpop.permute.xlu0 %1543 }
 0x21d   : > { %v1576_v54 = vmul.f32 %v3723_v2, %v1539_v6  ;;  %v1577_v59 = vmul.f32 %v3724_v5, %v1544_v29 }
 0x21f   : > { %v1592_v55 = vadd.f32 %v1576_v54, %v1304_v25  ;;  %v1593_v1 = vadd.f32 %v1577_v59, %v1305_v46 }
 0x220   : > { %v1683_v42 = vpop.permute.xlu1 %1682  ;;  %v1688_v38 = vpop.permute.xlu0 %1687 }
 0x221   : > { %vm1720_vm0 = vcmp.eq.f32.partialorder %v5413_v34, %v1683_v42  ;;  %vm1721_vm5 = vcmp.eq.f32.partialorder %v5413_v34, %v1688_v38 }
 0x222   : > { %v3739_v30 = vsel %vm1720_vm0, 1.0, %v6496_v19  ;;  %v3740_v8 = vsel %vm1721_vm5, 1.0, %v6496_v19 }
 0x224   : > { %v1801_v12 = vpop.permute.xlu1 %1800  ;;  %v1806_v13 = vpop.permute.xlu0 %1805 }
 0x225   : > { %v1846_v22 = vmul.f32 %v3737_v28, %v1801_v12  ;;  %v1847_v53 = vmul.f32 %v3738_v15, %v1806_v13 }
 0x227   : > { %v1862_v17 = vadd.f32 %v1846_v22, %v1590_v37  ;;  %v1863_v39 = vadd.f32 %v1847_v53, %v1591_v18 }
 0x228   : > { %v1811_v57 = vpop.permute.xlu1 %1810  ;;  %v1816_v10 = vpop.permute.xlu0 %1815 }
 0x229   : > { %v1848_v56 = vmul.f32 %v3739_v30, %v1811_v57  ;;  %v1849_v32 = vmul.f32 %v3740_v8, %v1816_v10 }
 0x22b   : > { %v1864_v3 = vadd.f32 %v1848_v56, %v1592_v55  ;;  %v1865_v41 = vadd.f32 %v1849_v32, %v1593_v1 }
 0x22c   : > { %v4171_v60 = vpop.permute.xlu1 %4170  ;;  %v4176_v49 = vpop.permute.xlu0 %4175 }
 0x22d   : > { %v4173_v40 = vunpack.i.h.bf16 %v4171_v60  ;;  %v4172_v24 = vunpack.i.l.bf16 %v4171_v60  ;;  %v4178_v47 = vunpack.i.h.bf16 %v4176_v49  ;;  %v4177_v61 = vunpack.i.l.bf16 %v4176_v49 }
 0x22f   : > { %v2198_v44 = vmul.f32 %v4172_v24, %v1862_v17  ;;  %v2199_v21 = vmul.f32 %v4173_v40, %v1863_v39  ;;  %v2201_v58 = vmul.f32 %v4178_v47, %v1865_v41  ;;  %v2200_v11 = vmul.f32 %v4177_v61, %v1864_v3 }
 0x230   : > { %v701_v6 = vpop.permute.xlu1 %700  ;;  %v706_v36 = vpop.permute.xlu0 %705 }
 0x231   : > { %v2210_v29 = vpack.c.bf16 %v2199_v21, %v2198_v44  ;;  %v2211_v35 = vpack.c.bf16 %v2201_v58, %v2200_v11  ;;  %vm730_vm12 = vcmp.eq.f32.partialorder %v5413_v34, %v701_v6  ;;  %vm731_vm9 = vcmp.eq.f32.partialorder %v5413_v34, %v706_v36 }
 0x232   : > { %v3693_v15 = vsel %vm730_vm12, 1.0, %v6496_v19  ;;  %v3694_v57 = vsel %vm731_vm9, 1.0, %v6496_v19  ;;  %vm6671_vm12 = vcmask 130048  }
 0x233   : > { %3928 = vmatprep.mubr.msk.bf16.mxu0 %vm6669_vm14, %v2210_v29  ;;  %vm6672_vm9 = vmmov %vm6671_vm12 }
 0x234   : > { %v1133_v62 = vpop.permute.xlu1 %1132  ;;  %3929 = vmatmul.mubr.msk.bf16.gmra.mrb[8].mxu0 %vm6670_vm11, %v2211_v35  ;;  %v1138_v33 = vpop.permute.xlu0 %1137 }
 0x235   : > { %vm1162_vm13 = vcmp.eq.f32.partialorder %v5413_v34, %v1133_v62  ;;  %vm1163_vm3 = vcmp.eq.f32.partialorder %v5413_v34, %v1138_v33 }
 0x236   : > { %v3709_v5 = vsel %vm1162_vm13, 1.0, %v6496_v19  ;;  %v3710_v54 = vsel %vm1163_vm3, 1.0, %v6496_v19  ;;  %vm2422_vm3 = vcmask 261120  }
 0x238   : > { %v711_v52 = vpop.permute.xlu1 %710  ;;  %v716_v7 = vpop.permute.xlu0 %715 }
 0x239   : > { %vm732_vm7 = vcmp.eq.f32.partialorder %v5413_v34, %v711_v52  ;;  %vm733_vm6 = vcmp.eq.f32.partialorder %v5413_v34, %v716_v7 }
 0x23a   : > { %v3695_v10 = vsel %vm732_vm7, 1.0, %v6496_v19  ;;  %v3696_v25 = vsel %vm733_vm6, 1.0, %v6496_v19 }
 0x23c   : > { %v1143_v42 = vpop.permute.xlu1 %1142  ;;  %v1148_v31 = vpop.permute.xlu0 %1147 }
 0x23d   : > { %vm1164_vm4 = vcmp.eq.f32.partialorder %v5413_v34, %v1143_v42  ;;  %vm1165_vm10 = vcmp.eq.f32.partialorder %v5413_v34, %v1148_v31 }
 0x23e   : > { %v3711_v32 = vsel %vm1164_vm4, 1.0, %v6496_v19  ;;  %v3712_v37 = vsel %vm1165_vm10, 1.0, %v6496_v19 }
 0x240   : > { %v829_v27 = vpop.permute.xlu1 %828  ;;  %v834_v38 = vpop.permute.xlu0 %833 }
 0x241   : > { %v858_v53 = vmul.f32 %v3693_v15, %v829_v27  ;;  %v859_v30 = vmul.f32 %v3694_v57, %v834_v38  ;;  %v4193_v57 = vld [vmem:[%s6317_s2 + $0x8] sm:$0xff]  }
 0x244   : > { %v1261_v23 = vpop.permute.xlu1 %1260  ;;  %v1266_v26 = vpop.permute.xlu0 %1265 }
 0x245   : > { %v1290_v59 = vmul.f32 %v3709_v5, %v1261_v23  ;;  %v1291_v28 = vmul.f32 %v3710_v54, %v1266_v26 }
 0x247   : > { %v1306_v46 = vadd.f32 %v1290_v59, %v858_v53  ;;  %v1307_v56 = vadd.f32 %v1291_v28, %v859_v30  ;;  %v4195_v30 = vld [vmem:[%s6317_s2 + $0x28] sm:$0xff]  }
 0x248   : > { %v1421_v51 = vpop.permute.xlu1 %1420  ;;  %v1426_v45 = vpop.permute.xlu0 %1425 }
 0x249   : > { %vm1450_vm2 = vcmp.eq.f32.partialorder %v5413_v34, %v1421_v51  ;;  %vm1451_vm1 = vcmp.eq.f32.partialorder %v5413_v34, %v1426_v45 }
 0x24a   : > { %v3725_v18 = vsel %vm1450_vm2, 1.0, %v6496_v19  ;;  %v3726_v55 = vsel %vm1451_vm1, 1.0, %v6496_v19 }
 0x24c   : > { %v839_v50 = vpop.permute.xlu1 %838  ;;  %v844_v48 = vpop.permute.xlu0 %843 }
 0x24d   : > { %v860_v60 = vmul.f32 %v3695_v10, %v839_v50  ;;  %v861_v17 = vmul.f32 %v3696_v25, %v844_v48  ;;  %v4197_v25 = vld [vmem:[%s6317_s2 + $0x38] sm:$0xff]  }
 0x250   : > { %v1271_v20 = vpop.permute.xlu1 %1270  ;;  %v1276_v12 = vpop.permute.xlu0 %1275 }
 0x251   : > { %v1292_v40 = vmul.f32 %v3711_v32, %v1271_v20  ;;  %v1293_v24 = vmul.f32 %v3712_v37, %v1276_v12  ;;  %v4201_v32 = vld [vmem:[%s6317_s2 + $0x58] sm:$0xff]  }
 0x253   : > { %v1308_v33 = vadd.f32 %v1292_v40, %v860_v60  ;;  %v1309_v52 = vadd.f32 %v1293_v24, %v861_v17  ;;  %v4204_v24 = vld [vmem:[%s6317_s2 + $0x68] sm:$0xff]  }
 0x254   : > { %v1431_v4 = vpop.permute.xlu1 %1430  ;;  %v1436_v9 = vpop.permute.xlu0 %1435 }
 0x255   : > { %vm1452_vm8 = vcmp.eq.f32.partialorder %v5413_v34, %v1431_v4  ;;  %vm1453_vm0 = vcmp.eq.f32.partialorder %v5413_v34, %v1436_v9 }
 0x256   : > { %v3727_v41 = vsel %vm1452_vm8, 1.0, %v6496_v19  ;;  %v3728_v47 = vsel %vm1453_vm0, 1.0, %v6496_v19 }
 0x258   : > { %v1549_v13 = vpop.permute.xlu1 %1548  ;;  %v1554_v63 = vpop.permute.xlu0 %1553 }
 0x259   : > { %v1578_v49 = vmul.f32 %v3725_v18, %v1549_v13  ;;  %v1579_v3 = vmul.f32 %v3726_v55, %v1554_v63  ;;  %v4202_v55 = vld [vmem:[%s6317_s2 + $0x60] sm:$0xff]  }
 0x25b   : > { %v1595_v31 = vadd.f32 %v1579_v3, %v1307_v56  ;;  %v4206_v3 = vld [vmem:[%s6317_s2 + $0x80] sm:$0xff]  }
 0x25c   : > { %v1693_v0 = vpop.permute.xlu1 %1692  ;;  %v1698_v14 = vpop.permute.xlu0 %1697 }
 0x25d   : > { %vm1722_vm5 = vcmp.eq.f32.partialorder %v5413_v34, %v1693_v0  ;;  %vm1723_vm14 = vcmp.eq.f32.partialorder %v5413_v34, %v1698_v14  ;;  %v4192_v14 = vld [vmem:[%s6317_s2] sm:$0xff]  }
 0x25e   : > { %v3741_v21 = vsel %vm1722_vm5, 1.0, %v6496_v19  ;;  %v3742_v58 = vsel %vm1723_vm14, 1.0, %v6496_v19 }
 0x260   : > { %v1559_v16 = vpop.permute.xlu1 %1558  ;;  %v1564_v2 = vpop.permute.xlu0 %1563 }
 0x261   : > { %v1580_v61 = vmul.f32 %v3727_v41, %v1559_v16  ;;  %v1581_v44 = vmul.f32 %v3728_v47, %v1564_v2  ;;  %v4207_v47 = vld [vmem:[%s6317_s2 + $0x90] sm:$0xff]  }
 0x263   : > { %v1596_v38 = vadd.f32 %v1580_v61, %v1308_v33  ;;  %v1597_v43 = vadd.f32 %v1581_v44, %v1309_v52  ;;  %v4208_v44 = vld [vmem:[%s6317_s2 + $0x88] sm:$0xff]  }
 0x264   : > { %v1703_v22 = vpop.permute.xlu1 %1702  ;;  %v1708_v8 = vpop.permute.xlu0 %1707  ;;  %v4212_v52 = vld [vmem:[%s6317_s2 + $0xa8] sm:$0xff]  }
 0x265   : > { %vm1724_vm11 = vcmp.eq.f32.partialorder %v5413_v34, %v1703_v22  ;;  %vm1725_vm13 = vcmp.eq.f32.partialorder %v5413_v34, %v1708_v8  ;;  %v1594_v34 = vadd.f32 %v1578_v49, %v1306_v46  ;;  %v4194_v22 = vld [vmem:[%s6317_s2 + $0x20] sm:$0xff]   ;;  %v4196_v8 = vld [vmem:[%s6317_s2 + $0x30] sm:$0xff]   ;;  %v4205_v49 = vld [vmem:[%s6317_s2 + $0x78] sm:$0xff]  }
 0x266   : > { %v3743_v36 = vsel %vm1724_vm11, 1.0, %v6496_v19  ;;  %v3744_v35 = vsel %vm1725_vm13, 1.0, %v6496_v19  ;;  %v4199_v46 = vld [vmem:[%s6317_s2 + $0x50] sm:$0xff]  }
 0x268   : > { %v1821_v1 = vpop.permute.xlu1 %1820  ;;  %v1826_v39 = vpop.permute.xlu0 %1825 }
 0x269   : > { %v1850_v6 = vmul.f32 %v3741_v21, %v1821_v1  ;;  %v1851_v29 = vmul.f32 %v3742_v58, %v1826_v39  ;;  %v4203_v39 = vld [vmem:[%s6317_s2 + $0x70] sm:$0xff]   ;;  %v4209_v21 = vld [vmem:[%s6317_s2 + $0x98] sm:$0xff]  }
 0x26b   : > { %v1866_v51 = vadd.f32 %v1850_v6, %v1594_v34  ;;  %v1867_v45 = vadd.f32 %v1851_v29, %v1595_v31  ;;  %v4210_v6 = vld [vmem:[%s6317_s2 + $0xa0] sm:$0xff]   ;;  %v4215_v31 = vld [vmem:[%s6317_s2 + $0xd0] sm:$0xff]  }
 0x26c   : > { %v1831_v11 = vpop.permute.xlu1 %1830  ;;  %v1836_v62 = vpop.permute.xlu0 %1835 }
 0x26d   : > { %v1852_v7 = vmul.f32 %v3743_v36, %v1831_v11  ;;  %v1853_v42 = vmul.f32 %v3744_v35, %v1836_v62  ;;  %v4211_v62 = vld [vmem:[%s6317_s2 + $0xb0] sm:$0xff]  }
 0x26f   : > { %v3922_v27 = vpop.f32.mrb[0].mxu0  ;;  %v1868_v4 = vadd.f32 %v1852_v7, %v1596_v38  ;;  %v1869_v9 = vadd.f32 %v1853_v42, %v1597_v43  ;;  %v4213_v7 = vld [vmem:[%s6317_s2 + $0xb8] sm:$0xff]   ;;  %v4214_v42 = vld [vmem:[%s6317_s2 + $0xc0] sm:$0xff]   ;;  %v4216_v38 = vld [vmem:[%s6317_s2 + $0xc8] sm:$0xff]  }
 0x270   : > { %v4181_v23 = vpop.permute.xlu1 %4180  ;;  %v2281_v26 = vpop.f32.mrb[1].mxu0  ;;  %v2521_v10 = vpack.c.bf16 %v3922_v27, %v3922_v27  ;;  %v4217_v43 = vld [vmem:[%s6317_s2 + $0xd8] sm:$0xff]  }
 0x271   : > { %v4183_v50 = vunpack.i.h.bf16 %v4181_v23  ;;  %v4182_v48 = vunpack.i.l.bf16 %v4181_v23  ;;  %v4186_v20 = vpop.permute.xlu0 %4185  ;;  %v3923_v12 = vpop.f32.mrb[2].mxu0  ;;  %v2408_v53 = vpack.c.bf16 %v2281_v26, %v2281_v26 }
 0x272   : > { %v4188_v13 = vunpack.i.h.bf16 %v4186_v20  ;;  %v4187_v63 = vunpack.i.l.bf16 %v4186_v20  ;;  %v2284_v0 = vpop.f32.mrb[3].mxu0  ;;  %v2578_v56 = vpack.c.bf16 %v3923_v12, %v3923_v12  ;;  %v4218_v20 = vld [vmem:[%s6317_s2 + $0xe0] sm:$0xff]  }
 0x273   : > { %v2202_v16 = vmul.f32 %v4182_v48, %v1866_v51  ;;  %v2203_v2 = vmul.f32 %v4183_v50, %v1867_v45  ;;  %v2409_v5 = vpack.c.bf16 %v2284_v0, %v2284_v0 }
 0x274   : > { %v2205_v54 = vmul.f32 %v4188_v13, %v1869_v9  ;;  %v2204_v59 = vmul.f32 %v4187_v63, %v1868_v4  ;;  %v4219_v13 = vld [vmem:[%s6317_s2 + $0xf0] sm:$0xff]  }
 0x275   : > { %v2212_v28 = vpack.c.bf16 %v2203_v2, %v2202_v16  ;;  %3941 = vmatmul.mubr.msk.bf16.vlgmr.msra.gmra.mrb[0].mxu1 %vm2422_vm3, %v2409_v5 }
 0x276   : > { %v2213_v15 = vpack.c.bf16 %v2205_v54, %v2204_v59  ;;  %3945 = vmatpush3.bf16.msra.mxu1 %v4192_v14  ;;  %3948 = vmatprep.mubr.msk.bf16.mxu1 %vm4305_vm15, %v6496_v19  ;;  %v4220_v14 = vld [vmem:[%s6317_s2 + $0xe8] sm:$0xff]   ;;  %v4221_v54 = vld [vmem:[%s6317_s2 + $0xf8] sm:$0xff]  }
 0x277   : > { %3932 = vmatprep.mubr.msk.bf16.mxu0 %vm6671_vm12, %v2212_v28  ;;  %3946 = vmatprep.subr.bf16.mxu1 %v6496_v19 }
 0x278   : > { %3933 = vmatmul.mubr.msk.bf16.gmra.mrb[12].mxu0 %vm6672_vm9, %v2213_v15 }
 0x279   : > { %3972 = vmatprep.mubr.msk.bf16.mxu0 %vm4305_vm15, %v6496_v19 }
 0x27a   : > { %3947 = vmatpush3.bf16.msra.mxu1 %v4193_v57 }
 0x27b   : > { %3952 = vmatprep.subr.bf16.mxu1 %v6496_v19 }
 0x27d   : > { %3949 = vmatmul.mubr.msk.bf16.vlgmr.msra.gmra.mrb[4].mxu1 %vm2422_vm3, %v2408_v53 }
 0x27e   : > { %3953 = vmatpush3.bf16.msra.mxu1 %v4194_v22  ;;  %3956 = vmatprep.mubr.msk.bf16.mxu1 %vm4305_vm15, %v6496_v19 }
 0x27f   : > { %3954 = vmatprep.subr.bf16.mxu1 %v6496_v19 }
 0x282   : > { %3955 = vmatpush3.bf16.msra.mxu1 %v4195_v30 }
 0x283   : > { %3960 = vmatprep.subr.bf16.mxu1 %v6496_v19 }
 0x285   : > { %3957 = vmatmul.mubr.msk.bf16.vlgmr.msra.gmra.mrb[8].mxu1 %vm2422_vm3, %v2521_v10 }
 0x286   : > { %3961 = vmatpush3.bf16.msra.mxu1 %v4196_v8  ;;  %3964 = vmatprep.mubr.msk.bf16.mxu1 %vm4305_vm15, %v6496_v19 }
 0x287   : > { %3962 = vmatprep.subr.bf16.mxu1 %v6496_v19 }
 0x28a   : > { %3963 = vmatpush3.bf16.msra.mxu1 %v4197_v25 }
 0x28b   : > { %3976 = vmatprep.subr.bf16.mxu1 %v6496_v19 }
 0x28d   : > { %3965 = vmatmul.mubr.msk.bf16.vlgmr.msra.gmra.mrb[12].mxu1 %vm2422_vm3, %v2578_v56 }
 0x28e   : > { %3977 = vmatpush3.bf16.msra.mxu1 %v4199_v46  ;;  %3980 = vmatprep.mubr.msk.bf16.mxu1 %vm4305_vm15, %v6496_v19 }
 0x28f   : > { %3978 = vmatprep.subr.bf16.mxu1 %v6496_v19 }
 0x292   : > { %3979 = vmatpush3.bf16.msra.mxu1 %v4201_v32 }
 0x293   : > { %3992 = vmatprep.subr.bf16.mxu1 %v6496_v19 }
 0x2c3   : > { %v3926_v37 = vpop.f32.mrb[4].mxu0 }
 0x2c4   : > { %v2297_v18 = vpop.f32.mrb[5].mxu0  ;;  %v2749_v41 = vpack.c.bf16 %v3926_v37, %v3926_v37  ;;  %v4222_v37 = vld [vmem:[%s6319_s4] sm:$0xff]  }
 0x2c5   : > { %v2635_v1 = vpack.c.bf16 %v2297_v18, %v2297_v18  ;;  %v3927_v60 = vpop.f32.mrb[6].mxu0  ;;  %v4223_v18 = vld [vmem:[%s6319_s4 + $0x8] sm:$0xff]  }
 0x2c6   : > { %v2300_v17 = vpop.f32.mrb[7].mxu0  ;;  %v2806_v61 = vpack.c.bf16 %v3927_v60, %v3927_v60 }
 0x2c7   : > { %v2692_v40 = vpack.c.bf16 %v2300_v17, %v2300_v17  ;;  %3973 = vmatmul.mubr.msk.bf16.vlgmr.msra.gmra.mrb[16].mxu0 %vm2422_vm3, %v2635_v1 }
 0x2c8   : > { %3985 = vmatpush3.bf16.msra.mxu0 %v4202_v55  ;;  %3988 = vmatprep.mubr.msk.bf16.mxu0 %vm4305_vm15, %v6496_v19  ;;  %v4224_v55 = vld [vmem:[%s6319_s4 + $0x10] sm:$0xff]  }
 0x2c9   : > { %3981 = vmatmul.mubr.msk.bf16.vlgmr.msra.gmra.mrb[16].mxu1 %vm2422_vm3, %v2692_v40  ;;  %3986 = vmatprep.subr.bf16.mxu0 %v6496_v19 }
 0x2ca   : > { %3993 = vmatpush3.bf16.msra.mxu1 %v4203_v39  ;;  %3996 = vmatprep.mubr.msk.bf16.mxu1 %vm4305_vm15, %v6496_v19 }
 0x2cb   : > { %3994 = vmatprep.subr.bf16.mxu1 %v6496_v19 }
 0x2cc   : > { %3987 = vmatpush3.bf16.msra.mxu0 %v4204_v24 }
 0x2cd   : > { %4000 = vmatprep.subr.bf16.mxu0 %v6496_v19 }
 0x2ce   : > { %3995 = vmatpush3.bf16.msra.mxu1 %v4205_v49 }
 0x2cf   : > { %3989 = vmatmul.mubr.msk.bf16.vlgmr.msra.gmra.mrb[20].mxu0 %vm2422_vm3, %v2749_v41  ;;  %4008 = vmatprep.subr.bf16.mxu1 %v6496_v19 }
 0x2d0   : > { %4001 = vmatpush3.bf16.msra.mxu0 %v4206_v3  ;;  %4004 = vmatprep.mubr.msk.bf16.mxu0 %vm4305_vm15, %v6496_v19 }
 0x2d1   : > { %3997 = vmatmul.mubr.msk.bf16.vlgmr.msra.gmra.mrb[20].mxu1 %vm2422_vm3, %v2806_v61  ;;  %4002 = vmatprep.subr.bf16.mxu0 %v6496_v19  ;;  %v4225_v61 = vld [vmem:[%s6319_s4 + $0x18] sm:$0xff]  }
 0x2d2   : > { %4009 = vmatpush3.bf16.msra.mxu1 %v4207_v47  ;;  %4012 = vmatprep.mubr.msk.bf16.mxu1 %vm4305_vm15, %v6496_v19 }
 0x2d3   : > { %4010 = vmatprep.subr.bf16.mxu1 %v6496_v19 }
 0x2d4   : > { %4003 = vmatpush3.bf16.msra.mxu0 %v4208_v44 }
 0x2d5   : > { %4016 = vmatprep.subr.bf16.mxu0 %v6496_v19 }
 0x2d6   : > { %4011 = vmatpush3.bf16.msra.mxu1 %v4209_v21 }
 0x2d7   : > { %4024 = vmatprep.subr.bf16.mxu1 %v6496_v19 }
 0x307   : > { %v3930_v58 = vpop.f32.mrb[8].mxu0 }
 0x308   : > { %v2313_v11 = vpop.f32.mrb[9].mxu0  ;;  %v2977_v34 = vpack.c.bf16 %v3930_v58, %v3930_v58 }
 0x309   : > { %v2863_v29 = vpack.c.bf16 %v2313_v11, %v2313_v11  ;;  %v3931_v36 = vpop.f32.mrb[10].mxu0 }
 0x30a   : > { %v2316_v35 = vpop.f32.mrb[11].mxu0  ;;  %v3034_v27 = vpack.c.bf16 %v3931_v36, %v3931_v36 }
 0x30b   : > { %v2920_v33 = vpack.c.bf16 %v2316_v35, %v2316_v35  ;;  %4005 = vmatmul.mubr.msk.bf16.vlgmr.msra.gmra.mrb[24].mxu0 %vm2422_vm3, %v2863_v29 }
 0x30c   : > { %4017 = vmatpush3.bf16.msra.mxu0 %v4210_v6  ;;  %4020 = vmatprep.mubr.msk.bf16.mxu0 %vm4305_vm15, %v6496_v19 }
 0x30d   : > { %4013 = vmatmul.mubr.msk.bf16.vlgmr.msra.gmra.mrb[24].mxu1 %vm2422_vm3, %v2920_v33  ;;  %4018 = vmatprep.subr.bf16.mxu0 %v6496_v19 }
 0x30e   : > { %4025 = vmatpush3.bf16.msra.mxu1 %v4211_v62  ;;  %4028 = vmatprep.mubr.msk.bf16.mxu1 %vm4305_vm15, %v6496_v19  ;;  %v4226_v62 = vld [vmem:[%s6319_s4 + $0x20] sm:$0xff]  }
 0x30f   : > { %4026 = vmatprep.subr.bf16.mxu1 %v6496_v19 }
 0x310   : > { %4019 = vmatpush3.bf16.msra.mxu0 %v4212_v52 }
 0x311   : > { %4032 = vmatprep.subr.bf16.mxu0 %v6496_v19 }
 0x312   : > { %4027 = vmatpush3.bf16.msra.mxu1 %v4213_v7  ;;  %v4227_v7 = vld [vmem:[%s6319_s4 + $0x28] sm:$0xff]  }
 0x313   : > { %4021 = vmatmul.mubr.msk.bf16.vlgmr.msra.gmra.mrb[28].mxu0 %vm2422_vm3, %v2977_v34  ;;  %4040 = vmatprep.subr.bf16.mxu1 %v6496_v19  ;;  %v4229_v34 = vld [vmem:[%s6319_s4 + $0x38] sm:$0xff]  }
 0x314   : > { %4033 = vmatpush3.bf16.msra.mxu0 %v4214_v42  ;;  %4036 = vmatprep.mubr.msk.bf16.mxu0 %vm4305_vm15, %v6496_v19  ;;  %v4228_v42 = vld [vmem:[%s6319_s4 + $0x30] sm:$0xff]  }
 0x315   : > { %4029 = vmatmul.mubr.msk.bf16.vlgmr.msra.gmra.mrb[28].mxu1 %vm2422_vm3, %v3034_v27  ;;  %4034 = vmatprep.subr.bf16.mxu0 %v6496_v19  ;;  %v4231_v27 = vld [vmem:[%s6321_s6 + $0x8] sm:$0xff]  }
 0x316   : > { %4041 = vmatpush3.bf16.msra.mxu1 %v4215_v31  ;;  %4044 = vmatprep.mubr.msk.bf16.mxu1 %vm4305_vm15, %v6496_v19  ;;  %v4230_v31 = vld [vmem:[%s6321_s6] sm:$0xff]  }
 0x317   : > { %4042 = vmatprep.subr.bf16.mxu1 %v6496_v19 }
 0x318   : > { %4035 = vmatpush3.bf16.msra.mxu0 %v4216_v38  ;;  %v4232_v38 = vld [vmem:[%s6321_s6 + $0x10] sm:$0xff]  }
 0x319   : > { %4048 = vmatprep.subr.bf16.mxu0 %v6496_v19 }
 0x31a   : > { %4043 = vmatpush3.bf16.msra.mxu1 %v4217_v43  ;;  %v4233_v43 = vld [vmem:[%s6321_s6 + $0x18] sm:$0xff]  }
 0x31b   : > { %4056 = vmatprep.subr.bf16.mxu1 %v6496_v19 }
 0x348   : > { %v2460_v23 = vpop.f32.mrb[0].mxu1 }
 0x349   : > { %v3942_v26 = vpop.f32.mrb[1].mxu1 }
 0x34a   : > { %v2463_v51 = vpop.f32.mrb[2].mxu1  ;;  %v4235_v26 = vld [vmem:[%s6321_s6 + $0x28] sm:$0xff]  }
 0x34b   : > { %v3934_v45 = vpop.f32.mrb[12].mxu0  ;;  %v3943_v50 = vpop.f32.mrb[3].mxu1 }
 0x34c   : > { %v2329_v48 = vpop.f32.mrb[13].mxu0  ;;  %v3205_v28 = vpack.c.bf16 %v3934_v45, %v3934_v45 }
 0x34d   : > { %v3091_v12 = vpack.c.bf16 %v2329_v48, %v2329_v48  ;;  %v3935_v4 = vpop.f32.mrb[14].mxu0 }
 0x34e   : > { %v2332_v9 = vpop.f32.mrb[15].mxu0  ;;  %v3262_v15 = vpack.c.bf16 %v3935_v4, %v3935_v4 }
 0x34f   : > { %v3148_v63 = vpack.c.bf16 %v2332_v9, %v2332_v9  ;;  %4037 = vmatmul.mubr.msk.bf16.vlgmr.msra.gmra.mrb[32].mxu0 %vm2422_vm3, %v3091_v12 }
 0x350   : > { %4049 = vmatpush3.bf16.msra.mxu0 %v4218_v20  ;;  %v2515_v0 = vpop.f32.mrb[4].mxu1  ;;  %4052 = vmatprep.mubr.msk.bf16.mxu0 %vm4305_vm15, %v6496_v19 }
 0x351   : > { %v2516_v16 = vadd.f32 %v2515_v0, %v2460_v23  ;;  %v3950_v2 = vpop.f32.mrb[5].mxu1  ;;  %4045 = vmatmul.mubr.msk.bf16.vlgmr.msra.gmra.mrb[32].mxu1 %vm2422_vm3, %v3148_v63  ;;  %4050 = vmatprep.subr.bf16.mxu0 %v6496_v19  ;;  %v4234_v23 = vld [vmem:[%s6321_s6 + $0x20] sm:$0xff]  }
 0x352   : > { %4057 = vmatpush3.bf16.msra.mxu1 %v4219_v13  ;;  %v2518_v5 = vpop.f32.mrb[6].mxu1  ;;  %4060 = vmatprep.mubr.msk.bf16.mxu1 %vm4305_vm15, %v6496_v19 }
 0x353   : > { %v3951_v59 = vpop.f32.mrb[7].mxu1  ;;  %4058 = vmatprep.subr.bf16.mxu1 %v6496_v19 }
 0x354   : > { %4051 = vmatpush3.bf16.msra.mxu0 %v4220_v14 }
 0x355   : > { %4064 = vmatprep.subr.bf16.mxu0 %v6496_v19 }
 0x356   : > { %4059 = vmatpush3.bf16.msra.mxu1 %v4221_v54 }
 0x357   : > { %4053 = vmatmul.mubr.msk.bf16.vlgmr.msra.gmra.mrb[36].mxu0 %vm2422_vm3, %v3205_v28  ;;  %4084 = vmatprep.subr.bf16.mxu1 %v6496_v19 }
 0x358   : > { %v2571_v57 = vpop.f32.mrb[8].mxu1  ;;  %4080 = vmatprep.mubr.msk.bf16.mxu0 %vm4305_vm15, %v6496_v19  ;;  %4065 = vmatpush3.bf16.msra.mxu0 %v4222_v37 }
 0x359   : > { %v2577_v22 = vadd.f32 %v2571_v57, %v2516_v16  ;;  %v3958_v53 = vpop.f32.mrb[9].mxu1  ;;  %4061 = vmatmul.mubr.msk.bf16.vlgmr.msra.gmra.mrb[36].mxu1 %vm2422_vm3, %v3262_v15  ;;  %4066 = vmatprep.subr.bf16.mxu0 %v6496_v19 }
 0x35a   : > { %v2574_v30 = vpop.f32.mrb[10].mxu1  ;;  %4100 = vmatprep.mubr.msk.bf16.mxu1 %vm4305_vm15, %v6496_v19  ;;  %4085 = vmatpush3.bf16.msra.mxu1 %v4230_v31 }
 0x35b   : > { %v3959_v8 = vpop.f32.mrb[11].mxu1  ;;  %4086 = vmatprep.subr.bf16.mxu1 %v6496_v19 }
 0x35c   : > { %4067 = vmatpush3.bf16.msra.mxu0 %v4223_v18 }
 0x35d   : > { %4068 = vmatprep.subr.bf16.mxu0 %v6496_v19 }
 0x35e   : > { %4087 = vmatpush3.bf16.msra.mxu1 %v4231_v27 }
 0x35f   : > { %4088 = vmatprep.subr.bf16.mxu1 %v6496_v19 }
 0x360   : > { %v2628_v10 = vpop.f32.mrb[12].mxu1  ;;  %4069 = vmatpush3.bf16.msra.mxu0 %v4224_v55 }
 0x361   : > { %v2634_v25 = vadd.f32 %v2628_v10, %v2577_v22  ;;  %v3966_v46 = vpop.f32.mrb[13].mxu1  ;;  %4070 = vmatprep.subr.bf16.mxu0 %v6496_v19 }
 0x362   : > { %v2631_v56 = vpop.f32.mrb[14].mxu1  ;;  %4089 = vmatpush3.bf16.msra.mxu1 %v4232_v38 }
 0x363   : > { %v3967_v32 = vpop.f32.mrb[15].mxu1  ;;  %4090 = vmatprep.subr.bf16.mxu1 %v6496_v19 }
 0x364   : > { %4071 = vmatpush3.bf16.msra.mxu0 %v4225_v61 }
 0x365   : > { %4072 = vmatprep.subr.bf16.mxu0 %v6496_v19 }
 0x366   : > { %4091 = vmatpush3.bf16.msra.mxu1 %v4233_v43 }
 0x367   : > { %4092 = vmatprep.subr.bf16.mxu1 %v6496_v19 }
 0x368   : > { %4073 = vmatpush3.bf16.msra.mxu0 %v4226_v62 }
 0x369   : > { %4074 = vmatprep.subr.bf16.mxu0 %v6496_v19 }
 0x36a   : > { %4093 = vmatpush3.bf16.msra.mxu1 %v4234_v23 }
 0x36b   : > { %4094 = vmatprep.subr.bf16.mxu1 %v6496_v19 }
 0x36c   : > { %4075 = vmatpush3.bf16.msra.mxu0 %v4227_v7 }
 0x36d   : > { %4076 = vmatprep.subr.bf16.mxu0 %v6496_v19 }
 0x36e   : > { %4095 = vmatpush3.bf16.msra.mxu1 %v4235_v26 }
 0x36f   : > { %4096 = vmatprep.subr.bf16.mxu1 %v6496_v19 }
 0x370   : > { %4077 = vmatpush3.bf16.msra.mxu0 %v4228_v42 }
 0x371   : > { %4078 = vmatprep.subr.bf16.mxu0 %v6496_v19 }
 0x374   : > { %4079 = vmatpush3.bf16.msra.mxu0 %v4229_v34 }
 0x39a   : > { %v2685_v1 = vpop.f32.mrb[16].mxu0 }
 0x39b   : > { %v2691_v60 = vadd.f32 %v2685_v1, %v2634_v25  ;;  %v3974_v17 = vpop.f32.mrb[17].mxu0 }
 0x39c   : > { %v2688_v39 = vpop.f32.mrb[18].mxu0  ;;  %v2742_v40 = vpop.f32.mrb[16].mxu1 }
 0x39d   : > { %v2748_v24 = vadd.f32 %v2742_v40, %v2691_v60  ;;  %v3975_v49 = vpop.f32.mrb[19].mxu0  ;;  %v3982_v3 = vpop.f32.mrb[17].mxu1  ;;  %v3818_v39 = vld [vmem:[%s6318_s3] ss:$0 sm:$0xff] }
 0x39e   : > { %v2745_v41 = vpop.f32.mrb[18].mxu1 }
 0x39f   : > { %v3983_v47 = vpop.f32.mrb[19].mxu1 }
 0x3a2   : > { %v2799_v44 = vpop.f32.mrb[20].mxu0 }
 0x3a3   : > { %v2805_v21 = vadd.f32 %v2799_v44, %v2748_v24  ;;  %v3990_v58 = vpop.f32.mrb[21].mxu0 }
 0x3a4   : > { %v2802_v11 = vpop.f32.mrb[22].mxu0  ;;  %v2856_v6 = vpop.f32.mrb[20].mxu1  ;;  %v4237_v58 = vld [vmem:[%s6321_s6 + $0x38] sm:$0xff]  }
 0x3a5   : > { %v2862_v29 = vadd.f32 %v2856_v6, %v2805_v21  ;;  %v3991_v36 = vpop.f32.mrb[23].mxu0  ;;  %v3998_v35 = vpop.f32.mrb[21].mxu1  ;;  %v4236_v21 = vld [vmem:[%s6321_s6 + $0x30] sm:$0xff]   ;;  %v3819_v11 = vld [vmem:[%s6320_s5] ss:$0 sm:$0xff] }
 0x3a6   : > { %v2859_v33 = vpop.f32.mrb[22].mxu1  ;;  %4097 = vmatpush3.bf16.msra.mxu1 %v4236_v21 }
 0x3a7   : > { %v3999_v52 = vpop.f32.mrb[23].mxu1  ;;  %4098 = vmatprep.subr.bf16.mxu1 %v6496_v19 }
 0x3aa   : > { %4099 = vmatpush3.bf16.msra.mxu1 %v4237_v58 }
 0x3de   : > { %v2913_v51 = vpop.f32.mrb[24].mxu0 }
 0x3df   : > { %v2919_v45 = vadd.f32 %v2913_v51, %v2862_v29  ;;  %v4006_v50 = vpop.f32.mrb[25].mxu0 }
 0x3e0   : > { %v2916_v48 = vpop.f32.mrb[26].mxu0  ;;  %v2970_v20 = vpop.f32.mrb[24].mxu1 }
 0x3e1   : > { %v2976_v12 = vadd.f32 %v2970_v20, %v2919_v45  ;;  %v4007_v4 = vpop.f32.mrb[27].mxu0  ;;  %v4014_v9 = vpop.f32.mrb[25].mxu1 }
 0x3e2   : > { %v2973_v13 = vpop.f32.mrb[26].mxu1 }
 0x3e3   : > { %v4015_v63 = vpop.f32.mrb[27].mxu1 }
 0x3e6   : > { %v3027_v0 = vpop.f32.mrb[28].mxu0 }
 0x3e7   : > { %v3033_v14 = vadd.f32 %v3027_v0, %v2976_v12  ;;  %v4022_v16 = vpop.f32.mrb[29].mxu0 }
 0x3e8   : > { %v3030_v2 = vpop.f32.mrb[30].mxu0  ;;  %v3084_v5 = vpop.f32.mrb[28].mxu1 }
 0x3e9   : > { %v3090_v54 = vadd.f32 %v3084_v5, %v3033_v14  ;;  %v4023_v59 = vpop.f32.mrb[31].mxu0  ;;  %v4030_v28 = vpop.f32.mrb[29].mxu1 }
 0x3ea   : > { %v3087_v15 = vpop.f32.mrb[30].mxu1 }
 0x3eb   : > { %v4031_v57 = vpop.f32.mrb[31].mxu1 }
 0x422   : > { %v3141_v22 = vpop.f32.mrb[32].mxu0 }
 0x423   : > { %v3147_v53 = vadd.f32 %v3141_v22, %v3090_v54  ;;  %v4038_v30 = vpop.f32.mrb[33].mxu0 }
 0x424   : > { %v3144_v8 = vpop.f32.mrb[34].mxu0  ;;  %v3198_v10 = vpop.f32.mrb[32].mxu1 }
 0x425   : > { %v3204_v25 = vadd.f32 %v3198_v10, %v3147_v53  ;;  %v4039_v46 = vpop.f32.mrb[35].mxu0  ;;  %v4046_v56 = vpop.f32.mrb[33].mxu1 }
 0x426   : > { %v3201_v32 = vpop.f32.mrb[34].mxu1 }
 0x427   : > { %v4047_v37 = vpop.f32.mrb[35].mxu1 }
 0x42a   : > { %v3255_v18 = vpop.f32.mrb[36].mxu0 }
 0x42b   : > { %v3261_v55 = vadd.f32 %v3255_v18, %v3204_v25  ;;  %v4054_v1 = vpop.f32.mrb[37].mxu0 }
 0x42c   : > { %v3258_v60 = vpop.f32.mrb[38].mxu0  ;;  %v3312_v17 = vpop.f32.mrb[36].mxu1 }
 0x42d   : > { %v3318_v40 = vadd.f32 %v3312_v17, %v3261_v55  ;;  %v4055_v24 = vpop.f32.mrb[39].mxu0  ;;  %v4062_v49 = vpop.f32.mrb[37].mxu1 }
 0x42e   : > { %v3315_v3 = vpop.f32.mrb[38].mxu1 }
 0x42f   : > { %v3326_v41 = vadd.f32 %v3818_v39, %v3318_v40  ;;  %v4063_v47 = vpop.f32.mrb[39].mxu1 }
 0x431   : > { %v3327_v61 = vmax.f32 %v3326_v41, 0.0 }
 0x433   : > { %v3328_v44 = vpack.c.bf16 %v3327_v61, %v3327_v61 }
 0x435   : > { %4081 = vmatmul.mubr.bf16.vlgmr.msra.gmra.mrb[40].mxu0 %v3328_v44 }
 0x508   : > { %v3434_v6 = vpop.f32.mrb[40].mxu0 }
 0x509   : > { %v3435_v29 = vadd.f32 %v3819_v11, %v3434_v6  ;;  %v4082_v36 = vpop.f32.mrb[41].mxu0 }
 0x50a   : > { %v3437_v35 = vpop.f32.mrb[42].mxu0 }
 0x50b   : > { %v3440_v62 = vmax.f32 %v3435_v29, 0.0  ;;  %v4083_v33 = vpop.f32.mrb[43].mxu0 }
 0x50d   : > { %3441 = vst [vmem:[%s341_s22] sm:$0xff] %v3440_v62  ;;  %v3442_v19 = vpack.c.bf16 %v3440_v62, %v3440_v62 }
 0x50f   : > { %4101 = vmatmul.mubr.bf16.vlgmr.msra.gmra.mrb[40].mxu1 %v3442_v19 }
 0x510   : > { %4251 = shalt.err (!%p4248_p3)
}
 0x511   : > { %s4252_s13 = scalar_lea.hbm %s6271_s28, 128  ;;  %s4256_s27 = scalar_lea.hbm %s6323_s8, 256 }
 0x512   : > { %p4253_p4 = scmp.ne.s32.totalorder %s6271_s28, %s4252_s13  ;;  %p4257_p9 = scmp.lt.u32.totalorder %s6271_s28, %s6323_s8 }
 0x513   : > { %p4258_p10 = scmp.lt.u32.totalorder %s4256_s27, %s4252_s13  ;;  %p4260_p12 = scmp.lt.u32.totalorder %s4252_s13, %s6271_s28 }
 0x514   : > { %p4254_p7 = pnand %p4253_p4, %p4395_p5 }
 0x515   : > { %p4259_p11 = por %p4258_p10, %p4257_p9 }
 0x516   : > { %p4255_p8 = pneg %p4254_p7 }
 0x517   : > { %p4261_p13 = por %p4260_p12, %p4259_p11 }
 0x519   : > { %p4262_p0 = pnand %p4261_p13, %p4255_p8 }
 0x51b   : > { %4265 = shalt.err (!%p4262_p0)
}
 0x51c   : > { %4104 = dma.vmem_to_hbm [thread:$0]  (%p4395_p5), %s3574_s24, 128, %s6271_s28, %s3556_s14   ;;  %v3828_v52 = vld [vmem:[%s6322_s7] ss:$0 sm:$0xff] }
 0x51d   : > { %s6673_s16 = sshll.u32 %s4409_s21, 3 }
 0x51e   : > { %s361_s22 = scalar_lea.vmem %s6324_s9, %s6673_s16 }
 0x5e2   : > { %v3548_v7 = vpop.f32.mrb[40].mxu1 }
 0x5e3   : > { %v3549_v42 = vadd.f32 %v3828_v52, %v3548_v7  ;;  %v4102_v34 = vpop.f32.mrb[41].mxu1 }
 0x5e4   : > { %v3551_v31 = vpop.f32.mrb[42].mxu1 }
 0x5e5   : > { %3554 = vst [vmem:[%s361_s22] sm:$0xff] %v3549_v42  ;;  %v4103_v27 = vpop.f32.mrb[43].mxu1 }
 0x5e6 PF: > { %p4110_p5 = scmp.ge.s32.totalorder %s4300_s12, 2  ;;  %s3588_s19 = sand.u32 1, %s4288_s30  }
 0x5e7   : > { %s3589_s24 = scalar_lea.sflag [#allocation3], %s3588_s19 }
 0x5e8   : > { %p4107_p1 = pnand %p4110_p5, %p4399_p6 }
 0x5ea   : > { %4283 = dma.done.wait (!%p4107_p1), %s3589_s24, 128  }
 0x5eb   : > { %4285 = vsyncadd (!%p4107_p1), %s3589_s24, 4294967168  ;;  %p20_p2 = scmp.ge.s32.totalorder %s4382_s15, 4   ;;  %s6674_s30 = smov %s4292_s10 }
 0x5ec   : > { %s6675_s10 = smov %s4296_s11  ;;  %s6676_s11 = smov %s4393_s18 }
 0x5ed   : > { %s6677_s12 = smov %s4382_s15  ;;  %22 = sbr.rel (!%p20_p2) target bundleno = 5 (0x5), region = 102 }
 0x5f4   :  { %3601 = vsyncpa [#allocation3], 1 }
 0x5f5   :  { %3603 = vsyncpa [#allocation3 + $0x1], 1 }

</bundles_post_ra>
